<compile_context>
chip_gen: v5e
topology: v5e:2x2
jax: 0.10.0
libtpu: 0.0.40
codegen_flags: <defaults>
</compile_context>

<pallas_src>
import functools
import numpy as np

import jax
import jax.numpy as jnp
from jax.experimental import pallas as pl
from jax.experimental.pallas import tpu as pltpu


# ----------------------------------------------------------------------------
# Pallas kernel: tiled matmul, bf16 inputs, f32 accumulator, fused bias + act
# ----------------------------------------------------------------------------
def _mm_kernel(a_ref, b_ref, bias_ref, o_ref, acc_ref, *, act):
    @pl.when(pl.program_id(2) == 0)
    def _():
        acc_ref[...] = jnp.zeros_like(acc_ref)

    acc_ref[...] += jnp.dot(a_ref[...], b_ref[...],
                            preferred_element_type=jnp.float32)

    @pl.when(pl.program_id(2) == pl.num_programs(2) - 1)
    def _():
        r = acc_ref[...] + bias_ref[...]        # (tm,tn) + (1,tn) broadcast, f32
        if act == "relu":
            r = jnp.maximum(r, 0.0)
        o_ref[...] = r.astype(o_ref.dtype)


def _round_up(x, m):
    return ((x + m - 1) // m) * m


def _use_pallas(M, K, N):
    # Tiny GEMMs: padding M->8/128 or N->128 wastes the MXU and pays launch /
    # pipeline overhead larger than the compute; let XLA handle them.
    return M >= 16 and N >= 16 and K >= 16


def pallas_matmul(a, b, bias=None, act="none"):
    """C = act(A @ B + bias).  A:(M,K) B:(K,N) bias:(N,) -> (M,N) float32."""
    M, K = a.shape
    K2, N = b.shape
    assert K == K2

    if not _use_pallas(M, K, N):
        r = jnp.dot(a.astype(jnp.float32), b.astype(jnp.float32),
                    preferred_element_type=jnp.float32)
        if bias is not None:
            r = r + bias.astype(jnp.float32)[None, :]
        if act == "relu":
            r = jnp.maximum(r, 0.0)
        return r

    # bf16 MXU operands (f32 accumulation happens inside the kernel).
    a = a.astype(jnp.bfloat16)
    b = b.astype(jnp.bfloat16)

    # --- generation-aware tile selection ------------------------------------
    tm = 256 if M > 256 else _round_up(M, 8)
    tn = 256 if N > 256 else _round_up(N, 128)
    if K <= 2048:                      # whole-K in one step: no K padding, no
        tk, nk = K, 1                  # accumulator round-trips
    else:
        nk = -(-K // 2048)
        tk = _round_up(-(-K // nk), 128)
    Mp = _round_up(M, tm)
    Np = _round_up(N, tn)
    Kp = tk * nk
    # keep >=2 parallel blocks so both v7x TensorCores get work
    if (Mp // tm) * (Np // tn) < 2 and M >= 32:
        tm = _round_up(-(-M // 2), 8)
        Mp = _round_up(M, tm)

    # Pad only when strictly required (tiles above make A-padding rare).
    if (Mp, Kp) != (M, K):
        a = jnp.pad(a, ((0, Mp - M), (0, Kp - K)))
    if (Kp, Np) != (K, N):
        b = jnp.pad(b, ((0, Kp - K), (0, Np - N)))
    if bias is None:
        bias_p = jnp.zeros((1, Np), jnp.float32)
    else:
        bias_p = jnp.pad(bias.astype(jnp.float32)[None, :], ((0, 0), (0, Np - N)))

    grid = (Mp // tm, Np // tn, Kp // tk)
    flops = 2 * Mp * Np * Kp
    bytes_accessed = (Mp * Kp + Kp * Np) * 2 + Np * 4 + Mp * Np * 4

    out = pl.pallas_call(
        functools.partial(_mm_kernel, act=act),
        out_shape=jax.ShapeDtypeStruct((Mp, Np), jnp.float32),
        grid_spec=pltpu.PrefetchScalarGridSpec(
            num_scalar_prefetch=0,
            grid=grid,
            in_specs=[
                pl.BlockSpec((tm, tk), lambda i, j, k: (i, k)),
                pl.BlockSpec((tk, tn), lambda i, j, k: (k, j)),
                pl.BlockSpec((1, tn), lambda i, j, k: (0, j)),
            ],
            out_specs=pl.BlockSpec((tm, tn), lambda i, j, k: (i, j)),
            scratch_shapes=[pltpu.VMEM((tm, tn), jnp.float32)],
        ),
        compiler_params=pltpu.CompilerParams(
            dimension_semantics=("parallel", "parallel", "arbitrary"),
            vmem_limit_bytes=48 * 1024 * 1024),
        cost_estimate=pl.CostEstimate(
            flops=flops, transcendentals=0, bytes_accessed=bytes_accessed),
    )(a, b, bias_p)
    if (Mp, Np) != (M, N):
        out = out[:M, :N]
    return out


# ----------------------------------------------------------------------------
# Conv / pooling / resize helpers (im2col + Pallas matmul)
# ----------------------------------------------------------------------------
def conv2d(x, w2, kh, kw, stride=1, pad=0, bias=None, act="none"):
    """x: NHWC float32, w2: pre-flattened (kh*kw*cin, cout) weights."""
    Nb, H, W, Cin = x.shape
    K, Cout = w2.shape
    Ho = (H + 2 * pad - kh) // stride + 1
    Wo = (W + 2 * pad - kw) // stride + 1
    M = Nb * Ho * Wo
    # cast activations to bf16 only when the matmul runs on the Pallas/MXU path
    xc = x.astype(jnp.bfloat16) if _use_pallas(M, K, Cout) else x
    if kh == 1 and kw == 1 and stride == 1 and pad == 0:
        patches = xc.reshape(M, Cin)
    else:
        xp = jnp.pad(xc, ((0, 0), (pad, pad), (pad, pad), (0, 0)))
        cols = [xp[:, dy:dy + stride * Ho:stride, dx:dx + stride * Wo:stride, :]
                for dy in range(kh) for dx in range(kw)]
        patches = jnp.concatenate(cols, axis=-1).reshape(M, kh * kw * Cin)
    out = pallas_matmul(patches, w2, bias=bias, act=act)
    return out.reshape(Nb, Ho, Wo, Cout)


def maxpool_3x3_s2_p1(x):
    return jax.lax.reduce_window(
        x, -jnp.inf, jax.lax.max,
        window_dimensions=(1, 3, 3, 1),
        window_strides=(1, 2, 2, 1),
        padding=((0, 0), (1, 1), (1, 1), (0, 0)))


def bilinear_resize(x, oh, ow):
    """Bilinear resize, align_corners=True (matches the reference Upsample)."""
    N, H, W, C = x.shape
    if oh == H and ow == W:
        return x

    def coords(out_size, in_size):
        if out_size == 1 or in_size == 1:
            return jnp.zeros((out_size,), jnp.float32)
        return jnp.arange(out_size, dtype=jnp.float32) * (in_size - 1) / (out_size - 1)

    ys = coords(oh, H)
    xs = coords(ow, W)
    y0 = jnp.floor(ys).astype(jnp.int32)
    x0 = jnp.floor(xs).astype(jnp.int32)
    y1 = jnp.minimum(y0 + 1, H - 1)
    x1 = jnp.minimum(x0 + 1, W - 1)
    wy = (ys - y0.astype(jnp.float32))[None, :, None, None]
    wx = (xs - x0.astype(jnp.float32))[None, None, :, None]

    def g(yi, xi):
        return x[:, yi][:, :, xi]  # (N, oh, ow, C)

    top = g(y0, x0) * (1 - wx) + g(y0, x1) * wx
    bot = g(y1, x0) * (1 - wx) + g(y1, x1) * wx
    return top * (1 - wy) + bot * wy


# ----------------------------------------------------------------------------
# Deterministic parameter construction (BN folded into conv, eval mode)
# Conv weights are pre-flattened to (kh*kw*cin, cout) and pre-cast to bf16 at
# build time so there is no per-forward reshape/cast of the big weights.
# ----------------------------------------------------------------------------
_BN_EPS = 1e-5
_BN_SCALE = 1.0 / float(np.sqrt(1.0 + _BN_EPS))   # gamma=1, beta=0, mean=0, var=1


class ParamGen:
    def __init__(self, seed=0):
        self.key = jax.random.PRNGKey(seed)
        self.count = 0

    def _next(self):
        self.count += 1
        return jax.random.fold_in(self.key, self.count)

    def conv(self, kh, kw, cin, cout):
        std = (2.0 / (kh * kw * cin)) ** 0.5
        return jax.random.normal(self._next(), (kh, kw, cin, cout), jnp.float32) * std

    def bias(self, c):
        return jax.random.normal(self._next(), (c,), jnp.float32) * 0.01

    def linear(self, cin, cout):
        std = (1.0 / cin) ** 0.5
        w = jax.random.normal(self._next(), (cin, cout), jnp.float32) * std
        b = jax.random.normal(self._next(), (cout,), jnp.float32) * std
        return w, b


def conv_bn(pg, kh, kw, cin, cout, conv_bias=False):
    w = pg.conv(kh, kw, cin, cout) * _BN_SCALE
    b = (pg.bias(cout) if conv_bias else jnp.zeros((cout,), jnp.float32)) * _BN_SCALE
    return {"w": w.reshape(kh * kw * cin, cout).astype(jnp.bfloat16), "b": b}


def make_layer_params(pg, cin, cout, nblocks, stride):
    blocks = []
    for i in range(nblocks):
        s = stride if i == 0 else 1
        ci = cin if i == 0 else cout
        blk = {
            "conv1": conv_bn(pg, 3, 3, ci, cout),
            "conv2": conv_bn(pg, 3, 3, cout, cout),
        }
        if s != 1 or ci != cout:
            blk["down"] = conv_bn(pg, 1, 1, ci, cout)
        blocks.append(blk)
    return blocks


def make_decoder_params(pg, in_ch, skip_ch, out_ch):
    return {
        "conv1": conv_bn(pg, 3, 3, in_ch + skip_ch, out_ch, conv_bias=True),
        "conv2": conv_bn(pg, 3, 3, out_ch, out_ch, conv_bias=True),
        # tiny heads stay f32 (they run on the XLA fallback path)
        "ca_w1": pg.conv(1, 1, skip_ch, skip_ch // 16).reshape(skip_ch, skip_ch // 16),
        "ca_w2": pg.conv(1, 1, skip_ch // 16, skip_ch).reshape(skip_ch // 16, skip_ch),
        "sa_w": pg.conv(7, 7, 2, 1).reshape(7 * 7 * 2, 1),
    }


def build_params(in_channels, num_classes, seed=0):
    pg = ParamGen(seed)
    p = {}
    p["firstconv"] = conv_bn(pg, 7, 7, in_channels, 64)           # bias=False + bn1
    p["layer1"] = make_layer_params(pg, 64, 64, 3, 1)
    p["layer2"] = make_layer_params(pg, 64, 128, 4, 2)
    p["layer3"] = make_layer_params(pg, 128, 256, 6, 2)
    p["layer4"] = make_layer_params(pg, 256, 512, 3, 2)
    p["decoder4"] = make_decoder_params(pg, 512, 256, 256)
    p["decoder3"] = make_decoder_params(pg, 256, 128, 128)
    p["decoder2"] = make_decoder_params(pg, 128, 64, 64)
    p["decoder1"] = make_decoder_params(pg, 64, 64, 32)
    for name, cin in (("dsv4", 256), ("dsv3", 128), ("dsv2", 64),
                      ("dsv1", 32), ("final", 32)):
        p[name] = {"w": pg.conv(1, 1, cin, num_classes).reshape(cin, num_classes),
                   "b": pg.bias(num_classes)}
    p["cls_w"], p["cls_b"] = pg.linear(512, 5)
    p["router_w1"], p["router_b1"] = pg.linear(512, 128)
    p["router_w2"], p["router_b2"] = pg.linear(128, 2)
    return p


# ----------------------------------------------------------------------------
# Model forward (device side, fully jittable)
# ----------------------------------------------------------------------------
def basic_block(x, blk, stride):
    identity = x
    out = conv2d(x, blk["conv1"]["w"], 3, 3, stride=stride, pad=1,
                 bias=blk["conv1"]["b"], act="relu")
    out = conv2d(out, blk["conv2"]["w"], 3, 3, stride=1, pad=1,
                 bias=blk["conv2"]["b"], act="none")
    if "down" in blk:
        identity = conv2d(x, blk["down"]["w"], 1, 1, stride=stride, pad=0,
                          bias=blk["down"]["b"], act="none")
    return jax.nn.relu(out + identity)


def run_layer(x, blocks, stride):
    for i, blk in enumerate(blocks):
        x = basic_block(x, blk, stride if i == 0 else 1)
    return x


def channel_attention(skip, w1, w2):
    avg = jnp.mean(skip, axis=(1, 2))            # (N, C)
    mx = jnp.max(skip, axis=(1, 2))              # (N, C)

    def fc(v):
        h = pallas_matmul(v, w1, act="relu")     # M=batch -> XLA fallback path
        return pallas_matmul(h, w2)

    att = jax.nn.sigmoid(fc(avg) + fc(mx))       # (N, C)
    return skip * att[:, None, None, :]


def spatial_attention(skip, w):
    avg = jnp.mean(skip, axis=-1, keepdims=True)
    mx = jnp.max(skip, axis=-1, keepdims=True)
    cat = jnp.concatenate([avg, mx], axis=-1)
    att = jax.nn.sigmoid(conv2d(cat, w, 7, 7, stride=1, pad=3))
    return skip * att


def decoder_block(x, skip, p):
    N, H, W, _ = x.shape
    x = bilinear_resize(x, 2 * H, 2 * W)
    dy = skip.shape[1] - x.shape[1]
    dx = skip.shape[2] - x.shape[2]
    x = jnp.pad(x, ((0, 0), (dy // 2, dy - dy // 2),
                    (dx // 2, dx - dx // 2), (0, 0)))
    skip = channel_attention(skip, p["ca_w1"], p["ca_w2"])
    skip = spatial_attention(skip, p["sa_w"])
    x = jnp.concatenate([x, skip], axis=-1)
    x = conv2d(x, p["conv1"]["w"], 3, 3, stride=1, pad=1,
               bias=p["conv1"]["b"], act="relu")
    x = conv2d(x, p["conv2"]["w"], 3, 3, stride=1, pad=1,
               bias=p["conv2"]["b"], act="relu")
    return x


def device_forward(x_nchw, params):
    x = jnp.transpose(x_nchw, (0, 2, 3, 1)).astype(jnp.float32)   # NCHW -> NHWC
    in_h, in_w = x.shape[1], x.shape[2]

    # --- encoder (ResNet-34) ---
    x = conv2d(x, params["firstconv"]["w"], 7, 7, stride=2, pad=3,
               bias=params["firstconv"]["b"], act="relu")
    x_skip1 = x
    x = maxpool_3x3_s2_p1(x)
    x = run_layer(x, params["layer1"], 1); x_skip2 = x
    x = run_layer(x, params["layer2"], 2); x_skip3 = x
    x = run_layer(x, params["layer3"], 2); x_skip4 = x
    x4 = run_layer(x, params["layer4"], 2)

    # --- router (tiny GEMMs: XLA fallback) ---
    pooled = jnp.mean(x4, axis=(1, 2))                            # (N, 512)
    h = pallas_matmul(pooled, params["router_w1"], params["router_b1"], act="relu")
    routing_logits = pallas_matmul(h, params["router_w2"], params["router_b2"])
    routing_weights = jax.nn.softmax(routing_logits, axis=-1)
    topk_idx = jnp.argmax(routing_weights, axis=-1)[:, None]      # (N, 1)

    # --- decoder ---
    x = decoder_block(x4, x_skip4, params["decoder4"]); d4 = x
    x = decoder_block(x, x_skip3, params["decoder3"]); d3 = x
    x = decoder_block(x, x_skip2, params["decoder2"]); d2 = x
    x = decoder_block(x, x_skip1, params["decoder1"]); d1 = x

    final = conv2d(x, params["final"]["w"], 1, 1, bias=params["final"]["b"])
    final = bilinear_resize(final, in_h, in_w)
    p4 = bilinear_resize(conv2d(d4, params["dsv4"]["w"], 1, 1, bias=params["dsv4"]["b"]), in_h, in_w)
    p3 = bilinear_resize(conv2d(d3, params["dsv3"]["w"], 1, 1, bias=params["dsv3"]["b"]), in_h, in_w)
    p2 = bilinear_resize(conv2d(d2, params["dsv2"]["w"], 1, 1, bias=params["dsv2"]["b"]), in_h, in_w)
    p1 = bilinear_resize(conv2d(d1, params["dsv1"]["w"], 1, 1, bias=params["dsv1"]["b"]), in_h, in_w)

    # --- classifier head ---
    class_outputs = jax.nn.softmax(
        pallas_matmul(pooled, params["cls_w"], params["cls_b"]), axis=-1)

    to_nchw = lambda t: jnp.transpose(t, (0, 3, 1, 2))
    return {
        "routing_weights": routing_weights,
        "topk_idx": topk_idx,
        "class_outputs": class_outputs,
        "p1": to_nchw(p1), "p2": to_nchw(p2), "p3": to_nchw(p3), "p4": to_nchw(p4),
        "final": to_nchw(final),
    }


_forward_jit = jax.jit(device_forward)


def resunet_forward(x_nchw, params):
    dev = _forward_jit(x_nchw, params)
    class_outputs = dev["class_outputs"]
    p1n, p2n, p3n, p4n, fn = dev["p1"], dev["p2"], dev["p3"], dev["p4"], dev["final"]
    topk_idx = dev["topk_idx"]

    # Per-sample MoE routing (mirrors the PyTorch Python loop).  The single
    # host sync happens only AFTER the whole jitted forward is dispatched.
    idx_host = np.asarray(jax.device_get(topk_idx))
    classification_final, segmentation_final = [], []
    for i in range(x_nchw.shape[0]):
        if idx_host[i, 0] == 0:
            classification_final.append(class_outputs[i:i + 1])
            segmentation_final.append(None)
        else:
            classification_final.append(None)
            segmentation_final.append(
                [p4n[i:i + 1], p3n[i:i + 1], p2n[i:i + 1], p1n[i:i + 1], fn[i:i + 1]])

    # eval-mode output dict (module in eval / inference)
    return {
        "segmentation": segmentation_final,
        "classification": classification_final,
        "routing_weights": dev["routing_weights"],
        "active_expert": topk_idx,
        "only_classification": class_outputs,
    }


# ----------------------------------------------------------------------------
if __name__ == "__main__":
    IN_CHANNELS = 4
    NUM_CLASSES = 3
    key = jax.random.PRNGKey(0)
    x = jax.random.normal(key, (2, IN_CHANNELS, 32, 32), jnp.float32)

    params = build_params(IN_CHANNELS, NUM_CLASSES, seed=0)
    out = resunet_forward(x, params)

    jax.block_until_ready(out["routing_weights"])
    jax.block_until_ready(out["active_expert"])
    jax.block_until_ready(out["only_classification"])
    for s in out["segmentation"]:
        if s is not None:
            for t in s:
                jax.block_until_ready(t)
    for c in out["classification"]:
        if c is not None:
            jax.block_until_ready(c)

    print("KERNEL_OK")
</pallas_src>

<mosaic_0001>
module attributes {stable_mosaic.version = 11 : i64} {
  func.func @_mm_kernel(%arg0: i32, %arg1: i32, %arg2: i32, %arg3: memref<256x196xbf16, #tpu.memory_space<vmem>>, %arg4: memref<196x128xbf16, #tpu.memory_space<vmem>>, %arg5: memref<1x128xf32, #tpu.memory_space<vmem>>, %arg6: memref<256x128xf32, #tpu.memory_space<vmem>>, %arg7: memref<256x128xf32, #tpu.memory_space<vmem>>) attributes {dimension_semantics = [#tpu.dimension_semantics<parallel>, #tpu.dimension_semantics<parallel>, #tpu.dimension_semantics<arbitrary>], iteration_bounds = array<i64: 2, 1, 1>, scalar_prefetch = 0 : i64, scratch_operands = 1 : i64, tpu.core_type = #tpu.core_type<tc>, window_params = [{transform_indices = @transform_0, window_bounds = array<i64: 256, 196>}, {transform_indices = @transform_1, window_bounds = array<i64: 196, 128>}, {transform_indices = @transform_2, window_bounds = array<i64: 1, 128>}, {transform_indices = @transform_3, window_bounds = array<i64: 256, 128>}]} {
    %c0_i32 = arith.constant 0 : i32
    %0 = arith.cmpi eq, %arg2, %c0_i32 : i32
    %1 = arith.extui %0 : i1 to i32
    %c0_i32_0 = arith.constant 0 : i32
    %2 = arith.cmpi ne, %1, %c0_i32_0 : i32
    scf.if %2 {
      %cst_10 = arith.constant 0.000000e+00 : f32
      %12 = vector.broadcast %cst_10 : f32 to vector<256x128xf32>
      %c0_11 = arith.constant 0 : index
      %c0_12 = arith.constant 0 : index
      %13 = vector.load %arg7[%c0_11, %c0_12] : memref<256x128xf32, #tpu.memory_space<vmem>>, vector<256x128xf32>
      tpu.vector_store %arg7[%c0_11, %c0_12], %12 {strides = array<i32>} : memref<256x128xf32, #tpu.memory_space<vmem>>, vector<256x128xf32>,
    } else {
    }
    %c0 = arith.constant 0 : index
    %c0_1 = arith.constant 0 : index
    %3 = vector.load %arg7[%c0, %c0_1] : memref<256x128xf32, #tpu.memory_space<vmem>>, vector<256x128xf32>
    %c0_2 = arith.constant 0 : index
    %c0_3 = arith.constant 0 : index
    %4 = vector.load %arg3[%c0_2, %c0_3] : memref<256x196xbf16, #tpu.memory_space<vmem>>, vector<256x196xbf16>
    %c0_4 = arith.constant 0 : index
    %c0_5 = arith.constant 0 : index
    %5 = vector.load %arg4[%c0_4, %c0_5] : memref<196x128xbf16, #tpu.memory_space<vmem>>, vector<196x128xbf16>
    %cst = arith.constant dense<0.000000e+00> : vector<256x128xf32>
    %6 = tpu.matmul %4, %5, %cst {dimension_numbers = #tpu.dot_dimension_numbers<[1], [0], [0], [1], [0, 0, 1, 1], [], []>} : vector<256x196xbf16>, vector<196x128xbf16>, vector<256x128xf32> -> vector<256x128xf32>
    %7 = arith.addf %3, %6 : vector<256x128xf32>
    %c0_6 = arith.constant 0 : index
    %c0_7 = arith.constant 0 : index
    %8 = vector.load %arg7[%c0_6, %c0_7] : memref<256x128xf32, #tpu.memory_space<vmem>>, vector<256x128xf32>
    tpu.vector_store %arg7[%c0_6, %c0_7], %7 {strides = array<i32>} : memref<256x128xf32, #tpu.memory_space<vmem>>, vector<256x128xf32>,
    %c0_i32_8 = arith.constant 0 : i32
    %9 = arith.cmpi eq, %arg2, %c0_i32_8 : i32
    %10 = arith.extui %9 : i1 to i32
    %c0_i32_9 = arith.constant 0 : i32
    %11 = arith.cmpi ne, %10, %c0_i32_9 : i32
    scf.if %11 {
      %c0_10 = arith.constant 0 : index
      %c0_11 = arith.constant 0 : index
      %12 = vector.load %arg7[%c0_10, %c0_11] : memref<256x128xf32, #tpu.memory_space<vmem>>, vector<256x128xf32>
      %c0_12 = arith.constant 0 : index
      %c0_13 = arith.constant 0 : index
      %13 = vector.load %arg5[%c0_12, %c0_13] : memref<1x128xf32, #tpu.memory_space<vmem>>, vector<1x128xf32>
      %14 = vector.broadcast %13 : vector<1x128xf32> to vector<256x128xf32>
      %15 = arith.addf %12, %14 : vector<256x128xf32>
      %cst_14 = arith.constant 0.000000e+00 : f32
      %16 = vector.broadcast %cst_14 : f32 to vector<256x128xf32>
      %17 = arith.maximumf %15, %16 : vector<256x128xf32>
      %c0_15 = arith.constant 0 : index
      %c0_16 = arith.constant 0 : index
      %18 = vector.load %arg6[%c0_15, %c0_16] : memref<256x128xf32, #tpu.memory_space<vmem>>, vector<256x128xf32>
      tpu.vector_store %arg6[%c0_15, %c0_16], %17 {strides = array<i32>} : memref<256x128xf32, #tpu.memory_space<vmem>>, vector<256x128xf32>,
    } else {
    }
    return
  }
  func.func @transform_0(%arg0: i32, %arg1: i32, %arg2: i32) -> (i32, i32) {
    %c0_i32 = arith.constant 0 : i32
    return %arg0, %arg2 : i32, i32
  }
  func.func @transform_1(%arg0: i32, %arg1: i32, %arg2: i32) -> (i32, i32) {
    %c0_i32 = arith.constant 0 : i32
    return %arg2, %arg1 : i32, i32
  }
  func.func @transform_2(%arg0: i32, %arg1: i32, %arg2: i32) -> (i32, i32) {
    %c0_i32 = arith.constant 0 : i32
    %c0_i32_0 = arith.constant 0 : i32
    return %c0_i32, %arg1 : i32, i32
  }
  func.func @transform_3(%arg0: i32, %arg1: i32, %arg2: i32) -> (i32, i32) {
    %c0_i32 = arith.constant 0 : i32
    return %arg0, %arg1 : i32, i32
  }
}

module attributes {stable_mosaic.version = 11 : i64} {
  func.func @_mm_kernel(%arg0: i32, %arg1: i32, %arg2: i32, %arg3: memref<64x576xbf16, #tpu.memory_space<vmem>>, %arg4: memref<576x128xbf16, #tpu.memory_space<vmem>>, %arg5: memref<1x128xf32, #tpu.memory_space<vmem>>, %arg6: memref<64x128xf32, #tpu.memory_space<vmem>>, %arg7: memref<64x128xf32, #tpu.memory_space<vmem>>) attributes {dimension_semantics = [#tpu.dimension_semantics<parallel>, #tpu.dimension_semantics<parallel>, #tpu.dimension_semantics<arbitrary>], iteration_bounds = array<i64: 2, 1, 1>, scalar_prefetch = 0 : i64, scratch_operands = 1 : i64, tpu.core_type = #tpu.core_type<tc>, window_params = [{transform_indices = @transform_0, window_bounds = array<i64: 64, 576>}, {transform_indices = @transform_1, window_bounds = array<i64: 576, 128>}, {transform_indices = @transform_2, window_bounds = array<i64: 1, 128>}, {transform_indices = @transform_3, window_bounds = array<i64: 64, 128>}]} {
    %c0_i32 = arith.constant 0 : i32
    %0 = arith.cmpi eq, %arg2, %c0_i32 : i32
    %1 = arith.extui %0 : i1 to i32
    %c0_i32_0 = arith.constant 0 : i32
    %2 = arith.cmpi ne, %1, %c0_i32_0 : i32
    scf.if %2 {
      %cst_10 = arith.constant 0.000000e+00 : f32
      %12 = vector.broadcast %cst_10 : f32 to vector<64x128xf32>
      %c0_11 = arith.constant 0 : index
      %c0_12 = arith.constant 0 : index
      %13 = vector.load %arg7[%c0_11, %c0_12] : memref<64x128xf32, #tpu.memory_space<vmem>>, vector<64x128xf32>
      tpu.vector_store %arg7[%c0_11, %c0_12], %12 {strides = array<i32>} : memref<64x128xf32, #tpu.memory_space<vmem>>, vector<64x128xf32>,
    } else {
    }
    %c0 = arith.constant 0 : index
    %c0_1 = arith.constant 0 : index
    %3 = vector.load %arg7[%c0, %c0_1] : memref<64x128xf32, #tpu.memory_space<vmem>>, vector<64x128xf32>
    %c0_2 = arith.constant 0 : index
    %c0_3 = arith.constant 0 : index
    %4 = vector.load %arg3[%c0_2, %c0_3] : memref<64x576xbf16, #tpu.memory_space<vmem>>, vector<64x576xbf16>
    %c0_4 = arith.constant 0 : index
    %c0_5 = arith.constant 0 : index
    %5 = vector.load %arg4[%c0_4, %c0_5] : memref<576x128xbf16, #tpu.memory_space<vmem>>, vector<576x128xbf16>
    %cst = arith.constant dense<0.000000e+00> : vector<64x128xf32>
    %6 = tpu.matmul %4, %5, %cst {dimension_numbers = #tpu.dot_dimension_numbers<[1], [0], [0], [1], [0, 0, 1, 1], [], []>} : vector<64x576xbf16>, vector<576x128xbf16>, vector<64x128xf32> -> vector<64x128xf32>
    %7 = arith.addf %3, %6 : vector<64x128xf32>
    %c0_6 = arith.constant 0 : index
    %c0_7 = arith.constant 0 : index
    %8 = vector.load %arg7[%c0_6, %c0_7] : memref<64x128xf32, #tpu.memory_space<vmem>>, vector<64x128xf32>
    tpu.vector_store %arg7[%c0_6, %c0_7], %7 {strides = array<i32>} : memref<64x128xf32, #tpu.memory_space<vmem>>, vector<64x128xf32>,
    %c0_i32_8 = arith.constant 0 : i32
    %9 = arith.cmpi eq, %arg2, %c0_i32_8 : i32
    %10 = arith.extui %9 : i1 to i32
    %c0_i32_9 = arith.constant 0 : i32
    %11 = arith.cmpi ne, %10, %c0_i32_9 : i32
    scf.if %11 {
      %c0_10 = arith.constant 0 : index
      %c0_11 = arith.constant 0 : index
      %12 = vector.load %arg7[%c0_10, %c0_11] : memref<64x128xf32, #tpu.memory_space<vmem>>, vector<64x128xf32>
      %c0_12 = arith.constant 0 : index
      %c0_13 = arith.constant 0 : index
      %13 = vector.load %arg5[%c0_12, %c0_13] : memref<1x128xf32, #tpu.memory_space<vmem>>, vector<1x128xf32>
      %14 = vector.broadcast %13 : vector<1x128xf32> to vector<64x128xf32>
      %15 = arith.addf %12, %14 : vector<64x128xf32>
      %c0_14 = arith.constant 0 : index
      %c0_15 = arith.constant 0 : index
      %16 = vector.load %arg6[%c0_14, %c0_15] : memref<64x128xf32, #tpu.memory_space<vmem>>, vector<64x128xf32>
      tpu.vector_store %arg6[%c0_14, %c0_15], %15 {strides = array<i32>} : memref<64x128xf32, #tpu.memory_space<vmem>>, vector<64x128xf32>,
    } else {
    }
    return
  }
  func.func @transform_0(%arg0: i32, %arg1: i32, %arg2: i32) -> (i32, i32) {
    %c0_i32 = arith.constant 0 : i32
    return %arg0, %arg2 : i32, i32
  }
  func.func @transform_1(%arg0: i32, %arg1: i32, %arg2: i32) -> (i32, i32) {
    %c0_i32 = arith.constant 0 : i32
    return %arg2, %arg1 : i32, i32
  }
  func.func @transform_2(%arg0: i32, %arg1: i32, %arg2: i32) -> (i32, i32) {
    %c0_i32 = arith.constant 0 : i32
    %c0_i32_0 = arith.constant 0 : i32
    return %c0_i32, %arg1 : i32, i32
  }
  func.func @transform_3(%arg0: i32, %arg1: i32, %arg2: i32) -> (i32, i32) {
    %c0_i32 = arith.constant 0 : i32
    return %arg0, %arg1 : i32, i32
  }
}

module attributes {stable_mosaic.version = 11 : i64} {
  func.func @_mm_kernel(%arg0: i32, %arg1: i32, %arg2: i32, %arg3: memref<64x576xbf16, #tpu.memory_space<vmem>>, %arg4: memref<576x128xbf16, #tpu.memory_space<vmem>>, %arg5: memref<1x128xf32, #tpu.memory_space<vmem>>, %arg6: memref<64x128xf32, #tpu.memory_space<vmem>>, %arg7: memref<64x128xf32, #tpu.memory_space<vmem>>) attributes {dimension_semantics = [#tpu.dimension_semantics<parallel>, #tpu.dimension_semantics<parallel>, #tpu.dimension_semantics<arbitrary>], iteration_bounds = array<i64: 2, 1, 1>, scalar_prefetch = 0 : i64, scratch_operands = 1 : i64, tpu.core_type = #tpu.core_type<tc>, window_params = [{transform_indices = @transform_0, window_bounds = array<i64: 64, 576>}, {transform_indices = @transform_1, window_bounds = array<i64: 576, 128>}, {transform_indices = @transform_2, window_bounds = array<i64: 1, 128>}, {transform_indices = @transform_3, window_bounds = array<i64: 64, 128>}]} {
    %c0_i32 = arith.constant 0 : i32
    %0 = arith.cmpi eq, %arg2, %c0_i32 : i32
    %1 = arith.extui %0 : i1 to i32
    %c0_i32_0 = arith.constant 0 : i32
    %2 = arith.cmpi ne, %1, %c0_i32_0 : i32
    scf.if %2 {
      %cst_10 = arith.constant 0.000000e+00 : f32
      %12 = vector.broadcast %cst_10 : f32 to vector<64x128xf32>
      %c0_11 = arith.constant 0 : index
      %c0_12 = arith.constant 0 : index
      %13 = vector.load %arg7[%c0_11, %c0_12] : memref<64x128xf32, #tpu.memory_space<vmem>>, vector<64x128xf32>
      tpu.vector_store %arg7[%c0_11, %c0_12], %12 {strides = array<i32>} : memref<64x128xf32, #tpu.memory_space<vmem>>, vector<64x128xf32>,
    } else {
    }
    %c0 = arith.constant 0 : index
    %c0_1 = arith.constant 0 : index
    %3 = vector.load %arg7[%c0, %c0_1] : memref<64x128xf32, #tpu.memory_space<vmem>>, vector<64x128xf32>
    %c0_2 = arith.constant 0 : index
    %c0_3 = arith.constant 0 : index
    %4 = vector.load %arg3[%c0_2, %c0_3] : memref<64x576xbf16, #tpu.memory_space<vmem>>, vector<64x576xbf16>
    %c0_4 = arith.constant 0 : index
    %c0_5 = arith.constant 0 : index
    %5 = vector.load %arg4[%c0_4, %c0_5] : memref<576x128xbf16, #tpu.memory_space<vmem>>, vector<576x128xbf16>
    %cst = arith.constant dense<0.000000e+00> : vector<64x128xf32>
    %6 = tpu.matmul %4, %5, %cst {dimension_numbers = #tpu.dot_dimension_numbers<[1], [0], [0], [1], [0, 0, 1, 1], [], []>} : vector<64x576xbf16>, vector<576x128xbf16>, vector<64x128xf32> -> vector<64x128xf32>
    %7 = arith.addf %3, %6 : vector<64x128xf32>
    %c0_6 = arith.constant 0 : index
    %c0_7 = arith.constant 0 : index
    %8 = vector.load %arg7[%c0_6, %c0_7] : memref<64x128xf32, #tpu.memory_space<vmem>>, vector<64x128xf32>
    tpu.vector_store %arg7[%c0_6, %c0_7], %7 {strides = array<i32>} : memref<64x128xf32, #tpu.memory_space<vmem>>, vector<64x128xf32>,
    %c0_i32_8 = arith.constant 0 : i32
    %9 = arith.cmpi eq, %arg2, %c0_i32_8 : i32
    %10 = arith.extui %9 : i1 to i32
    %c0_i32_9 = arith.constant 0 : i32
    %11 = arith.cmpi ne, %10, %c0_i32_9 : i32
    scf.if %11 {
      %c0_10 = arith.constant 0 : index
      %c0_11 = arith.constant 0 : index
      %12 = vector.load %arg7[%c0_10, %c0_11] : memref<64x128xf32, #tpu.memory_space<vmem>>, vector<64x128xf32>
      %c0_12 = arith.constant 0 : index
      %c0_13 = arith.constant 0 : index
      %13 = vector.load %arg5[%c0_12, %c0_13] : memref<1x128xf32, #tpu.memory_space<vmem>>, vector<1x128xf32>
      %14 = vector.broadcast %13 : vector<1x128xf32> to vector<64x128xf32>
      %15 = arith.addf %12, %14 : vector<64x128xf32>
      %cst_14 = arith.constant 0.000000e+00 : f32
      %16 = vector.broadcast %cst_14 : f32 to vector<64x128xf32>
      %17 = arith.maximumf %15, %16 : vector<64x128xf32>
      %c0_15 = arith.constant 0 : index
      %c0_16 = arith.constant 0 : index
      %18 = vector.load %arg6[%c0_15, %c0_16] : memref<64x128xf32, #tpu.memory_space<vmem>>, vector<64x128xf32>
      tpu.vector_store %arg6[%c0_15, %c0_16], %17 {strides = array<i32>} : memref<64x128xf32, #tpu.memory_space<vmem>>, vector<64x128xf32>,
    } else {
    }
    return
  }
  func.func @transform_0(%arg0: i32, %arg1: i32, %arg2: i32) -> (i32, i32) {
    %c0_i32 = arith.constant 0 : i32
    return %arg0, %arg2 : i32, i32
  }
  func.func @transform_1(%arg0: i32, %arg1: i32, %arg2: i32) -> (i32, i32) {
    %c0_i32 = arith.constant 0 : i32
    return %arg2, %arg1 : i32, i32
  }
  func.func @transform_2(%arg0: i32, %arg1: i32, %arg2: i32) -> (i32, i32) {
    %c0_i32 = arith.constant 0 : i32
    %c0_i32_0 = arith.constant 0 : i32
    return %c0_i32, %arg1 : i32, i32
  }
  func.func @transform_3(%arg0: i32, %arg1: i32, %arg2: i32) -> (i32, i32) {
    %c0_i32 = arith.constant 0 : i32
    return %arg0, %arg1 : i32, i32
  }
}

module attributes {stable_mosaic.version = 11 : i64} {
  func.func @_mm_kernel(%arg0: i32, %arg1: i32, %arg2: i32, %arg3: memref<16x576xbf16, #tpu.memory_space<vmem>>, %arg4: memref<576x128xbf16, #tpu.memory_space<vmem>>, %arg5: memref<1x128xf32, #tpu.memory_space<vmem>>, %arg6: memref<16x128xf32, #tpu.memory_space<vmem>>, %arg7: memref<16x128xf32, #tpu.memory_space<vmem>>) attributes {dimension_semantics = [#tpu.dimension_semantics<parallel>, #tpu.dimension_semantics<parallel>, #tpu.dimension_semantics<arbitrary>], iteration_bounds = array<i64: 2, 1, 1>, scalar_prefetch = 0 : i64, scratch_operands = 1 : i64, tpu.core_type = #tpu.core_type<tc>, window_params = [{transform_indices = @transform_0, window_bounds = array<i64: 16, 576>}, {transform_indices = @transform_1, window_bounds = array<i64: 576, 128>}, {transform_indices = @transform_2, window_bounds = array<i64: 1, 128>}, {transform_indices = @transform_3, window_bounds = array<i64: 16, 128>}]} {
    %c0_i32 = arith.constant 0 : i32
    %0 = arith.cmpi eq, %arg2, %c0_i32 : i32
    %1 = arith.extui %0 : i1 to i32
    %c0_i32_0 = arith.constant 0 : i32
    %2 = arith.cmpi ne, %1, %c0_i32_0 : i32
    scf.if %2 {
      %cst_10 = arith.constant 0.000000e+00 : f32
      %12 = vector.broadcast %cst_10 : f32 to vector<16x128xf32>
      %c0_11 = arith.constant 0 : index
      %c0_12 = arith.constant 0 : index
      %13 = vector.load %arg7[%c0_11, %c0_12] : memref<16x128xf32, #tpu.memory_space<vmem>>, vector<16x128xf32>
      tpu.vector_store %arg7[%c0_11, %c0_12], %12 {strides = array<i32>} : memref<16x128xf32, #tpu.memory_space<vmem>>, vector<16x128xf32>,
    } else {
    }
    %c0 = arith.constant 0 : index
    %c0_1 = arith.constant 0 : index
    %3 = vector.load %arg7[%c0, %c0_1] : memref<16x128xf32, #tpu.memory_space<vmem>>, vector<16x128xf32>
    %c0_2 = arith.constant 0 : index
    %c0_3 = arith.constant 0 : index
    %4 = vector.load %arg3[%c0_2, %c0_3] : memref<16x576xbf16, #tpu.memory_space<vmem>>, vector<16x576xbf16>
    %c0_4 = arith.constant 0 : index
    %c0_5 = arith.constant 0 : index
    %5 = vector.load %arg4[%c0_4, %c0_5] : memref<576x128xbf16, #tpu.memory_space<vmem>>, vector<576x128xbf16>
    %cst = arith.constant dense<0.000000e+00> : vector<16x128xf32>
    %6 = tpu.matmul %4, %5, %cst {dimension_numbers = #tpu.dot_dimension_numbers<[1], [0], [0], [1], [0, 0, 1, 1], [], []>} : vector<16x576xbf16>, vector<576x128xbf16>, vector<16x128xf32> -> vector<16x128xf32>
    %7 = arith.addf %3, %6 : vector<16x128xf32>
    %c0_6 = arith.constant 0 : index
    %c0_7 = arith.constant 0 : index
    %8 = vector.load %arg7[%c0_6, %c0_7] : memref<16x128xf32, #tpu.memory_space<vmem>>, vector<16x128xf32>
    tpu.vector_store %arg7[%c0_6, %c0_7], %7 {strides = array<i32>} : memref<16x128xf32, #tpu.memory_space<vmem>>, vector<16x128xf32>,
    %c0_i32_8 = arith.constant 0 : i32
    %9 = arith.cmpi eq, %arg2, %c0_i32_8 : i32
    %10 = arith.extui %9 : i1 to i32
    %c0_i32_9 = arith.constant 0 : i32
    %11 = arith.cmpi ne, %10, %c0_i32_9 : i32
    scf.if %11 {
      %c0_10 = arith.constant 0 : index
      %c0_11 = arith.constant 0 : index
      %12 = vector.load %arg7[%c0_10, %c0_11] : memref<16x128xf32, #tpu.memory_space<vmem>>, vector<16x128xf32>
      %c0_12 = arith.constant 0 : index
      %c0_13 = arith.constant 0 : index
      %13 = vector.load %arg5[%c0_12, %c0_13] : memref<1x128xf32, #tpu.memory_space<vmem>>, vector<1x128xf32>
      %14 = vector.broadcast %13 : vector<1x128xf32> to vector<16x128xf32>
      %15 = arith.addf %12, %14 : vector<16x128xf32>
      %cst_14 = arith.constant 0.000000e+00 : f32
      %16 = vector.broadcast %cst_14 : f32 to vector<16x128xf32>
      %17 = arith.maximumf %15, %16 : vector<16x128xf32>
      %c0_15 = arith.constant 0 : index
      %c0_16 = arith.constant 0 : index
      %18 = vector.load %arg6[%c0_15, %c0_16] : memref<16x128xf32, #tpu.memory_space<vmem>>, vector<16x128xf32>
      tpu.vector_store %arg6[%c0_15, %c0_16], %17 {strides = array<i32>} : memref<16x128xf32, #tpu.memory_space<vmem>>, vector<16x128xf32>,
    } else {
    }
    return
  }
  func.func @transform_0(%arg0: i32, %arg1: i32, %arg2: i32) -> (i32, i32) {
    %c0_i32 = arith.constant 0 : i32
    return %arg0, %arg2 : i32, i32
  }
  func.func @transform_1(%arg0: i32, %arg1: i32, %arg2: i32) -> (i32, i32) {
    %c0_i32 = arith.constant 0 : i32
    return %arg2, %arg1 : i32, i32
  }
  func.func @transform_2(%arg0: i32, %arg1: i32, %arg2: i32) -> (i32, i32) {
    %c0_i32 = arith.constant 0 : i32
    %c0_i32_0 = arith.constant 0 : i32
    return %c0_i32, %arg1 : i32, i32
  }
  func.func @transform_3(%arg0: i32, %arg1: i32, %arg2: i32) -> (i32, i32) {
    %c0_i32 = arith.constant 0 : i32
    return %arg0, %arg1 : i32, i32
  }
}

module attributes {stable_mosaic.version = 11 : i64} {
  func.func @_mm_kernel(%arg0: i32, %arg1: i32, %arg2: i32, %arg3: memref<16x64xbf16, #tpu.memory_space<vmem>>, %arg4: memref<64x128xbf16, #tpu.memory_space<vmem>>, %arg5: memref<1x128xf32, #tpu.memory_space<vmem>>, %arg6: memref<16x128xf32, #tpu.memory_space<vmem>>, %arg7: memref<16x128xf32, #tpu.memory_space<vmem>>) attributes {dimension_semantics = [#tpu.dimension_semantics<parallel>, #tpu.dimension_semantics<parallel>, #tpu.dimension_semantics<arbitrary>], iteration_bounds = array<i64: 2, 1, 1>, scalar_prefetch = 0 : i64, scratch_operands = 1 : i64, tpu.core_type = #tpu.core_type<tc>, window_params = [{transform_indices = @transform_0, window_bounds = array<i64: 16, 64>}, {transform_indices = @transform_1, window_bounds = array<i64: 64, 128>}, {transform_indices = @transform_2, window_bounds = array<i64: 1, 128>}, {transform_indices = @transform_3, window_bounds = array<i64: 16, 128>}]} {
    %c0_i32 = arith.constant 0 : i32
    %0 = arith.cmpi eq, %arg2, %c0_i32 : i32
    %1 = arith.extui %0 : i1 to i32
    %c0_i32_0 = arith.constant 0 : i32
    %2 = arith.cmpi ne, %1, %c0_i32_0 : i32
    scf.if %2 {
      %cst_10 = arith.constant 0.000000e+00 : f32
      %12 = vector.broadcast %cst_10 : f32 to vector<16x128xf32>
      %c0_11 = arith.constant 0 : index
      %c0_12 = arith.constant 0 : index
      %13 = vector.load %arg7[%c0_11, %c0_12] : memref<16x128xf32, #tpu.memory_space<vmem>>, vector<16x128xf32>
      tpu.vector_store %arg7[%c0_11, %c0_12], %12 {strides = array<i32>} : memref<16x128xf32, #tpu.memory_space<vmem>>, vector<16x128xf32>,
    } else {
    }
    %c0 = arith.constant 0 : index
    %c0_1 = arith.constant 0 : index
    %3 = vector.load %arg7[%c0, %c0_1] : memref<16x128xf32, #tpu.memory_space<vmem>>, vector<16x128xf32>
    %c0_2 = arith.constant 0 : index
    %c0_3 = arith.constant 0 : index
    %4 = vector.load %arg3[%c0_2, %c0_3] : memref<16x64xbf16, #tpu.memory_space<vmem>>, vector<16x64xbf16>
    %c0_4 = arith.constant 0 : index
    %c0_5 = arith.constant 0 : index
    %5 = vector.load %arg4[%c0_4, %c0_5] : memref<64x128xbf16, #tpu.memory_space<vmem>>, vector<64x128xbf16>
    %cst = arith.constant dense<0.000000e+00> : vector<16x128xf32>
    %6 = tpu.matmul %4, %5, %cst {dimension_numbers = #tpu.dot_dimension_numbers<[1], [0], [0], [1], [0, 0, 1, 1], [], []>} : vector<16x64xbf16>, vector<64x128xbf16>, vector<16x128xf32> -> vector<16x128xf32>
    %7 = arith.addf %3, %6 : vector<16x128xf32>
    %c0_6 = arith.constant 0 : index
    %c0_7 = arith.constant 0 : index
    %8 = vector.load %arg7[%c0_6, %c0_7] : memref<16x128xf32, #tpu.memory_space<vmem>>, vector<16x128xf32>
    tpu.vector_store %arg7[%c0_6, %c0_7], %7 {strides = array<i32>} : memref<16x128xf32, #tpu.memory_space<vmem>>, vector<16x128xf32>,
    %c0_i32_8 = arith.constant 0 : i32
    %9 = arith.cmpi eq, %arg2, %c0_i32_8 : i32
    %10 = arith.extui %9 : i1 to i32
    %c0_i32_9 = arith.constant 0 : i32
    %11 = arith.cmpi ne, %10, %c0_i32_9 : i32
    scf.if %11 {
      %c0_10 = arith.constant 0 : index
      %c0_11 = arith.constant 0 : index
      %12 = vector.load %arg7[%c0_10, %c0_11] : memref<16x128xf32, #tpu.memory_space<vmem>>, vector<16x128xf32>
      %c0_12 = arith.constant 0 : index
      %c0_13 = arith.constant 0 : index
      %13 = vector.load %arg5[%c0_12, %c0_13] : memref<1x128xf32, #tpu.memory_space<vmem>>, vector<1x128xf32>
      %14 = vector.broadcast %13 : vector<1x128xf32> to vector<16x128xf32>
      %15 = arith.addf %12, %14 : vector<16x128xf32>
      %c0_14 = arith.constant 0 : index
      %c0_15 = arith.constant 0 : index
      %16 = vector.load %arg6[%c0_14, %c0_15] : memref<16x128xf32, #tpu.memory_space<vmem>>, vector<16x128xf32>
      tpu.vector_store %arg6[%c0_14, %c0_15], %15 {strides = array<i32>} : memref<16x128xf32, #tpu.memory_space<vmem>>, vector<16x128xf32>,
    } else {
    }
    return
  }
  func.func @transform_0(%arg0: i32, %arg1: i32, %arg2: i32) -> (i32, i32) {
    %c0_i32 = arith.constant 0 : i32
    return %arg0, %arg2 : i32, i32
  }
  func.func @transform_1(%arg0: i32, %arg1: i32, %arg2: i32) -> (i32, i32) {
    %c0_i32 = arith.constant 0 : i32
    return %arg2, %arg1 : i32, i32
  }
  func.func @transform_2(%arg0: i32, %arg1: i32, %arg2: i32) -> (i32, i32) {
    %c0_i32 = arith.constant 0 : i32
    %c0_i32_0 = arith.constant 0 : i32
    return %c0_i32, %arg1 : i32, i32
  }
  func.func @transform_3(%arg0: i32, %arg1: i32, %arg2: i32) -> (i32, i32) {
    %c0_i32 = arith.constant 0 : i32
    return %arg0, %arg1 : i32, i32
  }
}

module attributes {stable_mosaic.version = 11 : i64} {
  func.func @_mm_kernel(%arg0: i32, %arg1: i32, %arg2: i32, %arg3: memref<16x1152xbf16, #tpu.memory_space<vmem>>, %arg4: memref<1152x128xbf16, #tpu.memory_space<vmem>>, %arg5: memref<1x128xf32, #tpu.memory_space<vmem>>, %arg6: memref<16x128xf32, #tpu.memory_space<vmem>>, %arg7: memref<16x128xf32, #tpu.memory_space<vmem>>) attributes {dimension_semantics = [#tpu.dimension_semantics<parallel>, #tpu.dimension_semantics<parallel>, #tpu.dimension_semantics<arbitrary>], iteration_bounds = array<i64: 2, 1, 1>, scalar_prefetch = 0 : i64, scratch_operands = 1 : i64, tpu.core_type = #tpu.core_type<tc>, window_params = [{transform_indices = @transform_0, window_bounds = array<i64: 16, 1152>}, {transform_indices = @transform_1, window_bounds = array<i64: 1152, 128>}, {transform_indices = @transform_2, window_bounds = array<i64: 1, 128>}, {transform_indices = @transform_3, window_bounds = array<i64: 16, 128>}]} {
    %c0_i32 = arith.constant 0 : i32
    %0 = arith.cmpi eq, %arg2, %c0_i32 : i32
    %1 = arith.extui %0 : i1 to i32
    %c0_i32_0 = arith.constant 0 : i32
    %2 = arith.cmpi ne, %1, %c0_i32_0 : i32
    scf.if %2 {
      %cst_10 = arith.constant 0.000000e+00 : f32
      %12 = vector.broadcast %cst_10 : f32 to vector<16x128xf32>
      %c0_11 = arith.constant 0 : index
      %c0_12 = arith.constant 0 : index
      %13 = vector.load %arg7[%c0_11, %c0_12] : memref<16x128xf32, #tpu.memory_space<vmem>>, vector<16x128xf32>
      tpu.vector_store %arg7[%c0_11, %c0_12], %12 {strides = array<i32>} : memref<16x128xf32, #tpu.memory_space<vmem>>, vector<16x128xf32>,
    } else {
    }
    %c0 = arith.constant 0 : index
    %c0_1 = arith.constant 0 : index
    %3 = vector.load %arg7[%c0, %c0_1] : memref<16x128xf32, #tpu.memory_space<vmem>>, vector<16x128xf32>
    %c0_2 = arith.constant 0 : index
    %c0_3 = arith.constant 0 : index
    %4 = vector.load %arg3[%c0_2, %c0_3] : memref<16x1152xbf16, #tpu.memory_space<vmem>>, vector<16x1152xbf16>
    %c0_4 = arith.constant 0 : index
    %c0_5 = arith.constant 0 : index
    %5 = vector.load %arg4[%c0_4, %c0_5] : memref<1152x128xbf16, #tpu.memory_space<vmem>>, vector<1152x128xbf16>
    %cst = arith.constant dense<0.000000e+00> : vector<16x128xf32>
    %6 = tpu.matmul %4, %5, %cst {dimension_numbers = #tpu.dot_dimension_numbers<[1], [0], [0], [1], [0, 0, 1, 1], [], []>} : vector<16x1152xbf16>, vector<1152x128xbf16>, vector<16x128xf32> -> vector<16x128xf32>
    %7 = arith.addf %3, %6 : vector<16x128xf32>
    %c0_6 = arith.constant 0 : index
    %c0_7 = arith.constant 0 : index
    %8 = vector.load %arg7[%c0_6, %c0_7] : memref<16x128xf32, #tpu.memory_space<vmem>>, vector<16x128xf32>
    tpu.vector_store %arg7[%c0_6, %c0_7], %7 {strides = array<i32>} : memref<16x128xf32, #tpu.memory_space<vmem>>, vector<16x128xf32>,
    %c0_i32_8 = arith.constant 0 : i32
    %9 = arith.cmpi eq, %arg2, %c0_i32_8 : i32
    %10 = arith.extui %9 : i1 to i32
    %c0_i32_9 = arith.constant 0 : i32
    %11 = arith.cmpi ne, %10, %c0_i32_9 : i32
    scf.if %11 {
      %c0_10 = arith.constant 0 : index
      %c0_11 = arith.constant 0 : index
      %12 = vector.load %arg7[%c0_10, %c0_11] : memref<16x128xf32, #tpu.memory_space<vmem>>, vector<16x128xf32>
      %c0_12 = arith.constant 0 : index
      %c0_13 = arith.constant 0 : index
      %13 = vector.load %arg5[%c0_12, %c0_13] : memref<1x128xf32, #tpu.memory_space<vmem>>, vector<1x128xf32>
      %14 = vector.broadcast %13 : vector<1x128xf32> to vector<16x128xf32>
      %15 = arith.addf %12, %14 : vector<16x128xf32>
      %c0_14 = arith.constant 0 : index
      %c0_15 = arith.constant 0 : index
      %16 = vector.load %arg6[%c0_14, %c0_15] : memref<16x128xf32, #tpu.memory_space<vmem>>, vector<16x128xf32>
      tpu.vector_store %arg6[%c0_14, %c0_15], %15 {strides = array<i32>} : memref<16x128xf32, #tpu.memory_space<vmem>>, vector<16x128xf32>,
    } else {
    }
    return
  }
  func.func @transform_0(%arg0: i32, %arg1: i32, %arg2: i32) -> (i32, i32) {
    %c0_i32 = arith.constant 0 : i32
    return %arg0, %arg2 : i32, i32
  }
  func.func @transform_1(%arg0: i32, %arg1: i32, %arg2: i32) -> (i32, i32) {
    %c0_i32 = arith.constant 0 : i32
    return %arg2, %arg1 : i32, i32
  }
  func.func @transform_2(%arg0: i32, %arg1: i32, %arg2: i32) -> (i32, i32) {
    %c0_i32 = arith.constant 0 : i32
    %c0_i32_0 = arith.constant 0 : i32
    return %c0_i32, %arg1 : i32, i32
  }
  func.func @transform_3(%arg0: i32, %arg1: i32, %arg2: i32) -> (i32, i32) {
    %c0_i32 = arith.constant 0 : i32
    return %arg0, %arg1 : i32, i32
  }
}

module attributes {stable_mosaic.version = 11 : i64} {
  func.func @_mm_kernel(%arg0: i32, %arg1: i32, %arg2: i32, %arg3: memref<16x1152xbf16, #tpu.memory_space<vmem>>, %arg4: memref<1152x128xbf16, #tpu.memory_space<vmem>>, %arg5: memref<1x128xf32, #tpu.memory_space<vmem>>, %arg6: memref<16x128xf32, #tpu.memory_space<vmem>>, %arg7: memref<16x128xf32, #tpu.memory_space<vmem>>) attributes {dimension_semantics = [#tpu.dimension_semantics<parallel>, #tpu.dimension_semantics<parallel>, #tpu.dimension_semantics<arbitrary>], iteration_bounds = array<i64: 2, 1, 1>, scalar_prefetch = 0 : i64, scratch_operands = 1 : i64, tpu.core_type = #tpu.core_type<tc>, window_params = [{transform_indices = @transform_0, window_bounds = array<i64: 16, 1152>}, {transform_indices = @transform_1, window_bounds = array<i64: 1152, 128>}, {transform_indices = @transform_2, window_bounds = array<i64: 1, 128>}, {transform_indices = @transform_3, window_bounds = array<i64: 16, 128>}]} {
    %c0_i32 = arith.constant 0 : i32
    %0 = arith.cmpi eq, %arg2, %c0_i32 : i32
    %1 = arith.extui %0 : i1 to i32
    %c0_i32_0 = arith.constant 0 : i32
    %2 = arith.cmpi ne, %1, %c0_i32_0 : i32
    scf.if %2 {
      %cst_10 = arith.constant 0.000000e+00 : f32
      %12 = vector.broadcast %cst_10 : f32 to vector<16x128xf32>
      %c0_11 = arith.constant 0 : index
      %c0_12 = arith.constant 0 : index
      %13 = vector.load %arg7[%c0_11, %c0_12] : memref<16x128xf32, #tpu.memory_space<vmem>>, vector<16x128xf32>
      tpu.vector_store %arg7[%c0_11, %c0_12], %12 {strides = array<i32>} : memref<16x128xf32, #tpu.memory_space<vmem>>, vector<16x128xf32>,
    } else {
    }
    %c0 = arith.constant 0 : index
    %c0_1 = arith.constant 0 : index
    %3 = vector.load %arg7[%c0, %c0_1] : memref<16x128xf32, #tpu.memory_space<vmem>>, vector<16x128xf32>
    %c0_2 = arith.constant 0 : index
    %c0_3 = arith.constant 0 : index
    %4 = vector.load %arg3[%c0_2, %c0_3] : memref<16x1152xbf16, #tpu.memory_space<vmem>>, vector<16x1152xbf16>
    %c0_4 = arith.constant 0 : index
    %c0_5 = arith.constant 0 : index
    %5 = vector.load %arg4[%c0_4, %c0_5] : memref<1152x128xbf16, #tpu.memory_space<vmem>>, vector<1152x128xbf16>
    %cst = arith.constant dense<0.000000e+00> : vector<16x128xf32>
    %6 = tpu.matmul %4, %5, %cst {dimension_numbers = #tpu.dot_dimension_numbers<[1], [0], [0], [1], [0, 0, 1, 1], [], []>} : vector<16x1152xbf16>, vector<1152x128xbf16>, vector<16x128xf32> -> vector<16x128xf32>
    %7 = arith.addf %3, %6 : vector<16x128xf32>
    %c0_6 = arith.constant 0 : index
    %c0_7 = arith.constant 0 : index
    %8 = vector.load %arg7[%c0_6, %c0_7] : memref<16x128xf32, #tpu.memory_space<vmem>>, vector<16x128xf32>
    tpu.vector_store %arg7[%c0_6, %c0_7], %7 {strides = array<i32>} : memref<16x128xf32, #tpu.memory_space<vmem>>, vector<16x128xf32>,
    %c0_i32_8 = arith.constant 0 : i32
    %9 = arith.cmpi eq, %arg2, %c0_i32_8 : i32
    %10 = arith.extui %9 : i1 to i32
    %c0_i32_9 = arith.constant 0 : i32
    %11 = arith.cmpi ne, %10, %c0_i32_9 : i32
    scf.if %11 {
      %c0_10 = arith.constant 0 : index
      %c0_11 = arith.constant 0 : index
      %12 = vector.load %arg7[%c0_10, %c0_11] : memref<16x128xf32, #tpu.memory_space<vmem>>, vector<16x128xf32>
      %c0_12 = arith.constant 0 : index
      %c0_13 = arith.constant 0 : index
      %13 = vector.load %arg5[%c0_12, %c0_13] : memref<1x128xf32, #tpu.memory_space<vmem>>, vector<1x128xf32>
      %14 = vector.broadcast %13 : vector<1x128xf32> to vector<16x128xf32>
      %15 = arith.addf %12, %14 : vector<16x128xf32>
      %cst_14 = arith.constant 0.000000e+00 : f32
      %16 = vector.broadcast %cst_14 : f32 to vector<16x128xf32>
      %17 = arith.maximumf %15, %16 : vector<16x128xf32>
      %c0_15 = arith.constant 0 : index
      %c0_16 = arith.constant 0 : index
      %18 = vector.load %arg6[%c0_15, %c0_16] : memref<16x128xf32, #tpu.memory_space<vmem>>, vector<16x128xf32>
      tpu.vector_store %arg6[%c0_15, %c0_16], %17 {strides = array<i32>} : memref<16x128xf32, #tpu.memory_space<vmem>>, vector<16x128xf32>,
    } else {
    }
    return
  }
  func.func @transform_0(%arg0: i32, %arg1: i32, %arg2: i32) -> (i32, i32) {
    %c0_i32 = arith.constant 0 : i32
    return %arg0, %arg2 : i32, i32
  }
  func.func @transform_1(%arg0: i32, %arg1: i32, %arg2: i32) -> (i32, i32) {
    %c0_i32 = arith.constant 0 : i32
    return %arg2, %arg1 : i32, i32
  }
  func.func @transform_2(%arg0: i32, %arg1: i32, %arg2: i32) -> (i32, i32) {
    %c0_i32 = arith.constant 0 : i32
    %c0_i32_0 = arith.constant 0 : i32
    return %c0_i32, %arg1 : i32, i32
  }
  func.func @transform_3(%arg0: i32, %arg1: i32, %arg2: i32) -> (i32, i32) {
    %c0_i32 = arith.constant 0 : i32
    return %arg0, %arg1 : i32, i32
  }
}

module attributes {stable_mosaic.version = 11 : i64} {
  func.func @_mm_kernel(%arg0: i32, %arg1: i32, %arg2: i32, %arg3: memref<16x1792xbf16, #tpu.memory_space<vmem>>, %arg4: memref<1792x128xbf16, #tpu.memory_space<vmem>>, %arg5: memref<1x128xf32, #tpu.memory_space<vmem>>, %arg6: memref<16x128xf32, #tpu.memory_space<vmem>>, %arg7: memref<16x128xf32, #tpu.memory_space<vmem>>) attributes {dimension_semantics = [#tpu.dimension_semantics<parallel>, #tpu.dimension_semantics<parallel>, #tpu.dimension_semantics<arbitrary>], iteration_bounds = array<i64: 2, 1, 2>, scalar_prefetch = 0 : i64, scratch_operands = 1 : i64, tpu.core_type = #tpu.core_type<tc>, window_params = [{transform_indices = @transform_0, window_bounds = array<i64: 16, 1792>}, {transform_indices = @transform_1, window_bounds = array<i64: 1792, 128>}, {transform_indices = @transform_2, window_bounds = array<i64: 1, 128>}, {transform_indices = @transform_3, window_bounds = array<i64: 16, 128>}]} {
    %c0_i32 = arith.constant 0 : i32
    %0 = arith.cmpi eq, %arg2, %c0_i32 : i32
    %1 = arith.extui %0 : i1 to i32
    %c0_i32_0 = arith.constant 0 : i32
    %2 = arith.cmpi ne, %1, %c0_i32_0 : i32
    scf.if %2 {
      %cst_9 = arith.constant 0.000000e+00 : f32
      %12 = vector.broadcast %cst_9 : f32 to vector<16x128xf32>
      %c0_10 = arith.constant 0 : index
      %c0_11 = arith.constant 0 : index
      %13 = vector.load %arg7[%c0_10, %c0_11] : memref<16x128xf32, #tpu.memory_space<vmem>>, vector<16x128xf32>
      tpu.vector_store %arg7[%c0_10, %c0_11], %12 {strides = array<i32>} : memref<16x128xf32, #tpu.memory_space<vmem>>, vector<16x128xf32>,
    } else {
    }
    %c0 = arith.constant 0 : index
    %c0_1 = arith.constant 0 : index
    %3 = vector.load %arg7[%c0, %c0_1] : memref<16x128xf32, #tpu.memory_space<vmem>>, vector<16x128xf32>
    %c0_2 = arith.constant 0 : index
    %c0_3 = arith.constant 0 : index
    %4 = vector.load %arg3[%c0_2, %c0_3] : memref<16x1792xbf16, #tpu.memory_space<vmem>>, vector<16x1792xbf16>
    %c0_4 = arith.constant 0 : index
    %c0_5 = arith.constant 0 : index
    %5 = vector.load %arg4[%c0_4, %c0_5] : memref<1792x128xbf16, #tpu.memory_space<vmem>>, vector<1792x128xbf16>
    %cst = arith.constant dense<0.000000e+00> : vector<16x128xf32>
    %6 = tpu.matmul %4, %5, %cst {dimension_numbers = #tpu.dot_dimension_numbers<[1], [0], [0], [1], [0, 0, 1, 1], [], []>} : vector<16x1792xbf16>, vector<1792x128xbf16>, vector<16x128xf32> -> vector<16x128xf32>
    %7 = arith.addf %3, %6 : vector<16x128xf32>
    %c0_6 = arith.constant 0 : index
    %c0_7 = arith.constant 0 : index
    %8 = vector.load %arg7[%c0_6, %c0_7] : memref<16x128xf32, #tpu.memory_space<vmem>>, vector<16x128xf32>
    tpu.vector_store %arg7[%c0_6, %c0_7], %7 {strides = array<i32>} : memref<16x128xf32, #tpu.memory_space<vmem>>, vector<16x128xf32>,
    %c1_i32 = arith.constant 1 : i32
    %9 = arith.cmpi eq, %arg2, %c1_i32 : i32
    %10 = arith.extui %9 : i1 to i32
    %c0_i32_8 = arith.constant 0 : i32
    %11 = arith.cmpi ne, %10, %c0_i32_8 : i32
    scf.if %11 {
      %c0_9 = arith.constant 0 : index
      %c0_10 = arith.constant 0 : index
      %12 = vector.load %arg7[%c0_9, %c0_10] : memref<16x128xf32, #tpu.memory_space<vmem>>, vector<16x128xf32>
      %c0_11 = arith.constant 0 : index
      %c0_12 = arith.constant 0 : index
      %13 = vector.load %arg5[%c0_11, %c0_12] : memref<1x128xf32, #tpu.memory_space<vmem>>, vector<1x128xf32>
      %14 = vector.broadcast %13 : vector<1x128xf32> to vector<16x128xf32>
      %15 = arith.addf %12, %14 : vector<16x128xf32>
      %cst_13 = arith.constant 0.000000e+00 : f32
      %16 = vector.broadcast %cst_13 : f32 to vector<16x128xf32>
      %17 = arith.maximumf %15, %16 : vector<16x128xf32>
      %c0_14 = arith.constant 0 : index
      %c0_15 = arith.constant 0 : index
      %18 = vector.load %arg6[%c0_14, %c0_15] : memref<16x128xf32, #tpu.memory_space<vmem>>, vector<16x128xf32>
      tpu.vector_store %arg6[%c0_14, %c0_15], %17 {strides = array<i32>} : memref<16x128xf32, #tpu.memory_space<vmem>>, vector<16x128xf32>,
    } else {
    }
    return
  }
  func.func @transform_0(%arg0: i32, %arg1: i32, %arg2: i32) -> (i32, i32) {
    %c0_i32 = arith.constant 0 : i32
    return %arg0, %arg2 : i32, i32
  }
  func.func @transform_1(%arg0: i32, %arg1: i32, %arg2: i32) -> (i32, i32) {
    %c0_i32 = arith.constant 0 : i32
    return %arg2, %arg1 : i32, i32
  }
  func.func @transform_2(%arg0: i32, %arg1: i32, %arg2: i32) -> (i32, i32) {
    %c0_i32 = arith.constant 0 : i32
    %c0_i32_0 = arith.constant 0 : i32
    return %c0_i32, %arg1 : i32, i32
  }
  func.func @transform_3(%arg0: i32, %arg1: i32, %arg2: i32) -> (i32, i32) {
    %c0_i32 = arith.constant 0 : i32
    return %arg0, %arg1 : i32, i32
  }
}

module attributes {stable_mosaic.version = 11 : i64} {
  func.func @_mm_kernel(%arg0: i32, %arg1: i32, %arg2: i32, %arg3: memref<64x1728xbf16, #tpu.memory_space<vmem>>, %arg4: memref<1728x128xbf16, #tpu.memory_space<vmem>>, %arg5: memref<1x128xf32, #tpu.memory_space<vmem>>, %arg6: memref<64x128xf32, #tpu.memory_space<vmem>>, %arg7: memref<64x128xf32, #tpu.memory_space<vmem>>) attributes {dimension_semantics = [#tpu.dimension_semantics<parallel>, #tpu.dimension_semantics<parallel>, #tpu.dimension_semantics<arbitrary>], iteration_bounds = array<i64: 2, 1, 1>, scalar_prefetch = 0 : i64, scratch_operands = 1 : i64, tpu.core_type = #tpu.core_type<tc>, window_params = [{transform_indices = @transform_0, window_bounds = array<i64: 64, 1728>}, {transform_indices = @transform_1, window_bounds = array<i64: 1728, 128>}, {transform_indices = @transform_2, window_bounds = array<i64: 1, 128>}, {transform_indices = @transform_3, window_bounds = array<i64: 64, 128>}]} {
    %c0_i32 = arith.constant 0 : i32
    %0 = arith.cmpi eq, %arg2, %c0_i32 : i32
    %1 = arith.extui %0 : i1 to i32
    %c0_i32_0 = arith.constant 0 : i32
    %2 = arith.cmpi ne, %1, %c0_i32_0 : i32
    scf.if %2 {
      %cst_10 = arith.constant 0.000000e+00 : f32
      %12 = vector.broadcast %cst_10 : f32 to vector<64x128xf32>
      %c0_11 = arith.constant 0 : index
      %c0_12 = arith.constant 0 : index
      %13 = vector.load %arg7[%c0_11, %c0_12] : memref<64x128xf32, #tpu.memory_space<vmem>>, vector<64x128xf32>
      tpu.vector_store %arg7[%c0_11, %c0_12], %12 {strides = array<i32>} : memref<64x128xf32, #tpu.memory_space<vmem>>, vector<64x128xf32>,
    } else {
    }
    %c0 = arith.constant 0 : index
    %c0_1 = arith.constant 0 : index
    %3 = vector.load %arg7[%c0, %c0_1] : memref<64x128xf32, #tpu.memory_space<vmem>>, vector<64x128xf32>
    %c0_2 = arith.constant 0 : index
    %c0_3 = arith.constant 0 : index
    %4 = vector.load %arg3[%c0_2, %c0_3] : memref<64x1728xbf16, #tpu.memory_space<vmem>>, vector<64x1728xbf16>
    %c0_4 = arith.constant 0 : index
    %c0_5 = arith.constant 0 : index
    %5 = vector.load %arg4[%c0_4, %c0_5] : memref<1728x128xbf16, #tpu.memory_space<vmem>>, vector<1728x128xbf16>
    %cst = arith.constant dense<0.000000e+00> : vector<64x128xf32>
    %6 = tpu.matmul %4, %5, %cst {dimension_numbers = #tpu.dot_dimension_numbers<[1], [0], [0], [1], [0, 0, 1, 1], [], []>} : vector<64x1728xbf16>, vector<1728x128xbf16>, vector<64x128xf32> -> vector<64x128xf32>
    %7 = arith.addf %3, %6 : vector<64x128xf32>
    %c0_6 = arith.constant 0 : index
    %c0_7 = arith.constant 0 : index
    %8 = vector.load %arg7[%c0_6, %c0_7] : memref<64x128xf32, #tpu.memory_space<vmem>>, vector<64x128xf32>
    tpu.vector_store %arg7[%c0_6, %c0_7], %7 {strides = array<i32>} : memref<64x128xf32, #tpu.memory_space<vmem>>, vector<64x128xf32>,
    %c0_i32_8 = arith.constant 0 : i32
    %9 = arith.cmpi eq, %arg2, %c0_i32_8 : i32
    %10 = arith.extui %9 : i1 to i32
    %c0_i32_9 = arith.constant 0 : i32
    %11 = arith.cmpi ne, %10, %c0_i32_9 : i32
    scf.if %11 {
      %c0_10 = arith.constant 0 : index
      %c0_11 = arith.constant 0 : index
      %12 = vector.load %arg7[%c0_10, %c0_11] : memref<64x128xf32, #tpu.memory_space<vmem>>, vector<64x128xf32>
      %c0_12 = arith.constant 0 : index
      %c0_13 = arith.constant 0 : index
      %13 = vector.load %arg5[%c0_12, %c0_13] : memref<1x128xf32, #tpu.memory_space<vmem>>, vector<1x128xf32>
      %14 = vector.broadcast %13 : vector<1x128xf32> to vector<64x128xf32>
      %15 = arith.addf %12, %14 : vector<64x128xf32>
      %cst_14 = arith.constant 0.000000e+00 : f32
      %16 = vector.broadcast %cst_14 : f32 to vector<64x128xf32>
      %17 = arith.maximumf %15, %16 : vector<64x128xf32>
      %c0_15 = arith.constant 0 : index
      %c0_16 = arith.constant 0 : index
      %18 = vector.load %arg6[%c0_15, %c0_16] : memref<64x128xf32, #tpu.memory_space<vmem>>, vector<64x128xf32>
      tpu.vector_store %arg6[%c0_15, %c0_16], %17 {strides = array<i32>} : memref<64x128xf32, #tpu.memory_space<vmem>>, vector<64x128xf32>,
    } else {
    }
    return
  }
  func.func @transform_0(%arg0: i32, %arg1: i32, %arg2: i32) -> (i32, i32) {
    %c0_i32 = arith.constant 0 : i32
    return %arg0, %arg2 : i32, i32
  }
  func.func @transform_1(%arg0: i32, %arg1: i32, %arg2: i32) -> (i32, i32) {
    %c0_i32 = arith.constant 0 : i32
    return %arg2, %arg1 : i32, i32
  }
  func.func @transform_2(%arg0: i32, %arg1: i32, %arg2: i32) -> (i32, i32) {
    %c0_i32 = arith.constant 0 : i32
    %c0_i32_0 = arith.constant 0 : i32
    return %c0_i32, %arg1 : i32, i32
  }
  func.func @transform_3(%arg0: i32, %arg1: i32, %arg2: i32) -> (i32, i32) {
    %c0_i32 = arith.constant 0 : i32
    return %arg0, %arg1 : i32, i32
  }
}

module attributes {stable_mosaic.version = 11 : i64} {
  func.func @_mm_kernel(%arg0: i32, %arg1: i32, %arg2: i32, %arg3: memref<256x1152xbf16, #tpu.memory_space<vmem>>, %arg4: memref<1152x128xbf16, #tpu.memory_space<vmem>>, %arg5: memref<1x128xf32, #tpu.memory_space<vmem>>, %arg6: memref<256x128xf32, #tpu.memory_space<vmem>>, %arg7: memref<256x128xf32, #tpu.memory_space<vmem>>) attributes {dimension_semantics = [#tpu.dimension_semantics<parallel>, #tpu.dimension_semantics<parallel>, #tpu.dimension_semantics<arbitrary>], iteration_bounds = array<i64: 2, 1, 1>, scalar_prefetch = 0 : i64, scratch_operands = 1 : i64, tpu.core_type = #tpu.core_type<tc>, window_params = [{transform_indices = @transform_0, window_bounds = array<i64: 256, 1152>}, {transform_indices = @transform_1, window_bounds = array<i64: 1152, 128>}, {transform_indices = @transform_2, window_bounds = array<i64: 1, 128>}, {transform_indices = @transform_3, window_bounds = array<i64: 256, 128>}]} {
    %c0_i32 = arith.constant 0 : i32
    %0 = arith.cmpi eq, %arg2, %c0_i32 : i32
    %1 = arith.extui %0 : i1 to i32
    %c0_i32_0 = arith.constant 0 : i32
    %2 = arith.cmpi ne, %1, %c0_i32_0 : i32
    scf.if %2 {
      %cst_10 = arith.constant 0.000000e+00 : f32
      %12 = vector.broadcast %cst_10 : f32 to vector<256x128xf32>
      %c0_11 = arith.constant 0 : index
      %c0_12 = arith.constant 0 : index
      %13 = vector.load %arg7[%c0_11, %c0_12] : memref<256x128xf32, #tpu.memory_space<vmem>>, vector<256x128xf32>
      tpu.vector_store %arg7[%c0_11, %c0_12], %12 {strides = array<i32>} : memref<256x128xf32, #tpu.memory_space<vmem>>, vector<256x128xf32>,
    } else {
    }
    %c0 = arith.constant 0 : index
    %c0_1 = arith.constant 0 : index
    %3 = vector.load %arg7[%c0, %c0_1] : memref<256x128xf32, #tpu.memory_space<vmem>>, vector<256x128xf32>
    %c0_2 = arith.constant 0 : index
    %c0_3 = arith.constant 0 : index
    %4 = vector.load %arg3[%c0_2, %c0_3] : memref<256x1152xbf16, #tpu.memory_space<vmem>>, vector<256x1152xbf16>
    %c0_4 = arith.constant 0 : index
    %c0_5 = arith.constant 0 : index
    %5 = vector.load %arg4[%c0_4, %c0_5] : memref<1152x128xbf16, #tpu.memory_space<vmem>>, vector<1152x128xbf16>
    %cst = arith.constant dense<0.000000e+00> : vector<256x128xf32>
    %6 = tpu.matmul %4, %5, %cst {dimension_numbers = #tpu.dot_dimension_numbers<[1], [0], [0], [1], [0, 0, 1, 1], [], []>} : vector<256x1152xbf16>, vector<1152x128xbf16>, vector<256x128xf32> -> vector<256x128xf32>
    %7 = arith.addf %3, %6 : vector<256x128xf32>
    %c0_6 = arith.constant 0 : index
    %c0_7 = arith.constant 0 : index
    %8 = vector.load %arg7[%c0_6, %c0_7] : memref<256x128xf32, #tpu.memory_space<vmem>>, vector<256x128xf32>
    tpu.vector_store %arg7[%c0_6, %c0_7], %7 {strides = array<i32>} : memref<256x128xf32, #tpu.memory_space<vmem>>, vector<256x128xf32>,
    %c0_i32_8 = arith.constant 0 : i32
    %9 = arith.cmpi eq, %arg2, %c0_i32_8 : i32
    %10 = arith.extui %9 : i1 to i32
    %c0_i32_9 = arith.constant 0 : i32
    %11 = arith.cmpi ne, %10, %c0_i32_9 : i32
    scf.if %11 {
      %c0_10 = arith.constant 0 : index
      %c0_11 = arith.constant 0 : index
      %12 = vector.load %arg7[%c0_10, %c0_11] : memref<256x128xf32, #tpu.memory_space<vmem>>, vector<256x128xf32>
      %c0_12 = arith.constant 0 : index
      %c0_13 = arith.constant 0 : index
      %13 = vector.load %arg5[%c0_12, %c0_13] : memref<1x128xf32, #tpu.memory_space<vmem>>, vector<1x128xf32>
      %14 = vector.broadcast %13 : vector<1x128xf32> to vector<256x128xf32>
      %15 = arith.addf %12, %14 : vector<256x128xf32>
      %cst_14 = arith.constant 0.000000e+00 : f32
      %16 = vector.broadcast %cst_14 : f32 to vector<256x128xf32>
      %17 = arith.maximumf %15, %16 : vector<256x128xf32>
      %c0_15 = arith.constant 0 : index
      %c0_16 = arith.constant 0 : index
      %18 = vector.load %arg6[%c0_15, %c0_16] : memref<256x128xf32, #tpu.memory_space<vmem>>, vector<256x128xf32>
      tpu.vector_store %arg6[%c0_15, %c0_16], %17 {strides = array<i32>} : memref<256x128xf32, #tpu.memory_space<vmem>>, vector<256x128xf32>,
    } else {
    }
    return
  }
  func.func @transform_0(%arg0: i32, %arg1: i32, %arg2: i32) -> (i32, i32) {
    %c0_i32 = arith.constant 0 : i32
    return %arg0, %arg2 : i32, i32
  }
  func.func @transform_1(%arg0: i32, %arg1: i32, %arg2: i32) -> (i32, i32) {
    %c0_i32 = arith.constant 0 : i32
    return %arg2, %arg1 : i32, i32
  }
  func.func @transform_2(%arg0: i32, %arg1: i32, %arg2: i32) -> (i32, i32) {
    %c0_i32 = arith.constant 0 : i32
    %c0_i32_0 = arith.constant 0 : i32
    return %c0_i32, %arg1 : i32, i32
  }
  func.func @transform_3(%arg0: i32, %arg1: i32, %arg2: i32) -> (i32, i32) {
    %c0_i32 = arith.constant 0 : i32
    return %arg0, %arg1 : i32, i32
  }
}

module attributes {stable_mosaic.version = 11 : i64} {
  func.func @_mm_kernel(%arg0: i32, %arg1: i32, %arg2: i32, %arg3: memref<256x288xbf16, #tpu.memory_space<vmem>>, %arg4: memref<288x128xbf16, #tpu.memory_space<vmem>>, %arg5: memref<1x128xf32, #tpu.memory_space<vmem>>, %arg6: memref<256x128xf32, #tpu.memory_space<vmem>>, %arg7: memref<256x128xf32, #tpu.memory_space<vmem>>) attributes {dimension_semantics = [#tpu.dimension_semantics<parallel>, #tpu.dimension_semantics<parallel>, #tpu.dimension_semantics<arbitrary>], iteration_bounds = array<i64: 2, 1, 1>, scalar_prefetch = 0 : i64, scratch_operands = 1 : i64, tpu.core_type = #tpu.core_type<tc>, window_params = [{transform_indices = @transform_0, window_bounds = array<i64: 256, 288>}, {transform_indices = @transform_1, window_bounds = array<i64: 288, 128>}, {transform_indices = @transform_2, window_bounds = array<i64: 1, 128>}, {transform_indices = @transform_3, window_bounds = array<i64: 256, 128>}]} {
    %c0_i32 = arith.constant 0 : i32
    %0 = arith.cmpi eq, %arg2, %c0_i32 : i32
    %1 = arith.extui %0 : i1 to i32
    %c0_i32_0 = arith.constant 0 : i32
    %2 = arith.cmpi ne, %1, %c0_i32_0 : i32
    scf.if %2 {
      %cst_10 = arith.constant 0.000000e+00 : f32
      %12 = vector.broadcast %cst_10 : f32 to vector<256x128xf32>
      %c0_11 = arith.constant 0 : index
      %c0_12 = arith.constant 0 : index
      %13 = vector.load %arg7[%c0_11, %c0_12] : memref<256x128xf32, #tpu.memory_space<vmem>>, vector<256x128xf32>
      tpu.vector_store %arg7[%c0_11, %c0_12], %12 {strides = array<i32>} : memref<256x128xf32, #tpu.memory_space<vmem>>, vector<256x128xf32>,
    } else {
    }
    %c0 = arith.constant 0 : index
    %c0_1 = arith.constant 0 : index
    %3 = vector.load %arg7[%c0, %c0_1] : memref<256x128xf32, #tpu.memory_space<vmem>>, vector<256x128xf32>
    %c0_2 = arith.constant 0 : index
    %c0_3 = arith.constant 0 : index
    %4 = vector.load %arg3[%c0_2, %c0_3] : memref<256x288xbf16, #tpu.memory_space<vmem>>, vector<256x288xbf16>
    %c0_4 = arith.constant 0 : index
    %c0_5 = arith.constant 0 : index
    %5 = vector.load %arg4[%c0_4, %c0_5] : memref<288x128xbf16, #tpu.memory_space<vmem>>, vector<288x128xbf16>
    %cst = arith.constant dense<0.000000e+00> : vector<256x128xf32>
    %6 = tpu.matmul %4, %5, %cst {dimension_numbers = #tpu.dot_dimension_numbers<[1], [0], [0], [1], [0, 0, 1, 1], [], []>} : vector<256x288xbf16>, vector<288x128xbf16>, vector<256x128xf32> -> vector<256x128xf32>
    %7 = arith.addf %3, %6 : vector<256x128xf32>
    %c0_6 = arith.constant 0 : index
    %c0_7 = arith.constant 0 : index
    %8 = vector.load %arg7[%c0_6, %c0_7] : memref<256x128xf32, #tpu.memory_space<vmem>>, vector<256x128xf32>
    tpu.vector_store %arg7[%c0_6, %c0_7], %7 {strides = array<i32>} : memref<256x128xf32, #tpu.memory_space<vmem>>, vector<256x128xf32>,
    %c0_i32_8 = arith.constant 0 : i32
    %9 = arith.cmpi eq, %arg2, %c0_i32_8 : i32
    %10 = arith.extui %9 : i1 to i32
    %c0_i32_9 = arith.constant 0 : i32
    %11 = arith.cmpi ne, %10, %c0_i32_9 : i32
    scf.if %11 {
      %c0_10 = arith.constant 0 : index
      %c0_11 = arith.constant 0 : index
      %12 = vector.load %arg7[%c0_10, %c0_11] : memref<256x128xf32, #tpu.memory_space<vmem>>, vector<256x128xf32>
      %c0_12 = arith.constant 0 : index
      %c0_13 = arith.constant 0 : index
      %13 = vector.load %arg5[%c0_12, %c0_13] : memref<1x128xf32, #tpu.memory_space<vmem>>, vector<1x128xf32>
      %14 = vector.broadcast %13 : vector<1x128xf32> to vector<256x128xf32>
      %15 = arith.addf %12, %14 : vector<256x128xf32>
      %cst_14 = arith.constant 0.000000e+00 : f32
      %16 = vector.broadcast %cst_14 : f32 to vector<256x128xf32>
      %17 = arith.maximumf %15, %16 : vector<256x128xf32>
      %c0_15 = arith.constant 0 : index
      %c0_16 = arith.constant 0 : index
      %18 = vector.load %arg6[%c0_15, %c0_16] : memref<256x128xf32, #tpu.memory_space<vmem>>, vector<256x128xf32>
      tpu.vector_store %arg6[%c0_15, %c0_16], %17 {strides = array<i32>} : memref<256x128xf32, #tpu.memory_space<vmem>>, vector<256x128xf32>,
    } else {
    }
    return
  }
  func.func @transform_0(%arg0: i32, %arg1: i32, %arg2: i32) -> (i32, i32) {
    %c0_i32 = arith.constant 0 : i32
    return %arg0, %arg2 : i32, i32
  }
  func.func @transform_1(%arg0: i32, %arg1: i32, %arg2: i32) -> (i32, i32) {
    %c0_i32 = arith.constant 0 : i32
    return %arg2, %arg1 : i32, i32
  }
  func.func @transform_2(%arg0: i32, %arg1: i32, %arg2: i32) -> (i32, i32) {
    %c0_i32 = arith.constant 0 : i32
    %c0_i32_0 = arith.constant 0 : i32
    return %c0_i32, %arg1 : i32, i32
  }
  func.func @transform_3(%arg0: i32, %arg1: i32, %arg2: i32) -> (i32, i32) {
    %c0_i32 = arith.constant 0 : i32
    return %arg0, %arg1 : i32, i32
  }
}

</mosaic_0001>

<bundles_post_ra>
// kernel: mul.386.clone
= control target key start
LH: loop header
LB: loop body
LE: loop exit
PB: predicated region body
PF: predicated region fallthrough
CT: control target
= control target key end

     0   :  { %s474_s0 = inlined_call_operand.vmem [shape: f32[2,64], index: 0, kind: input, shape index: {}]   ;;  %s475_s1 = inlined_call_operand.vmem [shape: f32[2,16,16,64], index: 1, kind: output, shape index: {}]  }
   0x1   :  { %v211_v0 = vld [vmem:[%s474_s0] ss:$0 sm:$0xff]  ;;  %v216_v1 = vld [vmem:[%s474_s0 + $0x1] ss:$0 sm:$0xff] }
   0x2   :  { %5 = vst [vmem:[%s475_s1] sm:$0xff] %v211_v0 }
   0x3   :  { %135 = vst [vmem:[%s475_s1 + $0x100] sm:$0xff] %v216_v1 }
   0x4   :  { %136 = vst [vmem:[%s475_s1 + $0x10] sm:$0xff] %v211_v0 }
   0x5   :  { %137 = vst [vmem:[%s475_s1 + $0x110] sm:$0xff] %v216_v1 }
   0x6   :  { %138 = vst [vmem:[%s475_s1 + $0x20] sm:$0xff] %v211_v0 }
   0x7   :  { %139 = vst [vmem:[%s475_s1 + $0x120] sm:$0xff] %v216_v1 }
   0x8   :  { %140 = vst [vmem:[%s475_s1 + $0x30] sm:$0xff] %v211_v0 }
   0x9   :  { %141 = vst [vmem:[%s475_s1 + $0x130] sm:$0xff] %v216_v1 }
   0xa   :  { %142 = vst [vmem:[%s475_s1 + $0x40] sm:$0xff] %v211_v0 }
   0xb   :  { %143 = vst [vmem:[%s475_s1 + $0x140] sm:$0xff] %v216_v1 }
   0xc   :  { %144 = vst [vmem:[%s475_s1 + $0x50] sm:$0xff] %v211_v0 }
   0xd   :  { %145 = vst [vmem:[%s475_s1 + $0x150] sm:$0xff] %v216_v1 }
   0xe   :  { %146 = vst [vmem:[%s475_s1 + $0x60] sm:$0xff] %v211_v0 }
   0xf   :  { %147 = vst [vmem:[%s475_s1 + $0x160] sm:$0xff] %v216_v1 }
  0x10   :  { %148 = vst [vmem:[%s475_s1 + $0x70] sm:$0xff] %v211_v0 }
  0x11   :  { %149 = vst [vmem:[%s475_s1 + $0x170] sm:$0xff] %v216_v1 }
  0x12   :  { %150 = vst [vmem:[%s475_s1 + $0x80] sm:$0xff] %v211_v0 }
  0x13   :  { %151 = vst [vmem:[%s475_s1 + $0x180] sm:$0xff] %v216_v1 }
  0x14   :  { %152 = vst [vmem:[%s475_s1 + $0x90] sm:$0xff] %v211_v0 }
  0x15   :  { %153 = vst [vmem:[%s475_s1 + $0x190] sm:$0xff] %v216_v1 }
  0x16   :  { %154 = vst [vmem:[%s475_s1 + $0xa0] sm:$0xff] %v211_v0 }
  0x17   :  { %155 = vst [vmem:[%s475_s1 + $0x1a0] sm:$0xff] %v216_v1 }
  0x18   :  { %156 = vst [vmem:[%s475_s1 + $0xb0] sm:$0xff] %v211_v0 }
  0x19   :  { %157 = vst [vmem:[%s475_s1 + $0x1b0] sm:$0xff] %v216_v1 }
  0x1a   :  { %158 = vst [vmem:[%s475_s1 + $0xc0] sm:$0xff] %v211_v0 }
  0x1b   :  { %159 = vst [vmem:[%s475_s1 + $0x1c0] sm:$0xff] %v216_v1 }
  0x1c   :  { %160 = vst [vmem:[%s475_s1 + $0xd0] sm:$0xff] %v211_v0 }
  0x1d   :  { %161 = vst [vmem:[%s475_s1 + $0x1d0] sm:$0xff] %v216_v1 }
  0x1e   :  { %162 = vst [vmem:[%s475_s1 + $0xe0] sm:$0xff] %v211_v0 }
  0x1f   :  { %163 = vst [vmem:[%s475_s1 + $0x1e0] sm:$0xff] %v216_v1 }
  0x20   :  { %164 = vst [vmem:[%s475_s1 + $0xf0] sm:$0xff] %v211_v0 }
  0x21   :  { %165 = vst [vmem:[%s475_s1 + $0x1f0] sm:$0xff] %v216_v1 }
  0x22   :  { %166 = vst [vmem:[%s475_s1 + $0x8] sm:$0xff] %v211_v0 }
  0x23   :  { %167 = vst [vmem:[%s475_s1 + $0x108] sm:$0xff] %v216_v1 }
  0x24   :  { %168 = vst [vmem:[%s475_s1 + $0x18] sm:$0xff] %v211_v0 }
  0x25   :  { %169 = vst [vmem:[%s475_s1 + $0x118] sm:$0xff] %v216_v1 }
  0x26   :  { %170 = vst [vmem:[%s475_s1 + $0x28] sm:$0xff] %v211_v0 }
  0x27   :  { %171 = vst [vmem:[%s475_s1 + $0x128] sm:$0xff] %v216_v1 }
  0x28   :  { %172 = vst [vmem:[%s475_s1 + $0x38] sm:$0xff] %v211_v0 }
  0x29   :  { %173 = vst [vmem:[%s475_s1 + $0x138] sm:$0xff] %v216_v1 }
  0x2a   :  { %174 = vst [vmem:[%s475_s1 + $0x48] sm:$0xff] %v211_v0 }
  0x2b   :  { %175 = vst [vmem:[%s475_s1 + $0x148] sm:$0xff] %v216_v1 }
  0x2c   :  { %176 = vst [vmem:[%s475_s1 + $0x58] sm:$0xff] %v211_v0 }
  0x2d   :  { %177 = vst [vmem:[%s475_s1 + $0x158] sm:$0xff] %v216_v1 }
  0x2e   :  { %178 = vst [vmem:[%s475_s1 + $0x68] sm:$0xff] %v211_v0 }
  0x2f   :  { %179 = vst [vmem:[%s475_s1 + $0x168] sm:$0xff] %v216_v1 }
  0x30   :  { %180 = vst [vmem:[%s475_s1 + $0x78] sm:$0xff] %v211_v0 }
  0x31   :  { %181 = vst [vmem:[%s475_s1 + $0x178] sm:$0xff] %v216_v1 }
  0x32   :  { %182 = vst [vmem:[%s475_s1 + $0x88] sm:$0xff] %v211_v0 }
  0x33   :  { %183 = vst [vmem:[%s475_s1 + $0x188] sm:$0xff] %v216_v1 }
  0x34   :  { %184 = vst [vmem:[%s475_s1 + $0x98] sm:$0xff] %v211_v0 }
  0x35   :  { %185 = vst [vmem:[%s475_s1 + $0x198] sm:$0xff] %v216_v1 }
  0x36   :  { %186 = vst [vmem:[%s475_s1 + $0xa8] sm:$0xff] %v211_v0 }
  0x37   :  { %187 = vst [vmem:[%s475_s1 + $0x1a8] sm:$0xff] %v216_v1 }
  0x38   :  { %188 = vst [vmem:[%s475_s1 + $0xb8] sm:$0xff] %v211_v0 }
  0x39   :  { %189 = vst [vmem:[%s475_s1 + $0x1b8] sm:$0xff] %v216_v1 }
  0x3a   :  { %190 = vst [vmem:[%s475_s1 + $0xc8] sm:$0xff] %v211_v0 }
  0x3b   :  { %191 = vst [vmem:[%s475_s1 + $0x1c8] sm:$0xff] %v216_v1 }
  0x3c   :  { %192 = vst [vmem:[%s475_s1 + $0xd8] sm:$0xff] %v211_v0 }
  0x3d   :  { %193 = vst [vmem:[%s475_s1 + $0x1d8] sm:$0xff] %v216_v1 }
  0x3e   :  { %194 = vst [vmem:[%s475_s1 + $0xe8] sm:$0xff] %v211_v0 }
  0x3f   :  { %195 = vst [vmem:[%s475_s1 + $0x1e8] sm:$0xff] %v216_v1 }
  0x40   :  { %196 = vst [vmem:[%s475_s1 + $0xf8] sm:$0xff] %v211_v0 }
  0x41   :  { %197 = vst [vmem:[%s475_s1 + $0x1f8] sm:$0xff] %v216_v1 }

// kernel: device_forward.24
= control target key start
LH: loop header
LB: loop body
LE: loop exit
PB: predicated region body
PF: predicated region fallthrough
CT: control target
= control target key end

     0   :  { %s1402_s12 = smov 0   ;;  %s1404_s13 = smov 0   ;;  %s1625_s0 = inlined_call_operand.vmem [shape: bf16[128,576], index: 0, kind: input, shape index: {}]   ;;  %s1626_s1 = inlined_call_operand.vmem [shape: bf16[576,128], index: 1, kind: input, shape index: {}]   ;;  %s1627_s2 = inlined_call_operand.vmem [shape: f32[1,128], index: 2, kind: input, shape index: {}]   ;;  %s1628_s3 = inlined_call_operand.vmem [shape: f32[128,128], index: 3, kind: output, shape index: {}]  }
   0x1   :  { %s1406_s14 = smov 0  }
   0x2 LB: > { %s32_s15 = sadd.s32 1, %s1376_s13  ;;  %p1025_p0 = scmp.ge.s32.totalorder %s1380_s14, 1  ;;  %s1380_s14 = sphi %s1406_s14, %s13_s14   ;;  %s1376_s13 = sphi %s1404_s13, %s1630_s13   ;;  %s1372_s12 = sphi %s1402_s12, %s1629_s12  }
   0x3   : > { %p34_p1 = scmp.ge.s32.totalorder %s32_s15, 2  ;;  %p191_p2 = scmp.lt.s32.totalorder %s1380_s14, 3 }
   0x5   : > { %s1632_s15 = smov (%p34_p1, %s32_s15), 0  ;;  %p192_p3 = pnand %p1025_p0, %p191_p2 }
   0x6   : > { %s1026_s26 = sshll.u32 (!%p192_p3), %s1372_s12, 3 }
   0x7   : > { %195 = sbr.rel (%p192_p3) target bundleno = 273 (0x111), region = 32  ;;  %p236_p4 = scmp.lt.s32.totalorder (!%p192_p3), %s1026_s26, 15 }
   0xc   : > { %v1287_v0 = vld [vmem:[%s1626_s1 + $0x38] sm:$0xff]  ;;  %v1286_v1 = vld [vmem:[%s1626_s1 + $0x30] sm:$0xff]  ;;  %v1285_v4 = vld [vmem:[%s1626_s1 + $0x28] sm:$0xff]  ;;  %s1634_s26 = smov (!%p236_p4, %s1026_s26), 15  ;;  %vm700_vm0 = vcmask 523264  }
   0xd   : > { %1316 = vmatpush.bf16.msra.mxu1 %v1287_v0  ;;  %1317 = vmatpush.bf16.msra.mxu2 %v1287_v0  ;;  %v1311_v2 = vld [vmem:[%s1626_s1 + $0xf8] sm:$0xff]  ;;  %v1310_v3 = vld [vmem:[%s1626_s1 + $0xf0] sm:$0xff]  ;;  %v1309_v5 = vld [vmem:[%s1626_s1 + $0xe8] sm:$0xff]  ;;  %s1332_s12 = smul.u32 20, %s1634_s26 }
   0xe   : > { %713 = vmatpush.bf16.msra.mxu0 %v1287_v0  ;;  %800 = vmatpush.bf16.msra.mxu3 %v1311_v2  ;;  %v1284_v6 = vld [vmem:[%s1626_s1 + $0x20] sm:$0xff]  ;;  %v1283_v8 = vld [vmem:[%s1626_s1 + $0x18] sm:$0xff]  ;;  %v1282_v10 = vld [vmem:[%s1626_s1 + $0x10] sm:$0xff] }
   0xf   : > { %v1308_v7 = vld [vmem:[%s1626_s1 + $0xe0] sm:$0xff]  ;;  %v1307_v9 = vld [vmem:[%s1626_s1 + $0xd8] sm:$0xff]  ;;  %v1306_v11 = vld [vmem:[%s1626_s1 + $0xd0] sm:$0xff]  ;;  %s1468_s22 = scalar_lea.vmem %s1625_s0, %s1332_s12 }
  0x10   : > { %v1281_v12 = vld [vmem:[%s1626_s1 + $0x8] sm:$0xff]  ;;  %v1280_v14 = vld [vmem:[%s1626_s1] sm:$0xff]  ;;  %v1267_v16 = vld [vmem:[%s1468_s22 + $0x38] sm:$0xf0] }
  0x11   : > { %1318 = vmatpush.bf16.msra.mxu1 %v1286_v1  ;;  %1319 = vmatpush.bf16.msra.mxu2 %v1286_v1  ;;  %v1305_v13 = vld [vmem:[%s1626_s1 + $0xc8] sm:$0xff]  ;;  %v1092_v17 = vld [vmem:[%s1468_s22 + $0x78] sm:$0xf]  ;;  %v1032_v21 = vld [vmem:[%s1468_s22] sm:$0xf] }
  0x12   : > { %714 = vmatpush.bf16.msra.mxu0 %v1286_v1  ;;  %801 = vmatpush.bf16.msra.mxu3 %v1310_v3  ;;  %v1052_v15 = vld [vmem:[%s1468_s22 + $0x28] sm:$0xf]  ;;  %v1277_v18 = vld [vmem:[%s1468_s22 + $0x88] sm:$0xf0]  ;;  %v1303_v19 = vld [vmem:[%s1626_s1 + $0xb8] sm:$0xff] }
  0x13   : > { %v1295_v20 = vld [vmem:[%s1626_s1 + $0x78] sm:$0xff]  ;;  %v1304_v22 = vld [vmem:[%s1626_s1 + $0xc0] sm:$0xff]  ;;  %v1053_v23 = vor.u32 %v1267_v16, %v1052_v15  ;;  %v1093_v24 = vor.u32 %v1277_v18, %v1092_v17  ;;  %v1262_v25 = vld [vmem:[%s1468_s22 + $0x10] sm:$0xf0] }
  0x14   : > { %v1261_v26 = vld [vmem:[%s1468_s22 + $0xc] sm:$0xf]  ;;  %v1042_v27 = vld [vmem:[%s1468_s22 + $0x1c] sm:$0xf0]  ;;  %v1315_v28 = vld [vmem:[%s1626_s1 + $0x118] sm:$0xff]  ;;  %v1033_v31 = vor.u32 %v1262_v25, %v1032_v21 }
  0x15   : > { %1320 = vmatpush.bf16.msra.mxu1 %v1285_v4  ;;  %1321 = vmatpush.bf16.msra.mxu2 %v1285_v4  ;;  %v1302_v29 = vld [vmem:[%s1626_s1 + $0xb0] sm:$0xff]  ;;  %v1045_v32 = vor.u32 %v1261_v26, %v1042_v27  ;;  %v1301_v34 = vld [vmem:[%s1626_s1 + $0xa8] sm:$0xff]  ;;  %v1300_v37 = vld [vmem:[%s1626_s1 + $0xa0] sm:$0xff] }
  0x16   : > { %715 = vmatpush.bf16.msra.mxu0 %v1285_v4  ;;  %802 = vmatpush.bf16.msra.mxu3 %v1309_v5  ;;  %v1294_v30 = vld [vmem:[%s1626_s1 + $0x70] sm:$0xff]  ;;  %v1293_v35 = vld [vmem:[%s1626_s1 + $0x68] sm:$0xff]  ;;  %v1292_v38 = vld [vmem:[%s1626_s1 + $0x60] sm:$0xff] }
  0x17   : > { %v1314_v33 = vld [vmem:[%s1626_s1 + $0x110] sm:$0xff]  ;;  %v1313_v36 = vld [vmem:[%s1626_s1 + $0x108] sm:$0xff]  ;;  %v1272_v40 = vld [vmem:[%s1468_s22 + $0x60] sm:$0xf0] }
  0x18   : > { %v1072_v39 = vld [vmem:[%s1468_s22 + $0x50] sm:$0xf]  ;;  %v1312_v41 = vld [vmem:[%s1626_s1 + $0x100] sm:$0xff]  ;;  %v1299_v42 = vld [vmem:[%s1626_s1 + $0x98] sm:$0xff] }
  0x19   : > { %1322 = vmatpush.bf16.msra.mxu1 %v1284_v6  ;;  %1323 = vmatpush.bf16.msra.mxu2 %v1284_v6  ;;  %v1291_v43 = vld [vmem:[%s1626_s1 + $0x58] sm:$0xff]  ;;  %v1048_v44 = vld [vmem:[%s1468_s22 + $0x10] sm:$0xf]  ;;  %v1073_v45 = vor.u32 %v1272_v40, %v1072_v39  ;;  %v1264_v46 = vld [vmem:[%s1468_s22 + $0x20] sm:$0xf0] }
  0x1a   : > { %716 = vmatpush.bf16.msra.mxu0 %v1284_v6  ;;  %803 = vmatpush.bf16.msra.mxu3 %v1308_v7  ;;  %v1266_v47 = vld [vmem:[%s1468_s22 + $0x34] sm:$0xf]  ;;  %v1062_v48 = vld [vmem:[%s1468_s22 + $0x44] sm:$0xf0]  ;;  %v1049_v51 = vor.u32 %v1264_v46, %v1048_v44  ;;  %v1296_v55 = vld [vmem:[%s1626_s1 + $0x80] sm:$0xff] }
  0x1b   : > { %v1298_v49 = vld [vmem:[%s1626_s1 + $0x90] sm:$0xff]  ;;  %v1065_v52 = vor.u32 %v1266_v47, %v1062_v48  ;;  %v1297_v53 = vld [vmem:[%s1626_s1 + $0x88] sm:$0xff]  ;;  %v1288_v56 = vld [vmem:[%s1626_s1 + $0x40] sm:$0xff] }
  0x1c   : > { %v1290_v50 = vld [vmem:[%s1626_s1 + $0x50] sm:$0xff]  ;;  %v1289_v54 = vld [vmem:[%s1626_s1 + $0x48] sm:$0xff]  ;;  %v1263_v58 = vld [vmem:[%s1468_s22 + $0x18] sm:$0xf0] }
  0x1d   : > { %1324 = vmatpush.bf16.msra.mxu1 %v1283_v8  ;;  %1325 = vmatpush.bf16.msra.mxu2 %v1283_v8  ;;  %v1040_v57 = vld [vmem:[%s1468_s22 + $0x8] sm:$0xf]  ;;  %v1260_v60 = vld [vmem:[%s1468_s22 + $0x4] sm:$0xf]  ;;  %v1034_v61 = vld [vmem:[%s1468_s22 + $0x14] sm:$0xf0] }
  0x1e   : > { %717 = vmatpush.bf16.msra.mxu0 %v1283_v8  ;;  %804 = vmatpush.bf16.msra.mxu3 %v1307_v9  ;;  %v1041_v59 = vor.u32 %v1263_v58, %v1040_v57  ;;  %v1068_v62 = vld [vmem:[%s1468_s22 + $0x38] sm:$0xf]  ;;  %v1037_v63 = vor.u32 %v1260_v60, %v1034_v61  ;;  %v1269_v0 = vld [vmem:[%s1468_s22 + $0x48] sm:$0xf0]  ;;  %v1271_v1 = vld [vmem:[%s1468_s22 + $0x5c] sm:$0xf] }
  0x1f   : > { %v1082_v2 = vld [vmem:[%s1468_s22 + $0x6c] sm:$0xf0]  ;;  %v1069_v3 = vor.u32 %v1269_v0, %v1068_v62  ;;  %v1268_v6 = vld [vmem:[%s1468_s22 + $0x40] sm:$0xf0]  ;;  %v1265_v8 = vld [vmem:[%s1468_s22 + $0x2c] sm:$0xf] }
  0x20   : > { %v1085_v4 = vor.u32 %v1271_v1, %v1082_v2  ;;  %v1060_v5 = vld [vmem:[%s1468_s22 + $0x30] sm:$0xf]  ;;  %v1054_v9 = vld [vmem:[%s1468_s22 + $0x3c] sm:$0xf0]  ;;  %v1080_v17 = vld [vmem:[%s1468_s22 + $0x58] sm:$0xf] }
  0x21   : > { %1326 = vmatpush.bf16.msra.mxu1 %v1282_v10  ;;  %1327 = vmatpush.bf16.msra.mxu2 %v1282_v10  ;;  %v1061_v7 = vor.u32 %v1268_v6, %v1060_v5  ;;  %v1273_v18 = vld [vmem:[%s1468_s22 + $0x68] sm:$0xf0]  ;;  %v1074_v21 = vld [vmem:[%s1468_s22 + $0x64] sm:$0xf0]  ;;  %v1100_v26 = vld [vmem:[%s1468_s22 + $0x80] sm:$0xf] }
  0x22   : > { %718 = vmatpush.bf16.msra.mxu0 %v1282_v10  ;;  %805 = vmatpush.bf16.msra.mxu3 %v1306_v11  ;;  %v1088_v10 = vld [vmem:[%s1468_s22 + $0x60] sm:$0xf]  ;;  %v1057_v11 = vor.u32 %v1265_v8, %v1054_v9  ;;  %v1278_v27 = vld [vmem:[%s1468_s22 + $0x90] sm:$0xf0] }
  0x25   : > { %1328 = vmatpush.bf16.msra.mxu1 %v1281_v12  ;;  %1329 = vmatpush.bf16.msra.mxu2 %v1281_v12 }
  0x26   : > { %719 = vmatpush.bf16.msra.mxu0 %v1281_v12  ;;  %806 = vmatpush.bf16.msra.mxu3 %v1305_v13  ;;  %v1274_v12 = vld [vmem:[%s1468_s22 + $0x70] sm:$0xf0]  ;;  %v1276_v13 = vld [vmem:[%s1468_s22 + $0x84] sm:$0xf] }
  0x27   : > { %v1089_v15 = vor.u32 %v1274_v12, %v1088_v10 }
  0x29   : > { %1330 = vmatpush.bf16.msra.mxu1 %v1280_v14  ;;  %1331 = vmatpush.bf16.msra.mxu2 %v1280_v14 }
  0x2a   : > { %720 = vmatpush.bf16.msra.mxu0 %v1280_v14  ;;  %807 = vmatpush.bf16.msra.mxu3 %v1304_v22  ;;  %v1102_v14 = vld [vmem:[%s1468_s22 + $0x94] sm:$0xf0] }
  0x2b   : > { %v1105_v16 = vor.u32 %v1276_v13, %v1102_v14 }
  0x2c   : > { %726 = vmatmul.bf16.vlgmr.msra.gmra.mxu1 %v1053_v23  ;;  %736 = vmatmul.bf16.vlgmr.msra.gmra.mxu2 %v1093_v24  ;;  %v1108_v23 = vld [vmem:[%s1468_s22 + $0x88] sm:$0xf]  ;;  %v1279_v24 = vld [vmem:[%s1468_s22 + $0x98] sm:$0xf0] }
  0x2d   : > { %771 = vmatpush.bf16.msrb.mxu2 %v1303_v19  ;;  %742 = vmatpush.bf16.msrb.mxu1 %v1295_v20  ;;  %v1081_v19 = vor.u32 %v1273_v18, %v1080_v17  ;;  %v1270_v20 = vld [vmem:[%s1468_s22 + $0x54] sm:$0xf]  ;;  %v1109_v25 = vor.u32 %v1279_v24, %v1108_v23 }
  0x2e   : > { %833 = vmatpush.bf16.msrb.mxu0 %v1315_v28  ;;  %808 = vmatmul.bf16.vlgmr.msra.gmra.mxu3 %v1045_v32  ;;  %v1077_v22 = vor.u32 %v1270_v20, %v1074_v21  ;;  %v1101_v28 = vor.u32 %v1278_v27, %v1100_v26 }
  0x2f   : > { %721 = vmatmul.bf16.vlgmr.msra.gmra.mxu0 %v1033_v31 }
  0x31   : > { %772 = vmatpush.bf16.msrb.mxu2 %v1302_v29  ;;  %743 = vmatpush.bf16.msrb.mxu1 %v1294_v30  ;;  %v1275_v29 = vld [vmem:[%s1468_s22 + $0x7c] sm:$0xf]  ;;  %v1094_v30 = vld [vmem:[%s1468_s22 + $0x8c] sm:$0xf0]  ;;  %s1029_s22 = sshll.u32 %s1634_s26, 3 }
  0x32   : > { %834 = vmatpush.bf16.msrb.mxu0 %v1314_v33  ;;  %v1097_v31 = vor.u32 %v1275_v29, %v1094_v30  ;;  %s1596_s30 = scalar_lea.vmem %s1628_s3, %s1029_s22 }
  0x35   : > { %773 = vmatpush.bf16.msrb.mxu2 %v1301_v34  ;;  %744 = vmatpush.bf16.msrb.mxu1 %v1293_v35 }
  0x36   : > { %835 = vmatpush.bf16.msrb.mxu0 %v1313_v36 }
  0x39   : > { %774 = vmatpush.bf16.msrb.mxu2 %v1300_v37  ;;  %745 = vmatpush.bf16.msrb.mxu1 %v1292_v38 }
  0x3a   : > { %836 = vmatpush.bf16.msrb.mxu0 %v1312_v41 }
  0x3c   : > { %731 = vmatmul.bf16.gmra.mxu1 %v1073_v45 }
  0x3d   : > { %775 = vmatpush.bf16.msrb.mxu2 %v1299_v42  ;;  %746 = vmatpush.bf16.msrb.mxu1 %v1291_v43 }
  0x3e   : > { %813 = vmatmul.bf16.gmra.mxu3 %v1065_v52 }
  0x3f   : > { %1254 = vmatmul.msk.bf16.vlgmr.msrb.gmra.mxu0 %vm700_vm0, %v1049_v51 }
  0x41   : > { %776 = vmatpush.bf16.msrb.mxu2 %v1298_v49  ;;  %747 = vmatpush.bf16.msrb.mxu1 %v1290_v50  ;;  %v1591_v49 = vld [vmem:[%s1627_s2] ss:$0 sm:$0xff] }
  0x45   : > { %777 = vmatpush.bf16.msrb.mxu2 %v1297_v53  ;;  %748 = vmatpush.bf16.msrb.mxu1 %v1289_v54 }
  0x49   : > { %778 = vmatpush.bf16.msrb.mxu2 %v1296_v55  ;;  %749 = vmatpush.bf16.msrb.mxu1 %v1288_v56 }
  0x4c   : > { %779 = vmatmul.bf16.vlgmr.msrb.gmra.mxu2 %v1041_v59  ;;  %750 = vmatmul.bf16.vlgmr.msrb.gmra.mxu1 %v1037_v63 }
  0x4e   : > { %818 = vmatmul.bf16.gmra.mxu3 %v1085_v4 }
  0x4f   : > { %1255 = vmatmul.msk.bf16.gmra.mxu0 %vm700_vm0, %v1069_v3 }
  0x5c   : > { %784 = vmatmul.bf16.gmra.mxu2 %v1061_v7  ;;  %755 = vmatmul.bf16.gmra.mxu1 %v1057_v11 }
  0x5e   : > { %823 = vmatmul.bf16.gmra.mxu3 %v1105_v16 }
  0x5f   : > { %1256 = vmatmul.msk.bf16.gmra.mxu0 %vm700_vm0, %v1089_v15 }
  0x6c   : > { %789 = vmatmul.bf16.gmra.mxu2 %v1081_v19  ;;  %760 = vmatmul.bf16.gmra.mxu1 %v1077_v22 }
  0x6f   : > { %1257 = vmatmul.msk.bf16.gmra.mxu0 %vm700_vm0, %v1109_v25 }
  0x7c   : > { %794 = vmatmul.bf16.gmra.mxu2 %v1101_v28  ;;  %765 = vmatmul.bf16.gmra.mxu1 %v1097_v31 }
  0xa9   : > { %v727_v32 = vpop.f32.mrf.mxu1 }
  0xac   : > { %v722_v33 = vpop.f32.mrf.mxu0 }
  0xaf   : > { %v1583_v37 = vpop.f32.mrf.mxu2 }
  0xb1   : > { %v729_v34 = vpop.f32.mrf.mxu1  ;;  %v809_v38 = vpop.f32.mrf.mxu3 }
  0xb4   : > { %v724_v35 = vpop.f32.mrf.mxu0 }
  0xb7   : > { %v1585_v41 = vpop.f32.mrf.mxu2 }
  0xb9   : > { %v732_v36 = vpop.f32.mrf.mxu1  ;;  %v811_v44 = vpop.f32.mrf.mxu3 }
  0xbc   : > { %v838_v40 = vpop.f32.mrf.mxu0 }
  0xc1   : > { %v734_v39 = vpop.f32.mrf.mxu1  ;;  %v814_v55 = vpop.f32.mrf.mxu3 }
  0xc4   : > { %v840_v46 = vpop.f32.mrf.mxu0 }
  0xc9   : > { %v751_v42 = vpop.f32.mrf.mxu1  ;;  %v816_v1 = vpop.f32.mrf.mxu3 }
  0xca   : > { %v752_v43 = vadd.f32 %v751_v42, %v722_v33 }
  0xcc   : > { %v843_v57 = vpop.f32.mrf.mxu0 }
  0xcf   : > { %v780_v45 = vpop.f32.mrf.mxu2 }
  0xd0   : > { %v781_v47 = vadd.f32 %v780_v45, %v752_v43 }
  0xd1   : > { %v753_v51 = vpop.f32.mrf.mxu1  ;;  %v819_v11 = vpop.f32.mrf.mxu3 }
  0xd2   : > { %v810_v48 = vadd.f32 %v809_v38, %v781_v47  ;;  %v754_v52 = vadd.f32 %v753_v51, %v724_v35 }
  0xd4   : > { %v839_v50 = vadd.f32 %v838_v40, %v810_v48  ;;  %v845_v3 = vpop.f32.mrf.mxu0 }
  0xd6   : > { %v889_v53 = vadd.f32 %v1591_v49, %v839_v50 }
  0xd7   : > { %v782_v54 = vpop.f32.mrf.mxu2 }
  0xd8   : > { %897 = vst [vmem:[%s1596_s30] sm:$0xff] %v889_v53  ;;  %v783_v56 = vadd.f32 %v782_v54, %v754_v52 }
  0xd9   : > { %v756_v60 = vpop.f32.mrf.mxu1  ;;  %v821_v22 = vpop.f32.mrf.mxu3 }
  0xda   : > { %v812_v58 = vadd.f32 %v811_v44, %v783_v56  ;;  %v757_v61 = vadd.f32 %v756_v60, %v727_v32 }
  0xdc   : > { %v841_v59 = vadd.f32 %v840_v46, %v812_v58  ;;  %v848_v14 = vpop.f32.mrf.mxu0 }
  0xde   : > { %v890_v62 = vadd.f32 %v1591_v49, %v841_v59 }
  0xdf   : > { %v785_v63 = vpop.f32.mrf.mxu2 }
  0xe0   : > { %898 = vst [vmem:[%s1596_s30 + $0x8] sm:$0xff] %v890_v62  ;;  %v786_v0 = vadd.f32 %v785_v63, %v757_v61 }
  0xe1   : > { %v758_v5 = vpop.f32.mrf.mxu1  ;;  %v824_v33 = vpop.f32.mrf.mxu3 }
  0xe2   : > { %v815_v2 = vadd.f32 %v814_v55, %v786_v0  ;;  %v759_v6 = vadd.f32 %v758_v5, %v729_v34 }
  0xe4   : > { %v844_v4 = vadd.f32 %v843_v57, %v815_v2  ;;  %v850_v25 = vpop.f32.mrf.mxu0 }
  0xe6   : > { %v891_v7 = vadd.f32 %v1591_v49, %v844_v4 }
  0xe7   : > { %v787_v8 = vpop.f32.mrf.mxu2 }
  0xe8   : > { %899 = vst [vmem:[%s1596_s30 + $0x10] sm:$0xff] %v891_v7  ;;  %v788_v9 = vadd.f32 %v787_v8, %v759_v6 }
  0xe9   : > { %v761_v13 = vpop.f32.mrf.mxu1  ;;  %v826_v46 = vpop.f32.mrf.mxu3 }
  0xea   : > { %v817_v10 = vadd.f32 %v816_v1, %v788_v9  ;;  %v762_v15 = vadd.f32 %v761_v13, %v732_v36 }
  0xec   : > { %v846_v12 = vadd.f32 %v845_v3, %v817_v10  ;;  %v853_v36 = vpop.f32.mrf.mxu0 }
  0xee   : > { %v892_v16 = vadd.f32 %v1591_v49, %v846_v12 }
  0xef   : > { %v790_v17 = vpop.f32.mrf.mxu2 }
  0xf0   : > { %900 = vst [vmem:[%s1596_s30 + $0x18] sm:$0xff] %v892_v16  ;;  %v791_v18 = vadd.f32 %v790_v17, %v762_v15 }
  0xf1   : > { %v763_v21 = vpop.f32.mrf.mxu1 }
  0xf2   : > { %v820_v19 = vadd.f32 %v819_v11, %v791_v18  ;;  %v764_v23 = vadd.f32 %v763_v21, %v734_v39 }
  0xf4   : > { %v849_v20 = vadd.f32 %v848_v14, %v820_v19  ;;  %v855_v47 = vpop.f32.mrf.mxu0 }
  0xf6   : > { %v893_v24 = vadd.f32 %v1591_v49, %v849_v20 }
  0xf7   : > { %v792_v26 = vpop.f32.mrf.mxu2 }
  0xf8   : > { %901 = vst [vmem:[%s1596_s30 + $0x20] sm:$0xff] %v893_v24  ;;  %v793_v27 = vadd.f32 %v792_v26, %v764_v23 }
  0xf9   : > { %v766_v30 = vpop.f32.mrf.mxu1 }
  0xfa   : > { %v822_v28 = vadd.f32 %v821_v22, %v793_v27  ;;  %v767_v31 = vadd.f32 %v766_v30, %v1583_v37 }
  0xfc   : > { %v851_v29 = vadd.f32 %v850_v25, %v822_v28 }
  0xfe   : > { %v894_v32 = vadd.f32 %v1591_v49, %v851_v29 }
  0xff   : > { %v795_v34 = vpop.f32.mrf.mxu2 }
 0x100   : > { %902 = vst [vmem:[%s1596_s30 + $0x28] sm:$0xff] %v894_v32  ;;  %v796_v35 = vadd.f32 %v795_v34, %v767_v31 }
 0x101   : > { %v768_v40 = vpop.f32.mrf.mxu1 }
 0x102   : > { %v825_v38 = vadd.f32 %v824_v33, %v796_v35  ;;  %v769_v42 = vadd.f32 %v768_v40, %v1585_v41 }
 0x104   : > { %v854_v39 = vadd.f32 %v853_v36, %v825_v38 }
 0x106   : > { %v895_v43 = vadd.f32 %v1591_v49, %v854_v39 }
 0x107   : > { %v797_v44 = vpop.f32.mrf.mxu2 }
 0x108   : > { %903 = vst [vmem:[%s1596_s30 + $0x30] sm:$0xff] %v895_v43  ;;  %v798_v45 = vadd.f32 %v797_v44, %v769_v42 }
 0x10a   : > { %v827_v37 = vadd.f32 %v826_v46, %v798_v45 }
 0x10c   : > { %v856_v48 = vadd.f32 %v855_v47, %v827_v37 }
 0x10e   : > { %v896_v50 = vadd.f32 %v1591_v49, %v856_v48 }
 0x110   : > { %904 = vst [vmem:[%s1596_s30 + $0x38] sm:$0xff] %v896_v50 }
 0x111 PF: > { %s13_s14 = sadd.s32 1, %s1380_s14   ;;  %s1629_s12 = smov %s1376_s13 }
 0x112   : > { %p10_p5 = scmp.ge.s32.totalorder %s13_s14, 4   ;;  %s1630_s13 = smov %s1632_s15 }
 0x114   :  { %12 = sbr.rel (!%p10_p5) target bundleno = 2 (0x2), region = 76 }

// kernel: device_forward.22
= control target key start
LH: loop header
LB: loop body
LE: loop exit
PB: predicated region body
PF: predicated region fallthrough
CT: control target
= control target key end

     0   :  { %s1489_s12 = smov 0   ;;  %s1491_s13 = smov 0   ;;  %s1727_s0 = inlined_call_operand.vmem [shape: bf16[512,196], index: 0, kind: input, shape index: {}]   ;;  %s1728_s1 = inlined_call_operand.vmem [shape: bf16[196,128], index: 1, kind: input, shape index: {}]   ;;  %s1729_s2 = inlined_call_operand.vmem [shape: f32[1,128], index: 2, kind: input, shape index: {}]   ;;  %s1730_s3 = inlined_call_operand.vmem [shape: f32[512,128], index: 3, kind: output, shape index: {}]  }
   0x1   :  { %s1493_s14 = smov 0  }
   0x2 LB: > { %s32_s15 = sadd.s32 1, %s1463_s13  ;;  %p1162_p0 = scmp.ge.s32.totalorder %s1467_s14, 1  ;;  %s1467_s14 = sphi %s1493_s14, %s13_s14   ;;  %s1463_s13 = sphi %s1491_s13, %s1732_s13   ;;  %s1459_s12 = sphi %s1489_s12, %s1731_s12  }
   0x3   : > { %p34_p1 = scmp.ge.s32.totalorder %s32_s15, 2  ;;  %p191_p2 = scmp.lt.s32.totalorder %s1467_s14, 3 }
   0x5   : > { %s1734_s15 = smov (%p34_p1, %s32_s15), 0  ;;  %p192_p3 = pnand %p1162_p0, %p191_p2 }
   0x6   : > { %s1163_s20 = sshll.u32 (!%p192_p3), %s1459_s12, 5 }
   0x7   : > { %195 = sbr.rel (%p192_p3) target bundleno = 306 (0x132), region = 32  ;;  %p236_p4 = scmp.lt.s32.totalorder (!%p192_p3), %s1163_s20, 63 }
   0xc   : > { %v1402_v0 = vld [vmem:[%s1728_s1 + $0x38] sm:$0xff]  ;;  %v392_v1 = vld [vmem:[%s1728_s1 + $0x60] sm:$0x3]  ;;  %vm661_vm0 = vcmask 1041408   ;;  %v1401_v3 = vld [vmem:[%s1728_s1 + $0x30] sm:$0xff]  ;;  %s1736_s20 = smov (!%p236_p4, %s1163_s20), 63 }
   0xd   : > { %v586_v2 = vunpack.c.l.b16 %v392_v1  ;;  %665 = vmatpush.bf16.msra.mxu0 %v1402_v0  ;;  %1407 = vmatpush.bf16.msra.mxu2 %v1402_v0  ;;  %v1406_v6 = vld [vmem:[%s1728_s1 + $0x58] sm:$0xff]  ;;  %v1400_v7 = vld [vmem:[%s1728_s1 + $0x28] sm:$0xff]  ;;  %v1405_v8 = vld [vmem:[%s1728_s1 + $0x50] sm:$0xff]  ;;  %s1362_s4 = sshll.u32 %s1736_s20, 3  ;;  %vm612_vm1 = vcmask 556032  }
   0xe   : > { %v1399_v9 = vld [vmem:[%s1728_s1 + $0x20] sm:$0xff]  ;;  %v1404_v10 = vld [vmem:[%s1728_s1 + $0x48] sm:$0xff]  ;;  %v1398_v11 = vld [vmem:[%s1728_s1 + $0x18] sm:$0xff]  ;;  %s1542_s11 = scalar_lea.vmem %s1727_s0, %s1362_s4  ;;  %s1647_s28 = scalar_lea.vmem %s1730_s3, %s1362_s4 }
   0xf   : > { %v599_v4 = vpack.c.b16 %v586_v2, %v586_v2  ;;  %v1403_v12 = vld [vmem:[%s1728_s1 + $0x40] sm:$0xff]  ;;  %v1397_v13 = vld [vmem:[%s1728_s1 + $0x10] sm:$0xff]  ;;  %v1172_v15 = vld [vmem:[%s1542_s11 + $0x8] sm:$0xf0] }
  0x10   : > { %v1363_v14 = vld [vmem:[%s1542_s11 + $0x4] sm:$0xf]  ;;  %v1381_v16 = vld [vmem:[%s1542_s11 + $0x94] sm:$0xf]  ;;  %v1244_v17 = vld [vmem:[%s1542_s11 + $0x98] sm:$0xf0] }
  0x11   : > { %v663_v5 = vsel %vm661_vm0, %v599_v4, 0  ;;  %666 = vmatpush.bf16.msra.mxu0 %v1401_v3  ;;  %1408 = vmatpush.bf16.msra.mxu2 %v1401_v3  ;;  %v1175_v18 = vor.u32 %v1363_v14, %v1172_v15  ;;  %v1396_v19 = vld [vmem:[%s1728_s1 + $0x8] sm:$0xff]  ;;  %v1247_v20 = vor.u32 %v1381_v16, %v1244_v17  ;;  %v1395_v21 = vld [vmem:[%s1728_s1] sm:$0xff]  ;;  %v1365_v28 = vld [vmem:[%s1542_s11 + $0x14] sm:$0xf] }
  0x12   : > { %757 = vmatpush.bf16.msra.mxu1 %v663_v5  ;;  %1415 = vmatpush.bf16.msra.mxu3 %v663_v5  ;;  %v1170_v22 = vld [vmem:[%s1542_s11] sm:$0xf]  ;;  %v1364_v23 = vld [vmem:[%s1542_s11 + $0x4] sm:$0xf0]  ;;  %v1180_v29 = vld [vmem:[%s1542_s11 + $0x18] sm:$0xf0] }
  0x13   : > { %v1234_v24 = vld [vmem:[%s1542_s11 + $0x80] sm:$0xf]  ;;  %v1380_v25 = vld [vmem:[%s1542_s11 + $0x84] sm:$0xf0]  ;;  %v1171_v26 = vor.u32 %v1364_v23, %v1170_v22  ;;  %v1383_v30 = vld [vmem:[%s1542_s11 + $0xa4] sm:$0xf]  ;;  %v1183_v32 = vor.u32 %v1365_v28, %v1180_v29 }
  0x14   : > { %v1235_v27 = vor.u32 %v1380_v25, %v1234_v24  ;;  %v1252_v31 = vld [vmem:[%s1542_s11 + $0xa8] sm:$0xf0]  ;;  %v1178_v34 = vld [vmem:[%s1542_s11 + $0x10] sm:$0xf]  ;;  %v1366_v35 = vld [vmem:[%s1542_s11 + $0x14] sm:$0xf0] }
  0x15   : > { %667 = vmatpush.bf16.msra.mxu0 %v1400_v7  ;;  %1409 = vmatpush.bf16.msra.mxu2 %v1400_v7  ;;  %v1255_v33 = vor.u32 %v1383_v30, %v1252_v31  ;;  %v1242_v36 = vld [vmem:[%s1542_s11 + $0x90] sm:$0xf]  ;;  %v1382_v37 = vld [vmem:[%s1542_s11 + $0x94] sm:$0xf0]  ;;  %v1179_v38 = vor.u32 %v1366_v35, %v1178_v34  ;;  %v1367_v40 = vld [vmem:[%s1542_s11 + $0x24] sm:$0xf] }
  0x16   : > { %758 = vmatpush.bf16.msra.mxu1 %v1406_v6  ;;  %1416 = vmatpush.bf16.msra.mxu3 %v1406_v6  ;;  %v1243_v39 = vor.u32 %v1382_v37, %v1242_v36  ;;  %v1188_v41 = vld [vmem:[%s1542_s11 + $0x28] sm:$0xf0]  ;;  %v1385_v42 = vld [vmem:[%s1542_s11 + $0xb4] sm:$0xf]  ;;  %v1260_v43 = vld [vmem:[%s1542_s11 + $0xb8] sm:$0xf0] }
  0x17   : > { %v1191_v44 = vor.u32 %v1367_v40, %v1188_v41  ;;  %v1263_v45 = vor.u32 %v1385_v42, %v1260_v43  ;;  %v1186_v46 = vld [vmem:[%s1542_s11 + $0x20] sm:$0xf]  ;;  %v1368_v47 = vld [vmem:[%s1542_s11 + $0x24] sm:$0xf0]  ;;  %v1369_v52 = vld [vmem:[%s1542_s11 + $0x34] sm:$0xf] }
  0x18   : > { %v1250_v48 = vld [vmem:[%s1542_s11 + $0xa0] sm:$0xf]  ;;  %v1384_v49 = vld [vmem:[%s1542_s11 + $0xa4] sm:$0xf0]  ;;  %v1187_v50 = vor.u32 %v1368_v47, %v1186_v46  ;;  %v1196_v53 = vld [vmem:[%s1542_s11 + $0x38] sm:$0xf0] }
  0x19   : > { %668 = vmatpush.bf16.msra.mxu0 %v1399_v9  ;;  %1410 = vmatpush.bf16.msra.mxu2 %v1399_v9  ;;  %v1251_v51 = vor.u32 %v1384_v49, %v1250_v48  ;;  %v1387_v54 = vld [vmem:[%s1542_s11 + $0xc4] sm:$0xf]  ;;  %v1268_v55 = vld [vmem:[%s1542_s11 + $0xc8] sm:$0xf0]  ;;  %v1199_v56 = vor.u32 %v1369_v52, %v1196_v53  ;;  %v1194_v58 = vld [vmem:[%s1542_s11 + $0x30] sm:$0xf] }
  0x1a   : > { %759 = vmatpush.bf16.msra.mxu1 %v1405_v8  ;;  %1417 = vmatpush.bf16.msra.mxu3 %v1405_v8  ;;  %v1271_v57 = vor.u32 %v1387_v54, %v1268_v55  ;;  %v1370_v59 = vld [vmem:[%s1542_s11 + $0x34] sm:$0xf0]  ;;  %v1258_v60 = vld [vmem:[%s1542_s11 + $0xb0] sm:$0xf]  ;;  %v1371_v0 = vld [vmem:[%s1542_s11 + $0x44] sm:$0xf] }
  0x1b   : > { %v1386_v61 = vld [vmem:[%s1542_s11 + $0xb4] sm:$0xf0]  ;;  %v1195_v62 = vor.u32 %v1370_v59, %v1194_v58  ;;  %v1204_v1 = vld [vmem:[%s1542_s11 + $0x48] sm:$0xf0]  ;;  %v1389_v2 = vld [vmem:[%s1542_s11 + $0xd4] sm:$0xf] }
  0x1c   : > { %v1259_v63 = vor.u32 %v1386_v61, %v1258_v60  ;;  %v1276_v3 = vld [vmem:[%s1542_s11 + $0xd8] sm:$0xf0]  ;;  %v1207_v4 = vor.u32 %v1371_v0, %v1204_v1  ;;  %v1202_v6 = vld [vmem:[%s1542_s11 + $0x40] sm:$0xf]  ;;  %v1372_v7 = vld [vmem:[%s1542_s11 + $0x44] sm:$0xf0] }
  0x1d   : > { %669 = vmatpush.bf16.msra.mxu0 %v1398_v11  ;;  %1411 = vmatpush.bf16.msra.mxu2 %v1398_v11  ;;  %v1279_v5 = vor.u32 %v1389_v2, %v1276_v3  ;;  %v1266_v8 = vld [vmem:[%s1542_s11 + $0xc0] sm:$0xf]  ;;  %v1388_v9 = vld [vmem:[%s1542_s11 + $0xc4] sm:$0xf0]  ;;  %v1391_v14 = vld [vmem:[%s1542_s11 + $0xe4] sm:$0xf] }
  0x1e   : > { %760 = vmatpush.bf16.msra.mxu1 %v1404_v10  ;;  %1418 = vmatpush.bf16.msra.mxu3 %v1404_v10  ;;  %v1203_v10 = vor.u32 %v1372_v7, %v1202_v6  ;;  %v1267_v11 = vor.u32 %v1388_v9, %v1266_v8  ;;  %v1284_v15 = vld [vmem:[%s1542_s11 + $0xe8] sm:$0xf0]  ;;  %v1375_v24 = vld [vmem:[%s1542_s11 + $0x64] sm:$0xf]  ;;  %v1218_v30 = vld [vmem:[%s1542_s11 + $0x60] sm:$0xf] }
  0x1f   : > { %v1287_v17 = vor.u32 %v1391_v14, %v1284_v15  ;;  %v1220_v25 = vld [vmem:[%s1542_s11 + $0x68] sm:$0xf0]  ;;  %v1376_v31 = vld [vmem:[%s1542_s11 + $0x64] sm:$0xf0]  ;;  %v1377_v36 = vld [vmem:[%s1542_s11 + $0x74] sm:$0xf] }
  0x20   : > { %v1223_v28 = vor.u32 %v1375_v24, %v1220_v25  ;;  %v1219_v34 = vor.u32 %v1376_v31, %v1218_v30  ;;  %v1228_v37 = vld [vmem:[%s1542_s11 + $0x78] sm:$0xf0]  ;;  %v1378_v40 = vld [vmem:[%s1542_s11 + $0x74] sm:$0xf0]  ;;  %v1290_v41 = vld [vmem:[%s1542_s11 + $0xf0] sm:$0xf] }
  0x21   : > { %670 = vmatpush.bf16.msra.mxu0 %v1397_v13  ;;  %1412 = vmatpush.bf16.msra.mxu2 %v1397_v13  ;;  %v1212_v13 = vld [vmem:[%s1542_s11 + $0x58] sm:$0xf0]  ;;  %v1394_v42 = vld [vmem:[%s1542_s11 + $0xf4] sm:$0xf0]  ;;  %v1236_v46 = vld [vmem:[%s1542_s11 + $0x88] sm:$0xf0] }
  0x22   : > { %761 = vmatpush.bf16.msra.mxu1 %v1403_v12  ;;  %1419 = vmatpush.bf16.msra.mxu3 %v1403_v12  ;;  %v1373_v12 = vld [vmem:[%s1542_s11 + $0x54] sm:$0xf]  ;;  %v1639_v49 = vld [vmem:[%s1729_s2] ss:$0 sm:$0xff] }
  0x23   : > { %v1215_v16 = vor.u32 %v1373_v12, %v1212_v13 }
  0x25   : > { %1344 = vmatmul.msk.bf16.vlgmr.msra.gmra.mxu1 %vm612_vm1, %v1175_v18  ;;  %671 = vmatpush.bf16.msra.mxu0 %v1396_v19  ;;  %v1210_v18 = vld [vmem:[%s1542_s11 + $0x50] sm:$0xf] }
  0x26   : > { %1353 = vmatmul.msk.bf16.vlgmr.msra.gmra.mxu3 %vm612_vm1, %v1247_v20  ;;  %1413 = vmatpush.bf16.msra.mxu2 %v1396_v19  ;;  %v1374_v19 = vld [vmem:[%s1542_s11 + $0x54] sm:$0xf0]  ;;  %v1274_v20 = vld [vmem:[%s1542_s11 + $0xd0] sm:$0xf] }
  0x27   : > { %v1211_v22 = vor.u32 %v1374_v19, %v1210_v18 }
  0x29   : > { %672 = vmatpush.bf16.msra.mxu0 %v1395_v21 }
  0x2a   : > { %1414 = vmatpush.bf16.msra.mxu2 %v1395_v21  ;;  %v1390_v21 = vld [vmem:[%s1542_s11 + $0xd4] sm:$0xf0] }
  0x2b   : > { %v1275_v23 = vor.u32 %v1390_v21, %v1274_v20 }
  0x2c   : > { %673 = vmatmul.bf16.vlgmr.msra.gmra.mxu0 %v1171_v26  ;;  %v1393_v26 = vld [vmem:[%s1542_s11 + $0xf4] sm:$0xf] }
  0x2d   : > { %713 = vmatmul.bf16.vlgmr.msra.gmra.mxu2 %v1235_v27  ;;  %v1292_v27 = vld [vmem:[%s1542_s11 + $0xf8] sm:$0xf0] }
  0x2e   : > { %v1295_v29 = vor.u32 %v1393_v26, %v1292_v27 }
  0x35   : > { %1345 = vmatmul.msk.bf16.gmra.mxu1 %vm612_vm1, %v1183_v32  ;;  %v1282_v32 = vld [vmem:[%s1542_s11 + $0xe0] sm:$0xf] }
  0x36   : > { %1354 = vmatmul.msk.bf16.gmra.mxu3 %vm612_vm1, %v1255_v33  ;;  %v1392_v33 = vld [vmem:[%s1542_s11 + $0xe4] sm:$0xf0] }
  0x37   : > { %v1283_v35 = vor.u32 %v1392_v33, %v1282_v32 }
  0x3c   : > { %678 = vmatmul.bf16.gmra.mxu0 %v1179_v38  ;;  %v1231_v38 = vor.u32 %v1377_v36, %v1228_v37 }
  0x3d   : > { %718 = vmatmul.bf16.gmra.mxu2 %v1243_v39  ;;  %v1226_v39 = vld [vmem:[%s1542_s11 + $0x70] sm:$0xf] }
  0x3e   : > { %v1227_v43 = vor.u32 %v1378_v40, %v1226_v39 }
  0x45   : > { %1346 = vmatmul.msk.bf16.gmra.mxu1 %vm612_vm1, %v1191_v44  ;;  %v1291_v44 = vor.u32 %v1394_v42, %v1290_v41 }
  0x46   : > { %1355 = vmatmul.msk.bf16.gmra.mxu3 %vm612_vm1, %v1263_v45  ;;  %v1379_v45 = vld [vmem:[%s1542_s11 + $0x84] sm:$0xf] }
  0x47   : > { %v1239_v47 = vor.u32 %v1379_v45, %v1236_v46 }
  0x4c   : > { %683 = vmatmul.bf16.gmra.mxu0 %v1187_v50 }
  0x4d   : > { %723 = vmatmul.bf16.gmra.mxu2 %v1251_v51 }
  0x55   : > { %1347 = vmatmul.msk.bf16.gmra.mxu1 %vm612_vm1, %v1199_v56 }
  0x56   : > { %1356 = vmatmul.msk.bf16.gmra.mxu3 %vm612_vm1, %v1271_v57 }
  0x5c   : > { %688 = vmatmul.bf16.gmra.mxu0 %v1195_v62 }
  0x5d   : > { %728 = vmatmul.bf16.gmra.mxu2 %v1259_v63 }
  0x65   : > { %1348 = vmatmul.msk.bf16.gmra.mxu1 %vm612_vm1, %v1207_v4 }
  0x66   : > { %1357 = vmatmul.msk.bf16.gmra.mxu3 %vm612_vm1, %v1279_v5 }
  0x6c   : > { %693 = vmatmul.bf16.gmra.mxu0 %v1203_v10 }
  0x6d   : > { %733 = vmatmul.bf16.gmra.mxu2 %v1267_v11 }
  0x75   : > { %1349 = vmatmul.msk.bf16.gmra.mxu1 %vm612_vm1, %v1215_v16 }
  0x76   : > { %1358 = vmatmul.msk.bf16.gmra.mxu3 %vm612_vm1, %v1287_v17 }
  0x7c   : > { %698 = vmatmul.bf16.gmra.mxu0 %v1211_v22 }
  0x7d   : > { %738 = vmatmul.bf16.gmra.mxu2 %v1275_v23 }
  0x85   : > { %1350 = vmatmul.msk.bf16.gmra.mxu1 %vm612_vm1, %v1223_v28 }
  0x86   : > { %1359 = vmatmul.msk.bf16.gmra.mxu3 %vm612_vm1, %v1295_v29 }
  0x8c   : > { %703 = vmatmul.bf16.gmra.mxu0 %v1219_v34 }
  0x8d   : > { %743 = vmatmul.bf16.gmra.mxu2 %v1283_v35 }
  0x95   : > { %1351 = vmatmul.msk.bf16.gmra.mxu1 %vm612_vm1, %v1231_v38 }
  0x9c   : > { %708 = vmatmul.bf16.gmra.mxu0 %v1227_v43 }
  0x9d   : > { %748 = vmatmul.bf16.gmra.mxu2 %v1291_v44 }
  0xa2   : > { %v763_v48 = vpop.f32.mrf.mxu1 }
  0xa5   : > { %1352 = vmatmul.msk.bf16.gmra.mxu1 %vm612_vm1, %v1239_v47 }
  0xa9   : > { %v808_v50 = vpop.f32.mrf.mxu3  ;;  %v674_v52 = vpop.f32.mrf.mxu0 }
  0xaa   : > { %v765_v51 = vpop.f32.mrf.mxu1  ;;  %v764_v53 = vadd.f32 %v763_v48, %v674_v52 }
  0xac   : > { %v946_v54 = vadd.f32 %v1639_v49, %v764_v53 }
  0xae   : > { %v978_v55 = vmax.f32 %v946_v54, 0.0 }
  0xb0   : > { %1010 = vst [vmem:[%s1647_s28] sm:$0xff] %v978_v55  ;;  %v1650_v56 = vpop.f32.mrf.mxu2 }
  0xb1   : > { %v810_v57 = vpop.f32.mrf.mxu3  ;;  %v676_v59 = vpop.f32.mrf.mxu0 }
  0xb2   : > { %v768_v58 = vpop.f32.mrf.mxu1  ;;  %v766_v60 = vadd.f32 %v765_v51, %v676_v59 }
  0xb4   : > { %v947_v61 = vadd.f32 %v1639_v49, %v766_v60 }
  0xb6   : > { %v979_v62 = vmax.f32 %v947_v61, 0.0 }
  0xb8   : > { %1011 = vst [vmem:[%s1647_s28 + $0x8] sm:$0xff] %v979_v62  ;;  %v1654_v63 = vpop.f32.mrf.mxu2 }
  0xb9   : > { %v679_v1 = vpop.f32.mrf.mxu0  ;;  %v813_v3 = vpop.f32.mrf.mxu3 }
  0xba   : > { %v770_v0 = vpop.f32.mrf.mxu1  ;;  %v769_v2 = vadd.f32 %v768_v58, %v679_v1 }
  0xbc   : > { %v948_v4 = vadd.f32 %v1639_v49, %v769_v2 }
  0xbe   : > { %v980_v5 = vmax.f32 %v948_v4, 0.0 }
  0xc0   : > { %1012 = vst [vmem:[%s1647_s28 + $0x10] sm:$0xff] %v980_v5  ;;  %v719_v6 = vpop.f32.mrf.mxu2 }
  0xc1   : > { %v809_v7 = vadd.f32 %v808_v50, %v719_v6  ;;  %v681_v9 = vpop.f32.mrf.mxu0  ;;  %v815_v13 = vpop.f32.mrf.mxu3 }
  0xc2   : > { %v773_v8 = vpop.f32.mrf.mxu1  ;;  %v771_v10 = vadd.f32 %v770_v0, %v681_v9 }
  0xc3   : > { %v964_v11 = vadd.f32 %v1639_v49, %v809_v7 }
  0xc4   : > { %v949_v12 = vadd.f32 %v1639_v49, %v771_v10 }
  0xc5   : > { %v996_v14 = vmax.f32 %v964_v11, 0.0 }
  0xc6   : > { %v981_v15 = vmax.f32 %v949_v12, 0.0 }
  0xc7   : > { %1028 = vst [vmem:[%s1647_s28 + $0x90] sm:$0xff] %v996_v14 }
  0xc8   : > { %1013 = vst [vmem:[%s1647_s28 + $0x18] sm:$0xff] %v981_v15  ;;  %v721_v16 = vpop.f32.mrf.mxu2 }
  0xc9   : > { %v811_v17 = vadd.f32 %v810_v57, %v721_v16  ;;  %v684_v19 = vpop.f32.mrf.mxu0  ;;  %v818_v25 = vpop.f32.mrf.mxu3 }
  0xca   : > { %v775_v18 = vpop.f32.mrf.mxu1  ;;  %v774_v20 = vadd.f32 %v773_v8, %v684_v19 }
  0xcb   : > { %v965_v21 = vadd.f32 %v1639_v49, %v811_v17 }
  0xcc   : > { %v950_v22 = vadd.f32 %v1639_v49, %v774_v20 }
  0xcd   : > { %v997_v23 = vmax.f32 %v965_v21, 0.0 }
  0xce   : > { %v982_v24 = vmax.f32 %v950_v22, 0.0 }
  0xcf   : > { %1029 = vst [vmem:[%s1647_s28 + $0x98] sm:$0xff] %v997_v23 }
  0xd0   : > { %1014 = vst [vmem:[%s1647_s28 + $0x20] sm:$0xff] %v982_v24  ;;  %v724_v26 = vpop.f32.mrf.mxu2 }
  0xd1   : > { %v814_v27 = vadd.f32 %v813_v3, %v724_v26  ;;  %v686_v29 = vpop.f32.mrf.mxu0  ;;  %v820_v36 = vpop.f32.mrf.mxu3 }
  0xd2   : > { %v778_v28 = vpop.f32.mrf.mxu1  ;;  %v776_v30 = vadd.f32 %v775_v18, %v686_v29 }
  0xd3   : > { %v966_v31 = vadd.f32 %v1639_v49, %v814_v27 }
  0xd4   : > { %v951_v32 = vadd.f32 %v1639_v49, %v776_v30 }
  0xd5   : > { %v998_v33 = vmax.f32 %v966_v31, 0.0 }
  0xd6   : > { %v983_v34 = vmax.f32 %v951_v32, 0.0 }
  0xd7   : > { %1030 = vst [vmem:[%s1647_s28 + $0xa0] sm:$0xff] %v998_v33 }
  0xd8   : > { %1015 = vst [vmem:[%s1647_s28 + $0x28] sm:$0xff] %v983_v34  ;;  %v726_v35 = vpop.f32.mrf.mxu2 }
  0xd9   : > { %v816_v37 = vadd.f32 %v815_v13, %v726_v35  ;;  %v689_v39 = vpop.f32.mrf.mxu0  ;;  %v823_v51 = vpop.f32.mrf.mxu3 }
  0xda   : > { %v780_v38 = vpop.f32.mrf.mxu1  ;;  %v779_v40 = vadd.f32 %v778_v28, %v689_v39 }
  0xdb   : > { %v967_v41 = vadd.f32 %v1639_v49, %v816_v37 }
  0xdc   : > { %v952_v42 = vadd.f32 %v1639_v49, %v779_v40 }
  0xdd   : > { %v999_v43 = vmax.f32 %v967_v41, 0.0 }
  0xde   : > { %v984_v44 = vmax.f32 %v952_v42, 0.0 }
  0xdf   : > { %1031 = vst [vmem:[%s1647_s28 + $0xa8] sm:$0xff] %v999_v43 }
  0xe0   : > { %1016 = vst [vmem:[%s1647_s28 + $0x30] sm:$0xff] %v984_v44  ;;  %v729_v45 = vpop.f32.mrf.mxu2 }
  0xe1   : > { %v819_v46 = vadd.f32 %v818_v25, %v729_v45  ;;  %v691_v48 = vpop.f32.mrf.mxu0  ;;  %v825_v1 = vpop.f32.mrf.mxu3 }
  0xe2   : > { %v783_v47 = vpop.f32.mrf.mxu1  ;;  %v781_v50 = vadd.f32 %v780_v38, %v691_v48 }
  0xe3   : > { %v968_v52 = vadd.f32 %v1639_v49, %v819_v46 }
  0xe4   : > { %v953_v53 = vadd.f32 %v1639_v49, %v781_v50 }
  0xe5   : > { %v1000_v54 = vmax.f32 %v968_v52, 0.0 }
  0xe6   : > { %v985_v55 = vmax.f32 %v953_v53, 0.0 }
  0xe7   : > { %1032 = vst [vmem:[%s1647_s28 + $0xb0] sm:$0xff] %v1000_v54 }
  0xe8   : > { %1017 = vst [vmem:[%s1647_s28 + $0x38] sm:$0xff] %v985_v55  ;;  %v731_v57 = vpop.f32.mrf.mxu2 }
  0xe9   : > { %v821_v58 = vadd.f32 %v820_v36, %v731_v57  ;;  %v694_v60 = vpop.f32.mrf.mxu0  ;;  %v828_v13 = vpop.f32.mrf.mxu3 }
  0xea   : > { %v785_v59 = vpop.f32.mrf.mxu1  ;;  %v784_v61 = vadd.f32 %v783_v47, %v694_v60 }
  0xeb   : > { %v969_v62 = vadd.f32 %v1639_v49, %v821_v58 }
  0xec   : > { %v954_v0 = vadd.f32 %v1639_v49, %v784_v61 }
  0xed   : > { %v1001_v2 = vmax.f32 %v969_v62, 0.0 }
  0xee   : > { %v986_v3 = vmax.f32 %v954_v0, 0.0 }
  0xef   : > { %1033 = vst [vmem:[%s1647_s28 + $0xb8] sm:$0xff] %v1001_v2 }
  0xf0   : > { %1018 = vst [vmem:[%s1647_s28 + $0x40] sm:$0xff] %v986_v3  ;;  %v734_v4 = vpop.f32.mrf.mxu2 }
  0xf1   : > { %v824_v5 = vadd.f32 %v823_v51, %v734_v4  ;;  %v696_v7 = vpop.f32.mrf.mxu0  ;;  %v830_v24 = vpop.f32.mrf.mxu3 }
  0xf2   : > { %v788_v6 = vpop.f32.mrf.mxu1  ;;  %v786_v8 = vadd.f32 %v785_v59, %v696_v7 }
  0xf3   : > { %v970_v9 = vadd.f32 %v1639_v49, %v824_v5 }
  0xf4   : > { %v955_v10 = vadd.f32 %v1639_v49, %v786_v8 }
  0xf5   : > { %v1002_v11 = vmax.f32 %v970_v9, 0.0 }
  0xf6   : > { %v987_v12 = vmax.f32 %v955_v10, 0.0 }
  0xf7   : > { %1034 = vst [vmem:[%s1647_s28 + $0xc0] sm:$0xff] %v1002_v11 }
  0xf8   : > { %1019 = vst [vmem:[%s1647_s28 + $0x48] sm:$0xff] %v987_v12  ;;  %v736_v14 = vpop.f32.mrf.mxu2 }
  0xf9   : > { %v826_v15 = vadd.f32 %v825_v1, %v736_v14  ;;  %v699_v17 = vpop.f32.mrf.mxu0  ;;  %v833_v37 = vpop.f32.mrf.mxu3 }
  0xfa   : > { %v790_v16 = vpop.f32.mrf.mxu1  ;;  %v789_v18 = vadd.f32 %v788_v6, %v699_v17 }
  0xfb   : > { %v971_v19 = vadd.f32 %v1639_v49, %v826_v15 }
  0xfc   : > { %v956_v20 = vadd.f32 %v1639_v49, %v789_v18 }
  0xfd   : > { %v1003_v21 = vmax.f32 %v971_v19, 0.0 }
  0xfe   : > { %v988_v22 = vmax.f32 %v956_v20, 0.0 }
  0xff   : > { %1035 = vst [vmem:[%s1647_s28 + $0xc8] sm:$0xff] %v1003_v21 }
 0x100   : > { %1020 = vst [vmem:[%s1647_s28 + $0x50] sm:$0xff] %v988_v22  ;;  %v739_v23 = vpop.f32.mrf.mxu2 }
 0x101   : > { %v829_v25 = vadd.f32 %v828_v13, %v739_v23  ;;  %v701_v27 = vpop.f32.mrf.mxu0  ;;  %v835_v50 = vpop.f32.mrf.mxu3 }
 0x102   : > { %v793_v26 = vpop.f32.mrf.mxu1  ;;  %v791_v28 = vadd.f32 %v790_v16, %v701_v27 }
 0x103   : > { %v972_v29 = vadd.f32 %v1639_v49, %v829_v25 }
 0x104   : > { %v957_v30 = vadd.f32 %v1639_v49, %v791_v28 }
 0x105   : > { %v1004_v31 = vmax.f32 %v972_v29, 0.0 }
 0x106   : > { %v989_v32 = vmax.f32 %v957_v30, 0.0 }
 0x107   : > { %1036 = vst [vmem:[%s1647_s28 + $0xd0] sm:$0xff] %v1004_v31 }
 0x108   : > { %1021 = vst [vmem:[%s1647_s28 + $0x58] sm:$0xff] %v989_v32  ;;  %v741_v33 = vpop.f32.mrf.mxu2 }
 0x109   : > { %v831_v34 = vadd.f32 %v830_v24, %v741_v33  ;;  %v704_v36 = vpop.f32.mrf.mxu0  ;;  %v838_v0 = vpop.f32.mrf.mxu3 }
 0x10a   : > { %v795_v35 = vpop.f32.mrf.mxu1  ;;  %v794_v38 = vadd.f32 %v793_v26, %v704_v36 }
 0x10b   : > { %v973_v39 = vadd.f32 %v1639_v49, %v831_v34 }
 0x10c   : > { %v958_v40 = vadd.f32 %v1639_v49, %v794_v38 }
 0x10d   : > { %v1005_v41 = vmax.f32 %v973_v39, 0.0 }
 0x10e   : > { %v990_v42 = vmax.f32 %v958_v40, 0.0 }
 0x10f   : > { %1037 = vst [vmem:[%s1647_s28 + $0xd8] sm:$0xff] %v1005_v41 }
 0x110   : > { %1022 = vst [vmem:[%s1647_s28 + $0x60] sm:$0xff] %v990_v42  ;;  %v744_v43 = vpop.f32.mrf.mxu2 }
 0x111   : > { %v834_v44 = vadd.f32 %v833_v37, %v744_v43  ;;  %v706_v46 = vpop.f32.mrf.mxu0  ;;  %v840_v14 = vpop.f32.mrf.mxu3 }
 0x112   : > { %v798_v45 = vpop.f32.mrf.mxu1  ;;  %v796_v47 = vadd.f32 %v795_v35, %v706_v46 }
 0x113   : > { %v974_v48 = vadd.f32 %v1639_v49, %v834_v44 }
 0x114   : > { %v959_v51 = vadd.f32 %v1639_v49, %v796_v47 }
 0x115   : > { %v1006_v52 = vmax.f32 %v974_v48, 0.0 }
 0x116   : > { %v991_v53 = vmax.f32 %v959_v51, 0.0 }
 0x117   : > { %1038 = vst [vmem:[%s1647_s28 + $0xe0] sm:$0xff] %v1006_v52 }
 0x118   : > { %1023 = vst [vmem:[%s1647_s28 + $0x68] sm:$0xff] %v991_v53  ;;  %v746_v54 = vpop.f32.mrf.mxu2 }
 0x119   : > { %v836_v55 = vadd.f32 %v835_v50, %v746_v54  ;;  %v709_v58 = vpop.f32.mrf.mxu0 }
 0x11a   : > { %v800_v57 = vpop.f32.mrf.mxu1  ;;  %v799_v59 = vadd.f32 %v798_v45, %v709_v58 }
 0x11b   : > { %v975_v60 = vadd.f32 %v1639_v49, %v836_v55 }
 0x11c   : > { %v960_v61 = vadd.f32 %v1639_v49, %v799_v59 }
 0x11d   : > { %v1007_v62 = vmax.f32 %v975_v60, 0.0 }
 0x11e   : > { %v992_v1 = vmax.f32 %v960_v61, 0.0 }
 0x11f   : > { %1039 = vst [vmem:[%s1647_s28 + $0xe8] sm:$0xff] %v1007_v62 }
 0x120   : > { %1024 = vst [vmem:[%s1647_s28 + $0x70] sm:$0xff] %v992_v1  ;;  %v749_v2 = vpop.f32.mrf.mxu2 }
 0x121   : > { %v839_v3 = vadd.f32 %v838_v0, %v749_v2  ;;  %v711_v5 = vpop.f32.mrf.mxu0 }
 0x122   : > { %v803_v4 = vpop.f32.mrf.mxu1  ;;  %v801_v7 = vadd.f32 %v800_v57, %v711_v5 }
 0x123   : > { %v804_v6 = vadd.f32 %v803_v4, %v1650_v56  ;;  %v976_v8 = vadd.f32 %v1639_v49, %v839_v3 }
 0x124   : > { %v961_v10 = vadd.f32 %v1639_v49, %v801_v7 }
 0x125   : > { %v962_v9 = vadd.f32 %v1639_v49, %v804_v6  ;;  %v1008_v11 = vmax.f32 %v976_v8, 0.0 }
 0x126   : > { %v993_v13 = vmax.f32 %v961_v10, 0.0 }
 0x127   : > { %v994_v12 = vmax.f32 %v962_v9, 0.0  ;;  %1040 = vst [vmem:[%s1647_s28 + $0xf0] sm:$0xff] %v1008_v11 }
 0x128   : > { %v751_v15 = vpop.f32.mrf.mxu2  ;;  %1025 = vst [vmem:[%s1647_s28 + $0x78] sm:$0xff] %v993_v13 }
 0x129   : > { %1026 = vst [vmem:[%s1647_s28 + $0x80] sm:$0xff] %v994_v12  ;;  %v841_v16 = vadd.f32 %v840_v14, %v751_v15 }
 0x12a   : > { %v805_v17 = vpop.f32.mrf.mxu1 }
 0x12b   : > { %v806_v56 = vadd.f32 %v805_v17, %v1654_v63  ;;  %v977_v18 = vadd.f32 %v1639_v49, %v841_v16 }
 0x12d   : > { %v963_v19 = vadd.f32 %v1639_v49, %v806_v56  ;;  %v1009_v20 = vmax.f32 %v977_v18, 0.0 }
 0x12f   : > { %v995_v21 = vmax.f32 %v963_v19, 0.0  ;;  %1041 = vst [vmem:[%s1647_s28 + $0xf8] sm:$0xff] %v1009_v20 }
 0x131   : > { %1027 = vst [vmem:[%s1647_s28 + $0x88] sm:$0xff] %v995_v21 }
 0x132 PF: > { %s13_s14 = sadd.s32 1, %s1467_s14   ;;  %s1731_s12 = smov %s1463_s13 }
 0x133   : > { %p10_p5 = scmp.ge.s32.totalorder %s13_s14, 4   ;;  %s1732_s13 = smov %s1734_s15 }
 0x135   :  { %12 = sbr.rel (!%p10_p5) target bundleno = 2 (0x2), region = 76 }

// kernel: mul.352.clone
= control target key start
LH: loop header
LB: loop body
LE: loop exit
PB: predicated region body
PF: predicated region fallthrough
CT: control target
= control target key end

     0   :  { %s118_s0 = inlined_call_operand.vmem [shape: f32[2,64], index: 0, kind: input, shape index: {}]   ;;  %s119_s1 = inlined_call_operand.vmem [shape: f32[2,8,8,64], index: 1, kind: output, shape index: {}]  }
   0x1   :  { %v4_v0 = vld [vmem:[%s118_s0] ss:$0 sm:$0xff]  ;;  %v38_v1 = vld [vmem:[%s118_s0 + $0x1] ss:$0 sm:$0xff] }
   0x2   :  { %5 = vst [vmem:[%s119_s1] sm:$0xff] %v4_v0 }
   0x3   :  { %39 = vst [vmem:[%s119_s1 + $0x40] sm:$0xff] %v38_v1 }
   0x4   :  { %40 = vst [vmem:[%s119_s1 + $0x8] sm:$0xff] %v4_v0 }
   0x5   :  { %41 = vst [vmem:[%s119_s1 + $0x48] sm:$0xff] %v38_v1 }
   0x6   :  { %42 = vst [vmem:[%s119_s1 + $0x10] sm:$0xff] %v4_v0 }
   0x7   :  { %43 = vst [vmem:[%s119_s1 + $0x50] sm:$0xff] %v38_v1 }
   0x8   :  { %44 = vst [vmem:[%s119_s1 + $0x18] sm:$0xff] %v4_v0 }
   0x9   :  { %45 = vst [vmem:[%s119_s1 + $0x58] sm:$0xff] %v38_v1 }
   0xa   :  { %46 = vst [vmem:[%s119_s1 + $0x20] sm:$0xff] %v4_v0 }
   0xb   :  { %47 = vst [vmem:[%s119_s1 + $0x60] sm:$0xff] %v38_v1 }
   0xc   :  { %48 = vst [vmem:[%s119_s1 + $0x28] sm:$0xff] %v4_v0 }
   0xd   :  { %49 = vst [vmem:[%s119_s1 + $0x68] sm:$0xff] %v38_v1 }
   0xe   :  { %50 = vst [vmem:[%s119_s1 + $0x30] sm:$0xff] %v4_v0 }
   0xf   :  { %51 = vst [vmem:[%s119_s1 + $0x70] sm:$0xff] %v38_v1 }
  0x10   :  { %52 = vst [vmem:[%s119_s1 + $0x38] sm:$0xff] %v4_v0 }
  0x11   :  { %53 = vst [vmem:[%s119_s1 + $0x78] sm:$0xff] %v38_v1 }

// kernel: device_forward.23
= control target key start
LH: loop header
LB: loop body
LE: loop exit
PB: predicated region body
PF: predicated region fallthrough
CT: control target
= control target key end

     0   :  { %s1410_s12 = smov 0   ;;  %s1412_s13 = smov 0   ;;  %s1633_s0 = inlined_call_operand.vmem [shape: bf16[128,576], index: 0, kind: input, shape index: {}]   ;;  %s1634_s1 = inlined_call_operand.vmem [shape: bf16[576,128], index: 1, kind: input, shape index: {}]   ;;  %s1635_s2 = inlined_call_operand.vmem [shape: f32[1,128], index: 2, kind: input, shape index: {}]   ;;  %s1636_s3 = inlined_call_operand.vmem [shape: f32[128,128], index: 3, kind: output, shape index: {}]  }
   0x1   :  { %s1414_s14 = smov 0  }
   0x2 LB: > { %s32_s15 = sadd.s32 1, %s1384_s13  ;;  %p1033_p0 = scmp.ge.s32.totalorder %s1388_s14, 1  ;;  %s1388_s14 = sphi %s1414_s14, %s13_s14   ;;  %s1384_s13 = sphi %s1412_s13, %s1638_s13   ;;  %s1380_s12 = sphi %s1410_s12, %s1637_s12  }
   0x3   : > { %p34_p1 = scmp.ge.s32.totalorder %s32_s15, 2  ;;  %p191_p2 = scmp.lt.s32.totalorder %s1388_s14, 3 }
   0x5   : > { %s1640_s15 = smov (%p34_p1, %s32_s15), 0  ;;  %p192_p3 = pnand %p1033_p0, %p191_p2 }
   0x6   : > { %s1034_s26 = sshll.u32 (!%p192_p3), %s1380_s12, 3 }
   0x7   : > { %195 = sbr.rel (%p192_p3) target bundleno = 275 (0x113), region = 32  ;;  %p236_p4 = scmp.lt.s32.totalorder (!%p192_p3), %s1034_s26, 15 }
   0xc   : > { %v1295_v0 = vld [vmem:[%s1634_s1 + $0x38] sm:$0xff]  ;;  %v1294_v1 = vld [vmem:[%s1634_s1 + $0x30] sm:$0xff]  ;;  %v1293_v4 = vld [vmem:[%s1634_s1 + $0x28] sm:$0xff]  ;;  %s1642_s26 = smov (!%p236_p4, %s1034_s26), 15  ;;  %vm700_vm0 = vcmask 523264  }
   0xd   : > { %1324 = vmatpush.bf16.msra.mxu1 %v1295_v0  ;;  %1325 = vmatpush.bf16.msra.mxu2 %v1295_v0  ;;  %v1319_v2 = vld [vmem:[%s1634_s1 + $0xf8] sm:$0xff]  ;;  %v1318_v3 = vld [vmem:[%s1634_s1 + $0xf0] sm:$0xff]  ;;  %v1317_v5 = vld [vmem:[%s1634_s1 + $0xe8] sm:$0xff]  ;;  %s1340_s12 = smul.u32 20, %s1642_s26  ;;  %s1037_s27 = sshll.u32 %s1642_s26, 3 }
   0xe   : > { %713 = vmatpush.bf16.msra.mxu0 %v1295_v0  ;;  %800 = vmatpush.bf16.msra.mxu3 %v1319_v2  ;;  %v1292_v6 = vld [vmem:[%s1634_s1 + $0x20] sm:$0xff]  ;;  %v1291_v8 = vld [vmem:[%s1634_s1 + $0x18] sm:$0xff]  ;;  %v1290_v10 = vld [vmem:[%s1634_s1 + $0x10] sm:$0xff]  ;;  %s1605_s30 = scalar_lea.vmem %s1636_s3, %s1037_s27 }
   0xf   : > { %v1316_v7 = vld [vmem:[%s1634_s1 + $0xe0] sm:$0xff]  ;;  %v1315_v9 = vld [vmem:[%s1634_s1 + $0xd8] sm:$0xff]  ;;  %v1314_v11 = vld [vmem:[%s1634_s1 + $0xd0] sm:$0xff]  ;;  %s1476_s22 = scalar_lea.vmem %s1633_s0, %s1340_s12 }
  0x10   : > { %v1289_v12 = vld [vmem:[%s1634_s1 + $0x8] sm:$0xff]  ;;  %v1288_v14 = vld [vmem:[%s1634_s1] sm:$0xff]  ;;  %v1275_v16 = vld [vmem:[%s1476_s22 + $0x38] sm:$0xf0] }
  0x11   : > { %1326 = vmatpush.bf16.msra.mxu1 %v1294_v1  ;;  %1327 = vmatpush.bf16.msra.mxu2 %v1294_v1  ;;  %v1313_v13 = vld [vmem:[%s1634_s1 + $0xc8] sm:$0xff]  ;;  %v1100_v17 = vld [vmem:[%s1476_s22 + $0x78] sm:$0xf]  ;;  %v1040_v21 = vld [vmem:[%s1476_s22] sm:$0xf] }
  0x12   : > { %714 = vmatpush.bf16.msra.mxu0 %v1294_v1  ;;  %801 = vmatpush.bf16.msra.mxu3 %v1318_v3  ;;  %v1060_v15 = vld [vmem:[%s1476_s22 + $0x28] sm:$0xf]  ;;  %v1285_v18 = vld [vmem:[%s1476_s22 + $0x88] sm:$0xf0]  ;;  %v1311_v19 = vld [vmem:[%s1634_s1 + $0xb8] sm:$0xff] }
  0x13   : > { %v1303_v20 = vld [vmem:[%s1634_s1 + $0x78] sm:$0xff]  ;;  %v1312_v22 = vld [vmem:[%s1634_s1 + $0xc0] sm:$0xff]  ;;  %v1061_v23 = vor.u32 %v1275_v16, %v1060_v15  ;;  %v1101_v24 = vor.u32 %v1285_v18, %v1100_v17  ;;  %v1270_v25 = vld [vmem:[%s1476_s22 + $0x10] sm:$0xf0] }
  0x14   : > { %v1269_v26 = vld [vmem:[%s1476_s22 + $0xc] sm:$0xf]  ;;  %v1050_v27 = vld [vmem:[%s1476_s22 + $0x1c] sm:$0xf0]  ;;  %v1323_v28 = vld [vmem:[%s1634_s1 + $0x118] sm:$0xff]  ;;  %v1041_v31 = vor.u32 %v1270_v25, %v1040_v21 }
  0x15   : > { %1328 = vmatpush.bf16.msra.mxu1 %v1293_v4  ;;  %1329 = vmatpush.bf16.msra.mxu2 %v1293_v4  ;;  %v1310_v29 = vld [vmem:[%s1634_s1 + $0xb0] sm:$0xff]  ;;  %v1053_v32 = vor.u32 %v1269_v26, %v1050_v27  ;;  %v1309_v34 = vld [vmem:[%s1634_s1 + $0xa8] sm:$0xff]  ;;  %v1308_v37 = vld [vmem:[%s1634_s1 + $0xa0] sm:$0xff] }
  0x16   : > { %715 = vmatpush.bf16.msra.mxu0 %v1293_v4  ;;  %802 = vmatpush.bf16.msra.mxu3 %v1317_v5  ;;  %v1302_v30 = vld [vmem:[%s1634_s1 + $0x70] sm:$0xff]  ;;  %v1301_v35 = vld [vmem:[%s1634_s1 + $0x68] sm:$0xff]  ;;  %v1300_v38 = vld [vmem:[%s1634_s1 + $0x60] sm:$0xff] }
  0x17   : > { %v1322_v33 = vld [vmem:[%s1634_s1 + $0x110] sm:$0xff]  ;;  %v1321_v36 = vld [vmem:[%s1634_s1 + $0x108] sm:$0xff]  ;;  %v1280_v40 = vld [vmem:[%s1476_s22 + $0x60] sm:$0xf0] }
  0x18   : > { %v1080_v39 = vld [vmem:[%s1476_s22 + $0x50] sm:$0xf]  ;;  %v1320_v41 = vld [vmem:[%s1634_s1 + $0x100] sm:$0xff]  ;;  %v1307_v42 = vld [vmem:[%s1634_s1 + $0x98] sm:$0xff] }
  0x19   : > { %1330 = vmatpush.bf16.msra.mxu1 %v1292_v6  ;;  %1331 = vmatpush.bf16.msra.mxu2 %v1292_v6  ;;  %v1299_v43 = vld [vmem:[%s1634_s1 + $0x58] sm:$0xff]  ;;  %v1056_v44 = vld [vmem:[%s1476_s22 + $0x10] sm:$0xf]  ;;  %v1081_v45 = vor.u32 %v1280_v40, %v1080_v39  ;;  %v1272_v46 = vld [vmem:[%s1476_s22 + $0x20] sm:$0xf0] }
  0x1a   : > { %716 = vmatpush.bf16.msra.mxu0 %v1292_v6  ;;  %803 = vmatpush.bf16.msra.mxu3 %v1316_v7  ;;  %v1274_v47 = vld [vmem:[%s1476_s22 + $0x34] sm:$0xf]  ;;  %v1070_v48 = vld [vmem:[%s1476_s22 + $0x44] sm:$0xf0]  ;;  %v1057_v51 = vor.u32 %v1272_v46, %v1056_v44  ;;  %v1304_v55 = vld [vmem:[%s1634_s1 + $0x80] sm:$0xff] }
  0x1b   : > { %v1306_v49 = vld [vmem:[%s1634_s1 + $0x90] sm:$0xff]  ;;  %v1073_v52 = vor.u32 %v1274_v47, %v1070_v48  ;;  %v1305_v53 = vld [vmem:[%s1634_s1 + $0x88] sm:$0xff]  ;;  %v1296_v56 = vld [vmem:[%s1634_s1 + $0x40] sm:$0xff] }
  0x1c   : > { %v1298_v50 = vld [vmem:[%s1634_s1 + $0x50] sm:$0xff]  ;;  %v1297_v54 = vld [vmem:[%s1634_s1 + $0x48] sm:$0xff]  ;;  %v1271_v58 = vld [vmem:[%s1476_s22 + $0x18] sm:$0xf0] }
  0x1d   : > { %1332 = vmatpush.bf16.msra.mxu1 %v1291_v8  ;;  %1333 = vmatpush.bf16.msra.mxu2 %v1291_v8  ;;  %v1048_v57 = vld [vmem:[%s1476_s22 + $0x8] sm:$0xf]  ;;  %v1268_v60 = vld [vmem:[%s1476_s22 + $0x4] sm:$0xf]  ;;  %v1042_v61 = vld [vmem:[%s1476_s22 + $0x14] sm:$0xf0] }
  0x1e   : > { %717 = vmatpush.bf16.msra.mxu0 %v1291_v8  ;;  %804 = vmatpush.bf16.msra.mxu3 %v1315_v9  ;;  %v1049_v59 = vor.u32 %v1271_v58, %v1048_v57  ;;  %v1076_v62 = vld [vmem:[%s1476_s22 + $0x38] sm:$0xf]  ;;  %v1045_v63 = vor.u32 %v1268_v60, %v1042_v61  ;;  %v1277_v0 = vld [vmem:[%s1476_s22 + $0x48] sm:$0xf0]  ;;  %v1279_v1 = vld [vmem:[%s1476_s22 + $0x5c] sm:$0xf] }
  0x1f   : > { %v1090_v2 = vld [vmem:[%s1476_s22 + $0x6c] sm:$0xf0]  ;;  %v1077_v3 = vor.u32 %v1277_v0, %v1076_v62  ;;  %v1276_v6 = vld [vmem:[%s1476_s22 + $0x40] sm:$0xf0]  ;;  %v1273_v8 = vld [vmem:[%s1476_s22 + $0x2c] sm:$0xf] }
  0x20   : > { %v1093_v4 = vor.u32 %v1279_v1, %v1090_v2  ;;  %v1068_v5 = vld [vmem:[%s1476_s22 + $0x30] sm:$0xf]  ;;  %v1062_v9 = vld [vmem:[%s1476_s22 + $0x3c] sm:$0xf0]  ;;  %v1088_v17 = vld [vmem:[%s1476_s22 + $0x58] sm:$0xf] }
  0x21   : > { %1334 = vmatpush.bf16.msra.mxu1 %v1290_v10  ;;  %1335 = vmatpush.bf16.msra.mxu2 %v1290_v10  ;;  %v1069_v7 = vor.u32 %v1276_v6, %v1068_v5  ;;  %v1281_v18 = vld [vmem:[%s1476_s22 + $0x68] sm:$0xf0]  ;;  %v1082_v21 = vld [vmem:[%s1476_s22 + $0x64] sm:$0xf0]  ;;  %v1108_v26 = vld [vmem:[%s1476_s22 + $0x80] sm:$0xf] }
  0x22   : > { %718 = vmatpush.bf16.msra.mxu0 %v1290_v10  ;;  %805 = vmatpush.bf16.msra.mxu3 %v1314_v11  ;;  %v1096_v10 = vld [vmem:[%s1476_s22 + $0x60] sm:$0xf]  ;;  %v1065_v11 = vor.u32 %v1273_v8, %v1062_v9  ;;  %v1286_v27 = vld [vmem:[%s1476_s22 + $0x90] sm:$0xf0] }
  0x25   : > { %1336 = vmatpush.bf16.msra.mxu1 %v1289_v12  ;;  %1337 = vmatpush.bf16.msra.mxu2 %v1289_v12 }
  0x26   : > { %719 = vmatpush.bf16.msra.mxu0 %v1289_v12  ;;  %806 = vmatpush.bf16.msra.mxu3 %v1313_v13  ;;  %v1282_v12 = vld [vmem:[%s1476_s22 + $0x70] sm:$0xf0]  ;;  %v1284_v13 = vld [vmem:[%s1476_s22 + $0x84] sm:$0xf] }
  0x27   : > { %v1097_v15 = vor.u32 %v1282_v12, %v1096_v10 }
  0x29   : > { %1338 = vmatpush.bf16.msra.mxu1 %v1288_v14  ;;  %1339 = vmatpush.bf16.msra.mxu2 %v1288_v14 }
  0x2a   : > { %720 = vmatpush.bf16.msra.mxu0 %v1288_v14  ;;  %807 = vmatpush.bf16.msra.mxu3 %v1312_v22  ;;  %v1110_v14 = vld [vmem:[%s1476_s22 + $0x94] sm:$0xf0] }
  0x2b   : > { %v1113_v16 = vor.u32 %v1284_v13, %v1110_v14 }
  0x2c   : > { %726 = vmatmul.bf16.vlgmr.msra.gmra.mxu1 %v1061_v23  ;;  %736 = vmatmul.bf16.vlgmr.msra.gmra.mxu2 %v1101_v24  ;;  %v1116_v23 = vld [vmem:[%s1476_s22 + $0x88] sm:$0xf]  ;;  %v1287_v24 = vld [vmem:[%s1476_s22 + $0x98] sm:$0xf0] }
  0x2d   : > { %771 = vmatpush.bf16.msrb.mxu2 %v1311_v19  ;;  %742 = vmatpush.bf16.msrb.mxu1 %v1303_v20  ;;  %v1089_v19 = vor.u32 %v1281_v18, %v1088_v17  ;;  %v1278_v20 = vld [vmem:[%s1476_s22 + $0x54] sm:$0xf]  ;;  %v1117_v25 = vor.u32 %v1287_v24, %v1116_v23 }
  0x2e   : > { %833 = vmatpush.bf16.msrb.mxu0 %v1323_v28  ;;  %808 = vmatmul.bf16.vlgmr.msra.gmra.mxu3 %v1053_v32  ;;  %v1085_v22 = vor.u32 %v1278_v20, %v1082_v21  ;;  %v1109_v28 = vor.u32 %v1286_v27, %v1108_v26 }
  0x2f   : > { %721 = vmatmul.bf16.vlgmr.msra.gmra.mxu0 %v1041_v31 }
  0x31   : > { %772 = vmatpush.bf16.msrb.mxu2 %v1310_v29  ;;  %743 = vmatpush.bf16.msrb.mxu1 %v1302_v30  ;;  %v1283_v29 = vld [vmem:[%s1476_s22 + $0x7c] sm:$0xf]  ;;  %v1102_v30 = vld [vmem:[%s1476_s22 + $0x8c] sm:$0xf0] }
  0x32   : > { %834 = vmatpush.bf16.msrb.mxu0 %v1322_v33  ;;  %v1105_v31 = vor.u32 %v1283_v29, %v1102_v30 }
  0x35   : > { %773 = vmatpush.bf16.msrb.mxu2 %v1309_v34  ;;  %744 = vmatpush.bf16.msrb.mxu1 %v1301_v35 }
  0x36   : > { %835 = vmatpush.bf16.msrb.mxu0 %v1321_v36 }
  0x39   : > { %774 = vmatpush.bf16.msrb.mxu2 %v1308_v37  ;;  %745 = vmatpush.bf16.msrb.mxu1 %v1300_v38 }
  0x3a   : > { %836 = vmatpush.bf16.msrb.mxu0 %v1320_v41 }
  0x3c   : > { %731 = vmatmul.bf16.gmra.mxu1 %v1081_v45 }
  0x3d   : > { %775 = vmatpush.bf16.msrb.mxu2 %v1307_v42  ;;  %746 = vmatpush.bf16.msrb.mxu1 %v1299_v43 }
  0x3e   : > { %813 = vmatmul.bf16.gmra.mxu3 %v1073_v52 }
  0x3f   : > { %1262 = vmatmul.msk.bf16.vlgmr.msrb.gmra.mxu0 %vm700_vm0, %v1057_v51 }
  0x41   : > { %776 = vmatpush.bf16.msrb.mxu2 %v1306_v49  ;;  %747 = vmatpush.bf16.msrb.mxu1 %v1298_v50  ;;  %v1598_v49 = vld [vmem:[%s1635_s2] ss:$0 sm:$0xff] }
  0x45   : > { %777 = vmatpush.bf16.msrb.mxu2 %v1305_v53  ;;  %748 = vmatpush.bf16.msrb.mxu1 %v1297_v54 }
  0x49   : > { %778 = vmatpush.bf16.msrb.mxu2 %v1304_v55  ;;  %749 = vmatpush.bf16.msrb.mxu1 %v1296_v56 }
  0x4c   : > { %779 = vmatmul.bf16.vlgmr.msrb.gmra.mxu2 %v1049_v59  ;;  %750 = vmatmul.bf16.vlgmr.msrb.gmra.mxu1 %v1045_v63 }
  0x4e   : > { %818 = vmatmul.bf16.gmra.mxu3 %v1093_v4 }
  0x4f   : > { %1263 = vmatmul.msk.bf16.gmra.mxu0 %vm700_vm0, %v1077_v3 }
  0x5c   : > { %784 = vmatmul.bf16.gmra.mxu2 %v1069_v7  ;;  %755 = vmatmul.bf16.gmra.mxu1 %v1065_v11 }
  0x5e   : > { %823 = vmatmul.bf16.gmra.mxu3 %v1113_v16 }
  0x5f   : > { %1264 = vmatmul.msk.bf16.gmra.mxu0 %vm700_vm0, %v1097_v15 }
  0x6c   : > { %789 = vmatmul.bf16.gmra.mxu2 %v1089_v19  ;;  %760 = vmatmul.bf16.gmra.mxu1 %v1085_v22 }
  0x6f   : > { %1265 = vmatmul.msk.bf16.gmra.mxu0 %vm700_vm0, %v1117_v25 }
  0x7c   : > { %794 = vmatmul.bf16.gmra.mxu2 %v1109_v28  ;;  %765 = vmatmul.bf16.gmra.mxu1 %v1105_v31 }
  0xa9   : > { %v727_v32 = vpop.f32.mrf.mxu1 }
  0xac   : > { %v722_v33 = vpop.f32.mrf.mxu0 }
  0xaf   : > { %v1591_v37 = vpop.f32.mrf.mxu2 }
  0xb1   : > { %v729_v34 = vpop.f32.mrf.mxu1  ;;  %v809_v38 = vpop.f32.mrf.mxu3 }
  0xb4   : > { %v724_v35 = vpop.f32.mrf.mxu0 }
  0xb7   : > { %v1593_v41 = vpop.f32.mrf.mxu2 }
  0xb9   : > { %v732_v36 = vpop.f32.mrf.mxu1  ;;  %v811_v44 = vpop.f32.mrf.mxu3 }
  0xbc   : > { %v838_v40 = vpop.f32.mrf.mxu0 }
  0xc1   : > { %v734_v39 = vpop.f32.mrf.mxu1  ;;  %v814_v55 = vpop.f32.mrf.mxu3 }
  0xc4   : > { %v840_v46 = vpop.f32.mrf.mxu0 }
  0xc9   : > { %v751_v42 = vpop.f32.mrf.mxu1  ;;  %v816_v3 = vpop.f32.mrf.mxu3 }
  0xca   : > { %v752_v43 = vadd.f32 %v751_v42, %v722_v33 }
  0xcc   : > { %v843_v58 = vpop.f32.mrf.mxu0 }
  0xcf   : > { %v780_v45 = vpop.f32.mrf.mxu2 }
  0xd0   : > { %v781_v47 = vadd.f32 %v780_v45, %v752_v43 }
  0xd1   : > { %v753_v51 = vpop.f32.mrf.mxu1  ;;  %v819_v14 = vpop.f32.mrf.mxu3 }
  0xd2   : > { %v810_v48 = vadd.f32 %v809_v38, %v781_v47  ;;  %v754_v52 = vadd.f32 %v753_v51, %v724_v35 }
  0xd4   : > { %v839_v50 = vadd.f32 %v838_v40, %v810_v48  ;;  %v845_v5 = vpop.f32.mrf.mxu0 }
  0xd6   : > { %v889_v53 = vadd.f32 %v1598_v49, %v839_v50 }
  0xd7   : > { %v782_v54 = vpop.f32.mrf.mxu2 }
  0xd8   : > { %v897_v56 = vmax.f32 %v889_v53, 0.0  ;;  %v783_v57 = vadd.f32 %v782_v54, %v754_v52 }
  0xd9   : > { %v756_v61 = vpop.f32.mrf.mxu1  ;;  %v821_v26 = vpop.f32.mrf.mxu3 }
  0xda   : > { %905 = vst [vmem:[%s1605_s30] sm:$0xff] %v897_v56  ;;  %v812_v59 = vadd.f32 %v811_v44, %v783_v57  ;;  %v757_v62 = vadd.f32 %v756_v61, %v727_v32 }
  0xdc   : > { %v841_v60 = vadd.f32 %v840_v46, %v812_v59  ;;  %v848_v17 = vpop.f32.mrf.mxu0 }
  0xde   : > { %v890_v63 = vadd.f32 %v1598_v49, %v841_v60 }
  0xdf   : > { %v785_v0 = vpop.f32.mrf.mxu2 }
  0xe0   : > { %v898_v1 = vmax.f32 %v890_v63, 0.0  ;;  %v786_v2 = vadd.f32 %v785_v0, %v757_v62 }
  0xe1   : > { %v758_v7 = vpop.f32.mrf.mxu1  ;;  %v824_v40 = vpop.f32.mrf.mxu3 }
  0xe2   : > { %906 = vst [vmem:[%s1605_s30 + $0x8] sm:$0xff] %v898_v1  ;;  %v815_v4 = vadd.f32 %v814_v55, %v786_v2  ;;  %v759_v8 = vadd.f32 %v758_v7, %v729_v34 }
  0xe4   : > { %v844_v6 = vadd.f32 %v843_v58, %v815_v4  ;;  %v850_v29 = vpop.f32.mrf.mxu0 }
  0xe6   : > { %v891_v9 = vadd.f32 %v1598_v49, %v844_v6 }
  0xe7   : > { %v787_v10 = vpop.f32.mrf.mxu2 }
  0xe8   : > { %v899_v11 = vmax.f32 %v891_v9, 0.0  ;;  %v788_v12 = vadd.f32 %v787_v10, %v759_v8 }
  0xe9   : > { %v761_v16 = vpop.f32.mrf.mxu1  ;;  %v826_v53 = vpop.f32.mrf.mxu3 }
  0xea   : > { %907 = vst [vmem:[%s1605_s30 + $0x10] sm:$0xff] %v899_v11  ;;  %v817_v13 = vadd.f32 %v816_v3, %v788_v12  ;;  %v762_v18 = vadd.f32 %v761_v16, %v732_v36 }
  0xec   : > { %v846_v15 = vadd.f32 %v845_v5, %v817_v13  ;;  %v853_v44 = vpop.f32.mrf.mxu0 }
  0xee   : > { %v892_v19 = vadd.f32 %v1598_v49, %v846_v15 }
  0xef   : > { %v790_v20 = vpop.f32.mrf.mxu2 }
  0xf0   : > { %v900_v21 = vmax.f32 %v892_v19, 0.0  ;;  %v791_v22 = vadd.f32 %v790_v20, %v762_v18 }
  0xf1   : > { %v763_v25 = vpop.f32.mrf.mxu1 }
  0xf2   : > { %908 = vst [vmem:[%s1605_s30 + $0x18] sm:$0xff] %v900_v21  ;;  %v820_v23 = vadd.f32 %v819_v14, %v791_v22  ;;  %v764_v27 = vadd.f32 %v763_v25, %v734_v39 }
  0xf4   : > { %v849_v24 = vadd.f32 %v848_v17, %v820_v23  ;;  %v855_v55 = vpop.f32.mrf.mxu0 }
  0xf6   : > { %v893_v28 = vadd.f32 %v1598_v49, %v849_v24 }
  0xf7   : > { %v792_v30 = vpop.f32.mrf.mxu2 }
  0xf8   : > { %v901_v31 = vmax.f32 %v893_v28, 0.0  ;;  %v793_v32 = vadd.f32 %v792_v30, %v764_v27 }
  0xf9   : > { %v766_v35 = vpop.f32.mrf.mxu1 }
  0xfa   : > { %909 = vst [vmem:[%s1605_s30 + $0x20] sm:$0xff] %v901_v31  ;;  %v822_v33 = vadd.f32 %v821_v26, %v793_v32  ;;  %v767_v36 = vadd.f32 %v766_v35, %v1591_v37 }
  0xfc   : > { %v851_v34 = vadd.f32 %v850_v29, %v822_v33 }
  0xfe   : > { %v894_v38 = vadd.f32 %v1598_v49, %v851_v34 }
  0xff   : > { %v795_v42 = vpop.f32.mrf.mxu2 }
 0x100   : > { %v902_v43 = vmax.f32 %v894_v38, 0.0  ;;  %v796_v39 = vadd.f32 %v795_v42, %v767_v36 }
 0x101   : > { %v768_v47 = vpop.f32.mrf.mxu1 }
 0x102   : > { %910 = vst [vmem:[%s1605_s30 + $0x28] sm:$0xff] %v902_v43  ;;  %v825_v45 = vadd.f32 %v824_v40, %v796_v39  ;;  %v769_v48 = vadd.f32 %v768_v47, %v1593_v41 }
 0x104   : > { %v854_v46 = vadd.f32 %v853_v44, %v825_v45 }
 0x106   : > { %v895_v50 = vadd.f32 %v1598_v49, %v854_v46 }
 0x107   : > { %v797_v51 = vpop.f32.mrf.mxu2 }
 0x108   : > { %v903_v52 = vmax.f32 %v895_v50, 0.0  ;;  %v798_v37 = vadd.f32 %v797_v51, %v769_v48 }
 0x10a   : > { %911 = vst [vmem:[%s1605_s30 + $0x30] sm:$0xff] %v903_v52  ;;  %v827_v54 = vadd.f32 %v826_v53, %v798_v37 }
 0x10c   : > { %v856_v56 = vadd.f32 %v855_v55, %v827_v54 }
 0x10e   : > { %v896_v57 = vadd.f32 %v1598_v49, %v856_v56 }
 0x110   : > { %v904_v58 = vmax.f32 %v896_v57, 0.0 }
 0x112   : > { %912 = vst [vmem:[%s1605_s30 + $0x38] sm:$0xff] %v904_v58 }
 0x113 PF: > { %s13_s14 = sadd.s32 1, %s1388_s14   ;;  %s1637_s12 = smov %s1384_s13 }
 0x114   : > { %p10_p5 = scmp.ge.s32.totalorder %s13_s14, 4   ;;  %s1638_s13 = smov %s1640_s15 }
 0x116   :  { %12 = sbr.rel (!%p10_p5) target bundleno = 2 (0x2), region = 76 }

// kernel: device_forward.31
= control target key start
LH: loop header
LB: loop body
LE: loop exit
PB: predicated region body
PF: predicated region fallthrough
CT: control target
= control target key end

     0   :  { %s561_s12 = smov 0   ;;  %s563_s13 = smov 0   ;;  %s609_s0 = inlined_call_operand.vmem [shape: bf16[32,64], index: 0, kind: input, shape index: {}]   ;;  %s610_s1 = inlined_call_operand.vmem [shape: bf16[64,128], index: 1, kind: input, shape index: {}]   ;;  %s611_s2 = inlined_call_operand.vmem [shape: f32[1,128], index: 2, kind: input, shape index: {}]   ;;  %s612_s3 = inlined_call_operand.vmem [shape: f32[32,128], index: 3, kind: output, shape index: {}]  }
   0x1   :  { %s565_s14 = smov 0  }
   0x2 LB: > { %s32_s15 = sadd.s32 1, %s535_s13  ;;  %p459_p0 = scmp.ge.s32.totalorder %s539_s14, 1  ;;  %s539_s14 = sphi %s565_s14, %s13_s14   ;;  %s535_s13 = sphi %s563_s13, %s614_s13   ;;  %s531_s12 = sphi %s561_s12, %s613_s12  }
   0x3   : > { %p34_p1 = scmp.ge.s32.totalorder %s32_s15, 2  ;;  %p188_p2 = scmp.lt.s32.totalorder %s539_s14, 3 }
   0x5   : > { %s616_s15 = smov (%p34_p1, %s32_s15), 0  ;;  %p189_p3 = pnand %p459_p0, %p188_p2 }
   0x6   : > { %s460_s18 = sshll.u32 (!%p189_p3), %s531_s12, 1 }
   0x7   : > { %192 = sbr.rel (%p189_p3) target bundleno = 165 (0xa5), region = 32  ;;  %p230_p4 = scmp.lt.s32.totalorder (!%p189_p3), %s460_s18, 3 }
   0xc   : > { %v491_v0 = vld [vmem:[%s610_s1 + $0x18] sm:$0xff]  ;;  %v490_v1 = vld [vmem:[%s610_s1 + $0x10] sm:$0xff]  ;;  %s618_s18 = smov (!%p230_p4, %s460_s18), 3  ;;  %v489_v2 = vld [vmem:[%s610_s1 + $0x8] sm:$0xff]  ;;  %vm307_vm0 = vcmask 523264  }
   0xd   : > { %315 = vmatpush.bf16.msra.mxu0 %v491_v0  ;;  %s461_s23 = sshll.u32 %s618_s18, 2  ;;  %v488_v3 = vld [vmem:[%s610_s1] sm:$0xff]  ;;  %s463_s29 = sshll.u32 %s618_s18, 3 }
   0xe   : > { %s236_s28 = scalar_lea.vmem %s609_s0, %s461_s23  ;;  %v516_v5 = vld [vmem:[%s611_s2] ss:$0 sm:$0xff]  ;;  %s257_s7 = scalar_lea.vmem %s612_s3, %s463_s29 }
   0xf   : > { %v487_v4 = vld [vmem:[%s236_s28] sm:$0xff] }
  0x11   : > { %316 = vmatpush.bf16.msra.mxu0 %v490_v1 }
  0x15   : > { %317 = vmatpush.bf16.msra.mxu0 %v489_v2 }
  0x19   : > { %318 = vmatpush.bf16.msra.mxu0 %v488_v3 }
  0x1c   : > { %484 = vmatmul.msk.bf16.vlgmr.msra.gmra.mxu0 %vm307_vm0, %v487_v4 }
  0x99   : > { %v320_v6 = vpop.f32.mrf.mxu0 }
  0x9a   : > { %v338_v7 = vadd.f32 %v516_v5, %v320_v6 }
  0x9c   : > { %340 = vst [vmem:[%s257_s7] sm:$0xff] %v338_v7 }
  0xa1   : > { %v322_v8 = vpop.f32.mrf.mxu0 }
  0xa2   : > { %v339_v9 = vadd.f32 %v516_v5, %v322_v8 }
  0xa4   : > { %341 = vst [vmem:[%s257_s7 + $0x8] sm:$0xff] %v339_v9 }
  0xa5 PF: > { %s13_s14 = sadd.s32 1, %s539_s14   ;;  %s613_s12 = smov %s535_s13 }
  0xa6   : > { %p10_p5 = scmp.ge.s32.totalorder %s13_s14, 4   ;;  %s614_s13 = smov %s616_s15 }
  0xa8   :  { %12 = sbr.rel (!%p10_p5) target bundleno = 2 (0x2), region = 76 }

// kernel: device_forward.29
= control target key start
LH: loop header
LB: loop body
LE: loop exit
PB: predicated region body
PF: predicated region fallthrough
CT: control target
= control target key end

     0   :  { %s1091_s12 = smov 0   ;;  %s1093_s13 = smov 0   ;;  %s1254_s0 = inlined_call_operand.vmem [shape: bf16[32,576], index: 0, kind: input, shape index: {}]   ;;  %s1255_s1 = inlined_call_operand.vmem [shape: bf16[576,128], index: 1, kind: input, shape index: {}]   ;;  %s1256_s2 = inlined_call_operand.vmem [shape: f32[1,128], index: 2, kind: input, shape index: {}]   ;;  %s1257_s3 = inlined_call_operand.vmem [shape: f32[32,128], index: 3, kind: output, shape index: {}]  }
   0x1   :  { %s1095_s14 = smov 0  }
   0x2 LB: > { %s32_s15 = sadd.s32 1, %s1065_s13  ;;  %p808_p0 = scmp.ge.s32.totalorder %s1069_s14, 1  ;;  %s1069_s14 = sphi %s1095_s14, %s13_s14   ;;  %s1065_s13 = sphi %s1093_s13, %s1259_s13   ;;  %s1061_s12 = sphi %s1091_s12, %s1258_s12  }
   0x3   : > { %p34_p1 = scmp.ge.s32.totalorder %s32_s15, 2  ;;  %p191_p2 = scmp.lt.s32.totalorder %s1069_s14, 3 }
   0x5   : > { %s1261_s15 = smov (%p34_p1, %s32_s15), 0  ;;  %p192_p3 = pnand %p808_p0, %p191_p2 }
   0x6   : > { %s809_s17 = sshll.u32 (!%p192_p3), %s1061_s12, 1 }
   0x7   : > { %195 = sbr.rel (%p192_p3) target bundleno = 201 (0xc9), region = 32  ;;  %p236_p4 = scmp.lt.s32.totalorder (!%p192_p3), %s809_s17, 3 }
   0xc   : > { %v992_v0 = vld [vmem:[%s1255_s1 + $0x38] sm:$0xff]  ;;  %v991_v4 = vld [vmem:[%s1255_s1 + $0x30] sm:$0xff]  ;;  %v990_v8 = vld [vmem:[%s1255_s1 + $0x28] sm:$0xff]  ;;  %s1263_s17 = smov (!%p236_p4, %s809_s17), 3  ;;  %vm595_vm0 = vcmask 523264  }
   0xd   : > { %v1000_v1 = vld [vmem:[%s1255_s1 + $0x78] sm:$0xff]  ;;  %599 = vmatpush.bf16.msra.mxu0 %v992_v0  ;;  %v999_v5 = vld [vmem:[%s1255_s1 + $0x70] sm:$0xff]  ;;  %v998_v9 = vld [vmem:[%s1255_s1 + $0x68] sm:$0xff]  ;;  %s1021_s10 = smul.u32 20, %s1263_s17 }
   0xe   : > { %v1008_v2 = vld [vmem:[%s1255_s1 + $0xb8] sm:$0xff]  ;;  %613 = vmatpush.bf16.msra.mxu1 %v1000_v1  ;;  %v1007_v6 = vld [vmem:[%s1255_s1 + $0xb0] sm:$0xff]  ;;  %v1006_v10 = vld [vmem:[%s1255_s1 + $0xa8] sm:$0xff] }
   0xf   : > { %v1016_v3 = vld [vmem:[%s1255_s1 + $0xf8] sm:$0xff]  ;;  %627 = vmatpush.bf16.msra.mxu2 %v1008_v2  ;;  %v1015_v7 = vld [vmem:[%s1255_s1 + $0xf0] sm:$0xff]  ;;  %v1014_v11 = vld [vmem:[%s1255_s1 + $0xe8] sm:$0xff]  ;;  %s1196_s12 = scalar_lea.vmem %s1254_s0, %s1021_s10 }
  0x10   : > { %641 = vmatpush.bf16.msra.mxu3 %v1016_v3  ;;  %v989_v12 = vld [vmem:[%s1255_s1 + $0x20] sm:$0xff]  ;;  %v988_v16 = vld [vmem:[%s1255_s1 + $0x18] sm:$0xff]  ;;  %v987_v20 = vld [vmem:[%s1255_s1 + $0x10] sm:$0xff] }
  0x11   : > { %600 = vmatpush.bf16.msra.mxu0 %v991_v4  ;;  %v997_v13 = vld [vmem:[%s1255_s1 + $0x60] sm:$0xff]  ;;  %v996_v17 = vld [vmem:[%s1255_s1 + $0x58] sm:$0xff]  ;;  %v995_v21 = vld [vmem:[%s1255_s1 + $0x50] sm:$0xff] }
  0x12   : > { %614 = vmatpush.bf16.msra.mxu1 %v999_v5  ;;  %v1005_v14 = vld [vmem:[%s1255_s1 + $0xa0] sm:$0xff]  ;;  %v1004_v18 = vld [vmem:[%s1255_s1 + $0x98] sm:$0xff]  ;;  %v1003_v22 = vld [vmem:[%s1255_s1 + $0x90] sm:$0xff] }
  0x13   : > { %628 = vmatpush.bf16.msra.mxu2 %v1007_v6  ;;  %v1013_v15 = vld [vmem:[%s1255_s1 + $0xe0] sm:$0xff]  ;;  %v1012_v19 = vld [vmem:[%s1255_s1 + $0xd8] sm:$0xff]  ;;  %v1011_v23 = vld [vmem:[%s1255_s1 + $0xd0] sm:$0xff] }
  0x14   : > { %642 = vmatpush.bf16.msra.mxu3 %v1015_v7  ;;  %v986_v24 = vld [vmem:[%s1255_s1 + $0x8] sm:$0xff]  ;;  %v985_v28 = vld [vmem:[%s1255_s1] sm:$0xff]  ;;  %v982_v33 = vld [vmem:[%s1196_s12 + $0x10] sm:$0xf0] }
  0x15   : > { %601 = vmatpush.bf16.msra.mxu0 %v990_v8  ;;  %v994_v25 = vld [vmem:[%s1255_s1 + $0x48] sm:$0xff]  ;;  %v993_v29 = vld [vmem:[%s1255_s1 + $0x40] sm:$0xff]  ;;  %v817_v35 = vld [vmem:[%s1196_s12 + $0x14] sm:$0xf0] }
  0x16   : > { %615 = vmatpush.bf16.msra.mxu1 %v998_v9  ;;  %v1002_v26 = vld [vmem:[%s1255_s1 + $0x88] sm:$0xff]  ;;  %v1001_v30 = vld [vmem:[%s1255_s1 + $0x80] sm:$0xff]  ;;  %v983_v37 = vld [vmem:[%s1196_s12 + $0x18] sm:$0xf0] }
  0x17   : > { %629 = vmatpush.bf16.msra.mxu2 %v1006_v10  ;;  %v1010_v27 = vld [vmem:[%s1255_s1 + $0xc8] sm:$0xff]  ;;  %v1009_v31 = vld [vmem:[%s1255_s1 + $0xc0] sm:$0xff]  ;;  %v1020_v40 = vld [vmem:[%s1255_s1 + $0x118] sm:$0xff] }
  0x18   : > { %643 = vmatpush.bf16.msra.mxu3 %v1014_v11  ;;  %v815_v32 = vld [vmem:[%s1196_s12] sm:$0xf]  ;;  %v980_v34 = vld [vmem:[%s1196_s12 + $0x4] sm:$0xf]  ;;  %v823_v36 = vld [vmem:[%s1196_s12 + $0x8] sm:$0xf] }
  0x19   : > { %602 = vmatpush.bf16.msra.mxu0 %v989_v12  ;;  %v981_v38 = vld [vmem:[%s1196_s12 + $0xc] sm:$0xf]  ;;  %v825_v39 = vld [vmem:[%s1196_s12 + $0x1c] sm:$0xf0]  ;;  %v816_v41 = vor.u32 %v982_v33, %v815_v32  ;;  %v820_v42 = vor.u32 %v980_v34, %v817_v35  ;;  %v824_v43 = vor.u32 %v983_v37, %v823_v36  ;;  %v1019_v45 = vld [vmem:[%s1255_s1 + $0x110] sm:$0xff] }
  0x1a   : > { %616 = vmatpush.bf16.msra.mxu1 %v997_v13  ;;  %v828_v44 = vor.u32 %v981_v38, %v825_v39  ;;  %v1018_v46 = vld [vmem:[%s1255_s1 + $0x108] sm:$0xff]  ;;  %v1017_v47 = vld [vmem:[%s1255_s1 + $0x100] sm:$0xff]  ;;  %v831_v48 = vld [vmem:[%s1196_s12 + $0x10] sm:$0xf] }
  0x1b   : > { %630 = vmatpush.bf16.msra.mxu2 %v1005_v14  ;;  %v984_v49 = vld [vmem:[%s1196_s12 + $0x20] sm:$0xf0]  ;;  %v1046_v60 = vld [vmem:[%s1256_s2] ss:$0 sm:$0xff]  ;;  %s812_s12 = sshll.u32 %s1263_s17, 3 }
  0x1c   : > { %644 = vmatpush.bf16.msra.mxu3 %v1013_v15  ;;  %v832_v50 = vor.u32 %v984_v49, %v831_v48  ;;  %s265_s28 = scalar_lea.vmem %s1257_s3, %s812_s12 }
  0x1d   : > { %603 = vmatpush.bf16.msra.mxu0 %v988_v16 }
  0x1e   : > { %617 = vmatpush.bf16.msra.mxu1 %v996_v17 }
  0x1f   : > { %631 = vmatpush.bf16.msra.mxu2 %v1004_v18 }
  0x20   : > { %645 = vmatpush.bf16.msra.mxu3 %v1012_v19 }
  0x21   : > { %604 = vmatpush.bf16.msra.mxu0 %v987_v20 }
  0x22   : > { %618 = vmatpush.bf16.msra.mxu1 %v995_v21 }
  0x23   : > { %632 = vmatpush.bf16.msra.mxu2 %v1003_v22 }
  0x24   : > { %646 = vmatpush.bf16.msra.mxu3 %v1011_v23 }
  0x25   : > { %605 = vmatpush.bf16.msra.mxu0 %v986_v24 }
  0x26   : > { %619 = vmatpush.bf16.msra.mxu1 %v994_v25 }
  0x27   : > { %633 = vmatpush.bf16.msra.mxu2 %v1002_v26 }
  0x28   : > { %647 = vmatpush.bf16.msra.mxu3 %v1010_v27 }
  0x29   : > { %606 = vmatpush.bf16.msra.mxu0 %v985_v28 }
  0x2a   : > { %620 = vmatpush.bf16.msra.mxu1 %v993_v29 }
  0x2b   : > { %634 = vmatpush.bf16.msra.mxu2 %v1001_v30 }
  0x2c   : > { %648 = vmatpush.bf16.msra.mxu3 %v1009_v31  ;;  %607 = vmatmul.bf16.vlgmr.msra.gmra.mxu0 %v816_v41 }
  0x2d   : > { %659 = vmatpush.bf16.msrb.mxu0 %v1020_v40  ;;  %621 = vmatmul.bf16.vlgmr.msra.gmra.mxu1 %v820_v42 }
  0x2e   : > { %635 = vmatmul.bf16.vlgmr.msra.gmra.mxu2 %v824_v43 }
  0x2f   : > { %649 = vmatmul.bf16.vlgmr.msra.gmra.mxu3 %v828_v44 }
  0x31   : > { %660 = vmatpush.bf16.msrb.mxu0 %v1019_v45 }
  0x35   : > { %661 = vmatpush.bf16.msrb.mxu0 %v1018_v46 }
  0x39   : > { %662 = vmatpush.bf16.msrb.mxu0 %v1017_v47 }
  0x3c   : > { %977 = vmatmul.msk.bf16.vlgmr.msrb.gmra.mxu0 %vm595_vm0, %v832_v50 }
  0xa9   : > { %v608_v51 = vpop.f32.mrf.mxu0 }
  0xaa   : > { %v622_v52 = vpop.f32.mrf.mxu1 }
  0xab   : > { %v623_v55 = vadd.f32 %v622_v52, %v608_v51 }
  0xb1   : > { %v636_v53 = vpop.f32.mrf.mxu2  ;;  %v610_v54 = vpop.f32.mrf.mxu0 }
  0xb2   : > { %v637_v56 = vadd.f32 %v636_v53, %v623_v55  ;;  %v650_v57 = vpop.f32.mrf.mxu3  ;;  %v624_v58 = vpop.f32.mrf.mxu1 }
  0xb3   : > { %v625_v63 = vadd.f32 %v624_v58, %v610_v54 }
  0xb4   : > { %v651_v59 = vadd.f32 %v650_v57, %v637_v56 }
  0xb9   : > { %v638_v61 = vpop.f32.mrf.mxu2  ;;  %v664_v62 = vpop.f32.mrf.mxu0 }
  0xba   : > { %v665_v0 = vadd.f32 %v664_v62, %v651_v59  ;;  %v639_v1 = vadd.f32 %v638_v61, %v625_v63  ;;  %v652_v4 = vpop.f32.mrf.mxu3 }
  0xbc   : > { %v682_v2 = vadd.f32 %v1046_v60, %v665_v0  ;;  %v653_v5 = vadd.f32 %v652_v4, %v639_v1 }
  0xbe   : > { %v684_v3 = vmax.f32 %v682_v2, 0.0 }
  0xc0   : > { %686 = vst [vmem:[%s265_s28] sm:$0xff] %v684_v3 }
  0xc1   : > { %v666_v6 = vpop.f32.mrf.mxu0 }
  0xc2   : > { %v667_v7 = vadd.f32 %v666_v6, %v653_v5 }
  0xc4   : > { %v683_v8 = vadd.f32 %v1046_v60, %v667_v7 }
  0xc6   : > { %v685_v9 = vmax.f32 %v683_v8, 0.0 }
  0xc8   : > { %687 = vst [vmem:[%s265_s28 + $0x8] sm:$0xff] %v685_v9 }
  0xc9 PF: > { %s13_s14 = sadd.s32 1, %s1069_s14   ;;  %s1258_s12 = smov %s1065_s13 }
  0xca   : > { %p10_p5 = scmp.ge.s32.totalorder %s13_s14, 4   ;;  %s1259_s13 = smov %s1261_s15 }
  0xcc   :  { %12 = sbr.rel (!%p10_p5) target bundleno = 2 (0x2), region = 76 }

// kernel: device_forward.30
= control target key start
LH: loop header
LB: loop body
LE: loop exit
PB: predicated region body
PF: predicated region fallthrough
CT: control target
= control target key end

     0   :  { %s1652_s12 = smov 0   ;;  %s1654_s13 = smov 0   ;;  %s1931_s0 = inlined_call_operand.vmem [shape: bf16[32,1152], index: 0, kind: input, shape index: {}]   ;;  %s1932_s1 = inlined_call_operand.vmem [shape: bf16[1152,128], index: 1, kind: input, shape index: {}]   ;;  %s1933_s2 = inlined_call_operand.vmem [shape: f32[1,128], index: 2, kind: input, shape index: {}]   ;;  %s1934_s3 = inlined_call_operand.vmem [shape: f32[32,128], index: 3, kind: output, shape index: {}]  }
   0x1   :  { %s1656_s14 = smov 0  }
   0x2 LB: > { %s32_s15 = sadd.s32 1, %s1626_s13  ;;  %p1170_p0 = scmp.ge.s32.totalorder %s1630_s14, 1  ;;  %s1630_s14 = sphi %s1656_s14, %s13_s14   ;;  %s1626_s13 = sphi %s1654_s13, %s1936_s13   ;;  %s1622_s12 = sphi %s1652_s12, %s1935_s12  }
   0x3   : > { %p34_p1 = scmp.ge.s32.totalorder %s32_s15, 2  ;;  %p191_p2 = scmp.lt.s32.totalorder %s1630_s14, 3 }
   0x5   : > { %s1938_s15 = smov (%p34_p1, %s32_s15), 0  ;;  %p192_p3 = pnand %p1170_p0, %p191_p2 }
   0x6   : > { %s1171_s17 = sshll.u32 (!%p192_p3), %s1622_s12, 1 }
   0x7   : > { %195 = sbr.rel (%p192_p3) target bundleno = 247 (0xf7), region = 32  ;;  %p236_p4 = scmp.lt.s32.totalorder (!%p192_p3), %s1171_s17, 3 }
   0xc   : > { %v1517_v0 = vld [vmem:[%s1932_s1 + $0x38] sm:$0xff]  ;;  %v1516_v4 = vld [vmem:[%s1932_s1 + $0x30] sm:$0xff]  ;;  %v1515_v8 = vld [vmem:[%s1932_s1 + $0x28] sm:$0xff]  ;;  %s1940_s17 = smov (!%p236_p4, %s1171_s17), 3 }
   0xd   : > { %v1533_v1 = vld [vmem:[%s1932_s1 + $0xb8] sm:$0xff]  ;;  %907 = vmatpush.bf16.msra.mxu0 %v1517_v0  ;;  %v1532_v5 = vld [vmem:[%s1932_s1 + $0xb0] sm:$0xff]  ;;  %v1531_v9 = vld [vmem:[%s1932_s1 + $0xa8] sm:$0xff]  ;;  %s1582_s19 = smul.u32 36, %s1940_s17 }
   0xe   : > { %v1525_v2 = vld [vmem:[%s1932_s1 + $0x78] sm:$0xff]  ;;  %935 = vmatpush.bf16.msra.mxu2 %v1533_v1  ;;  %v1524_v6 = vld [vmem:[%s1932_s1 + $0x70] sm:$0xff]  ;;  %v1523_v10 = vld [vmem:[%s1932_s1 + $0x68] sm:$0xff] }
   0xf   : > { %v1541_v3 = vld [vmem:[%s1932_s1 + $0xf8] sm:$0xff]  ;;  %921 = vmatpush.bf16.msra.mxu1 %v1525_v2  ;;  %v1540_v7 = vld [vmem:[%s1932_s1 + $0xf0] sm:$0xff]  ;;  %v1539_v11 = vld [vmem:[%s1932_s1 + $0xe8] sm:$0xff]  ;;  %s1763_s29 = scalar_lea.vmem %s1931_s0, %s1582_s19 }
  0x10   : > { %949 = vmatpush.bf16.msra.mxu3 %v1541_v3  ;;  %v1514_v12 = vld [vmem:[%s1932_s1 + $0x20] sm:$0xff]  ;;  %v1513_v16 = vld [vmem:[%s1932_s1 + $0x18] sm:$0xff]  ;;  %v1512_v20 = vld [vmem:[%s1932_s1 + $0x10] sm:$0xff] }
  0x11   : > { %908 = vmatpush.bf16.msra.mxu0 %v1516_v4  ;;  %v1530_v13 = vld [vmem:[%s1932_s1 + $0xa0] sm:$0xff]  ;;  %v1529_v17 = vld [vmem:[%s1932_s1 + $0x98] sm:$0xff]  ;;  %v1528_v21 = vld [vmem:[%s1932_s1 + $0x90] sm:$0xff] }
  0x12   : > { %936 = vmatpush.bf16.msra.mxu2 %v1532_v5  ;;  %v1522_v14 = vld [vmem:[%s1932_s1 + $0x60] sm:$0xff]  ;;  %v1521_v18 = vld [vmem:[%s1932_s1 + $0x58] sm:$0xff]  ;;  %v1520_v22 = vld [vmem:[%s1932_s1 + $0x50] sm:$0xff] }
  0x13   : > { %922 = vmatpush.bf16.msra.mxu1 %v1524_v6  ;;  %v1538_v15 = vld [vmem:[%s1932_s1 + $0xe0] sm:$0xff]  ;;  %v1537_v19 = vld [vmem:[%s1932_s1 + $0xd8] sm:$0xff]  ;;  %v1536_v23 = vld [vmem:[%s1932_s1 + $0xd0] sm:$0xff] }
  0x14   : > { %950 = vmatpush.bf16.msra.mxu3 %v1540_v7  ;;  %v1511_v24 = vld [vmem:[%s1932_s1 + $0x8] sm:$0xff]  ;;  %v1510_v28 = vld [vmem:[%s1932_s1] sm:$0xff]  ;;  %v1549_v30 = vld [vmem:[%s1932_s1 + $0x138] sm:$0xff] }
  0x15   : > { %909 = vmatpush.bf16.msra.mxu0 %v1515_v8  ;;  %v1527_v25 = vld [vmem:[%s1932_s1 + $0x88] sm:$0xff]  ;;  %v1526_v29 = vld [vmem:[%s1932_s1 + $0x80] sm:$0xff]  ;;  %v1565_v31 = vld [vmem:[%s1932_s1 + $0x1b8] sm:$0xff] }
  0x16   : > { %937 = vmatpush.bf16.msra.mxu2 %v1531_v9  ;;  %v1519_v26 = vld [vmem:[%s1932_s1 + $0x48] sm:$0xff]  ;;  %v1518_v32 = vld [vmem:[%s1932_s1 + $0x40] sm:$0xff]  ;;  %v1557_v38 = vld [vmem:[%s1932_s1 + $0x178] sm:$0xff] }
  0x17   : > { %923 = vmatpush.bf16.msra.mxu1 %v1523_v10  ;;  %v1535_v27 = vld [vmem:[%s1932_s1 + $0xc8] sm:$0xff]  ;;  %v1534_v33 = vld [vmem:[%s1932_s1 + $0xc0] sm:$0xff]  ;;  %v1573_v39 = vld [vmem:[%s1932_s1 + $0x1f8] sm:$0xff] }
  0x18   : > { %951 = vmatpush.bf16.msra.mxu3 %v1539_v11  ;;  %v1177_v34 = vld [vmem:[%s1763_s29] sm:$0xf]  ;;  %v1505_v35 = vld [vmem:[%s1763_s29 + $0x20] sm:$0xf0]  ;;  %v1185_v36 = vld [vmem:[%s1763_s29 + $0x8] sm:$0xf] }
  0x19   : > { %910 = vmatpush.bf16.msra.mxu0 %v1514_v12  ;;  %v1506_v37 = vld [vmem:[%s1763_s29 + $0x28] sm:$0xf0]  ;;  %v1501_v40 = vld [vmem:[%s1763_s29 + $0x4] sm:$0xf]  ;;  %v1179_v41 = vld [vmem:[%s1763_s29 + $0x24] sm:$0xf0]  ;;  %v1178_v44 = vor.u32 %v1505_v35, %v1177_v34 }
  0x1a   : > { %938 = vmatpush.bf16.msra.mxu2 %v1530_v13  ;;  %v1502_v42 = vld [vmem:[%s1763_s29 + $0xc] sm:$0xf]  ;;  %v1187_v43 = vld [vmem:[%s1763_s29 + $0x2c] sm:$0xf0]  ;;  %v1186_v45 = vor.u32 %v1506_v37, %v1185_v36  ;;  %v1182_v48 = vor.u32 %v1501_v40, %v1179_v41  ;;  %v1546_v56 = vld [vmem:[%s1932_s1 + $0x120] sm:$0xff] }
  0x1b   : > { %924 = vmatpush.bf16.msra.mxu1 %v1522_v14  ;;  %v1548_v46 = vld [vmem:[%s1932_s1 + $0x130] sm:$0xff]  ;;  %v1190_v49 = vor.u32 %v1502_v42, %v1187_v43  ;;  %v1547_v52 = vld [vmem:[%s1932_s1 + $0x128] sm:$0xff]  ;;  %v1562_v57 = vld [vmem:[%s1932_s1 + $0x1a0] sm:$0xff] }
  0x1c   : > { %952 = vmatpush.bf16.msra.mxu3 %v1538_v15  ;;  %v1564_v47 = vld [vmem:[%s1932_s1 + $0x1b0] sm:$0xff]  ;;  %v1563_v53 = vld [vmem:[%s1932_s1 + $0x1a8] sm:$0xff]  ;;  %v1554_v58 = vld [vmem:[%s1932_s1 + $0x160] sm:$0xff] }
  0x1d   : > { %911 = vmatpush.bf16.msra.mxu0 %v1513_v16  ;;  %v1556_v50 = vld [vmem:[%s1932_s1 + $0x170] sm:$0xff]  ;;  %v1555_v54 = vld [vmem:[%s1932_s1 + $0x168] sm:$0xff]  ;;  %v1570_v59 = vld [vmem:[%s1932_s1 + $0x1e0] sm:$0xff] }
  0x1e   : > { %939 = vmatpush.bf16.msra.mxu2 %v1529_v17  ;;  %v1572_v51 = vld [vmem:[%s1932_s1 + $0x1f0] sm:$0xff]  ;;  %v1571_v55 = vld [vmem:[%s1932_s1 + $0x1e8] sm:$0xff]  ;;  %v1545_v60 = vld [vmem:[%s1932_s1 + $0x118] sm:$0xff] }
  0x1f   : > { %925 = vmatpush.bf16.msra.mxu1 %v1521_v18  ;;  %v1561_v61 = vld [vmem:[%s1932_s1 + $0x198] sm:$0xff]  ;;  %v1544_v0 = vld [vmem:[%s1932_s1 + $0x110] sm:$0xff]  ;;  %v1543_v4 = vld [vmem:[%s1932_s1 + $0x108] sm:$0xff] }
  0x20   : > { %953 = vmatpush.bf16.msra.mxu3 %v1537_v19  ;;  %v1553_v62 = vld [vmem:[%s1932_s1 + $0x158] sm:$0xff]  ;;  %v1560_v1 = vld [vmem:[%s1932_s1 + $0x190] sm:$0xff]  ;;  %v1559_v5 = vld [vmem:[%s1932_s1 + $0x188] sm:$0xff] }
  0x21   : > { %912 = vmatpush.bf16.msra.mxu0 %v1512_v20  ;;  %v1569_v63 = vld [vmem:[%s1932_s1 + $0x1d8] sm:$0xff]  ;;  %v1552_v2 = vld [vmem:[%s1932_s1 + $0x150] sm:$0xff]  ;;  %v1551_v6 = vld [vmem:[%s1932_s1 + $0x148] sm:$0xff] }
  0x22   : > { %940 = vmatpush.bf16.msra.mxu2 %v1528_v21  ;;  %v1568_v3 = vld [vmem:[%s1932_s1 + $0x1d0] sm:$0xff]  ;;  %v1567_v7 = vld [vmem:[%s1932_s1 + $0x1c8] sm:$0xff]  ;;  %v1542_v8 = vld [vmem:[%s1932_s1 + $0x100] sm:$0xff] }
  0x23   : > { %926 = vmatpush.bf16.msra.mxu1 %v1520_v22  ;;  %v1558_v9 = vld [vmem:[%s1932_s1 + $0x180] sm:$0xff]  ;;  %v1581_v10 = vld [vmem:[%s1932_s1 + $0x238] sm:$0xff]  ;;  %v1193_v11 = vld [vmem:[%s1763_s29 + $0x10] sm:$0xf] }
  0x24   : > { %954 = vmatpush.bf16.msra.mxu3 %v1536_v23  ;;  %v1507_v12 = vld [vmem:[%s1763_s29 + $0x30] sm:$0xf0]  ;;  %v1201_v13 = vld [vmem:[%s1763_s29 + $0x18] sm:$0xf]  ;;  %v1508_v14 = vld [vmem:[%s1763_s29 + $0x38] sm:$0xf0] }
  0x25   : > { %913 = vmatpush.bf16.msra.mxu0 %v1511_v24  ;;  %v1550_v15 = vld [vmem:[%s1932_s1 + $0x140] sm:$0xff]  ;;  %v1503_v17 = vld [vmem:[%s1763_s29 + $0x14] sm:$0xf]  ;;  %v1195_v18 = vld [vmem:[%s1763_s29 + $0x34] sm:$0xf0]  ;;  %v1194_v21 = vor.u32 %v1507_v12, %v1193_v11  ;;  %v1202_v22 = vor.u32 %v1508_v14, %v1201_v13 }
  0x26   : > { %941 = vmatpush.bf16.msra.mxu2 %v1527_v25  ;;  %v1566_v16 = vld [vmem:[%s1932_s1 + $0x1c0] sm:$0xff]  ;;  %v1504_v19 = vld [vmem:[%s1763_s29 + $0x1c] sm:$0xf]  ;;  %v1198_v23 = vor.u32 %v1503_v17, %v1195_v18  ;;  %v1580_v25 = vld [vmem:[%s1932_s1 + $0x230] sm:$0xff] }
  0x27   : > { %927 = vmatpush.bf16.msra.mxu1 %v1519_v26  ;;  %v1203_v20 = vld [vmem:[%s1763_s29 + $0x3c] sm:$0xf0]  ;;  %v1579_v26 = vld [vmem:[%s1932_s1 + $0x228] sm:$0xff] }
  0x28   : > { %955 = vmatpush.bf16.msra.mxu3 %v1535_v27  ;;  %v1206_v24 = vor.u32 %v1504_v19, %v1203_v20  ;;  %v1578_v27 = vld [vmem:[%s1932_s1 + $0x220] sm:$0xff] }
  0x29   : > { %914 = vmatpush.bf16.msra.mxu0 %v1510_v28  ;;  %v1577_v28 = vld [vmem:[%s1932_s1 + $0x218] sm:$0xff] }
  0x2a   : > { %942 = vmatpush.bf16.msra.mxu2 %v1526_v29  ;;  %v1576_v29 = vld [vmem:[%s1932_s1 + $0x210] sm:$0xff] }
  0x2b   : > { %928 = vmatpush.bf16.msra.mxu1 %v1518_v32  ;;  %v1209_v32 = vld [vmem:[%s1763_s29 + $0x20] sm:$0xf] }
  0x2c   : > { %956 = vmatpush.bf16.msra.mxu3 %v1534_v33  ;;  %915 = vmatmul.bf16.vlgmr.msra.gmra.mxu0 %v1178_v44  ;;  %v1509_v33 = vld [vmem:[%s1763_s29 + $0x40] sm:$0xf0]  ;;  %s1174_s29 = sshll.u32 %s1940_s17, 3 }
  0x2d   : > { %963 = vmatpush.bf16.msrb.mxu0 %v1549_v30  ;;  %943 = vmatmul.bf16.vlgmr.msra.gmra.mxu2 %v1186_v45  ;;  %v1575_v30 = vld [vmem:[%s1932_s1 + $0x208] sm:$0xff]  ;;  %v1210_v34 = vor.u32 %v1509_v33, %v1209_v32  ;;  %s265_s7 = scalar_lea.vmem %s1934_s3, %s1174_s29 }
  0x2e   : > { %991 = vmatpush.bf16.msrb.mxu2 %v1565_v31  ;;  %929 = vmatmul.bf16.vlgmr.msra.gmra.mxu1 %v1182_v48  ;;  %v1574_v31 = vld [vmem:[%s1932_s1 + $0x200] sm:$0xff] }
  0x2f   : > { %977 = vmatpush.bf16.msrb.mxu1 %v1557_v38  ;;  %957 = vmatmul.bf16.vlgmr.msra.gmra.mxu3 %v1190_v49 }
  0x30   : > { %1005 = vmatpush.bf16.msrb.mxu3 %v1573_v39 }
  0x31   : > { %964 = vmatpush.bf16.msrb.mxu0 %v1548_v46 }
  0x32   : > { %992 = vmatpush.bf16.msrb.mxu2 %v1564_v47 }
  0x33   : > { %978 = vmatpush.bf16.msrb.mxu1 %v1556_v50 }
  0x34   : > { %1006 = vmatpush.bf16.msrb.mxu3 %v1572_v51 }
  0x35   : > { %965 = vmatpush.bf16.msrb.mxu0 %v1547_v52 }
  0x36   : > { %993 = vmatpush.bf16.msrb.mxu2 %v1563_v53 }
  0x37   : > { %979 = vmatpush.bf16.msrb.mxu1 %v1555_v54 }
  0x38   : > { %1007 = vmatpush.bf16.msrb.mxu3 %v1571_v55 }
  0x39   : > { %966 = vmatpush.bf16.msrb.mxu0 %v1546_v56 }
  0x3a   : > { %994 = vmatpush.bf16.msrb.mxu2 %v1562_v57 }
  0x3b   : > { %980 = vmatpush.bf16.msrb.mxu1 %v1554_v58 }
  0x3c   : > { %1008 = vmatpush.bf16.msrb.mxu3 %v1570_v59 }
  0x3d   : > { %967 = vmatpush.bf16.msrb.mxu0 %v1545_v60  ;;  %v1607_v60 = vld [vmem:[%s1933_s2] ss:$0 sm:$0xff] }
  0x3e   : > { %995 = vmatpush.bf16.msrb.mxu2 %v1561_v61 }
  0x3f   : > { %981 = vmatpush.bf16.msrb.mxu1 %v1553_v62 }
  0x40   : > { %1009 = vmatpush.bf16.msrb.mxu3 %v1569_v63 }
  0x41   : > { %968 = vmatpush.bf16.msrb.mxu0 %v1544_v0 }
  0x42   : > { %996 = vmatpush.bf16.msrb.mxu2 %v1560_v1 }
  0x43   : > { %982 = vmatpush.bf16.msrb.mxu1 %v1552_v2 }
  0x44   : > { %1010 = vmatpush.bf16.msrb.mxu3 %v1568_v3 }
  0x45   : > { %969 = vmatpush.bf16.msrb.mxu0 %v1543_v4 }
  0x46   : > { %997 = vmatpush.bf16.msrb.mxu2 %v1559_v5 }
  0x47   : > { %983 = vmatpush.bf16.msrb.mxu1 %v1551_v6 }
  0x48   : > { %1011 = vmatpush.bf16.msrb.mxu3 %v1567_v7 }
  0x49   : > { %970 = vmatpush.bf16.msrb.mxu0 %v1542_v8 }
  0x4a   : > { %998 = vmatpush.bf16.msrb.mxu2 %v1558_v9 }
  0x4b   : > { %984 = vmatpush.bf16.msrb.mxu1 %v1550_v15 }
  0x4c   : > { %1012 = vmatpush.bf16.msrb.mxu3 %v1566_v16  ;;  %971 = vmatmul.bf16.vlgmr.msrb.gmra.mxu0 %v1194_v21 }
  0x4d   : > { %1019 = vmatpush.bf16.msra.mxu0 %v1581_v10  ;;  %999 = vmatmul.bf16.vlgmr.msrb.gmra.mxu2 %v1202_v22 }
  0x4e   : > { %985 = vmatmul.bf16.vlgmr.msrb.gmra.mxu1 %v1198_v23 }
  0x4f   : > { %1013 = vmatmul.bf16.vlgmr.msrb.gmra.mxu3 %v1206_v24 }
  0x51   : > { %1020 = vmatpush.bf16.msra.mxu0 %v1580_v25 }
  0x55   : > { %1021 = vmatpush.bf16.msra.mxu0 %v1579_v26 }
  0x59   : > { %1022 = vmatpush.bf16.msra.mxu0 %v1578_v27 }
  0x5d   : > { %1023 = vmatpush.bf16.msra.mxu0 %v1577_v28 }
  0x61   : > { %1024 = vmatpush.bf16.msra.mxu0 %v1576_v29 }
  0x65   : > { %1025 = vmatpush.bf16.msra.mxu0 %v1575_v30 }
  0x69   : > { %1026 = vmatpush.bf16.msra.mxu0 %v1574_v31 }
  0x6c   : > { %1027 = vmatmul.bf16.vlgmr.msra.gmra.mxu0 %v1210_v34 }
  0xa9   : > { %v916_v35 = vpop.f32.mrf.mxu0 }
  0xab   : > { %v930_v36 = vpop.f32.mrf.mxu1 }
  0xac   : > { %v931_v40 = vadd.f32 %v930_v36, %v916_v35 }
  0xb0   : > { %v944_v37 = vpop.f32.mrf.mxu2 }
  0xb1   : > { %v918_v38 = vpop.f32.mrf.mxu0  ;;  %v945_v42 = vadd.f32 %v944_v37, %v931_v40 }
  0xb2   : > { %v958_v39 = vpop.f32.mrf.mxu3 }
  0xb3   : > { %v932_v41 = vpop.f32.mrf.mxu1  ;;  %v959_v45 = vadd.f32 %v958_v39, %v945_v42 }
  0xb4   : > { %v933_v47 = vadd.f32 %v932_v41, %v918_v38 }
  0xb8   : > { %v946_v43 = vpop.f32.mrf.mxu2 }
  0xb9   : > { %v947_v51 = vadd.f32 %v946_v43, %v933_v47 }
  0xba   : > { %v960_v46 = vpop.f32.mrf.mxu3 }
  0xbb   : > { %v961_v55 = vadd.f32 %v960_v46, %v947_v51 }
  0xc9   : > { %v972_v44 = vpop.f32.mrf.mxu0 }
  0xca   : > { %v973_v48 = vadd.f32 %v972_v44, %v959_v45 }
  0xcb   : > { %v986_v49 = vpop.f32.mrf.mxu1 }
  0xcc   : > { %v987_v52 = vadd.f32 %v986_v49, %v973_v48 }
  0xd0   : > { %v1000_v50 = vpop.f32.mrf.mxu2 }
  0xd1   : > { %v974_v53 = vpop.f32.mrf.mxu0  ;;  %v1001_v56 = vadd.f32 %v1000_v50, %v987_v52 }
  0xd2   : > { %v1014_v54 = vpop.f32.mrf.mxu3  ;;  %v975_v57 = vadd.f32 %v974_v53, %v961_v55 }
  0xd3   : > { %v988_v58 = vpop.f32.mrf.mxu1  ;;  %v1015_v59 = vadd.f32 %v1014_v54, %v1001_v56 }
  0xd4   : > { %v989_v63 = vadd.f32 %v988_v58, %v975_v57 }
  0xd8   : > { %v1002_v61 = vpop.f32.mrf.mxu2 }
  0xd9   : > { %v1003_v1 = vadd.f32 %v1002_v61, %v989_v63 }
  0xda   : > { %v1016_v3 = vpop.f32.mrf.mxu3 }
  0xdb   : > { %v1017_v4 = vadd.f32 %v1016_v3, %v1003_v1 }
  0xe9   : > { %v1028_v62 = vpop.f32.mrf.mxu0 }
  0xea   : > { %v1029_v0 = vadd.f32 %v1028_v62, %v1015_v59 }
  0xec   : > { %v1046_v2 = vadd.f32 %v1607_v60, %v1029_v0 }
  0xee   : > { %1048 = vst [vmem:[%s265_s7] sm:$0xff] %v1046_v2 }
  0xf1   : > { %v1030_v5 = vpop.f32.mrf.mxu0 }
  0xf2   : > { %v1031_v6 = vadd.f32 %v1030_v5, %v1017_v4 }
  0xf4   : > { %v1047_v7 = vadd.f32 %v1607_v60, %v1031_v6 }
  0xf6   : > { %1049 = vst [vmem:[%s265_s7 + $0x8] sm:$0xff] %v1047_v7 }
  0xf7 PF: > { %s13_s14 = sadd.s32 1, %s1630_s14   ;;  %s1935_s12 = smov %s1626_s13 }
  0xf8   : > { %p10_p5 = scmp.ge.s32.totalorder %s13_s14, 4   ;;  %s1936_s13 = smov %s1938_s15 }
  0xfa   :  { %12 = sbr.rel (!%p10_p5) target bundleno = 2 (0x2), region = 76 }

// kernel: device_forward.32
= control target key start
LH: loop header
LB: loop body
LE: loop exit
PB: predicated region body
PF: predicated region fallthrough
CT: control target
= control target key end

     0   :  { %s1654_s12 = smov 0   ;;  %s1656_s13 = smov 0   ;;  %s1933_s0 = inlined_call_operand.vmem [shape: bf16[32,1152], index: 0, kind: input, shape index: {}]   ;;  %s1934_s1 = inlined_call_operand.vmem [shape: bf16[1152,128], index: 1, kind: input, shape index: {}]   ;;  %s1935_s2 = inlined_call_operand.vmem [shape: f32[1,128], index: 2, kind: input, shape index: {}]   ;;  %s1936_s3 = inlined_call_operand.vmem [shape: f32[32,128], index: 3, kind: output, shape index: {}]  }
   0x1   :  { %s1658_s14 = smov 0  }
   0x2 LB: > { %s32_s15 = sadd.s32 1, %s1628_s13  ;;  %p1172_p0 = scmp.ge.s32.totalorder %s1632_s14, 1  ;;  %s1632_s14 = sphi %s1658_s14, %s13_s14   ;;  %s1628_s13 = sphi %s1656_s13, %s1938_s13   ;;  %s1624_s12 = sphi %s1654_s12, %s1937_s12  }
   0x3   : > { %p34_p1 = scmp.ge.s32.totalorder %s32_s15, 2  ;;  %p191_p2 = scmp.lt.s32.totalorder %s1632_s14, 3 }
   0x5   : > { %s1940_s15 = smov (%p34_p1, %s32_s15), 0  ;;  %p192_p3 = pnand %p1172_p0, %p191_p2 }
   0x6   : > { %s1173_s17 = sshll.u32 (!%p192_p3), %s1624_s12, 1 }
   0x7   : > { %195 = sbr.rel (%p192_p3) target bundleno = 249 (0xf9), region = 32  ;;  %p236_p4 = scmp.lt.s32.totalorder (!%p192_p3), %s1173_s17, 3 }
   0xc   : > { %v1519_v0 = vld [vmem:[%s1934_s1 + $0x38] sm:$0xff]  ;;  %v1518_v4 = vld [vmem:[%s1934_s1 + $0x30] sm:$0xff]  ;;  %v1517_v8 = vld [vmem:[%s1934_s1 + $0x28] sm:$0xff]  ;;  %s1942_s17 = smov (!%p236_p4, %s1173_s17), 3 }
   0xd   : > { %v1535_v1 = vld [vmem:[%s1934_s1 + $0xb8] sm:$0xff]  ;;  %907 = vmatpush.bf16.msra.mxu0 %v1519_v0  ;;  %v1534_v5 = vld [vmem:[%s1934_s1 + $0xb0] sm:$0xff]  ;;  %v1533_v9 = vld [vmem:[%s1934_s1 + $0xa8] sm:$0xff]  ;;  %s1584_s19 = smul.u32 36, %s1942_s17  ;;  %s1176_s4 = sshll.u32 %s1942_s17, 3 }
   0xe   : > { %v1527_v2 = vld [vmem:[%s1934_s1 + $0x78] sm:$0xff]  ;;  %935 = vmatpush.bf16.msra.mxu2 %v1535_v1  ;;  %v1526_v6 = vld [vmem:[%s1934_s1 + $0x70] sm:$0xff]  ;;  %v1525_v10 = vld [vmem:[%s1934_s1 + $0x68] sm:$0xff]  ;;  %s265_s7 = scalar_lea.vmem %s1936_s3, %s1176_s4 }
   0xf   : > { %v1543_v3 = vld [vmem:[%s1934_s1 + $0xf8] sm:$0xff]  ;;  %921 = vmatpush.bf16.msra.mxu1 %v1527_v2  ;;  %v1542_v7 = vld [vmem:[%s1934_s1 + $0xf0] sm:$0xff]  ;;  %v1541_v11 = vld [vmem:[%s1934_s1 + $0xe8] sm:$0xff]  ;;  %s1765_s29 = scalar_lea.vmem %s1933_s0, %s1584_s19 }
  0x10   : > { %949 = vmatpush.bf16.msra.mxu3 %v1543_v3  ;;  %v1516_v12 = vld [vmem:[%s1934_s1 + $0x20] sm:$0xff]  ;;  %v1515_v16 = vld [vmem:[%s1934_s1 + $0x18] sm:$0xff]  ;;  %v1514_v20 = vld [vmem:[%s1934_s1 + $0x10] sm:$0xff] }
  0x11   : > { %908 = vmatpush.bf16.msra.mxu0 %v1518_v4  ;;  %v1532_v13 = vld [vmem:[%s1934_s1 + $0xa0] sm:$0xff]  ;;  %v1531_v17 = vld [vmem:[%s1934_s1 + $0x98] sm:$0xff]  ;;  %v1530_v21 = vld [vmem:[%s1934_s1 + $0x90] sm:$0xff] }
  0x12   : > { %936 = vmatpush.bf16.msra.mxu2 %v1534_v5  ;;  %v1524_v14 = vld [vmem:[%s1934_s1 + $0x60] sm:$0xff]  ;;  %v1523_v18 = vld [vmem:[%s1934_s1 + $0x58] sm:$0xff]  ;;  %v1522_v22 = vld [vmem:[%s1934_s1 + $0x50] sm:$0xff] }
  0x13   : > { %922 = vmatpush.bf16.msra.mxu1 %v1526_v6  ;;  %v1540_v15 = vld [vmem:[%s1934_s1 + $0xe0] sm:$0xff]  ;;  %v1539_v19 = vld [vmem:[%s1934_s1 + $0xd8] sm:$0xff]  ;;  %v1538_v23 = vld [vmem:[%s1934_s1 + $0xd0] sm:$0xff] }
  0x14   : > { %950 = vmatpush.bf16.msra.mxu3 %v1542_v7  ;;  %v1513_v24 = vld [vmem:[%s1934_s1 + $0x8] sm:$0xff]  ;;  %v1512_v28 = vld [vmem:[%s1934_s1] sm:$0xff]  ;;  %v1551_v30 = vld [vmem:[%s1934_s1 + $0x138] sm:$0xff] }
  0x15   : > { %909 = vmatpush.bf16.msra.mxu0 %v1517_v8  ;;  %v1529_v25 = vld [vmem:[%s1934_s1 + $0x88] sm:$0xff]  ;;  %v1528_v29 = vld [vmem:[%s1934_s1 + $0x80] sm:$0xff]  ;;  %v1567_v31 = vld [vmem:[%s1934_s1 + $0x1b8] sm:$0xff] }
  0x16   : > { %937 = vmatpush.bf16.msra.mxu2 %v1533_v9  ;;  %v1521_v26 = vld [vmem:[%s1934_s1 + $0x48] sm:$0xff]  ;;  %v1520_v32 = vld [vmem:[%s1934_s1 + $0x40] sm:$0xff]  ;;  %v1559_v38 = vld [vmem:[%s1934_s1 + $0x178] sm:$0xff] }
  0x17   : > { %923 = vmatpush.bf16.msra.mxu1 %v1525_v10  ;;  %v1537_v27 = vld [vmem:[%s1934_s1 + $0xc8] sm:$0xff]  ;;  %v1536_v33 = vld [vmem:[%s1934_s1 + $0xc0] sm:$0xff]  ;;  %v1575_v39 = vld [vmem:[%s1934_s1 + $0x1f8] sm:$0xff] }
  0x18   : > { %951 = vmatpush.bf16.msra.mxu3 %v1541_v11  ;;  %v1179_v34 = vld [vmem:[%s1765_s29] sm:$0xf]  ;;  %v1507_v35 = vld [vmem:[%s1765_s29 + $0x20] sm:$0xf0]  ;;  %v1187_v36 = vld [vmem:[%s1765_s29 + $0x8] sm:$0xf] }
  0x19   : > { %910 = vmatpush.bf16.msra.mxu0 %v1516_v12  ;;  %v1508_v37 = vld [vmem:[%s1765_s29 + $0x28] sm:$0xf0]  ;;  %v1503_v40 = vld [vmem:[%s1765_s29 + $0x4] sm:$0xf]  ;;  %v1181_v41 = vld [vmem:[%s1765_s29 + $0x24] sm:$0xf0]  ;;  %v1180_v44 = vor.u32 %v1507_v35, %v1179_v34 }
  0x1a   : > { %938 = vmatpush.bf16.msra.mxu2 %v1532_v13  ;;  %v1504_v42 = vld [vmem:[%s1765_s29 + $0xc] sm:$0xf]  ;;  %v1189_v43 = vld [vmem:[%s1765_s29 + $0x2c] sm:$0xf0]  ;;  %v1188_v45 = vor.u32 %v1508_v37, %v1187_v36  ;;  %v1184_v48 = vor.u32 %v1503_v40, %v1181_v41  ;;  %v1548_v56 = vld [vmem:[%s1934_s1 + $0x120] sm:$0xff] }
  0x1b   : > { %924 = vmatpush.bf16.msra.mxu1 %v1524_v14  ;;  %v1550_v46 = vld [vmem:[%s1934_s1 + $0x130] sm:$0xff]  ;;  %v1192_v49 = vor.u32 %v1504_v42, %v1189_v43  ;;  %v1549_v52 = vld [vmem:[%s1934_s1 + $0x128] sm:$0xff]  ;;  %v1564_v57 = vld [vmem:[%s1934_s1 + $0x1a0] sm:$0xff] }
  0x1c   : > { %952 = vmatpush.bf16.msra.mxu3 %v1540_v15  ;;  %v1566_v47 = vld [vmem:[%s1934_s1 + $0x1b0] sm:$0xff]  ;;  %v1565_v53 = vld [vmem:[%s1934_s1 + $0x1a8] sm:$0xff]  ;;  %v1556_v58 = vld [vmem:[%s1934_s1 + $0x160] sm:$0xff] }
  0x1d   : > { %911 = vmatpush.bf16.msra.mxu0 %v1515_v16  ;;  %v1558_v50 = vld [vmem:[%s1934_s1 + $0x170] sm:$0xff]  ;;  %v1557_v54 = vld [vmem:[%s1934_s1 + $0x168] sm:$0xff]  ;;  %v1572_v59 = vld [vmem:[%s1934_s1 + $0x1e0] sm:$0xff] }
  0x1e   : > { %939 = vmatpush.bf16.msra.mxu2 %v1531_v17  ;;  %v1574_v51 = vld [vmem:[%s1934_s1 + $0x1f0] sm:$0xff]  ;;  %v1573_v55 = vld [vmem:[%s1934_s1 + $0x1e8] sm:$0xff]  ;;  %v1547_v60 = vld [vmem:[%s1934_s1 + $0x118] sm:$0xff] }
  0x1f   : > { %925 = vmatpush.bf16.msra.mxu1 %v1523_v18  ;;  %v1563_v61 = vld [vmem:[%s1934_s1 + $0x198] sm:$0xff]  ;;  %v1546_v0 = vld [vmem:[%s1934_s1 + $0x110] sm:$0xff]  ;;  %v1545_v4 = vld [vmem:[%s1934_s1 + $0x108] sm:$0xff] }
  0x20   : > { %953 = vmatpush.bf16.msra.mxu3 %v1539_v19  ;;  %v1555_v62 = vld [vmem:[%s1934_s1 + $0x158] sm:$0xff]  ;;  %v1562_v1 = vld [vmem:[%s1934_s1 + $0x190] sm:$0xff]  ;;  %v1561_v5 = vld [vmem:[%s1934_s1 + $0x188] sm:$0xff] }
  0x21   : > { %912 = vmatpush.bf16.msra.mxu0 %v1514_v20  ;;  %v1571_v63 = vld [vmem:[%s1934_s1 + $0x1d8] sm:$0xff]  ;;  %v1554_v2 = vld [vmem:[%s1934_s1 + $0x150] sm:$0xff]  ;;  %v1553_v6 = vld [vmem:[%s1934_s1 + $0x148] sm:$0xff] }
  0x22   : > { %940 = vmatpush.bf16.msra.mxu2 %v1530_v21  ;;  %v1570_v3 = vld [vmem:[%s1934_s1 + $0x1d0] sm:$0xff]  ;;  %v1569_v7 = vld [vmem:[%s1934_s1 + $0x1c8] sm:$0xff]  ;;  %v1544_v8 = vld [vmem:[%s1934_s1 + $0x100] sm:$0xff] }
  0x23   : > { %926 = vmatpush.bf16.msra.mxu1 %v1522_v22  ;;  %v1560_v9 = vld [vmem:[%s1934_s1 + $0x180] sm:$0xff]  ;;  %v1583_v10 = vld [vmem:[%s1934_s1 + $0x238] sm:$0xff]  ;;  %v1195_v11 = vld [vmem:[%s1765_s29 + $0x10] sm:$0xf] }
  0x24   : > { %954 = vmatpush.bf16.msra.mxu3 %v1538_v23  ;;  %v1509_v12 = vld [vmem:[%s1765_s29 + $0x30] sm:$0xf0]  ;;  %v1203_v13 = vld [vmem:[%s1765_s29 + $0x18] sm:$0xf]  ;;  %v1510_v14 = vld [vmem:[%s1765_s29 + $0x38] sm:$0xf0] }
  0x25   : > { %913 = vmatpush.bf16.msra.mxu0 %v1513_v24  ;;  %v1552_v15 = vld [vmem:[%s1934_s1 + $0x140] sm:$0xff]  ;;  %v1505_v17 = vld [vmem:[%s1765_s29 + $0x14] sm:$0xf]  ;;  %v1197_v18 = vld [vmem:[%s1765_s29 + $0x34] sm:$0xf0]  ;;  %v1196_v21 = vor.u32 %v1509_v12, %v1195_v11  ;;  %v1204_v22 = vor.u32 %v1510_v14, %v1203_v13 }
  0x26   : > { %941 = vmatpush.bf16.msra.mxu2 %v1529_v25  ;;  %v1568_v16 = vld [vmem:[%s1934_s1 + $0x1c0] sm:$0xff]  ;;  %v1506_v19 = vld [vmem:[%s1765_s29 + $0x1c] sm:$0xf]  ;;  %v1200_v23 = vor.u32 %v1505_v17, %v1197_v18  ;;  %v1582_v25 = vld [vmem:[%s1934_s1 + $0x230] sm:$0xff] }
  0x27   : > { %927 = vmatpush.bf16.msra.mxu1 %v1521_v26  ;;  %v1205_v20 = vld [vmem:[%s1765_s29 + $0x3c] sm:$0xf0]  ;;  %v1581_v26 = vld [vmem:[%s1934_s1 + $0x228] sm:$0xff] }
  0x28   : > { %955 = vmatpush.bf16.msra.mxu3 %v1537_v27  ;;  %v1208_v24 = vor.u32 %v1506_v19, %v1205_v20  ;;  %v1580_v27 = vld [vmem:[%s1934_s1 + $0x220] sm:$0xff] }
  0x29   : > { %914 = vmatpush.bf16.msra.mxu0 %v1512_v28  ;;  %v1579_v28 = vld [vmem:[%s1934_s1 + $0x218] sm:$0xff] }
  0x2a   : > { %942 = vmatpush.bf16.msra.mxu2 %v1528_v29  ;;  %v1578_v29 = vld [vmem:[%s1934_s1 + $0x210] sm:$0xff] }
  0x2b   : > { %928 = vmatpush.bf16.msra.mxu1 %v1520_v32  ;;  %v1211_v32 = vld [vmem:[%s1765_s29 + $0x20] sm:$0xf] }
  0x2c   : > { %956 = vmatpush.bf16.msra.mxu3 %v1536_v33  ;;  %915 = vmatmul.bf16.vlgmr.msra.gmra.mxu0 %v1180_v44  ;;  %v1511_v33 = vld [vmem:[%s1765_s29 + $0x40] sm:$0xf0] }
  0x2d   : > { %963 = vmatpush.bf16.msrb.mxu0 %v1551_v30  ;;  %943 = vmatmul.bf16.vlgmr.msra.gmra.mxu2 %v1188_v45  ;;  %v1577_v30 = vld [vmem:[%s1934_s1 + $0x208] sm:$0xff]  ;;  %v1212_v34 = vor.u32 %v1511_v33, %v1211_v32 }
  0x2e   : > { %991 = vmatpush.bf16.msrb.mxu2 %v1567_v31  ;;  %929 = vmatmul.bf16.vlgmr.msra.gmra.mxu1 %v1184_v48  ;;  %v1576_v31 = vld [vmem:[%s1934_s1 + $0x200] sm:$0xff] }
  0x2f   : > { %977 = vmatpush.bf16.msrb.mxu1 %v1559_v38  ;;  %957 = vmatmul.bf16.vlgmr.msra.gmra.mxu3 %v1192_v49 }
  0x30   : > { %1005 = vmatpush.bf16.msrb.mxu3 %v1575_v39 }
  0x31   : > { %964 = vmatpush.bf16.msrb.mxu0 %v1550_v46 }
  0x32   : > { %992 = vmatpush.bf16.msrb.mxu2 %v1566_v47 }
  0x33   : > { %978 = vmatpush.bf16.msrb.mxu1 %v1558_v50 }
  0x34   : > { %1006 = vmatpush.bf16.msrb.mxu3 %v1574_v51 }
  0x35   : > { %965 = vmatpush.bf16.msrb.mxu0 %v1549_v52 }
  0x36   : > { %993 = vmatpush.bf16.msrb.mxu2 %v1565_v53 }
  0x37   : > { %979 = vmatpush.bf16.msrb.mxu1 %v1557_v54 }
  0x38   : > { %1007 = vmatpush.bf16.msrb.mxu3 %v1573_v55 }
  0x39   : > { %966 = vmatpush.bf16.msrb.mxu0 %v1548_v56 }
  0x3a   : > { %994 = vmatpush.bf16.msrb.mxu2 %v1564_v57 }
  0x3b   : > { %980 = vmatpush.bf16.msrb.mxu1 %v1556_v58 }
  0x3c   : > { %1008 = vmatpush.bf16.msrb.mxu3 %v1572_v59 }
  0x3d   : > { %967 = vmatpush.bf16.msrb.mxu0 %v1547_v60  ;;  %v1609_v60 = vld [vmem:[%s1935_s2] ss:$0 sm:$0xff] }
  0x3e   : > { %995 = vmatpush.bf16.msrb.mxu2 %v1563_v61 }
  0x3f   : > { %981 = vmatpush.bf16.msrb.mxu1 %v1555_v62 }
  0x40   : > { %1009 = vmatpush.bf16.msrb.mxu3 %v1571_v63 }
  0x41   : > { %968 = vmatpush.bf16.msrb.mxu0 %v1546_v0 }
  0x42   : > { %996 = vmatpush.bf16.msrb.mxu2 %v1562_v1 }
  0x43   : > { %982 = vmatpush.bf16.msrb.mxu1 %v1554_v2 }
  0x44   : > { %1010 = vmatpush.bf16.msrb.mxu3 %v1570_v3 }
  0x45   : > { %969 = vmatpush.bf16.msrb.mxu0 %v1545_v4 }
  0x46   : > { %997 = vmatpush.bf16.msrb.mxu2 %v1561_v5 }
  0x47   : > { %983 = vmatpush.bf16.msrb.mxu1 %v1553_v6 }
  0x48   : > { %1011 = vmatpush.bf16.msrb.mxu3 %v1569_v7 }
  0x49   : > { %970 = vmatpush.bf16.msrb.mxu0 %v1544_v8 }
  0x4a   : > { %998 = vmatpush.bf16.msrb.mxu2 %v1560_v9 }
  0x4b   : > { %984 = vmatpush.bf16.msrb.mxu1 %v1552_v15 }
  0x4c   : > { %1012 = vmatpush.bf16.msrb.mxu3 %v1568_v16  ;;  %971 = vmatmul.bf16.vlgmr.msrb.gmra.mxu0 %v1196_v21 }
  0x4d   : > { %1019 = vmatpush.bf16.msra.mxu0 %v1583_v10  ;;  %999 = vmatmul.bf16.vlgmr.msrb.gmra.mxu2 %v1204_v22 }
  0x4e   : > { %985 = vmatmul.bf16.vlgmr.msrb.gmra.mxu1 %v1200_v23 }
  0x4f   : > { %1013 = vmatmul.bf16.vlgmr.msrb.gmra.mxu3 %v1208_v24 }
  0x51   : > { %1020 = vmatpush.bf16.msra.mxu0 %v1582_v25 }
  0x55   : > { %1021 = vmatpush.bf16.msra.mxu0 %v1581_v26 }
  0x59   : > { %1022 = vmatpush.bf16.msra.mxu0 %v1580_v27 }
  0x5d   : > { %1023 = vmatpush.bf16.msra.mxu0 %v1579_v28 }
  0x61   : > { %1024 = vmatpush.bf16.msra.mxu0 %v1578_v29 }
  0x65   : > { %1025 = vmatpush.bf16.msra.mxu0 %v1577_v30 }
  0x69   : > { %1026 = vmatpush.bf16.msra.mxu0 %v1576_v31 }
  0x6c   : > { %1027 = vmatmul.bf16.vlgmr.msra.gmra.mxu0 %v1212_v34 }
  0xa9   : > { %v916_v35 = vpop.f32.mrf.mxu0 }
  0xab   : > { %v930_v36 = vpop.f32.mrf.mxu1 }
  0xac   : > { %v931_v40 = vadd.f32 %v930_v36, %v916_v35 }
  0xb0   : > { %v944_v37 = vpop.f32.mrf.mxu2 }
  0xb1   : > { %v918_v38 = vpop.f32.mrf.mxu0  ;;  %v945_v42 = vadd.f32 %v944_v37, %v931_v40 }
  0xb2   : > { %v958_v39 = vpop.f32.mrf.mxu3 }
  0xb3   : > { %v932_v41 = vpop.f32.mrf.mxu1  ;;  %v959_v45 = vadd.f32 %v958_v39, %v945_v42 }
  0xb4   : > { %v933_v47 = vadd.f32 %v932_v41, %v918_v38 }
  0xb8   : > { %v946_v43 = vpop.f32.mrf.mxu2 }
  0xb9   : > { %v947_v51 = vadd.f32 %v946_v43, %v933_v47 }
  0xba   : > { %v960_v46 = vpop.f32.mrf.mxu3 }
  0xbb   : > { %v961_v55 = vadd.f32 %v960_v46, %v947_v51 }
  0xc9   : > { %v972_v44 = vpop.f32.mrf.mxu0 }
  0xca   : > { %v973_v48 = vadd.f32 %v972_v44, %v959_v45 }
  0xcb   : > { %v986_v49 = vpop.f32.mrf.mxu1 }
  0xcc   : > { %v987_v52 = vadd.f32 %v986_v49, %v973_v48 }
  0xd0   : > { %v1000_v50 = vpop.f32.mrf.mxu2 }
  0xd1   : > { %v974_v53 = vpop.f32.mrf.mxu0  ;;  %v1001_v56 = vadd.f32 %v1000_v50, %v987_v52 }
  0xd2   : > { %v1014_v54 = vpop.f32.mrf.mxu3  ;;  %v975_v57 = vadd.f32 %v974_v53, %v961_v55 }
  0xd3   : > { %v988_v58 = vpop.f32.mrf.mxu1  ;;  %v1015_v59 = vadd.f32 %v1014_v54, %v1001_v56 }
  0xd4   : > { %v989_v63 = vadd.f32 %v988_v58, %v975_v57 }
  0xd8   : > { %v1002_v61 = vpop.f32.mrf.mxu2 }
  0xd9   : > { %v1003_v1 = vadd.f32 %v1002_v61, %v989_v63 }
  0xda   : > { %v1016_v3 = vpop.f32.mrf.mxu3 }
  0xdb   : > { %v1017_v5 = vadd.f32 %v1016_v3, %v1003_v1 }
  0xe9   : > { %v1028_v62 = vpop.f32.mrf.mxu0 }
  0xea   : > { %v1029_v0 = vadd.f32 %v1028_v62, %v1015_v59 }
  0xec   : > { %v1046_v2 = vadd.f32 %v1609_v60, %v1029_v0 }
  0xee   : > { %v1048_v4 = vmax.f32 %v1046_v2, 0.0 }
  0xf0   : > { %1050 = vst [vmem:[%s265_s7] sm:$0xff] %v1048_v4 }
  0xf1   : > { %v1030_v6 = vpop.f32.mrf.mxu0 }
  0xf2   : > { %v1031_v7 = vadd.f32 %v1030_v6, %v1017_v5 }
  0xf4   : > { %v1047_v8 = vadd.f32 %v1609_v60, %v1031_v7 }
  0xf6   : > { %v1049_v9 = vmax.f32 %v1047_v8, 0.0 }
  0xf8   : > { %1051 = vst [vmem:[%s265_s7 + $0x8] sm:$0xff] %v1049_v9 }
  0xf9 PF: > { %s13_s14 = sadd.s32 1, %s1632_s14   ;;  %s1937_s12 = smov %s1628_s13 }
  0xfa   : > { %p10_p5 = scmp.ge.s32.totalorder %s13_s14, 4   ;;  %s1938_s13 = smov %s1940_s15 }
  0xfc   :  { %12 = sbr.rel (!%p10_p5) target bundleno = 2 (0x2), region = 76 }

// kernel: mul.286
= control target key start
LH: loop header
LB: loop body
LE: loop exit
PB: predicated region body
PF: predicated region fallthrough
CT: control target
= control target key end

     0   :  { %s84_s0 = inlined_call_operand.vmem [shape: f32[2,256], index: 0, kind: input, shape index: {}]   ;;  %s85_s1 = inlined_call_operand.vmem [shape: f32[2,2,2,256], index: 1, kind: output, shape index: {}]  }
   0x1   :  { %v4_v0 = vld [vmem:[%s84_s0] ss:$0 sm:$0xff]  ;;  %v28_v1 = vld [vmem:[%s84_s0 + $0x1] ss:$0 sm:$0xff]  ;;  %v32_v2 = vld [vmem:[%s84_s0 + $0x2] ss:$0 sm:$0xff] }
   0x2   :  { %5 = vst [vmem:[%s85_s1] sm:$0x3] %v4_v0  ;;  %v34_v3 = vld [vmem:[%s84_s0 + $0x3] ss:$0 sm:$0xff] }
   0x3   :  { %29 = vst [vmem:[%s85_s1 + $0x8] sm:$0x3] %v28_v1 }
   0x4   :  { %30 = vst [vmem:[%s85_s1 + $0x4] sm:$0x3] %v4_v0 }
   0x5   :  { %31 = vst [vmem:[%s85_s1 + $0xc] sm:$0x3] %v28_v1 }
   0x6   :  { %33 = vst [vmem:[%s85_s1 + $0x2] sm:$0x3] %v32_v2 }
   0x7   :  { %35 = vst [vmem:[%s85_s1 + $0xa] sm:$0x3] %v34_v3 }
   0x8   :  { %36 = vst [vmem:[%s85_s1 + $0x6] sm:$0x3] %v32_v2 }
   0x9   :  { %37 = vst [vmem:[%s85_s1 + $0xe] sm:$0x3] %v34_v3 }

// kernel: mul.318.clone
= control target key start
LH: loop header
LB: loop body
LE: loop exit
PB: predicated region body
PF: predicated region fallthrough
CT: control target
= control target key end

     0   :  { %s70_s0 = inlined_call_operand.vmem [shape: f32[2,128], index: 0, kind: input, shape index: {}]   ;;  %s71_s1 = inlined_call_operand.vmem [shape: f32[2,4,4,128], index: 1, kind: output, shape index: {}]  }
   0x1   :  { %v4_v0 = vld [vmem:[%s70_s0] ss:$0 sm:$0xff]  ;;  %v22_v1 = vld [vmem:[%s70_s0 + $0x1] ss:$0 sm:$0xff] }
   0x2   :  { %5 = vst [vmem:[%s71_s1] sm:$0xf] %v4_v0 }
   0x3   :  { %23 = vst [vmem:[%s71_s1 + $0x10] sm:$0xf] %v22_v1 }
   0x4   :  { %24 = vst [vmem:[%s71_s1 + $0x4] sm:$0xf] %v4_v0 }
   0x5   :  { %25 = vst [vmem:[%s71_s1 + $0x14] sm:$0xf] %v22_v1 }
   0x6   :  { %26 = vst [vmem:[%s71_s1 + $0x8] sm:$0xf] %v4_v0 }
   0x7   :  { %27 = vst [vmem:[%s71_s1 + $0x18] sm:$0xf] %v22_v1 }
   0x8   :  { %28 = vst [vmem:[%s71_s1 + $0xc] sm:$0xf] %v4_v0 }
   0x9   :  { %29 = vst [vmem:[%s71_s1 + $0x1c] sm:$0xf] %v22_v1 }

// kernel: device_forward.38
= control target key start
LH: loop header
LB: loop body
LE: loop exit
PB: predicated region body
PF: predicated region fallthrough
CT: control target
= control target key end

     0   :  { %s2404_s12 = smov 0   ;;  %s2406_s13 = smov 0   ;;  %s2649_s0 = inlined_call_operand.vmem [shape: bf16[32,3584], index: 0, kind: input, shape index: {}]   ;;  %s2650_s1 = inlined_call_operand.vmem [shape: bf16[3584,128], index: 1, kind: input, shape index: {}]   ;;  %s2651_s2 = inlined_call_operand.vmem [shape: f32[1,128], index: 2, kind: input, shape index: {}]   ;;  %s2652_s3 = inlined_call_operand.vmem [shape: f32[32,128], index: 3, kind: output, shape index: {}]  }
   0x1   :  { %s2408_s14 = smov 0   ;;  %s2410_s15 = smov 0  }
   0x2   :  { %s2412_s16 = smov 0   ;;  %s2414_s17 = smov 0  }
   0x3   :  { %s2416_s18 = smov 0  }
   0x4 LB: > { %s25_s19 = sadd.s32 1, %s2373_s16  ;;  %s32_s20 = sadd.s32 1, %s2377_s17  ;;  %s2381_s18 = sphi %s2416_s18, %s13_s18   ;;  %s2377_s17 = sphi %s2414_s17, %s2658_s17   ;;  %s2373_s16 = sphi %s2412_s16, %s2657_s16   ;;  %s2369_s15 = sphi %s2410_s15, %s2656_s15   ;;  %s2365_s14 = sphi %s2408_s14, %s2655_s14   ;;  %s2361_s13 = sphi %s2406_s13, %s2654_s13   ;;  %s2357_s12 = sphi %s2404_s12, %s2653_s12  }
   0x5   : > { %p26_p0 = scmp.ge.s32.totalorder %s25_s19, 2  ;;  %p48_p1 = scmp.ne.s32.totalorder %s2361_s13, %s2357_s12 }
   0x6   : > { %p49_p2 = scmp.eq.s32.totalorder %s2381_s18, 0  ;;  %s41_s24 = sadd.s32 1, %s2361_s13 }
   0x7   : > { %s2660_s19 = smov (%p26_p0, %s25_s19), 0  ;;  %s2662_s20 = smov (!%p26_p0, %s32_s20), %s2377_s17 }
   0x8   : > { %p50_p3 = por %p49_p2, %p48_p1  ;;  %p34_p4 = scmp.ge.s32.totalorder %s2662_s20, 2 }
   0x9   : > { %s37_s21 = ssub.s32 %s2373_s16, %s2660_s19  ;;  %p1624_p6 = scmp.ge.s32.totalorder %s2381_s18, 4 }
   0xa   : > { %s2664_s20 = smov (%p34_p4, %s2662_s20), 0 }
   0xb   : > { %s36_s22 = ssub.s32 %s2377_s17, %s2664_s20  ;;  %162 = sbr.rel (%p1624_p6) target bundleno = 39 (0x27), region = 20 }
   0xc   : > { %s38_s23 = sor.u32 %s37_s21, %s36_s22 }
   0xd   : > { %p39_p5 = scmp.eq.s32.totalorder %s38_s23, 0 }
   0xf   : > { %s2455_s25 = scalar_select %p39_p5, %s2361_s13, %s41_s24  }
  0x10   : > { %165 = sbr.rel (!%p50_p3) target bundleno = 39 (0x27), region = 24  ;;  %s167_s26 = sand.u32 (%p50_p3), 1, %s2361_s13  }
  0x11   : > { %s171_s27 = smul.u32 (%p50_p3), 14, %s2373_s16 }
  0x12   : > { %s2266_s28 = smul.u32 (%p50_p3), 112, %s167_s26 }
  0x13   : > { %s2267_s29 = smul.u32 (%p50_p3), 56, %s2377_s17 }
  0x14   : > { %s169_s8 = scalar_lea.vmem (%p50_p3), [#allocation3], %s2266_s28 }
  0x15   : > { %s173_s30 = sadd.s32 %s2267_s29, %s171_s27 }
  0x16   : > { %s1627_s4 = sshll.u32 %s173_s30, 2 }
  0x17   : > { %s175_s7 = scalar_lea.vmem %s2649_s0, %s1627_s4 }
  0x18   : > { %v188_v0 = vld [vmem:[%s175_s7] sm:$0xff]  ;;  %v190_v1 = vld [vmem:[%s175_s7 + $0x8] sm:$0xff]  ;;  %v192_v2 = vld [vmem:[%s175_s7 + $0x10] sm:$0xff] }
  0x19   : > { %189 = vst [vmem:[%s169_s8] sm:$0xff] %v188_v0  ;;  %v194_v3 = vld [vmem:[%s175_s7 + $0x18] sm:$0xff]  ;;  %v196_v4 = vld [vmem:[%s175_s7 + $0x20] sm:$0xff]  ;;  %v198_v5 = vld [vmem:[%s175_s7 + $0x28] sm:$0xff] }
  0x1a   : > { %191 = vst [vmem:[%s169_s8 + $0x8] sm:$0xff] %v190_v1  ;;  %v200_v6 = vld [vmem:[%s175_s7 + $0x30] sm:$0xff]  ;;  %v204_v8 = vld [vmem:[%s175_s7 + $0x78] sm:$0xff]  ;;  %v206_v9 = vld [vmem:[%s175_s7 + $0x80] sm:$0xff] }
  0x1b   : > { %193 = vst [vmem:[%s169_s8 + $0x10] sm:$0xff] %v192_v2  ;;  %v202_v7 = vld [vmem:[%s175_s7 + $0x70] sm:$0xff]  ;;  %v208_v10 = vld [vmem:[%s175_s7 + $0x88] sm:$0xff]  ;;  %v212_v12 = vld [vmem:[%s175_s7 + $0x98] sm:$0xff] }
  0x1c   : > { %195 = vst [vmem:[%s169_s8 + $0x18] sm:$0xff] %v194_v3  ;;  %v210_v11 = vld [vmem:[%s175_s7 + $0x90] sm:$0xff]  ;;  %v214_v13 = vld [vmem:[%s175_s7 + $0xa0] sm:$0xff] }
  0x1d   : > { %197 = vst [vmem:[%s169_s8 + $0x20] sm:$0xff] %v196_v4 }
  0x1e   : > { %199 = vst [vmem:[%s169_s8 + $0x28] sm:$0xff] %v198_v5 }
  0x1f   : > { %201 = vst [vmem:[%s169_s8 + $0x30] sm:$0xff] %v200_v6 }
  0x20   : > { %203 = vst [vmem:[%s169_s8 + $0x38] sm:$0xff] %v202_v7 }
  0x21   : > { %205 = vst [vmem:[%s169_s8 + $0x40] sm:$0xff] %v204_v8 }
  0x22   : > { %207 = vst [vmem:[%s169_s8 + $0x48] sm:$0xff] %v206_v9 }
  0x23   : > { %209 = vst [vmem:[%s169_s8 + $0x50] sm:$0xff] %v208_v10 }
  0x24   : > { %211 = vst [vmem:[%s169_s8 + $0x58] sm:$0xff] %v210_v11 }
  0x25   : > { %213 = vst [vmem:[%s169_s8 + $0x60] sm:$0xff] %v212_v12 }
  0x26   : > { %215 = vst [vmem:[%s169_s8 + $0x68] sm:$0xff] %v214_v13 }
  0x27 PF: > { %p1628_p7 = scmp.ge.s32.totalorder %s2381_s18, 1  ;;  %p232_p8 = scmp.lt.s32.totalorder %s2381_s18, 5 }
  0x29   : > { %p233_p9 = pnand %p1628_p7, %p232_p8 }
  0x2a   : > { %s239_s9 = sand.u32 (!%p233_p9), 1, %s2357_s12   ;;  %s278_s10 = smul.u32 (!%p233_p9), 224, %s2365_s14 }
  0x2b   : > { %236 = sbr.rel (%p233_p9) target bundleno = 340 (0x154), region = 51  ;;  %s1630_s21 = sshll.u32 (!%p233_p9), %s2369_s15, 1 }
  0x2c   : > { %s2268_s11 = smul.u32 (!%p233_p9), 112, %s239_s9  ;;  %p279_p10 = scmp.lt.s32.totalorder (!%p233_p9), %s278_s10, 447 }
  0x2d   : > { %p291_p11 = scmp.lt.s32.totalorder (!%p233_p9), %s1630_s21, 3  ;;  %p1632_p12 = scmp.ne.s32.totalorder (!%p233_p9), %s2365_s14, 0 }
  0x2e   : > { %s2479_s12 = scalar_lea.vmem (!%p233_p9), [#allocation3], %s2268_s11 }
  0x30   : > { %s2666_s10 = smov (!%p279_p10, %s278_s10), 447  ;;  %s2668_s21 = smov (!%p291_p11, %s1630_s21), 3 }
  0x31   : > { %s1629_s22 = sshll.u32 %s2666_s10, 2  ;;  %s1631_s27 = sshll.u32 %s2668_s21, 3 }
  0x32   : > { %s2472_s26 = scalar_lea.vmem %s2650_s1, %s1629_s22  ;;  %s2477_s30 = scalar_lea.vmem %s2652_s3, %s1631_s27 }
  0x33   : > { %302 = sbr.rel (%p1632_p12) target bundleno = 59 (0x3b), region = 59 }
  0x38   : > { %v2383_v14 = vmov 0.0  }
  0x39   : > { %303 = vst [vmem:[#allocation2] sm:$0xff] %v2383_v14 }
  0x3a   : > { %304 = vst [vmem:[#allocation2 + $0x8] sm:$0xff] %v2383_v14 }
  0x3b PF: > { %v2161_v15 = vld [vmem:[%s2472_s26 + $0x38] sm:$0xff]  ;;  %v2160_v19 = vld [vmem:[%s2472_s26 + $0x30] sm:$0xff]  ;;  %v2159_v23 = vld [vmem:[%s2472_s26 + $0x28] sm:$0xff]  ;;  %p2137_p13 = scmp.ne.s32.totalorder %s2365_s14, 1 }
  0x3c   : > { %v2169_v16 = vld [vmem:[%s2472_s26 + $0x78] sm:$0xff]  ;;  %1287 = vmatpush.bf16.msra.mxu0 %v2161_v15  ;;  %v2168_v20 = vld [vmem:[%s2472_s26 + $0x70] sm:$0xff]  ;;  %v2167_v24 = vld [vmem:[%s2472_s26 + $0x68] sm:$0xff] }
  0x3d   : > { %v2177_v17 = vld [vmem:[%s2472_s26 + $0xb8] sm:$0xff]  ;;  %1301 = vmatpush.bf16.msra.mxu1 %v2169_v16  ;;  %v2176_v21 = vld [vmem:[%s2472_s26 + $0xb0] sm:$0xff]  ;;  %v2175_v25 = vld [vmem:[%s2472_s26 + $0xa8] sm:$0xff] }
  0x3e   : > { %v2185_v18 = vld [vmem:[%s2472_s26 + $0xf8] sm:$0xff]  ;;  %1315 = vmatpush.bf16.msra.mxu2 %v2177_v17  ;;  %v2184_v22 = vld [vmem:[%s2472_s26 + $0xf0] sm:$0xff]  ;;  %v2183_v26 = vld [vmem:[%s2472_s26 + $0xe8] sm:$0xff] }
  0x3f   : > { %1329 = vmatpush.bf16.msra.mxu3 %v2185_v18  ;;  %v2158_v27 = vld [vmem:[%s2472_s26 + $0x20] sm:$0xff]  ;;  %v2157_v31 = vld [vmem:[%s2472_s26 + $0x18] sm:$0xff]  ;;  %v2156_v35 = vld [vmem:[%s2472_s26 + $0x10] sm:$0xff] }
  0x40   : > { %1288 = vmatpush.bf16.msra.mxu0 %v2160_v19  ;;  %v2166_v28 = vld [vmem:[%s2472_s26 + $0x60] sm:$0xff]  ;;  %v2165_v32 = vld [vmem:[%s2472_s26 + $0x58] sm:$0xff]  ;;  %v2164_v36 = vld [vmem:[%s2472_s26 + $0x50] sm:$0xff] }
  0x41   : > { %1302 = vmatpush.bf16.msra.mxu1 %v2168_v20  ;;  %v2174_v29 = vld [vmem:[%s2472_s26 + $0xa0] sm:$0xff]  ;;  %v2173_v33 = vld [vmem:[%s2472_s26 + $0x98] sm:$0xff]  ;;  %v2172_v37 = vld [vmem:[%s2472_s26 + $0x90] sm:$0xff] }
  0x42   : > { %1316 = vmatpush.bf16.msra.mxu2 %v2176_v21  ;;  %v2182_v30 = vld [vmem:[%s2472_s26 + $0xe0] sm:$0xff]  ;;  %v2181_v34 = vld [vmem:[%s2472_s26 + $0xd8] sm:$0xff]  ;;  %v2180_v38 = vld [vmem:[%s2472_s26 + $0xd0] sm:$0xff] }
  0x43   : > { %1330 = vmatpush.bf16.msra.mxu3 %v2184_v22  ;;  %v2155_v39 = vld [vmem:[%s2472_s26 + $0x8] sm:$0xff]  ;;  %v2154_v43 = vld [vmem:[%s2472_s26] sm:$0xff]  ;;  %v2193_v46 = vld [vmem:[%s2472_s26 + $0x138] sm:$0xff] }
  0x44   : > { %1289 = vmatpush.bf16.msra.mxu0 %v2159_v23  ;;  %v2163_v40 = vld [vmem:[%s2472_s26 + $0x48] sm:$0xff]  ;;  %v2162_v44 = vld [vmem:[%s2472_s26 + $0x40] sm:$0xff]  ;;  %v2201_v49 = vld [vmem:[%s2472_s26 + $0x178] sm:$0xff] }
  0x45   : > { %1303 = vmatpush.bf16.msra.mxu1 %v2167_v24  ;;  %v2171_v41 = vld [vmem:[%s2472_s26 + $0x88] sm:$0xff]  ;;  %v2170_v45 = vld [vmem:[%s2472_s26 + $0x80] sm:$0xff]  ;;  %v2209_v52 = vld [vmem:[%s2472_s26 + $0x1b8] sm:$0xff] }
  0x46   : > { %1317 = vmatpush.bf16.msra.mxu2 %v2175_v25  ;;  %v2179_v42 = vld [vmem:[%s2472_s26 + $0xc8] sm:$0xff]  ;;  %v1635_v47 = vld [vmem:[%s2479_s12] sm:$0xf]  ;;  %v2140_v53 = vld [vmem:[%s2479_s12 + $0x4] sm:$0xf] }
  0x47   : > { %1331 = vmatpush.bf16.msra.mxu3 %v2183_v26  ;;  %v2147_v48 = vld [vmem:[%s2479_s12 + $0x34] sm:$0xf0]  ;;  %v1643_v50 = vld [vmem:[%s2479_s12 + $0x8] sm:$0xf]  ;;  %v2148_v51 = vld [vmem:[%s2479_s12 + $0x3c] sm:$0xf0] }
  0x48   : > { %1290 = vmatpush.bf16.msra.mxu0 %v2158_v27  ;;  %v1637_v54 = vld [vmem:[%s2479_s12 + $0x38] sm:$0xf0]  ;;  %v2178_v55 = vld [vmem:[%s2472_s26 + $0xc0] sm:$0xff]  ;;  %v1636_v56 = vor.u32 %v2147_v48, %v1635_v47  ;;  %v1644_v58 = vor.u32 %v2148_v51, %v1643_v50  ;;  %v2141_v59 = vld [vmem:[%s2479_s12 + $0xc] sm:$0xf] }
  0x49   : > { %1304 = vmatpush.bf16.msra.mxu1 %v2166_v28  ;;  %v2217_v57 = vld [vmem:[%s2472_s26 + $0x1f8] sm:$0xff]  ;;  %v1645_v60 = vld [vmem:[%s2479_s12 + $0x40] sm:$0xf0]  ;;  %v1640_v62 = vor.u32 %v2140_v53, %v1637_v54  ;;  %v2191_v3 = vld [vmem:[%s2472_s26 + $0x128] sm:$0xff] }
  0x4a   : > { %1318 = vmatpush.bf16.msra.mxu2 %v2174_v29  ;;  %v2192_v61 = vld [vmem:[%s2472_s26 + $0x130] sm:$0xff]  ;;  %v1648_v1 = vor.u32 %v2141_v59, %v1645_v60  ;;  %v2199_v4 = vld [vmem:[%s2472_s26 + $0x168] sm:$0xff]  ;;  %v2190_v7 = vld [vmem:[%s2472_s26 + $0x120] sm:$0xff] }
  0x4b   : > { %1332 = vmatpush.bf16.msra.mxu3 %v2182_v30  ;;  %v2200_v63 = vld [vmem:[%s2472_s26 + $0x170] sm:$0xff]  ;;  %v2207_v5 = vld [vmem:[%s2472_s26 + $0x1a8] sm:$0xff]  ;;  %v2198_v8 = vld [vmem:[%s2472_s26 + $0x160] sm:$0xff] }
  0x4c   : > { %1291 = vmatpush.bf16.msra.mxu0 %v2157_v31  ;;  %v2208_v0 = vld [vmem:[%s2472_s26 + $0x1b0] sm:$0xff]  ;;  %v2215_v6 = vld [vmem:[%s2472_s26 + $0x1e8] sm:$0xff]  ;;  %v2206_v9 = vld [vmem:[%s2472_s26 + $0x1a0] sm:$0xff] }
  0x4d   : > { %1305 = vmatpush.bf16.msra.mxu1 %v2165_v32  ;;  %v2216_v2 = vld [vmem:[%s2472_s26 + $0x1f0] sm:$0xff]  ;;  %v2214_v10 = vld [vmem:[%s2472_s26 + $0x1e0] sm:$0xff]  ;;  %v2189_v11 = vld [vmem:[%s2472_s26 + $0x118] sm:$0xff] }
  0x4e   : > { %1319 = vmatpush.bf16.msra.mxu2 %v2173_v33  ;;  %v2197_v12 = vld [vmem:[%s2472_s26 + $0x158] sm:$0xff]  ;;  %v2188_v15 = vld [vmem:[%s2472_s26 + $0x110] sm:$0xff]  ;;  %v2187_v19 = vld [vmem:[%s2472_s26 + $0x108] sm:$0xff] }
  0x4f   : > { %1333 = vmatpush.bf16.msra.mxu3 %v2181_v34  ;;  %v2205_v13 = vld [vmem:[%s2472_s26 + $0x198] sm:$0xff]  ;;  %v2196_v16 = vld [vmem:[%s2472_s26 + $0x150] sm:$0xff]  ;;  %v2195_v20 = vld [vmem:[%s2472_s26 + $0x148] sm:$0xff] }
  0x50   : > { %1292 = vmatpush.bf16.msra.mxu0 %v2156_v35  ;;  %v2213_v14 = vld [vmem:[%s2472_s26 + $0x1d8] sm:$0xff]  ;;  %v2204_v17 = vld [vmem:[%s2472_s26 + $0x190] sm:$0xff]  ;;  %v2203_v21 = vld [vmem:[%s2472_s26 + $0x188] sm:$0xff] }
  0x51   : > { %1306 = vmatpush.bf16.msra.mxu1 %v2164_v36  ;;  %v2212_v18 = vld [vmem:[%s2472_s26 + $0x1d0] sm:$0xff]  ;;  %v2211_v22 = vld [vmem:[%s2472_s26 + $0x1c8] sm:$0xff]  ;;  %v2186_v23 = vld [vmem:[%s2472_s26 + $0x100] sm:$0xff] }
  0x52   : > { %1320 = vmatpush.bf16.msra.mxu2 %v2172_v37  ;;  %v2194_v24 = vld [vmem:[%s2472_s26 + $0x140] sm:$0xff]  ;;  %v2225_v26 = vld [vmem:[%s2472_s26 + $0x238] sm:$0xff]  ;;  %v2223_v47 = vld [vmem:[%s2472_s26 + $0x228] sm:$0xff] }
  0x53   : > { %1334 = vmatpush.bf16.msra.mxu3 %v2180_v38  ;;  %v2202_v25 = vld [vmem:[%s2472_s26 + $0x180] sm:$0xff]  ;;  %v2233_v27 = vld [vmem:[%s2472_s26 + $0x278] sm:$0xff]  ;;  %v2231_v48 = vld [vmem:[%s2472_s26 + $0x268] sm:$0xff] }
  0x54   : > { %1293 = vmatpush.bf16.msra.mxu0 %v2155_v39  ;;  %v1651_v28 = vld [vmem:[%s2479_s12 + $0x10] sm:$0xf]  ;;  %v2149_v29 = vld [vmem:[%s2479_s12 + $0x44] sm:$0xf0]  ;;  %v1659_v30 = vld [vmem:[%s2479_s12 + $0x18] sm:$0xf] }
  0x55   : > { %1307 = vmatpush.bf16.msra.mxu1 %v2163_v40  ;;  %v2150_v31 = vld [vmem:[%s2479_s12 + $0x4c] sm:$0xf0]  ;;  %v2241_v32 = vld [vmem:[%s2472_s26 + $0x2b8] sm:$0xff]  ;;  %v2142_v33 = vld [vmem:[%s2479_s12 + $0x14] sm:$0xf]  ;;  %v1652_v38 = vor.u32 %v2149_v29, %v1651_v28 }
  0x56   : > { %1321 = vmatpush.bf16.msra.mxu2 %v2171_v41  ;;  %v1653_v34 = vld [vmem:[%s2479_s12 + $0x48] sm:$0xf0]  ;;  %v2210_v35 = vld [vmem:[%s2472_s26 + $0x1c0] sm:$0xff]  ;;  %v2143_v36 = vld [vmem:[%s2479_s12 + $0x1c] sm:$0xf]  ;;  %v1660_v39 = vor.u32 %v2150_v31, %v1659_v30 }
  0x57   : > { %1335 = vmatpush.bf16.msra.mxu3 %v2179_v42  ;;  %v1661_v37 = vld [vmem:[%s2479_s12 + $0x50] sm:$0xf0]  ;;  %v2249_v40 = vld [vmem:[%s2472_s26 + $0x2f8] sm:$0xff]  ;;  %v1656_v41 = vor.u32 %v2142_v33, %v1653_v34  ;;  %v2247_v50 = vld [vmem:[%s2472_s26 + $0x2e8] sm:$0xff] }
  0x58   : > { %1294 = vmatpush.bf16.msra.mxu0 %v2154_v43  ;;  %v1664_v42 = vor.u32 %v2143_v36, %v1661_v37  ;;  %v2224_v43 = vld [vmem:[%s2472_s26 + $0x230] sm:$0xff]  ;;  %v2222_v51 = vld [vmem:[%s2472_s26 + $0x220] sm:$0xff]  ;;  %v2261_v28 = vld [vmem:[%s2472_s26 + $0x358] sm:$0xff] }
  0x59   : > { %1308 = vmatpush.bf16.msra.mxu1 %v2162_v44  ;;  %v2232_v44 = vld [vmem:[%s2472_s26 + $0x270] sm:$0xff]  ;;  %v2238_v53 = vld [vmem:[%s2472_s26 + $0x2a0] sm:$0xff]  ;;  %v2251_v31 = vld [vmem:[%s2472_s26 + $0x308] sm:$0xff] }
  0x5a   : > { %1322 = vmatpush.bf16.msra.mxu2 %v2170_v45  ;;  %v2240_v45 = vld [vmem:[%s2472_s26 + $0x2b0] sm:$0xff]  ;;  %v2246_v54 = vld [vmem:[%s2472_s26 + $0x2e0] sm:$0xff] }
  0x5b   : > { %1336 = vmatpush.bf16.msra.mxu3 %v2178_v55  ;;  %1295 = vmatmul.bf16.vlgmr.msra.gmra.mxu0 %v1636_v56  ;;  %v2221_v55 = vld [vmem:[%s2472_s26 + $0x218] sm:$0xff]  ;;  %v2220_v59 = vld [vmem:[%s2472_s26 + $0x210] sm:$0xff]  ;;  %v2250_v33 = vld [vmem:[%s2472_s26 + $0x300] sm:$0xff] }
  0x5c   : > { %1343 = vmatpush.bf16.msrb.mxu0 %v2193_v46  ;;  %1309 = vmatmul.bf16.vlgmr.msra.gmra.mxu1 %v1640_v62  ;;  %v2248_v46 = vld [vmem:[%s2472_s26 + $0x2f0] sm:$0xff]  ;;  %v2229_v56 = vld [vmem:[%s2472_s26 + $0x258] sm:$0xff]  ;;  %v2258_v36 = vld [vmem:[%s2472_s26 + $0x340] sm:$0xff] }
  0x5d   : > { %1357 = vmatpush.bf16.msrb.mxu1 %v2201_v49  ;;  %1323 = vmatmul.bf16.vlgmr.msra.gmra.mxu2 %v1644_v58  ;;  %v2239_v49 = vld [vmem:[%s2472_s26 + $0x2a8] sm:$0xff]  ;;  %v2245_v58 = vld [vmem:[%s2472_s26 + $0x2d8] sm:$0xff]  ;;  %v2228_v60 = vld [vmem:[%s2472_s26 + $0x250] sm:$0xff] }
  0x5e   : > { %1371 = vmatpush.bf16.msrb.mxu2 %v2209_v52  ;;  %1337 = vmatmul.bf16.vlgmr.msra.gmra.mxu3 %v1648_v1  ;;  %v2230_v52 = vld [vmem:[%s2472_s26 + $0x260] sm:$0xff]  ;;  %v2244_v62 = vld [vmem:[%s2472_s26 + $0x2d0] sm:$0xff]  ;;  %v2235_v1 = vld [vmem:[%s2472_s26 + $0x288] sm:$0xff] }
  0x5f   : > { %1385 = vmatpush.bf16.msrb.mxu3 %v2217_v57  ;;  %v2237_v57 = vld [vmem:[%s2472_s26 + $0x298] sm:$0xff]  ;;  %v2252_v29 = vld [vmem:[%s2472_s26 + $0x310] sm:$0xff] }
  0x60   : > { %1344 = vmatpush.bf16.msrb.mxu0 %v2192_v61  ;;  %v2236_v61 = vld [vmem:[%s2472_s26 + $0x290] sm:$0xff] }
  0x61   : > { %1358 = vmatpush.bf16.msrb.mxu1 %v2200_v63  ;;  %v2219_v63 = vld [vmem:[%s2472_s26 + $0x208] sm:$0xff]  ;;  %v2260_v30 = vld [vmem:[%s2472_s26 + $0x350] sm:$0xff] }
  0x62   : > { %1372 = vmatpush.bf16.msrb.mxu2 %v2208_v0  ;;  %v2227_v0 = vld [vmem:[%s2472_s26 + $0x248] sm:$0xff]  ;;  %v1683_v34 = vld [vmem:[%s2479_s12 + $0x30] sm:$0xf]  ;;  %v2146_v37 = vld [vmem:[%s2479_s12 + $0x34] sm:$0xf] }
  0x63   : > { %1386 = vmatpush.bf16.msrb.mxu3 %v2216_v2  ;;  %v2243_v2 = vld [vmem:[%s2472_s26 + $0x2c8] sm:$0xff] }
  0x64   : > { %1345 = vmatpush.bf16.msrb.mxu0 %v2191_v3  ;;  %v2218_v3 = vld [vmem:[%s2472_s26 + $0x200] sm:$0xff] }
  0x65   : > { %1359 = vmatpush.bf16.msrb.mxu1 %v2199_v4  ;;  %v2226_v4 = vld [vmem:[%s2472_s26 + $0x240] sm:$0xff] }
  0x66   : > { %1373 = vmatpush.bf16.msrb.mxu2 %v2207_v5  ;;  %v2234_v5 = vld [vmem:[%s2472_s26 + $0x280] sm:$0xff] }
  0x67   : > { %1387 = vmatpush.bf16.msrb.mxu3 %v2215_v6  ;;  %v1667_v6 = vld [vmem:[%s2479_s12 + $0x20] sm:$0xf] }
  0x68   : > { %1346 = vmatpush.bf16.msrb.mxu0 %v2190_v7  ;;  %v2151_v7 = vld [vmem:[%s2479_s12 + $0x54] sm:$0xf0] }
  0x69   : > { %1360 = vmatpush.bf16.msrb.mxu1 %v2198_v8  ;;  %v1675_v8 = vld [vmem:[%s2479_s12 + $0x28] sm:$0xf] }
  0x6a   : > { %1374 = vmatpush.bf16.msrb.mxu2 %v2206_v9  ;;  %v2152_v9 = vld [vmem:[%s2479_s12 + $0x5c] sm:$0xf0] }
  0x6b   : > { %1388 = vmatpush.bf16.msrb.mxu3 %v2214_v10  ;;  %v2144_v10 = vld [vmem:[%s2479_s12 + $0x24] sm:$0xf] }
  0x6c   : > { %1347 = vmatpush.bf16.msrb.mxu0 %v2189_v11  ;;  %v1669_v11 = vld [vmem:[%s2479_s12 + $0x58] sm:$0xf0] }
  0x6d   : > { %1361 = vmatpush.bf16.msrb.mxu1 %v2197_v12  ;;  %v2257_v12 = vld [vmem:[%s2472_s26 + $0x338] sm:$0xff] }
  0x6e   : > { %1375 = vmatpush.bf16.msrb.mxu2 %v2205_v13  ;;  %v2265_v13 = vld [vmem:[%s2472_s26 + $0x378] sm:$0xff] }
  0x6f   : > { %1389 = vmatpush.bf16.msrb.mxu3 %v2213_v14  ;;  %v2242_v14 = vld [vmem:[%s2472_s26 + $0x2c0] sm:$0xff] }
  0x70   : > { %1348 = vmatpush.bf16.msrb.mxu0 %v2188_v15  ;;  %v1668_v15 = vor.u32 %v2151_v7, %v1667_v6 }
  0x71   : > { %1362 = vmatpush.bf16.msrb.mxu1 %v2196_v16  ;;  %v2145_v16 = vld [vmem:[%s2479_s12 + $0x2c] sm:$0xf] }
  0x72   : > { %1376 = vmatpush.bf16.msrb.mxu2 %v2204_v17  ;;  %v1677_v17 = vld [vmem:[%s2479_s12 + $0x60] sm:$0xf0] }
  0x73   : > { %1390 = vmatpush.bf16.msrb.mxu3 %v2212_v18  ;;  %v1676_v18 = vor.u32 %v2152_v9, %v1675_v8 }
  0x74   : > { %1349 = vmatpush.bf16.msrb.mxu0 %v2187_v19  ;;  %v1672_v19 = vor.u32 %v2144_v10, %v1669_v11 }
  0x75   : > { %1363 = vmatpush.bf16.msrb.mxu1 %v2195_v20  ;;  %v1680_v20 = vor.u32 %v2145_v16, %v1677_v17 }
  0x76   : > { %1377 = vmatpush.bf16.msrb.mxu2 %v2203_v21  ;;  %v2256_v21 = vld [vmem:[%s2472_s26 + $0x330] sm:$0xff] }
  0x77   : > { %1391 = vmatpush.bf16.msrb.mxu3 %v2211_v22  ;;  %v2264_v22 = vld [vmem:[%s2472_s26 + $0x370] sm:$0xff] }
  0x78   : > { %1350 = vmatpush.bf16.msrb.mxu0 %v2186_v23  ;;  %v2255_v23 = vld [vmem:[%s2472_s26 + $0x328] sm:$0xff] }
  0x79   : > { %1364 = vmatpush.bf16.msrb.mxu1 %v2194_v24  ;;  %v2263_v24 = vld [vmem:[%s2472_s26 + $0x368] sm:$0xff] }
  0x7a   : > { %1378 = vmatpush.bf16.msrb.mxu2 %v2202_v25  ;;  %v2254_v25 = vld [vmem:[%s2472_s26 + $0x320] sm:$0xff] }
  0x7b   : > { %1392 = vmatpush.bf16.msrb.mxu3 %v2210_v35  ;;  %1351 = vmatmul.bf16.vlgmr.msrb.gmra.mxu0 %v1652_v38  ;;  %v2153_v35 = vld [vmem:[%s2479_s12 + $0x64] sm:$0xf0]  ;;  %v1685_v38 = vld [vmem:[%s2479_s12 + $0x68] sm:$0xf0] }
  0x7c   : > { %1399 = vmatpush.bf16.msra.mxu0 %v2225_v26  ;;  %1365 = vmatmul.bf16.vlgmr.msrb.gmra.mxu1 %v1656_v41  ;;  %v2262_v26 = vld [vmem:[%s2472_s26 + $0x360] sm:$0xff] }
  0x7d   : > { %1413 = vmatpush.bf16.msra.mxu1 %v2233_v27  ;;  %1379 = vmatmul.bf16.vlgmr.msrb.gmra.mxu2 %v1660_v39  ;;  %v2253_v27 = vld [vmem:[%s2472_s26 + $0x318] sm:$0xff]  ;;  %v1684_v39 = vor.u32 %v2153_v35, %v1683_v34 }
  0x7e   : > { %1427 = vmatpush.bf16.msra.mxu2 %v2241_v32  ;;  %1393 = vmatmul.bf16.vlgmr.msrb.gmra.mxu3 %v1664_v42  ;;  %v2259_v32 = vld [vmem:[%s2472_s26 + $0x348] sm:$0xff] }
  0x7f   : > { %1441 = vmatpush.bf16.msra.mxu3 %v2249_v40  ;;  %v1688_v40 = vor.u32 %v2146_v37, %v1685_v38 }
  0x80   : > { %1400 = vmatpush.bf16.msra.mxu0 %v2224_v43 }
  0x81   : > { %1414 = vmatpush.bf16.msra.mxu1 %v2232_v44 }
  0x82   : > { %1428 = vmatpush.bf16.msra.mxu2 %v2240_v45 }
  0x83   : > { %1442 = vmatpush.bf16.msra.mxu3 %v2248_v46 }
  0x84   : > { %1401 = vmatpush.bf16.msra.mxu0 %v2223_v47 }
  0x85   : > { %1415 = vmatpush.bf16.msra.mxu1 %v2231_v48 }
  0x86   : > { %1429 = vmatpush.bf16.msra.mxu2 %v2239_v49 }
  0x87   : > { %1443 = vmatpush.bf16.msra.mxu3 %v2247_v50 }
  0x88   : > { %1402 = vmatpush.bf16.msra.mxu0 %v2222_v51 }
  0x89   : > { %1416 = vmatpush.bf16.msra.mxu1 %v2230_v52 }
  0x8a   : > { %1430 = vmatpush.bf16.msra.mxu2 %v2238_v53 }
  0x8b   : > { %1444 = vmatpush.bf16.msra.mxu3 %v2246_v54 }
  0x8c   : > { %1403 = vmatpush.bf16.msra.mxu0 %v2221_v55 }
  0x8d   : > { %1417 = vmatpush.bf16.msra.mxu1 %v2229_v56 }
  0x8e   : > { %1431 = vmatpush.bf16.msra.mxu2 %v2237_v57 }
  0x8f   : > { %1445 = vmatpush.bf16.msra.mxu3 %v2245_v58 }
  0x90   : > { %1404 = vmatpush.bf16.msra.mxu0 %v2220_v59 }
  0x91   : > { %1418 = vmatpush.bf16.msra.mxu1 %v2228_v60 }
  0x92   : > { %1432 = vmatpush.bf16.msra.mxu2 %v2236_v61 }
  0x93   : > { %1446 = vmatpush.bf16.msra.mxu3 %v2244_v62 }
  0x94   : > { %1405 = vmatpush.bf16.msra.mxu0 %v2219_v63 }
  0x95   : > { %1419 = vmatpush.bf16.msra.mxu1 %v2227_v0 }
  0x96   : > { %1433 = vmatpush.bf16.msra.mxu2 %v2235_v1 }
  0x97   : > { %1447 = vmatpush.bf16.msra.mxu3 %v2243_v2 }
  0x98   : > { %1406 = vmatpush.bf16.msra.mxu0 %v2218_v3 }
  0x99   : > { %1420 = vmatpush.bf16.msra.mxu1 %v2226_v4 }
  0x9a   : > { %1434 = vmatpush.bf16.msra.mxu2 %v2234_v5 }
  0x9b   : > { %1448 = vmatpush.bf16.msra.mxu3 %v2242_v14  ;;  %1407 = vmatmul.bf16.vlgmr.msra.gmra.mxu0 %v1668_v15 }
  0x9c   : > { %1455 = vmatpush.bf16.msrb.mxu0 %v2257_v12  ;;  %1421 = vmatmul.bf16.vlgmr.msra.gmra.mxu1 %v1672_v19 }
  0x9d   : > { %1469 = vmatpush.bf16.msrb.mxu1 %v2265_v13  ;;  %1435 = vmatmul.bf16.vlgmr.msra.gmra.mxu2 %v1676_v18 }
  0x9e   : > { %1449 = vmatmul.bf16.vlgmr.msra.gmra.mxu3 %v1680_v20 }
  0xa0   : > { %1456 = vmatpush.bf16.msrb.mxu0 %v2256_v21 }
  0xa1   : > { %1470 = vmatpush.bf16.msrb.mxu1 %v2264_v22 }
  0xa4   : > { %1457 = vmatpush.bf16.msrb.mxu0 %v2255_v23  ;;  %v305_v23 = vld [vmem:[#allocation2] sm:$0xff] }
  0xa5   : > { %1471 = vmatpush.bf16.msrb.mxu1 %v2263_v24 }
  0xa8   : > { %1458 = vmatpush.bf16.msrb.mxu0 %v2254_v25 }
  0xa9   : > { %1472 = vmatpush.bf16.msrb.mxu1 %v2262_v26 }
  0xac   : > { %1459 = vmatpush.bf16.msrb.mxu0 %v2253_v27 }
  0xad   : > { %1473 = vmatpush.bf16.msrb.mxu1 %v2261_v28 }
  0xb0   : > { %1460 = vmatpush.bf16.msrb.mxu0 %v2252_v29 }
  0xb1   : > { %1474 = vmatpush.bf16.msrb.mxu1 %v2260_v30 }
  0xb4   : > { %1461 = vmatpush.bf16.msrb.mxu0 %v2251_v31  ;;  %v306_v31 = vld [vmem:[#allocation2 + $0x8] sm:$0xff] }
  0xb5   : > { %1475 = vmatpush.bf16.msrb.mxu1 %v2259_v32 }
  0xb8   : > { %1462 = vmatpush.bf16.msrb.mxu0 %v2250_v33 }
  0xb9   : > { %1476 = vmatpush.bf16.msrb.mxu1 %v2258_v36 }
  0xbb   : > { %1463 = vmatmul.bf16.vlgmr.msrb.gmra.mxu0 %v1684_v39 }
  0xbc   : > { %1477 = vmatmul.bf16.vlgmr.msrb.gmra.mxu1 %v1688_v40 }
  0xd8   : > { %v1296_v41 = vpop.f32.mrf.mxu0 }
  0xd9   : > { %v1310_v42 = vpop.f32.mrf.mxu1 }
  0xda   : > { %v1311_v48 = vadd.f32 %v1310_v42, %v1296_v41 }
  0xe0   : > { %v1324_v43 = vpop.f32.mrf.mxu2  ;;  %v1298_v44 = vpop.f32.mrf.mxu0 }
  0xe1   : > { %v1312_v45 = vpop.f32.mrf.mxu1  ;;  %v1338_v46 = vpop.f32.mrf.mxu3  ;;  %v1325_v52 = vadd.f32 %v1324_v43, %v1311_v48 }
  0xe2   : > { %v1313_v56 = vadd.f32 %v1312_v45, %v1298_v44 }
  0xe3   : > { %v1339_v53 = vadd.f32 %v1338_v46, %v1325_v52 }
  0xe8   : > { %v1326_v47 = vpop.f32.mrf.mxu2 }
  0xe9   : > { %v1340_v51 = vpop.f32.mrf.mxu3  ;;  %v1327_v60 = vadd.f32 %v1326_v47, %v1313_v56 }
  0xeb   : > { %v1341_v0 = vadd.f32 %v1340_v51, %v1327_v60 }
  0xf8   : > { %v1352_v49 = vpop.f32.mrf.mxu0 }
  0xf9   : > { %v1366_v50 = vpop.f32.mrf.mxu1  ;;  %v1353_v57 = vadd.f32 %v1352_v49, %v1339_v53 }
  0xfb   : > { %v1367_v61 = vadd.f32 %v1366_v50, %v1353_v57 }
 0x100   : > { %v1380_v54 = vpop.f32.mrf.mxu2  ;;  %v1354_v55 = vpop.f32.mrf.mxu0 }
 0x101   : > { %v1368_v58 = vpop.f32.mrf.mxu1  ;;  %v1394_v59 = vpop.f32.mrf.mxu3  ;;  %v1381_v1 = vadd.f32 %v1380_v54, %v1367_v61  ;;  %v1355_v3 = vadd.f32 %v1354_v55, %v1341_v0 }
 0x103   : > { %v1395_v5 = vadd.f32 %v1394_v59, %v1381_v1  ;;  %v1369_v6 = vadd.f32 %v1368_v58, %v1355_v3 }
 0x108   : > { %v1382_v62 = vpop.f32.mrf.mxu2 }
 0x109   : > { %v1396_v4 = vpop.f32.mrf.mxu3  ;;  %v1383_v9 = vadd.f32 %v1382_v62, %v1369_v6 }
 0x10b   : > { %v1397_v14 = vadd.f32 %v1396_v4, %v1383_v9 }
 0x118   : > { %v1408_v63 = vpop.f32.mrf.mxu0 }
 0x119   : > { %v1422_v2 = vpop.f32.mrf.mxu1  ;;  %v1409_v7 = vadd.f32 %v1408_v63, %v1395_v5 }
 0x11b   : > { %v1423_v11 = vadd.f32 %v1422_v2, %v1409_v7 }
 0x120   : > { %v1436_v8 = vpop.f32.mrf.mxu2  ;;  %v1410_v10 = vpop.f32.mrf.mxu0 }
 0x121   : > { %v1424_v12 = vpop.f32.mrf.mxu1  ;;  %v1450_v13 = vpop.f32.mrf.mxu3  ;;  %v1437_v15 = vadd.f32 %v1436_v8, %v1423_v11  ;;  %v1411_v16 = vadd.f32 %v1410_v10, %v1397_v14 }
 0x123   : > { %v1451_v17 = vadd.f32 %v1450_v13, %v1437_v15  ;;  %v1425_v20 = vadd.f32 %v1424_v12, %v1411_v16 }
 0x128   : > { %v1438_v18 = vpop.f32.mrf.mxu2 }
 0x129   : > { %v1439_v24 = vadd.f32 %v1438_v18, %v1425_v20  ;;  %v1452_v26 = vpop.f32.mrf.mxu3 }
 0x12b   : > { %v1453_v28 = vadd.f32 %v1452_v26, %v1439_v24 }
 0x138   : > { %v1464_v19 = vpop.f32.mrf.mxu0 }
 0x139   : > { %v1465_v21 = vadd.f32 %v1464_v19, %v1451_v17  ;;  %v1478_v22 = vpop.f32.mrf.mxu1 }
 0x13b   : > { %v1479_v25 = vadd.f32 %v1478_v22, %v1465_v21 }
 0x13d   : > { %v1483_v27 = vadd.f32 %v1479_v25, %v305_v23 }
 0x13f   : > { %1485 = vst [vmem:[#allocation2] sm:$0xff] %v1483_v27 }
 0x140   : > { %v1466_v29 = vpop.f32.mrf.mxu0 }
 0x141   : > { %v1467_v30 = vadd.f32 %v1466_v29, %v1453_v28  ;;  %v1480_v32 = vpop.f32.mrf.mxu1 }
 0x143   : > { %v1481_v33 = vadd.f32 %v1480_v32, %v1467_v30  ;;  %1490 = sbr.rel (%p2137_p13) target bundleno = 340 (0x154), region = 63 }
 0x145   : > { %v1484_v34 = vadd.f32 %v1481_v33, %v306_v31 }
 0x147   : > { %1486 = vst [vmem:[#allocation2 + $0x8] sm:$0xff] %v1484_v34 }
 0x148   : > { %v1491_v35 = vld [vmem:[#allocation2] sm:$0xff] }
 0x149   : > { %v2326_v36 = vld [vmem:[%s2651_s2] ss:$0 sm:$0xff] }
 0x14a   : > { %v1497_v38 = vadd.f32 %v2326_v36, %v1491_v35 }
 0x14c   : > { %v1499_v40 = vmax.f32 %v1497_v38, 0.0 }
 0x14e   : > { %v1492_v37 = vld [vmem:[#allocation2 + $0x8] sm:$0xff]  ;;  %1501 = vst [vmem:[%s2477_s30] sm:$0xff] %v1499_v40 }
 0x14f   : > { %v1498_v39 = vadd.f32 %v2326_v36, %v1492_v37 }
 0x151   : > { %v1500_v41 = vmax.f32 %v1498_v39, 0.0 }
 0x153   : > { %1502 = vst [vmem:[%s2477_s30 + $0x8] sm:$0xff] %v1500_v41 }
 0x154 PF: > { %s13_s18 = sadd.s32 1, %s2381_s18   ;;  %s2653_s12 = smov %s2361_s13 }
 0x155   : > { %p10_p0 = scmp.ge.s32.totalorder %s13_s18, 6   ;;  %s2654_s13 = smov %s2455_s25 }
 0x156   : > { %s2655_s14 = smov %s2373_s16  ;;  %s2656_s15 = smov %s2377_s17 }
 0x157   : > { %s2657_s16 = smov %s2660_s19  ;;  %s2658_s17 = smov %s2664_s20 }
 0x158   :  { %12 = sbr.rel (!%p10_p0) target bundleno = 4 (0x4), region = 104 }

// kernel: device_forward.40
= control target key start
LH: loop header
LB: loop body
LE: loop exit
PB: predicated region body
PF: predicated region fallthrough
CT: control target
= control target key end

     0   :  { %s2995_s12 = smov 0   ;;  %s2997_s13 = smov 0   ;;  %s3596_s0 = inlined_call_operand.vmem [shape: bf16[128,1728], index: 0, kind: input, shape index: {}]   ;;  %s3597_s1 = inlined_call_operand.vmem [shape: bf16[1728,128], index: 1, kind: input, shape index: {}]   ;;  %s3598_s2 = inlined_call_operand.vmem [shape: f32[1,128], index: 2, kind: input, shape index: {}]   ;;  %s3599_s3 = inlined_call_operand.vmem [shape: f32[128,128], index: 3, kind: output, shape index: {}]  }
   0x1   :  { %s2999_s14 = smov 0  }
   0x2 LB: > { %s32_s15 = sadd.s32 1, %s2969_s13  ;;  %p2078_p0 = scmp.ge.s32.totalorder %s2973_s14, 1  ;;  %s2973_s14 = sphi %s2999_s14, %s13_s14   ;;  %s2969_s13 = sphi %s2997_s13, %s3601_s13   ;;  %s2965_s12 = sphi %s2995_s12, %s3600_s12  }
   0x3   : > { %p34_p1 = scmp.ge.s32.totalorder %s32_s15, 2  ;;  %p191_p2 = scmp.lt.s32.totalorder %s2973_s14, 3 }
   0x5   : > { %s3603_s15 = smov (%p34_p1, %s32_s15), 0  ;;  %p192_p3 = pnand %p2078_p0, %p191_p2 }
   0x6   : > { %s2079_s28 = sshll.u32 (!%p192_p3), %s2965_s12, 3 }
   0x7   : > { %195 = sbr.rel (%p192_p3) target bundleno = 405 (0x195), region = 32  ;;  %p236_p4 = scmp.lt.s32.totalorder (!%p192_p3), %s2079_s28, 15 }
   0xc   : > { %v2808_v0 = vld [vmem:[%s3597_s1 + $0x38] sm:$0xff]  ;;  %v2807_v2 = vld [vmem:[%s3597_s1 + $0x30] sm:$0xff]  ;;  %v2806_v4 = vld [vmem:[%s3597_s1 + $0x28] sm:$0xff]  ;;  %s3605_s28 = smov (!%p236_p4, %s2079_s28), 15  ;;  %vm1484_vm0 = vcmask 523264  }
   0xd   : > { %v2816_v1 = vld [vmem:[%s3597_s1 + $0x78] sm:$0xff]  ;;  %2909 = vmatpush.bf16.msra.mxu2 %v2808_v0  ;;  %v2815_v3 = vld [vmem:[%s3597_s1 + $0x70] sm:$0xff]  ;;  %1497 = vmatpush.bf16.msra.mxu0 %v2808_v0  ;;  %v2814_v5 = vld [vmem:[%s3597_s1 + $0x68] sm:$0xff]  ;;  %s2925_s17 = smul.u32 56, %s3605_s28  ;;  %s2082_s12 = sshll.u32 %s3605_s28, 3 }
   0xe   : > { %2917 = vmatpush.bf16.msra.mxu3 %v2816_v1  ;;  %1526 = vmatpush.bf16.msra.mxu1 %v2816_v1  ;;  %v2805_v6 = vld [vmem:[%s3597_s1 + $0x20] sm:$0xff]  ;;  %v2804_v8 = vld [vmem:[%s3597_s1 + $0x18] sm:$0xff]  ;;  %v2803_v10 = vld [vmem:[%s3597_s1 + $0x10] sm:$0xff]  ;;  %s3549_s18 = scalar_lea.vmem %s3599_s3, %s2082_s12 }
   0xf   : > { %v2813_v7 = vld [vmem:[%s3597_s1 + $0x60] sm:$0xff]  ;;  %v2812_v9 = vld [vmem:[%s3597_s1 + $0x58] sm:$0xff]  ;;  %v2811_v11 = vld [vmem:[%s3597_s1 + $0x50] sm:$0xff]  ;;  %s3064_s24 = scalar_lea.vmem %s3596_s0, %s2925_s17 }
  0x10   : > { %v2802_v12 = vld [vmem:[%s3597_s1 + $0x8] sm:$0xff]  ;;  %v2801_v14 = vld [vmem:[%s3597_s1] sm:$0xff]  ;;  %v2780_v17 = vld [vmem:[%s3064_s24 + $0x114] sm:$0xf0] }
  0x11   : > { %2910 = vmatpush.bf16.msra.mxu2 %v2807_v2  ;;  %1498 = vmatpush.bf16.msra.mxu0 %v2807_v2  ;;  %v2810_v13 = vld [vmem:[%s3597_s1 + $0x48] sm:$0xff]  ;;  %v2809_v15 = vld [vmem:[%s3597_s1 + $0x40] sm:$0xff]  ;;  %v2199_v19 = vld [vmem:[%s3064_s24 + $0x118] sm:$0xf0] }
  0x12   : > { %2918 = vmatpush.bf16.msra.mxu3 %v2815_v3  ;;  %1527 = vmatpush.bf16.msra.mxu1 %v2815_v3  ;;  %v2197_v16 = vld [vmem:[%s3064_s24 + $0xe0] sm:$0xf]  ;;  %v2773_v18 = vld [vmem:[%s3064_s24 + $0xe4] sm:$0xf]  ;;  %v2752_v21 = vld [vmem:[%s3064_s24 + $0x34] sm:$0xf0] }
  0x13   : > { %v2085_v20 = vld [vmem:[%s3064_s24] sm:$0xf]  ;;  %v2745_v22 = vld [vmem:[%s3064_s24 + $0x4] sm:$0xf]  ;;  %v2087_v23 = vld [vmem:[%s3064_s24 + $0x38] sm:$0xf0]  ;;  %v2198_v26 = vor.u32 %v2780_v17, %v2197_v16  ;;  %v2202_v27 = vor.u32 %v2773_v18, %v2199_v19 }
  0x14   : > { %v2824_v24 = vld [vmem:[%s3597_s1 + $0xb8] sm:$0xff]  ;;  %v2086_v28 = vor.u32 %v2752_v21, %v2085_v20  ;;  %v2090_v29 = vor.u32 %v2745_v22, %v2087_v23  ;;  %v2823_v32 = vld [vmem:[%s3597_s1 + $0xb0] sm:$0xff]  ;;  %v2822_v36 = vld [vmem:[%s3597_s1 + $0xa8] sm:$0xff] }
  0x15   : > { %2911 = vmatpush.bf16.msra.mxu2 %v2806_v4  ;;  %1499 = vmatpush.bf16.msra.mxu0 %v2806_v4  ;;  %v2832_v25 = vld [vmem:[%s3597_s1 + $0xf8] sm:$0xff]  ;;  %v2831_v33 = vld [vmem:[%s3597_s1 + $0xf0] sm:$0xff]  ;;  %v2830_v37 = vld [vmem:[%s3597_s1 + $0xe8] sm:$0xff] }
  0x16   : > { %2919 = vmatpush.bf16.msra.mxu3 %v2814_v5  ;;  %1528 = vmatpush.bf16.msra.mxu1 %v2814_v5  ;;  %v2840_v30 = vld [vmem:[%s3597_s1 + $0x138] sm:$0xff]  ;;  %v2839_v34 = vld [vmem:[%s3597_s1 + $0x130] sm:$0xff]  ;;  %v2838_v38 = vld [vmem:[%s3597_s1 + $0x128] sm:$0xff] }
  0x17   : > { %v2848_v31 = vld [vmem:[%s3597_s1 + $0x178] sm:$0xff]  ;;  %v2847_v35 = vld [vmem:[%s3597_s1 + $0x170] sm:$0xff]  ;;  %v2846_v39 = vld [vmem:[%s3597_s1 + $0x168] sm:$0xff] }
  0x18   : > { %v2821_v40 = vld [vmem:[%s3597_s1 + $0xa0] sm:$0xff]  ;;  %v2253_v43 = vld [vmem:[%s3064_s24 + $0x150] sm:$0xf]  ;;  %v2794_v44 = vld [vmem:[%s3064_s24 + $0x184] sm:$0xf0] }
  0x19   : > { %2912 = vmatpush.bf16.msra.mxu2 %v2805_v6  ;;  %1500 = vmatpush.bf16.msra.mxu0 %v2805_v6  ;;  %v2829_v41 = vld [vmem:[%s3597_s1 + $0xe0] sm:$0xff]  ;;  %v2787_v45 = vld [vmem:[%s3064_s24 + $0x154] sm:$0xf]  ;;  %v2255_v46 = vld [vmem:[%s3064_s24 + $0x188] sm:$0xf0]  ;;  %v2254_v54 = vor.u32 %v2794_v44, %v2253_v43 }
  0x1a   : > { %2920 = vmatpush.bf16.msra.mxu3 %v2813_v7  ;;  %1529 = vmatpush.bf16.msra.mxu1 %v2813_v7  ;;  %v2837_v42 = vld [vmem:[%s3597_s1 + $0x120] sm:$0xff]  ;;  %v2141_v48 = vld [vmem:[%s3064_s24 + $0x70] sm:$0xf]  ;;  %v2766_v49 = vld [vmem:[%s3064_s24 + $0xa4] sm:$0xf0]  ;;  %v2258_v55 = vor.u32 %v2787_v45, %v2255_v46 }
  0x1b   : > { %v2845_v47 = vld [vmem:[%s3597_s1 + $0x160] sm:$0xff]  ;;  %v2759_v50 = vld [vmem:[%s3064_s24 + $0x74] sm:$0xf]  ;;  %v2143_v51 = vld [vmem:[%s3064_s24 + $0xa8] sm:$0xf0]  ;;  %v2142_v56 = vor.u32 %v2766_v49, %v2141_v48 }
  0x1c   : > { %v2820_v52 = vld [vmem:[%s3597_s1 + $0x98] sm:$0xff]  ;;  %v2146_v57 = vor.u32 %v2759_v50, %v2143_v51  ;;  %v2819_v60 = vld [vmem:[%s3597_s1 + $0x90] sm:$0xff]  ;;  %v2818_v0 = vld [vmem:[%s3597_s1 + $0x88] sm:$0xff] }
  0x1d   : > { %2913 = vmatpush.bf16.msra.mxu2 %v2804_v8  ;;  %1501 = vmatpush.bf16.msra.mxu0 %v2804_v8  ;;  %v2828_v53 = vld [vmem:[%s3597_s1 + $0xd8] sm:$0xff]  ;;  %v2827_v61 = vld [vmem:[%s3597_s1 + $0xd0] sm:$0xff]  ;;  %v2826_v1 = vld [vmem:[%s3597_s1 + $0xc8] sm:$0xff] }
  0x1e   : > { %2921 = vmatpush.bf16.msra.mxu3 %v2812_v9  ;;  %1530 = vmatpush.bf16.msra.mxu1 %v2812_v9  ;;  %v2836_v58 = vld [vmem:[%s3597_s1 + $0x118] sm:$0xff]  ;;  %v2835_v62 = vld [vmem:[%s3597_s1 + $0x110] sm:$0xff]  ;;  %v2834_v2 = vld [vmem:[%s3597_s1 + $0x108] sm:$0xff] }
  0x1f   : > { %v2844_v59 = vld [vmem:[%s3597_s1 + $0x158] sm:$0xff]  ;;  %v2843_v63 = vld [vmem:[%s3597_s1 + $0x150] sm:$0xff]  ;;  %v2817_v3 = vld [vmem:[%s3597_s1 + $0x80] sm:$0xff] }
  0x20   : > { %v2842_v4 = vld [vmem:[%s3597_s1 + $0x148] sm:$0xff]  ;;  %v2825_v5 = vld [vmem:[%s3597_s1 + $0xc0] sm:$0xff]  ;;  %v2747_v16 = vld [vmem:[%s3064_s24 + $0x14] sm:$0xf] }
  0x21   : > { %2914 = vmatpush.bf16.msra.mxu2 %v2803_v10  ;;  %1502 = vmatpush.bf16.msra.mxu0 %v2803_v10  ;;  %v2093_v6 = vld [vmem:[%s3064_s24 + $0x8] sm:$0xf]  ;;  %v2753_v7 = vld [vmem:[%s3064_s24 + $0x3c] sm:$0xf0]  ;;  %v2746_v9 = vld [vmem:[%s3064_s24 + $0xc] sm:$0xf] }
  0x22   : > { %2922 = vmatpush.bf16.msra.mxu3 %v2811_v11  ;;  %1531 = vmatpush.bf16.msra.mxu1 %v2811_v11  ;;  %v2833_v8 = vld [vmem:[%s3597_s1 + $0x100] sm:$0xff]  ;;  %v2856_v10 = vld [vmem:[%s3597_s1 + $0x1b8] sm:$0xff]  ;;  %v2103_v17 = vld [vmem:[%s3064_s24 + $0x48] sm:$0xf0]  ;;  %v2094_v20 = vor.u32 %v2753_v7, %v2093_v6 }
  0x23   : > { %v2864_v11 = vld [vmem:[%s3597_s1 + $0x1f8] sm:$0xff]  ;;  %v2106_v23 = vor.u32 %v2747_v16, %v2103_v17  ;;  %v2215_v6 = vld [vmem:[%s3064_s24 + $0x128] sm:$0xf0]  ;;  %v2895_v16 = vld [vmem:[%s3597_s1 + $0x2f0] sm:$0xff] }
  0x24   : > { %v2872_v18 = vld [vmem:[%s3597_s1 + $0x238] sm:$0xff] }
  0x25   : > { %2915 = vmatpush.bf16.msra.mxu2 %v2802_v12  ;;  %1503 = vmatpush.bf16.msra.mxu0 %v2802_v12  ;;  %v2095_v12 = vld [vmem:[%s3064_s24 + $0x40] sm:$0xf0]  ;;  %v2880_v19 = vld [vmem:[%s3597_s1 + $0x278] sm:$0xff] }
  0x26   : > { %2923 = vmatpush.bf16.msra.mxu3 %v2810_v13  ;;  %1532 = vmatpush.bf16.msra.mxu1 %v2810_v13  ;;  %v2841_v13 = vld [vmem:[%s3597_s1 + $0x140] sm:$0xff]  ;;  %v2098_v21 = vor.u32 %v2746_v9, %v2095_v12  ;;  %v2159_v43 = vld [vmem:[%s3064_s24 + $0xb8] sm:$0xf0] }
  0x27   : > { %v2852_v44 = vld [vmem:[%s3597_s1 + $0x198] sm:$0xff] }
  0x28   : > { %v2860_v45 = vld [vmem:[%s3597_s1 + $0x1d8] sm:$0xff] }
  0x29   : > { %2916 = vmatpush.bf16.msra.mxu2 %v2801_v14  ;;  %1504 = vmatpush.bf16.msra.mxu0 %v2801_v14  ;;  %v2101_v14 = vld [vmem:[%s3064_s24 + $0x10] sm:$0xf]  ;;  %v2868_v46 = vld [vmem:[%s3597_s1 + $0x218] sm:$0xff] }
  0x2a   : > { %2924 = vmatpush.bf16.msra.mxu3 %v2809_v15  ;;  %1533 = vmatpush.bf16.msra.mxu1 %v2809_v15  ;;  %v2754_v15 = vld [vmem:[%s3064_s24 + $0x44] sm:$0xf0]  ;;  %v2888_v12 = vld [vmem:[%s3597_s1 + $0x2b8] sm:$0xff] }
  0x2b   : > { %v2102_v22 = vor.u32 %v2754_v15, %v2101_v14  ;;  %v2887_v14 = vld [vmem:[%s3597_s1 + $0x2b0] sm:$0xff]  ;;  %v2904_v15 = vld [vmem:[%s3597_s1 + $0x338] sm:$0xff] }
  0x2c   : > { %1515 = vmatmul.bf16.vlgmr.msra.gmra.mxu2 %v2198_v26  ;;  %1505 = vmatmul.bf16.vlgmr.msra.gmra.mxu0 %v2086_v28  ;;  %v2871_v26 = vld [vmem:[%s3597_s1 + $0x230] sm:$0xff]  ;;  %v2854_v28 = vld [vmem:[%s3597_s1 + $0x1a8] sm:$0xff]  ;;  %v2908_v17 = vld [vmem:[%s3597_s1 + $0x358] sm:$0xff] }
  0x2d   : > { %1555 = vmatpush.bf16.msrb.mxu2 %v2824_v24  ;;  %1544 = vmatmul.bf16.vlgmr.msra.gmra.mxu3 %v2202_v27  ;;  %v2855_v24 = vld [vmem:[%s3597_s1 + $0x1b0] sm:$0xff] }
  0x2e   : > { %1584 = vmatpush.bf16.msrb.mxu3 %v2832_v25  ;;  %1534 = vmatmul.bf16.vlgmr.msra.gmra.mxu1 %v2090_v29  ;;  %v2863_v25 = vld [vmem:[%s3597_s1 + $0x1f0] sm:$0xff]  ;;  %v2862_v29 = vld [vmem:[%s3597_s1 + $0x1e8] sm:$0xff] }
  0x2f   : > { %1613 = vmatpush.bf16.msrb.mxu0 %v2840_v30  ;;  %1642 = vmatpush.bf16.msrb.mxu1 %v2848_v31  ;;  %v2879_v27 = vld [vmem:[%s3597_s1 + $0x270] sm:$0xff]  ;;  %v2870_v30 = vld [vmem:[%s3597_s1 + $0x228] sm:$0xff] }
  0x30   : > { %v2878_v31 = vld [vmem:[%s3597_s1 + $0x268] sm:$0xff] }
  0x31   : > { %1556 = vmatpush.bf16.msrb.mxu2 %v2823_v32  ;;  %v2853_v32 = vld [vmem:[%s3597_s1 + $0x1a0] sm:$0xff] }
  0x32   : > { %1585 = vmatpush.bf16.msrb.mxu3 %v2831_v33  ;;  %v2861_v33 = vld [vmem:[%s3597_s1 + $0x1e0] sm:$0xff] }
  0x33   : > { %1614 = vmatpush.bf16.msrb.mxu0 %v2839_v34  ;;  %1643 = vmatpush.bf16.msrb.mxu1 %v2847_v35  ;;  %v2149_v34 = vld [vmem:[%s3064_s24 + $0x78] sm:$0xf]  ;;  %v2869_v35 = vld [vmem:[%s3597_s1 + $0x220] sm:$0xff] }
  0x35   : > { %1557 = vmatpush.bf16.msrb.mxu2 %v2822_v36  ;;  %v2877_v36 = vld [vmem:[%s3597_s1 + $0x260] sm:$0xff] }
  0x36   : > { %1586 = vmatpush.bf16.msrb.mxu3 %v2830_v37  ;;  %v2767_v37 = vld [vmem:[%s3064_s24 + $0xac] sm:$0xf0] }
  0x37   : > { %1615 = vmatpush.bf16.msrb.mxu0 %v2838_v38  ;;  %1644 = vmatpush.bf16.msrb.mxu1 %v2846_v39  ;;  %v2760_v38 = vld [vmem:[%s3064_s24 + $0x7c] sm:$0xf]  ;;  %v2151_v39 = vld [vmem:[%s3064_s24 + $0xb0] sm:$0xf0]  ;;  %v2150_v48 = vor.u32 %v2767_v37, %v2149_v34  ;;  %v2893_v34 = vld [vmem:[%s3597_s1 + $0x2e0] sm:$0xff] }
  0x38   : > { %v2154_v49 = vor.u32 %v2760_v38, %v2151_v39  ;;  %v2109_v37 = vld [vmem:[%s3064_s24 + $0x18] sm:$0xf]  ;;  %v2755_v38 = vld [vmem:[%s3064_s24 + $0x4c] sm:$0xf0]  ;;  %v2748_v39 = vld [vmem:[%s3064_s24 + $0x1c] sm:$0xf] }
  0x39   : > { %1558 = vmatpush.bf16.msrb.mxu2 %v2821_v40  ;;  %v2157_v40 = vld [vmem:[%s3064_s24 + $0x80] sm:$0xf] }
  0x3a   : > { %1587 = vmatpush.bf16.msrb.mxu3 %v2829_v41  ;;  %v2768_v41 = vld [vmem:[%s3064_s24 + $0xb4] sm:$0xf0] }
  0x3b   : > { %1616 = vmatpush.bf16.msrb.mxu0 %v2837_v42  ;;  %1645 = vmatpush.bf16.msrb.mxu1 %v2845_v47  ;;  %v2761_v42 = vld [vmem:[%s3064_s24 + $0x84] sm:$0xf]  ;;  %v2876_v47 = vld [vmem:[%s3597_s1 + $0x258] sm:$0xff]  ;;  %v2158_v50 = vor.u32 %v2768_v41, %v2157_v40  ;;  %v2111_v40 = vld [vmem:[%s3064_s24 + $0x50] sm:$0xf0] }
  0x3c   : > { %1520 = vmatmul.bf16.gmra.mxu2 %v2254_v54  ;;  %1510 = vmatmul.bf16.gmra.mxu0 %v2142_v56  ;;  %v2162_v51 = vor.u32 %v2761_v42, %v2159_v43  ;;  %v2867_v54 = vld [vmem:[%s3597_s1 + $0x210] sm:$0xff]  ;;  %v2858_v56 = vld [vmem:[%s3597_s1 + $0x1c8] sm:$0xff]  ;;  %v2117_v41 = vld [vmem:[%s3064_s24 + $0x20] sm:$0xf] }
  0x3d   : > { %1559 = vmatpush.bf16.msrb.mxu2 %v2820_v52  ;;  %1549 = vmatmul.bf16.gmra.mxu3 %v2258_v55  ;;  %v2851_v52 = vld [vmem:[%s3597_s1 + $0x190] sm:$0xff]  ;;  %v2850_v55 = vld [vmem:[%s3597_s1 + $0x188] sm:$0xff]  ;;  %v2756_v42 = vld [vmem:[%s3064_s24 + $0x54] sm:$0xf0] }
  0x3e   : > { %1588 = vmatpush.bf16.msrb.mxu3 %v2828_v53  ;;  %1539 = vmatmul.bf16.gmra.mxu1 %v2146_v57  ;;  %v2859_v53 = vld [vmem:[%s3597_s1 + $0x1d0] sm:$0xff]  ;;  %v2749_v43 = vld [vmem:[%s3064_s24 + $0x24] sm:$0xf] }
  0x3f   : > { %1617 = vmatpush.bf16.msrb.mxu0 %v2836_v58  ;;  %1646 = vmatpush.bf16.msrb.mxu1 %v2844_v59  ;;  %v2875_v57 = vld [vmem:[%s3597_s1 + $0x250] sm:$0xff]  ;;  %v2866_v58 = vld [vmem:[%s3597_s1 + $0x208] sm:$0xff] }
  0x40   : > { %v2874_v59 = vld [vmem:[%s3597_s1 + $0x248] sm:$0xff] }
  0x41   : > { %1560 = vmatpush.bf16.msrb.mxu2 %v2819_v60  ;;  %v2849_v60 = vld [vmem:[%s3597_s1 + $0x180] sm:$0xff] }
  0x42   : > { %1589 = vmatpush.bf16.msrb.mxu3 %v2827_v61  ;;  %v2857_v61 = vld [vmem:[%s3597_s1 + $0x1c0] sm:$0xff] }
  0x43   : > { %1618 = vmatpush.bf16.msrb.mxu0 %v2835_v62  ;;  %1647 = vmatpush.bf16.msrb.mxu1 %v2843_v63  ;;  %v2865_v62 = vld [vmem:[%s3597_s1 + $0x200] sm:$0xff]  ;;  %v2205_v63 = vld [vmem:[%s3064_s24 + $0xe8] sm:$0xf] }
  0x45   : > { %1561 = vmatpush.bf16.msrb.mxu2 %v2818_v0  ;;  %v2781_v0 = vld [vmem:[%s3064_s24 + $0x11c] sm:$0xf0] }
  0x46   : > { %1590 = vmatpush.bf16.msrb.mxu3 %v2826_v1  ;;  %v2774_v1 = vld [vmem:[%s3064_s24 + $0xec] sm:$0xf]  ;;  %v2206_v7 = vor.u32 %v2781_v0, %v2205_v63 }
  0x47   : > { %1619 = vmatpush.bf16.msrb.mxu0 %v2834_v2  ;;  %1648 = vmatpush.bf16.msrb.mxu1 %v2842_v4  ;;  %v2207_v2 = vld [vmem:[%s3064_s24 + $0x120] sm:$0xf0]  ;;  %v2782_v4 = vld [vmem:[%s3064_s24 + $0x124] sm:$0xf0] }
  0x49   : > { %1562 = vmatpush.bf16.msrb.mxu2 %v2817_v3  ;;  %v2213_v3 = vld [vmem:[%s3064_s24 + $0xf0] sm:$0xf] }
  0x4a   : > { %1591 = vmatpush.bf16.msrb.mxu3 %v2825_v5  ;;  %v2775_v5 = vld [vmem:[%s3064_s24 + $0xf4] sm:$0xf]  ;;  %v2214_v9 = vor.u32 %v2782_v4, %v2213_v3  ;;  %v2882_v4 = vld [vmem:[%s3597_s1 + $0x288] sm:$0xff] }
  0x4b   : > { %1620 = vmatpush.bf16.msrb.mxu0 %v2833_v8  ;;  %1649 = vmatpush.bf16.msrb.mxu1 %v2841_v13  ;;  %v2210_v8 = vor.u32 %v2774_v1, %v2207_v2  ;;  %v2896_v13 = vld [vmem:[%s3597_s1 + $0x2f8] sm:$0xff]  ;;  %v2906_v1 = vld [vmem:[%s3597_s1 + $0x348] sm:$0xff] }
  0x4c   : > { %1563 = vmatmul.bf16.vlgmr.msrb.gmra.mxu2 %v2094_v20  ;;  %v2788_v20 = vld [vmem:[%s3064_s24 + $0x15c] sm:$0xf] }
  0x4d   : > { %1671 = vmatpush.bf16.msra.mxu2 %v2856_v10  ;;  %1592 = vmatmul.bf16.vlgmr.msrb.gmra.mxu3 %v2098_v21  ;;  %v2218_v10 = vor.u32 %v2775_v5, %v2215_v6  ;;  %v2263_v21 = vld [vmem:[%s3064_s24 + $0x190] sm:$0xf0]  ;;  %v2890_v5 = vld [vmem:[%s3597_s1 + $0x2c8] sm:$0xff] }
  0x4e   : > { %1700 = vmatpush.bf16.msra.mxu3 %v2864_v11  ;;  %1621 = vmatmul.bf16.vlgmr.msrb.gmra.mxu0 %v2102_v22  ;;  %v2873_v11 = vld [vmem:[%s3597_s1 + $0x240] sm:$0xff]  ;;  %v2899_v6 = vld [vmem:[%s3597_s1 + $0x310] sm:$0xff] }
  0x4f   : > { %1729 = vmatpush.bf16.msra.mxu0 %v2872_v18  ;;  %1758 = vmatpush.bf16.msra.mxu1 %v2880_v19  ;;  %v2261_v18 = vld [vmem:[%s3064_s24 + $0x158] sm:$0xf]  ;;  %v2795_v19 = vld [vmem:[%s3064_s24 + $0x18c] sm:$0xf0]  ;;  %v2269_v22 = vld [vmem:[%s3064_s24 + $0x160] sm:$0xf] }
  0x50   : > { %1650 = vmatmul.bf16.vlgmr.msrb.gmra.mxu1 %v2106_v23  ;;  %v2796_v23 = vld [vmem:[%s3064_s24 + $0x194] sm:$0xf0] }
  0x51   : > { %1672 = vmatpush.bf16.msra.mxu2 %v2855_v24  ;;  %v2789_v24 = vld [vmem:[%s3064_s24 + $0x164] sm:$0xf] }
  0x52   : > { %1701 = vmatpush.bf16.msra.mxu3 %v2863_v25  ;;  %v2271_v25 = vld [vmem:[%s3064_s24 + $0x198] sm:$0xf0] }
  0x53   : > { %1730 = vmatpush.bf16.msra.mxu0 %v2871_v26  ;;  %1759 = vmatpush.bf16.msra.mxu1 %v2879_v27  ;;  %v2262_v26 = vor.u32 %v2795_v19, %v2261_v18  ;;  %v2266_v27 = vor.u32 %v2788_v20, %v2263_v21  ;;  %v2905_v20 = vld [vmem:[%s3597_s1 + $0x340] sm:$0xff] }
  0x55   : > { %1673 = vmatpush.bf16.msra.mxu2 %v2854_v28  ;;  %v2270_v28 = vor.u32 %v2796_v23, %v2269_v22  ;;  %v2897_v23 = vld [vmem:[%s3597_s1 + $0x300] sm:$0xff] }
  0x56   : > { %1702 = vmatpush.bf16.msra.mxu3 %v2862_v29  ;;  %v2274_v29 = vor.u32 %v2789_v24, %v2271_v25 }
  0x57   : > { %1731 = vmatpush.bf16.msra.mxu0 %v2870_v30  ;;  %1760 = vmatpush.bf16.msra.mxu1 %v2878_v31  ;;  %v2886_v30 = vld [vmem:[%s3597_s1 + $0x2a8] sm:$0xff] }
  0x58   : > { %v2894_v31 = vld [vmem:[%s3597_s1 + $0x2e8] sm:$0xff] }
  0x59   : > { %1674 = vmatpush.bf16.msra.mxu2 %v2853_v32  ;;  %v2903_v32 = vld [vmem:[%s3597_s1 + $0x330] sm:$0xff] }
  0x5a   : > { %1703 = vmatpush.bf16.msra.mxu3 %v2861_v33  ;;  %v2885_v33 = vld [vmem:[%s3597_s1 + $0x2a0] sm:$0xff] }
  0x5b   : > { %1732 = vmatpush.bf16.msra.mxu0 %v2869_v35  ;;  %1761 = vmatpush.bf16.msra.mxu1 %v2877_v36  ;;  %v2902_v35 = vld [vmem:[%s3597_s1 + $0x328] sm:$0xff]  ;;  %v2907_v36 = vld [vmem:[%s3597_s1 + $0x350] sm:$0xff] }
  0x5c   : > { %1568 = vmatmul.bf16.gmra.mxu2 %v2150_v48 }
  0x5d   : > { %1675 = vmatpush.bf16.msra.mxu2 %v2852_v44  ;;  %1597 = vmatmul.bf16.gmra.mxu3 %v2154_v49  ;;  %v2119_v44 = vld [vmem:[%s3064_s24 + $0x58] sm:$0xf0] }
  0x5e   : > { %1704 = vmatpush.bf16.msra.mxu3 %v2860_v45  ;;  %1626 = vmatmul.bf16.gmra.mxu0 %v2158_v50  ;;  %v2110_v45 = vor.u32 %v2755_v38, %v2109_v37  ;;  %v2122_v48 = vor.u32 %v2749_v43, %v2119_v44  ;;  %v2884_v49 = vld [vmem:[%s3597_s1 + $0x298] sm:$0xff]  ;;  %v2285_v37 = vld [vmem:[%s3064_s24 + $0x170] sm:$0xf]  ;;  %v2798_v38 = vld [vmem:[%s3064_s24 + $0x1a4] sm:$0xf0] }
  0x5f   : > { %1733 = vmatpush.bf16.msra.mxu0 %v2868_v46  ;;  %1762 = vmatpush.bf16.msra.mxu1 %v2876_v47  ;;  %v2114_v46 = vor.u32 %v2748_v39, %v2111_v40  ;;  %v2118_v47 = vor.u32 %v2756_v42, %v2117_v41  ;;  %v2892_v50 = vld [vmem:[%s3597_s1 + $0x2d8] sm:$0xff]  ;;  %v2791_v39 = vld [vmem:[%s3064_s24 + $0x174] sm:$0xf]  ;;  %v2287_v40 = vld [vmem:[%s3064_s24 + $0x1a8] sm:$0xf0] }
  0x60   : > { %1655 = vmatmul.bf16.gmra.mxu1 %v2162_v51  ;;  %v2901_v51 = vld [vmem:[%s3597_s1 + $0x320] sm:$0xff] }
  0x61   : > { %1676 = vmatpush.bf16.msra.mxu2 %v2851_v52  ;;  %v2883_v52 = vld [vmem:[%s3597_s1 + $0x290] sm:$0xff] }
  0x62   : > { %1705 = vmatpush.bf16.msra.mxu3 %v2859_v53  ;;  %v2891_v53 = vld [vmem:[%s3597_s1 + $0x2d0] sm:$0xff] }
  0x63   : > { %1734 = vmatpush.bf16.msra.mxu0 %v2867_v54  ;;  %1763 = vmatpush.bf16.msra.mxu1 %v2875_v57  ;;  %v2900_v54 = vld [vmem:[%s3597_s1 + $0x318] sm:$0xff]  ;;  %v2762_v57 = vld [vmem:[%s3064_s24 + $0x8c] sm:$0xf] }
  0x65   : > { %1677 = vmatpush.bf16.msra.mxu2 %v2850_v55  ;;  %v2165_v55 = vld [vmem:[%s3064_s24 + $0x88] sm:$0xf] }
  0x66   : > { %1706 = vmatpush.bf16.msra.mxu3 %v2858_v56  ;;  %v2769_v56 = vld [vmem:[%s3064_s24 + $0xbc] sm:$0xf0] }
  0x67   : > { %1735 = vmatpush.bf16.msra.mxu0 %v2866_v58  ;;  %1764 = vmatpush.bf16.msra.mxu1 %v2874_v59  ;;  %v2167_v58 = vld [vmem:[%s3064_s24 + $0xc0] sm:$0xf0]  ;;  %v2173_v59 = vld [vmem:[%s3064_s24 + $0x90] sm:$0xf]  ;;  %v2166_v63 = vor.u32 %v2769_v56, %v2165_v55 }
  0x68   : > { %v2170_v0 = vor.u32 %v2762_v57, %v2167_v58  ;;  %v2125_v57 = vld [vmem:[%s3064_s24 + $0x28] sm:$0xf]  ;;  %v2757_v58 = vld [vmem:[%s3064_s24 + $0x5c] sm:$0xf0] }
  0x69   : > { %1678 = vmatpush.bf16.msra.mxu2 %v2849_v60  ;;  %v2770_v60 = vld [vmem:[%s3064_s24 + $0xc4] sm:$0xf0] }
  0x6a   : > { %1707 = vmatpush.bf16.msra.mxu3 %v2857_v61  ;;  %v2763_v61 = vld [vmem:[%s3064_s24 + $0x94] sm:$0xf]  ;;  %v2174_v2 = vor.u32 %v2770_v60, %v2173_v59  ;;  %v2750_v59 = vld [vmem:[%s3064_s24 + $0x2c] sm:$0xf]  ;;  %v2127_v60 = vld [vmem:[%s3064_s24 + $0x60] sm:$0xf0] }
  0x6b   : > { %1736 = vmatpush.bf16.msra.mxu0 %v2865_v62  ;;  %1765 = vmatpush.bf16.msra.mxu1 %v2873_v11  ;;  %v2175_v62 = vld [vmem:[%s3064_s24 + $0xc8] sm:$0xf0]  ;;  %v2783_v11 = vld [vmem:[%s3064_s24 + $0x12c] sm:$0xf0] }
  0x6c   : > { %1573 = vmatmul.bf16.gmra.mxu2 %v2206_v7  ;;  %v2178_v3 = vor.u32 %v2763_v61, %v2175_v62  ;;  %v2881_v7 = vld [vmem:[%s3597_s1 + $0x280] sm:$0xff]  ;;  %v2133_v61 = vld [vmem:[%s3064_s24 + $0x30] sm:$0xf]  ;;  %v2758_v62 = vld [vmem:[%s3064_s24 + $0x64] sm:$0xf0] }
  0x6d   : > { %1602 = vmatmul.bf16.gmra.mxu3 %v2210_v8  ;;  %1787 = vmatpush.bf16.msrb.mxu2 %v2888_v12  ;;  %v2889_v8 = vld [vmem:[%s3597_s1 + $0x2c0] sm:$0xff]  ;;  %v2776_v12 = vld [vmem:[%s3064_s24 + $0xfc] sm:$0xf] }
  0x6e   : > { %1631 = vmatmul.bf16.gmra.mxu0 %v2214_v9  ;;  %1816 = vmatpush.bf16.msrb.mxu3 %v2896_v13  ;;  %v2898_v9 = vld [vmem:[%s3597_s1 + $0x308] sm:$0xff]  ;;  %v2223_v13 = vld [vmem:[%s3064_s24 + $0x130] sm:$0xf0] }
  0x6f   : > { %1845 = vmatpush.bf16.msrb.mxu0 %v2904_v15  ;;  %1878 = vmatpush.bf16.msrb.mxu1 %v2908_v17  ;;  %v2784_v15 = vld [vmem:[%s3064_s24 + $0x134] sm:$0xf0]  ;;  %v2231_v17 = vld [vmem:[%s3064_s24 + $0x138] sm:$0xf0]  ;;  %v2226_v19 = vor.u32 %v2776_v12, %v2223_v13 }
  0x70   : > { %1660 = vmatmul.bf16.gmra.mxu1 %v2218_v10  ;;  %v2221_v10 = vld [vmem:[%s3064_s24 + $0xf8] sm:$0xf] }
  0x71   : > { %1788 = vmatpush.bf16.msrb.mxu2 %v2887_v14  ;;  %v2229_v14 = vld [vmem:[%s3064_s24 + $0x100] sm:$0xf]  ;;  %v2222_v18 = vor.u32 %v2783_v11, %v2221_v10 }
  0x72   : > { %1817 = vmatpush.bf16.msrb.mxu3 %v2895_v16  ;;  %v2777_v16 = vld [vmem:[%s3064_s24 + $0x104] sm:$0xf]  ;;  %v2230_v21 = vor.u32 %v2784_v15, %v2229_v14 }
  0x73   : > { %1846 = vmatpush.bf16.msrb.mxu0 %v2903_v32  ;;  %1879 = vmatpush.bf16.msrb.mxu1 %v2907_v36  ;;  %v2234_v22 = vor.u32 %v2777_v16, %v2231_v17  ;;  %v2279_v36 = vld [vmem:[%s3064_s24 + $0x1a0] sm:$0xf0]  ;;  %v2181_v17 = vld [vmem:[%s3064_s24 + $0x98] sm:$0xf] }
  0x75   : > { %1789 = vmatpush.bf16.msrb.mxu2 %v2886_v30 }
  0x76   : > { %1818 = vmatpush.bf16.msrb.mxu3 %v2894_v31 }
  0x77   : > { %1847 = vmatpush.bf16.msrb.mxu0 %v2902_v35  ;;  %1880 = vmatpush.bf16.msrb.mxu1 %v2906_v1  ;;  %v2790_v35 = vld [vmem:[%s3064_s24 + $0x16c] sm:$0xf] }
  0x79   : > { %1790 = vmatpush.bf16.msrb.mxu2 %v2885_v33  ;;  %v2277_v33 = vld [vmem:[%s3064_s24 + $0x168] sm:$0xf] }
  0x7a   : > { %1819 = vmatpush.bf16.msrb.mxu3 %v2893_v34  ;;  %v2797_v34 = vld [vmem:[%s3064_s24 + $0x19c] sm:$0xf0] }
  0x7b   : > { %1848 = vmatpush.bf16.msrb.mxu0 %v2901_v51  ;;  %1881 = vmatpush.bf16.msrb.mxu1 %v2905_v20  ;;  %v2278_v44 = vor.u32 %v2797_v34, %v2277_v33  ;;  %v2183_v20 = vld [vmem:[%s3064_s24 + $0xd0] sm:$0xf0] }
  0x7c   : > { %1578 = vmatmul.bf16.gmra.mxu2 %v2262_v26 }
  0x7d   : > { %1607 = vmatmul.bf16.gmra.mxu3 %v2266_v27  ;;  %1791 = vmatpush.bf16.msrb.mxu2 %v2884_v49 }
  0x7e   : > { %1636 = vmatmul.bf16.gmra.mxu0 %v2270_v28  ;;  %1820 = vmatpush.bf16.msrb.mxu3 %v2892_v50 }
  0x7f   : > { %1849 = vmatpush.bf16.msrb.mxu0 %v2900_v54 }
  0x80   : > { %1665 = vmatmul.bf16.gmra.mxu1 %v2274_v29 }
  0x81   : > { %1792 = vmatpush.bf16.msrb.mxu2 %v2883_v52 }
  0x82   : > { %1821 = vmatpush.bf16.msrb.mxu3 %v2891_v53 }
  0x83   : > { %1850 = vmatpush.bf16.msrb.mxu0 %v2899_v6  ;;  %v2134_v6 = vor.u32 %v2758_v62, %v2133_v61 }
  0x85   : > { %1793 = vmatpush.bf16.msrb.mxu2 %v2882_v4  ;;  %v2126_v4 = vor.u32 %v2757_v58, %v2125_v57  ;;  %v2247_v57 = vld [vmem:[%s3064_s24 + $0x148] sm:$0xf0] }
  0x86   : > { %1822 = vmatpush.bf16.msrb.mxu3 %v2890_v5  ;;  %v2130_v5 = vor.u32 %v2750_v59, %v2127_v60 }
  0x87   : > { %1851 = vmatpush.bf16.msrb.mxu0 %v2898_v9 }
  0x89   : > { %1794 = vmatpush.bf16.msrb.mxu2 %v2881_v7 }
  0x8a   : > { %1823 = vmatpush.bf16.msrb.mxu3 %v2889_v8 }
  0x8b   : > { %1852 = vmatpush.bf16.msrb.mxu0 %v2897_v23  ;;  %v2765_v23 = vld [vmem:[%s3064_s24 + $0xa4] sm:$0xf] }
  0x8c   : > { %1679 = vmatmul.bf16.vlgmr.msra.gmra.mxu2 %v2110_v45  ;;  %v2282_v45 = vor.u32 %v2790_v35, %v2279_v36 }
  0x8d   : > { %1708 = vmatmul.bf16.vlgmr.msra.gmra.mxu3 %v2114_v46  ;;  %v2286_v46 = vor.u32 %v2798_v38, %v2285_v37 }
  0x8e   : > { %1737 = vmatmul.bf16.vlgmr.msra.gmra.mxu0 %v2118_v47  ;;  %v2290_v47 = vor.u32 %v2791_v39, %v2287_v40 }
  0x90   : > { %1766 = vmatmul.bf16.vlgmr.msra.gmra.mxu1 %v2122_v48 }
  0x9c   : > { %1684 = vmatmul.bf16.gmra.mxu2 %v2166_v63  ;;  %v2751_v63 = vld [vmem:[%s3064_s24 + $0x34] sm:$0xf] }
  0x9d   : > { %1713 = vmatmul.bf16.gmra.mxu3 %v2170_v0  ;;  %v2135_v0 = vld [vmem:[%s3064_s24 + $0x68] sm:$0xf0] }
  0x9e   : > { %1742 = vmatmul.bf16.gmra.mxu0 %v2174_v2  ;;  %v2138_v7 = vor.u32 %v2751_v63, %v2135_v0 }
  0xa0   : > { %1771 = vmatmul.bf16.gmra.mxu1 %v2178_v3 }
  0xa9   : > { %v1506_v24 = vpop.f32.mrf.mxu0 }
  0xab   : > { %v1535_v25 = vpop.f32.mrf.mxu1 }
  0xac   : > { %v3420_v26 = vadd.f32 %v1535_v25, %v1506_v24  ;;  %1689 = vmatmul.bf16.gmra.mxu2 %v2222_v18  ;;  %v2771_v18 = vld [vmem:[%s3064_s24 + $0xcc] sm:$0xf0]  ;;  %v2191_v24 = vld [vmem:[%s3064_s24 + $0xd8] sm:$0xf0] }
  0xad   : > { %1718 = vmatmul.bf16.gmra.mxu3 %v2226_v19  ;;  %v2764_v19 = vld [vmem:[%s3064_s24 + $0x9c] sm:$0xf]  ;;  %v2194_v34 = vor.u32 %v2765_v23, %v2191_v24 }
  0xae   : > { %1747 = vmatmul.bf16.gmra.mxu0 %v2230_v21  ;;  %v2189_v21 = vld [vmem:[%s3064_s24 + $0xa0] sm:$0xf] }
  0xaf   : > { %v1516_v27 = vpop.f32.mrf.mxu2 }
  0xb0   : > { %1776 = vmatmul.bf16.gmra.mxu1 %v2234_v22  ;;  %v1545_v28 = vpop.f32.mrf.mxu3  ;;  %v2772_v22 = vld [vmem:[%s3064_s24 + $0xd4] sm:$0xf0] }
  0xb1   : > { %v3422_v29 = vadd.f32 %v1545_v28, %v1516_v27  ;;  %v1508_v30 = vpop.f32.mrf.mxu0  ;;  %v2190_v33 = vor.u32 %v2772_v22, %v2189_v21 }
  0xb3   : > { %v1537_v31 = vpop.f32.mrf.mxu1 }
  0xb4   : > { %v3424_v32 = vadd.f32 %v1537_v31, %v1508_v30  ;;  %v2182_v31 = vor.u32 %v2771_v18, %v2181_v17  ;;  %v2301_v17 = vld [vmem:[%s3064_s24 + $0x180] sm:$0xf]  ;;  %v2800_v18 = vld [vmem:[%s3064_s24 + $0x1b4] sm:$0xf0] }
  0xb7   : > { %v1518_v41 = vpop.f32.mrf.mxu2 }
  0xb8   : > { %v1547_v42 = vpop.f32.mrf.mxu3 }
  0xb9   : > { %v3434_v43 = vadd.f32 %v1547_v42, %v1518_v41  ;;  %v1511_v48 = vpop.f32.mrf.mxu0 }
  0xbb   : > { %v1540_v49 = vpop.f32.mrf.mxu1 }
  0xbc   : > { %v3436_v50 = vadd.f32 %v1540_v49, %v1511_v48  ;;  %1694 = vmatmul.bf16.gmra.mxu2 %v2278_v44  ;;  %v2785_v48 = vld [vmem:[%s3064_s24 + $0x13c] sm:$0xf0]  ;;  %v2778_v49 = vld [vmem:[%s3064_s24 + $0x10c] sm:$0xf] }
  0xbd   : > { %1723 = vmatmul.bf16.gmra.mxu3 %v2282_v45 }
  0xbe   : > { %1752 = vmatmul.bf16.gmra.mxu0 %v2286_v46 }
  0xbf   : > { %v1521_v51 = vpop.f32.mrf.mxu2 }
  0xc0   : > { %1781 = vmatmul.bf16.gmra.mxu1 %v2290_v47  ;;  %v1550_v52 = vpop.f32.mrf.mxu3  ;;  %v2237_v47 = vld [vmem:[%s3064_s24 + $0x108] sm:$0xf] }
  0xc1   : > { %v3438_v53 = vadd.f32 %v1550_v52, %v1521_v51  ;;  %v1513_v54 = vpop.f32.mrf.mxu0  ;;  %v2239_v51 = vld [vmem:[%s3064_s24 + $0x140] sm:$0xf0]  ;;  %v2245_v52 = vld [vmem:[%s3064_s24 + $0x110] sm:$0xf]  ;;  %v2238_v62 = vor.u32 %v2785_v48, %v2237_v47 }
  0xc3   : > { %v1542_v55 = vpop.f32.mrf.mxu1 }
  0xc4   : > { %v3440_v56 = vadd.f32 %v1542_v55, %v1513_v54  ;;  %v2786_v54 = vld [vmem:[%s3064_s24 + $0x144] sm:$0xf0]  ;;  %v2779_v55 = vld [vmem:[%s3064_s24 + $0x114] sm:$0xf] }
  0xc5   : > { %v2246_v63 = vor.u32 %v2786_v54, %v2245_v52  ;;  %v2250_v0 = vor.u32 %v2779_v55, %v2247_v57 }
  0xc7   : > { %v1523_v1 = vpop.f32.mrf.mxu2 }
  0xc8   : > { %v1552_v2 = vpop.f32.mrf.mxu3 }
  0xc9   : > { %v3450_v3 = vadd.f32 %v1552_v2, %v1523_v1 }
  0xcb   : > { %v1622_v8 = vpop.f32.mrf.mxu0 }
  0xcc   : > { %1795 = vmatmul.bf16.vlgmr.msrb.gmra.mxu2 %v2126_v4 }
  0xcd   : > { %v1651_v9 = vpop.f32.mrf.mxu1  ;;  %1824 = vmatmul.bf16.vlgmr.msrb.gmra.mxu3 %v2130_v5 }
  0xce   : > { %1853 = vmatmul.bf16.vlgmr.msrb.gmra.mxu0 %v2134_v6 }
  0xcf   : > { %v1564_v10 = vpop.f32.mrf.mxu2 }
  0xd0   : > { %2739 = vmatmul.msk.bf16.vlgmr.msrb.gmra.mxu1 %vm1484_vm0, %v2138_v7  ;;  %v1593_v11 = vpop.f32.mrf.mxu3  ;;  %v1565_v12 = vadd.f32 %v1564_v10, %v3420_v26  ;;  %v2186_v26 = vor.u32 %v2764_v19, %v2183_v20  ;;  %v2793_v19 = vld [vmem:[%s3064_s24 + $0x184] sm:$0xf]  ;;  %v2303_v20 = vld [vmem:[%s3064_s24 + $0x1b8] sm:$0xf0] }
  0xd2   : > { %v1594_v13 = vadd.f32 %v1593_v11, %v1565_v12 }
  0xd3   : > { %v1624_v14 = vpop.f32.mrf.mxu0 }
  0xd4   : > { %v1623_v16 = vadd.f32 %v1622_v8, %v1594_v13  ;;  %v2293_v13 = vld [vmem:[%s3064_s24 + $0x178] sm:$0xf] }
  0xd5   : > { %v1653_v15 = vpop.f32.mrf.mxu1 }
  0xd6   : > { %v3462_v25 = vadd.f32 %v1651_v9, %v1623_v16  ;;  %v2295_v16 = vld [vmem:[%s3064_s24 + $0x1b0] sm:$0xf0] }
  0xd7   : > { %v1566_v27 = vpop.f32.mrf.mxu2 }
  0xd8   : > { %v1595_v28 = vpop.f32.mrf.mxu3  ;;  %v1567_v30 = vadd.f32 %v1566_v27, %v3424_v32 }
  0xda   : > { %v1596_v35 = vadd.f32 %v1595_v28, %v1567_v30  ;;  %v2302_v28 = vor.u32 %v2800_v18, %v2301_v17  ;;  %v2306_v30 = vor.u32 %v2793_v19, %v2303_v20 }
  0xdb   : > { %v1627_v36 = vpop.f32.mrf.mxu0 }
  0xdc   : > { %v1625_v38 = vadd.f32 %v1624_v14, %v1596_v35  ;;  %1800 = vmatmul.bf16.gmra.mxu2 %v2182_v31  ;;  %v2799_v14 = vld [vmem:[%s3064_s24 + $0x1ac] sm:$0xf0] }
  0xdd   : > { %v1656_v37 = vpop.f32.mrf.mxu1  ;;  %1829 = vmatmul.bf16.gmra.mxu3 %v2186_v26  ;;  %v2294_v27 = vor.u32 %v2799_v14, %v2293_v13 }
  0xde   : > { %1858 = vmatmul.bf16.gmra.mxu0 %v2190_v33  ;;  %v3466_v32 = vadd.f32 %v1653_v15, %v1625_v38  ;;  %v2792_v15 = vld [vmem:[%s3064_s24 + $0x17c] sm:$0xf] }
  0xdf   : > { %v1569_v39 = vpop.f32.mrf.mxu2 }
  0xe0   : > { %2740 = vmatmul.msk.bf16.gmra.mxu1 %vm1484_vm0, %v2194_v34  ;;  %v1598_v40 = vpop.f32.mrf.mxu3  ;;  %v1570_v41 = vadd.f32 %v1569_v39, %v3436_v50  ;;  %v2242_v50 = vor.u32 %v2778_v49, %v2239_v51 }
  0xe2   : > { %v1599_v42 = vadd.f32 %v1598_v40, %v1570_v41 }
  0xe3   : > { %v1629_v44 = vpop.f32.mrf.mxu0 }
  0xe4   : > { %v1628_v46 = vadd.f32 %v1627_v36, %v1599_v42 }
  0xe5   : > { %v1658_v45 = vpop.f32.mrf.mxu1 }
  0xe6   : > { %v3477_v58 = vadd.f32 %v1656_v37, %v1628_v46 }
  0xe7   : > { %v1571_v59 = vpop.f32.mrf.mxu2 }
  0xe8   : > { %v1600_v60 = vpop.f32.mrf.mxu3  ;;  %v1572_v61 = vadd.f32 %v1571_v59, %v3440_v56 }
  0xea   : > { %v1601_v1 = vadd.f32 %v1600_v60, %v1572_v61 }
  0xeb   : > { %v1632_v2 = vpop.f32.mrf.mxu0 }
  0xec   : > { %v1630_v5 = vadd.f32 %v1629_v44, %v1601_v1  ;;  %1805 = vmatmul.bf16.gmra.mxu2 %v2238_v62 }
  0xed   : > { %v1661_v4 = vpop.f32.mrf.mxu1  ;;  %1834 = vmatmul.bf16.gmra.mxu3 %v2242_v50 }
  0xee   : > { %1863 = vmatmul.bf16.gmra.mxu0 %v2246_v63  ;;  %v3481_v56 = vadd.f32 %v1658_v45, %v1630_v5 }
  0xef   : > { %v1574_v6 = vpop.f32.mrf.mxu2 }
  0xf0   : > { %2741 = vmatmul.msk.bf16.gmra.mxu1 %vm1484_vm0, %v2250_v0  ;;  %v1603_v7 = vpop.f32.mrf.mxu3  ;;  %v1575_v8 = vadd.f32 %v1574_v6, %v3422_v29  ;;  %v2298_v29 = vor.u32 %v2792_v15, %v2295_v16 }
  0xf2   : > { %v1604_v9 = vadd.f32 %v1603_v7, %v1575_v8 }
  0xf3   : > { %v1634_v10 = vpop.f32.mrf.mxu0 }
  0xf4   : > { %v1633_v12 = vadd.f32 %v1632_v2, %v1604_v9 }
  0xf5   : > { %v1663_v11 = vpop.f32.mrf.mxu1 }
  0xf6   : > { %v3492_v21 = vadd.f32 %v1661_v4, %v1633_v12 }
  0xf7   : > { %v1576_v22 = vpop.f32.mrf.mxu2 }
  0xf8   : > { %v1605_v23 = vpop.f32.mrf.mxu3  ;;  %v1577_v24 = vadd.f32 %v1576_v22, %v3434_v43 }
  0xfa   : > { %v1606_v31 = vadd.f32 %v1605_v23, %v1577_v24 }
  0xfb   : > { %v1637_v26 = vpop.f32.mrf.mxu0 }
  0xfc   : > { %v1635_v34 = vadd.f32 %v1634_v10, %v1606_v31  ;;  %1810 = vmatmul.bf16.gmra.mxu2 %v2294_v27 }
  0xfd   : > { %v1666_v33 = vpop.f32.mrf.mxu1  ;;  %1839 = vmatmul.bf16.gmra.mxu3 %v2298_v29 }
  0xfe   : > { %1868 = vmatmul.bf16.gmra.mxu0 %v2302_v28  ;;  %v3496_v35 = vadd.f32 %v1663_v11, %v1635_v34 }
  0xff   : > { %v1579_v36 = vpop.f32.mrf.mxu2 }
 0x100   : > { %2742 = vmatmul.msk.bf16.gmra.mxu1 %vm1484_vm0, %v2306_v30  ;;  %v1608_v37 = vpop.f32.mrf.mxu3  ;;  %v1580_v38 = vadd.f32 %v1579_v36, %v3438_v53 }
 0x102   : > { %v1609_v43 = vadd.f32 %v1608_v37, %v1580_v38 }
 0x103   : > { %v1639_v39 = vpop.f32.mrf.mxu0 }
 0x104   : > { %v1638_v41 = vadd.f32 %v1637_v26, %v1609_v43 }
 0x105   : > { %v1668_v40 = vpop.f32.mrf.mxu1 }
 0x106   : > { %v3499_v42 = vadd.f32 %v1666_v33, %v1638_v41 }
 0x107   : > { %v1581_v44 = vpop.f32.mrf.mxu2 }
 0x108   : > { %v1610_v45 = vpop.f32.mrf.mxu3  ;;  %v1582_v46 = vadd.f32 %v1581_v44, %v3450_v3 }
 0x10a   : > { %v1611_v47 = vadd.f32 %v1610_v45, %v1582_v46 }
 0x10b   : > { %v1738_v48 = vpop.f32.mrf.mxu0 }
 0x10c   : > { %v1640_v51 = vadd.f32 %v1639_v39, %v1611_v47  ;;  %v3542_v39 = vld [vmem:[%s3598_s2] ss:$0 sm:$0xff] }
 0x10d   : > { %v1767_v49 = vpop.f32.mrf.mxu1 }
 0x10e   : > { %v3502_v52 = vadd.f32 %v1668_v40, %v1640_v51 }
 0x10f   : > { %v1680_v54 = vpop.f32.mrf.mxu2 }
 0x110   : > { %v1709_v55 = vpop.f32.mrf.mxu3  ;;  %v1681_v16 = vadd.f32 %v1680_v54, %v3462_v25 }
 0x112   : > { %v1710_v19 = vadd.f32 %v1709_v55, %v1681_v16 }
 0x113   : > { %v1740_v57 = vpop.f32.mrf.mxu0 }
 0x114   : > { %v1739_v23 = vadd.f32 %v1738_v48, %v1710_v19 }
 0x115   : > { %v1769_v53 = vpop.f32.mrf.mxu1 }
 0x116   : > { %v1768_v30 = vadd.f32 %v1767_v49, %v1739_v23 }
 0x117   : > { %v1682_v59 = vpop.f32.mrf.mxu2 }
 0x118   : > { %v1711_v60 = vpop.f32.mrf.mxu3  ;;  %v1683_v24 = vadd.f32 %v1682_v59, %v3466_v32 }
 0x11a   : > { %v1712_v28 = vadd.f32 %v1711_v60, %v1683_v24 }
 0x11b   : > { %v1743_v61 = vpop.f32.mrf.mxu0 }
 0x11c   : > { %v1741_v33 = vadd.f32 %v1740_v57, %v1712_v28 }
 0x11d   : > { %v1772_v62 = vpop.f32.mrf.mxu1 }
 0x11e   : > { %v1770_v41 = vadd.f32 %v1769_v53, %v1741_v33 }
 0x11f   : > { %v1685_v50 = vpop.f32.mrf.mxu2 }
 0x120   : > { %v1714_v63 = vpop.f32.mrf.mxu3  ;;  %v1686_v34 = vadd.f32 %v1685_v50, %v3477_v58 }
 0x122   : > { %v1715_v32 = vadd.f32 %v1714_v63, %v1686_v34 }
 0x123   : > { %v1745_v0 = vpop.f32.mrf.mxu0 }
 0x124   : > { %v1744_v58 = vadd.f32 %v1743_v61, %v1715_v32 }
 0x125   : > { %v3504_v1 = vpop.f32.mrf.mxu1 }
 0x126   : > { %v1773_v60 = vadd.f32 %v1772_v62, %v1744_v58 }
 0x127   : > { %v1687_v3 = vpop.f32.mrf.mxu2 }
 0x128   : > { %v1716_v2 = vpop.f32.mrf.mxu3  ;;  %v1688_v48 = vadd.f32 %v1687_v3, %v3481_v56 }
 0x12a   : > { %v1717_v53 = vadd.f32 %v1716_v2, %v1688_v48 }
 0x12b   : > { %v3506_v4 = vpop.f32.mrf.mxu0 }
 0x12c   : > { %v1746_v23 = vadd.f32 %v1745_v0, %v1717_v53 }
 0x12d   : > { %v3508_v5 = vpop.f32.mrf.mxu1 }
 0x12e   : > { %v1775_v62 = vadd.f32 %v3504_v1, %v1746_v23 }
 0x12f   : > { %v1690_v6 = vpop.f32.mrf.mxu2 }
 0x130   : > { %v3510_v7 = vpop.f32.mrf.mxu3  ;;  %v1691_v61 = vadd.f32 %v1690_v6, %v3492_v21 }
 0x132   : > { %v1720_v28 = vadd.f32 %v3510_v7, %v1691_v61 }
 0x133   : > { %v3512_v8 = vpop.f32.mrf.mxu0 }
 0x134   : > { %v1749_v0 = vadd.f32 %v3506_v4, %v1720_v28 }
 0x135   : > { %v3514_v9 = vpop.f32.mrf.mxu1 }
 0x137   : > { %v3516_v10 = vpop.f32.mrf.mxu2 }
 0x138   : > { %v3518_v11 = vpop.f32.mrf.mxu3  ;;  %v1693_v21 = vadd.f32 %v3516_v10, %v3496_v35 }
 0x13a   : > { %v1722_v7 = vadd.f32 %v3518_v11, %v1693_v21 }
 0x13b   : > { %v3520_v12 = vpop.f32.mrf.mxu0 }
 0x13d   : > { %v3522_v13 = vpop.f32.mrf.mxu1 }
 0x13f   : > { %v3524_v14 = vpop.f32.mrf.mxu2 }
 0x140   : > { %v3526_v15 = vpop.f32.mrf.mxu3  ;;  %v1696_v35 = vadd.f32 %v3524_v14, %v3499_v42 }
 0x142   : > { %v1725_v11 = vadd.f32 %v3526_v15, %v1696_v35 }
 0x143   : > { %v3529_v17 = vpop.f32.mrf.mxu0 }
 0x145   : > { %v3531_v18 = vpop.f32.mrf.mxu1 }
 0x147   : > { %v3533_v20 = vpop.f32.mrf.mxu2 }
 0x148   : > { %v3535_v22 = vpop.f32.mrf.mxu3  ;;  %v1698_v42 = vadd.f32 %v3533_v20, %v3502_v52 }
 0x14b   : > { %v1854_v27 = vpop.f32.mrf.mxu0 }
 0x14d   : > { %v1883_v29 = vpop.f32.mrf.mxu1 }
 0x14f   : > { %v1796_v31 = vpop.f32.mrf.mxu2 }
 0x150   : > { %v1825_v26 = vpop.f32.mrf.mxu3  ;;  %v1797_v25 = vadd.f32 %v1796_v31, %v1768_v30 }
 0x152   : > { %v1826_v36 = vadd.f32 %v1825_v26, %v1797_v25 }
 0x153   : > { %v1856_v37 = vpop.f32.mrf.mxu0 }
 0x154   : > { %v1855_v43 = vadd.f32 %v1854_v27, %v1826_v36 }
 0x155   : > { %v1885_v38 = vpop.f32.mrf.mxu1 }
 0x156   : > { %v1884_v40 = vadd.f32 %v1883_v29, %v1855_v43 }
 0x157   : > { %v1798_v44 = vpop.f32.mrf.mxu2 }
 0x158   : > { %v1827_v45 = vpop.f32.mrf.mxu3  ;;  %v1934_v46 = vadd.f32 %v3542_v39, %v1884_v40  ;;  %v1799_v47 = vadd.f32 %v1798_v44, %v1770_v41  ;;  %v1751_v41 = vadd.f32 %v3512_v8, %v1722_v7 }
 0x15a   : > { %v1942_v49 = vmax.f32 %v1934_v46, 0.0  ;;  %v1828_v51 = vadd.f32 %v1827_v45, %v1799_v47 }
 0x15b   : > { %v1859_v54 = vpop.f32.mrf.mxu0 }
 0x15c   : > { %1950 = vst [vmem:[%s3549_s18] sm:$0xff] %v1942_v49  ;;  %v1857_v57 = vadd.f32 %v1856_v37, %v1828_v51 }
 0x15d   : > { %v1888_v55 = vpop.f32.mrf.mxu1 }
 0x15e   : > { %v1886_v59 = vadd.f32 %v1885_v38, %v1857_v57  ;;  %v1778_v38 = vadd.f32 %v3508_v5, %v1749_v0  ;;  %v1780_v5 = vadd.f32 %v3514_v9, %v1751_v41  ;;  %v1727_v57 = vadd.f32 %v3535_v22, %v1698_v42 }
 0x15f   : > { %v1801_v50 = vpop.f32.mrf.mxu2 }
 0x160   : > { %v1830_v63 = vpop.f32.mrf.mxu3  ;;  %v1935_v16 = vadd.f32 %v3542_v39, %v1886_v59  ;;  %v1802_v19 = vadd.f32 %v1801_v50, %v1773_v60 }
 0x162   : > { %v1943_v24 = vmax.f32 %v1935_v16, 0.0  ;;  %v1831_v56 = vadd.f32 %v1830_v63, %v1802_v19 }
 0x163   : > { %v1861_v3 = vpop.f32.mrf.mxu0 }
 0x164   : > { %1951 = vst [vmem:[%s3549_s18 + $0x8] sm:$0xff] %v1943_v24  ;;  %v1860_v27 = vadd.f32 %v1859_v54, %v1831_v56  ;;  %v1754_v54 = vadd.f32 %v3520_v12, %v1725_v11  ;;  %v1756_v12 = vadd.f32 %v3529_v17, %v1727_v57 }
 0x165   : > { %v1890_v29 = vpop.f32.mrf.mxu1 }
 0x166   : > { %v1889_v2 = vadd.f32 %v1888_v55, %v1860_v27  ;;  %v1783_v9 = vadd.f32 %v3522_v13, %v1754_v54  ;;  %v1785_v22 = vadd.f32 %v3531_v18, %v1756_v12 }
 0x167   : > { %v1803_v30 = vpop.f32.mrf.mxu2 }
 0x168   : > { %v1832_v31 = vpop.f32.mrf.mxu3  ;;  %v1936_v26 = vadd.f32 %v3542_v39, %v1889_v2  ;;  %v1804_v25 = vadd.f32 %v1803_v30, %v1775_v62 }
 0x16a   : > { %v1944_v6 = vmax.f32 %v1936_v26, 0.0  ;;  %v1833_v33 = vadd.f32 %v1832_v31, %v1804_v25 }
 0x16b   : > { %v1864_v36 = vpop.f32.mrf.mxu0 }
 0x16c   : > { %1952 = vst [vmem:[%s3549_s18 + $0x10] sm:$0xff] %v1944_v6  ;;  %v1862_v34 = vadd.f32 %v1861_v3, %v1833_v33 }
 0x16d   : > { %v1893_v1 = vpop.f32.mrf.mxu1 }
 0x16e   : > { %v1891_v37 = vadd.f32 %v1890_v29, %v1862_v34 }
 0x16f   : > { %v1806_v43 = vpop.f32.mrf.mxu2 }
 0x170   : > { %v1835_v32 = vpop.f32.mrf.mxu3  ;;  %v1937_v40 = vadd.f32 %v3542_v39, %v1891_v37  ;;  %v1807_v4 = vadd.f32 %v1806_v43, %v1778_v38 }
 0x172   : > { %v1945_v10 = vmax.f32 %v1937_v40, 0.0  ;;  %v1836_v44 = vadd.f32 %v1835_v32, %v1807_v4 }
 0x173   : > { %v1866_v47 = vpop.f32.mrf.mxu0 }
 0x174   : > { %1953 = vst [vmem:[%s3549_s18 + $0x18] sm:$0xff] %v1945_v10  ;;  %v1865_v45 = vadd.f32 %v1864_v36, %v1836_v44 }
 0x175   : > { %v1895_v8 = vpop.f32.mrf.mxu1 }
 0x176   : > { %v1894_v46 = vadd.f32 %v1893_v1, %v1865_v45 }
 0x177   : > { %v1808_v58 = vpop.f32.mrf.mxu2 }
 0x178   : > { %v1837_v48 = vpop.f32.mrf.mxu3  ;;  %v1938_v49 = vadd.f32 %v3542_v39, %v1894_v46  ;;  %v1809_v51 = vadd.f32 %v1808_v58, %v1780_v5 }
 0x17a   : > { %v1946_v14 = vmax.f32 %v1938_v49, 0.0  ;;  %v1838_v55 = vadd.f32 %v1837_v48, %v1809_v51 }
 0x17b   : > { %v1869_v16 = vpop.f32.mrf.mxu0 }
 0x17c   : > { %1954 = vst [vmem:[%s3549_s18 + $0x20] sm:$0xff] %v1946_v14  ;;  %v1867_v15 = vadd.f32 %v1866_v47, %v1838_v55 }
 0x17d   : > { %v1898_v19 = vpop.f32.mrf.mxu1 }
 0x17e   : > { %v1896_v53 = vadd.f32 %v1895_v8, %v1867_v15 }
 0x17f   : > { %v1811_v59 = vpop.f32.mrf.mxu2 }
 0x180   : > { %v1840_v60 = vpop.f32.mrf.mxu3  ;;  %v1939_v50 = vadd.f32 %v3542_v39, %v1896_v53  ;;  %v1812_v63 = vadd.f32 %v1811_v59, %v1783_v9 }
 0x182   : > { %v1947_v52 = vmax.f32 %v1939_v50, 0.0  ;;  %v1841_v20 = vadd.f32 %v1840_v60, %v1812_v63 }
 0x183   : > { %v1871_v28 = vpop.f32.mrf.mxu0 }
 0x184   : > { %1955 = vst [vmem:[%s3549_s18 + $0x28] sm:$0xff] %v1947_v52  ;;  %v1870_v23 = vadd.f32 %v1869_v16, %v1841_v20 }
 0x185   : > { %v1900_v17 = vpop.f32.mrf.mxu1 }
 0x186   : > { %v1899_v61 = vadd.f32 %v1898_v19, %v1870_v23 }
 0x187   : > { %v1813_v24 = vpop.f32.mrf.mxu2 }
 0x188   : > { %v1940_v13 = vadd.f32 %v3542_v39, %v1899_v61  ;;  %v1814_v56 = vadd.f32 %v1813_v24, %v1785_v22  ;;  %v1842_v3 = vpop.f32.mrf.mxu3 }
 0x18a   : > { %v1948_v27 = vmax.f32 %v1940_v13, 0.0  ;;  %v1843_v29 = vadd.f32 %v1842_v3, %v1814_v56 }
 0x18c   : > { %1956 = vst [vmem:[%s3549_s18 + $0x30] sm:$0xff] %v1948_v27  ;;  %v1872_v2 = vadd.f32 %v1871_v28, %v1843_v29 }
 0x18e   : > { %v1901_v62 = vadd.f32 %v1900_v17, %v1872_v2 }
 0x190   : > { %v1941_v30 = vadd.f32 %v3542_v39, %v1901_v62 }
 0x192   : > { %v1949_v31 = vmax.f32 %v1941_v30, 0.0 }
 0x194   : > { %1957 = vst [vmem:[%s3549_s18 + $0x38] sm:$0xff] %v1949_v31 }
 0x195 PF: > { %s13_s14 = sadd.s32 1, %s2973_s14   ;;  %s3600_s12 = smov %s2969_s13 }
 0x196   : > { %p10_p5 = scmp.ge.s32.totalorder %s13_s14, 4   ;;  %s3601_s13 = smov %s3603_s15 }
 0x198   :  { %12 = sbr.rel (!%p10_p5) target bundleno = 2 (0x2), region = 76 }

// kernel: device_forward.42
= control target key start
LH: loop header
LB: loop body
LE: loop exit
PB: predicated region body
PF: predicated region fallthrough
CT: control target
= control target key end

     0   :  { %s4108_s12 = smov 0   ;;  %s4110_s13 = smov 0   ;;  %s4917_s0 = inlined_call_operand.vmem [shape: bf16[512,1152], index: 0, kind: input, shape index: {}]   ;;  %s4918_s1 = inlined_call_operand.vmem [shape: bf16[1152,128], index: 1, kind: input, shape index: {}]   ;;  %s4919_s2 = inlined_call_operand.vmem [shape: f32[1,128], index: 2, kind: input, shape index: {}]   ;;  %s4920_s3 = inlined_call_operand.vmem [shape: f32[512,128], index: 3, kind: output, shape index: {}]  }
   0x1   :  { %s4112_s14 = smov 0  }
   0x2 LB: > { %s32_s15 = sadd.s32 1, %s4082_s13  ;;  %p2927_p0 = scmp.ge.s32.totalorder %s4086_s14, 1  ;;  %s4086_s14 = sphi %s4112_s14, %s13_s14   ;;  %s4082_s13 = sphi %s4110_s13, %s4922_s13   ;;  %s4078_s12 = sphi %s4108_s12, %s4921_s12  }
   0x3   : > { %p34_p1 = scmp.ge.s32.totalorder %s32_s15, 2  ;;  %p191_p2 = scmp.lt.s32.totalorder %s4086_s14, 3 }
   0x5   : > { %s4924_s15 = smov (%p34_p1, %s32_s15), 0  ;;  %p192_p3 = pnand %p2927_p0, %p191_p2 }
   0x6   : > { %s2928_s22 = sshll.u32 (!%p192_p3), %s4078_s12, 5 }
   0x7   : > { %195 = sbr.rel (%p192_p3) target bundleno = 755 (0x2f3), region = 32  ;;  %p236_p4 = scmp.lt.s32.totalorder (!%p192_p3), %s2928_s22, 63 }
   0xc   : > { %v3949_v0 = vld [vmem:[%s4918_s1 + $0x38] sm:$0xff]  ;;  %v3948_v1 = vld [vmem:[%s4918_s1 + $0x30] sm:$0xff]  ;;  %v3947_v2 = vld [vmem:[%s4918_s1 + $0x28] sm:$0xff]  ;;  %s4926_s22 = smov (!%p236_p4, %s2928_s22), 63 }
   0xd   : > { %4014 = vmatpush.bf16.msra.mxu1 %v3949_v0  ;;  %4015 = vmatpush.bf16.msra.mxu2 %v3949_v0  ;;  %v3946_v3 = vld [vmem:[%s4918_s1 + $0x20] sm:$0xff]  ;;  %v3945_v4 = vld [vmem:[%s4918_s1 + $0x18] sm:$0xff]  ;;  %v3944_v5 = vld [vmem:[%s4918_s1 + $0x10] sm:$0xff]  ;;  %s4038_s29 = smul.u32 36, %s4926_s22  ;;  %s2931_s8 = sshll.u32 %s4926_s22, 3 }
   0xe   : > { %4016 = vmatpush.bf16.msra.mxu3 %v3949_v0  ;;  %1807 = vmatpush.bf16.msra.mxu0 %v3949_v0  ;;  %v3943_v6 = vld [vmem:[%s4918_s1 + $0x8] sm:$0xff]  ;;  %v3942_v7 = vld [vmem:[%s4918_s1] sm:$0xff]  ;;  %v3965_v16 = vld [vmem:[%s4918_s1 + $0xb8] sm:$0xff]  ;;  %s4765_s11 = scalar_lea.vmem %s4920_s3, %s2931_s8 }
   0xf   : > { %s4156_s7 = scalar_lea.vmem %s4917_s0, %s4038_s29  ;;  %v3973_v17 = vld [vmem:[%s4918_s1 + $0xf8] sm:$0xff]  ;;  %v3964_v24 = vld [vmem:[%s4918_s1 + $0xb0] sm:$0xff]  ;;  %v3963_v28 = vld [vmem:[%s4918_s1 + $0xa8] sm:$0xff] }
  0x10   : > { %v3078_v8 = vld [vmem:[%s4156_s7 + $0x120] sm:$0xf]  ;;  %v3838_v9 = vld [vmem:[%s4156_s7 + $0x140] sm:$0xf0]  ;;  %v3957_v22 = vld [vmem:[%s4918_s1 + $0x78] sm:$0xff] }
  0x11   : > { %4017 = vmatpush.bf16.msra.mxu1 %v3948_v1  ;;  %4018 = vmatpush.bf16.msra.mxu2 %v3948_v1  ;;  %v3222_v10 = vld [vmem:[%s4156_s7 + $0x240] sm:$0xf]  ;;  %v3874_v11 = vld [vmem:[%s4156_s7 + $0x260] sm:$0xf0]  ;;  %v3079_v18 = vor.u32 %v3838_v9, %v3078_v8  ;;  %v3981_v23 = vld [vmem:[%s4918_s1 + $0x138] sm:$0xff] }
  0x12   : > { %4019 = vmatpush.bf16.msra.mxu3 %v3948_v1  ;;  %1808 = vmatpush.bf16.msra.mxu0 %v3948_v1  ;;  %v3366_v12 = vld [vmem:[%s4156_s7 + $0x360] sm:$0xf]  ;;  %v3910_v13 = vld [vmem:[%s4156_s7 + $0x380] sm:$0xf0]  ;;  %v3223_v19 = vor.u32 %v3874_v11, %v3222_v10  ;;  %v3972_v25 = vld [vmem:[%s4918_s1 + $0xf0] sm:$0xff] }
  0x13   : > { %v2934_v14 = vld [vmem:[%s4156_s7] sm:$0xf]  ;;  %v3802_v15 = vld [vmem:[%s4156_s7 + $0x20] sm:$0xf0]  ;;  %v3367_v20 = vor.u32 %v3910_v13, %v3366_v12  ;;  %v3956_v26 = vld [vmem:[%s4918_s1 + $0x70] sm:$0xff] }
  0x14   : > { %v2935_v21 = vor.u32 %v3802_v15, %v2934_v14  ;;  %v3980_v27 = vld [vmem:[%s4918_s1 + $0x130] sm:$0xff]  ;;  %v3971_v29 = vld [vmem:[%s4918_s1 + $0xe8] sm:$0xff]  ;;  %v3962_v33 = vld [vmem:[%s4918_s1 + $0xa0] sm:$0xff] }
  0x15   : > { %4020 = vmatpush.bf16.msra.mxu1 %v3947_v2  ;;  %4021 = vmatpush.bf16.msra.mxu2 %v3947_v2  ;;  %v3955_v30 = vld [vmem:[%s4918_s1 + $0x68] sm:$0xff]  ;;  %v3970_v34 = vld [vmem:[%s4918_s1 + $0xe0] sm:$0xff]  ;;  %v3961_v44 = vld [vmem:[%s4918_s1 + $0x98] sm:$0xff] }
  0x16   : > { %4022 = vmatpush.bf16.msra.mxu3 %v3947_v2  ;;  %1809 = vmatpush.bf16.msra.mxu0 %v3947_v2  ;;  %v3979_v31 = vld [vmem:[%s4918_s1 + $0x128] sm:$0xff]  ;;  %v3954_v42 = vld [vmem:[%s4918_s1 + $0x60] sm:$0xff]  ;;  %v3969_v45 = vld [vmem:[%s4918_s1 + $0xd8] sm:$0xff] }
  0x17   : > { %v3114_v32 = vld [vmem:[%s4156_s7 + $0x168] sm:$0xf]  ;;  %v3847_v35 = vld [vmem:[%s4156_s7 + $0x188] sm:$0xf0]  ;;  %v3978_v43 = vld [vmem:[%s4918_s1 + $0x120] sm:$0xff] }
  0x18   : > { %v3258_v36 = vld [vmem:[%s4156_s7 + $0x288] sm:$0xf]  ;;  %v3883_v37 = vld [vmem:[%s4156_s7 + $0x2a8] sm:$0xf0]  ;;  %v3115_v46 = vor.u32 %v3847_v35, %v3114_v32  ;;  %v3953_v50 = vld [vmem:[%s4918_s1 + $0x58] sm:$0xff] }
  0x19   : > { %4023 = vmatpush.bf16.msra.mxu1 %v3946_v3  ;;  %4024 = vmatpush.bf16.msra.mxu2 %v3946_v3  ;;  %v3402_v38 = vld [vmem:[%s4156_s7 + $0x3a8] sm:$0xf]  ;;  %v3919_v39 = vld [vmem:[%s4156_s7 + $0x3c8] sm:$0xf0]  ;;  %v3259_v47 = vor.u32 %v3883_v37, %v3258_v36  ;;  %v3977_v51 = vld [vmem:[%s4918_s1 + $0x118] sm:$0xff] }
  0x1a   : > { %4025 = vmatpush.bf16.msra.mxu3 %v3946_v3  ;;  %1810 = vmatpush.bf16.msra.mxu0 %v3946_v3  ;;  %v2970_v40 = vld [vmem:[%s4156_s7 + $0x48] sm:$0xf]  ;;  %v3811_v41 = vld [vmem:[%s4156_s7 + $0x68] sm:$0xf0]  ;;  %v3403_v48 = vor.u32 %v3919_v39, %v3402_v38  ;;  %v3960_v52 = vld [vmem:[%s4918_s1 + $0x90] sm:$0xff] }
  0x1b   : > { %v2971_v49 = vor.u32 %v3811_v41, %v2970_v40  ;;  %v3968_v53 = vld [vmem:[%s4918_s1 + $0xd0] sm:$0xff]  ;;  %v3959_v56 = vld [vmem:[%s4918_s1 + $0x88] sm:$0xff]  ;;  %v3958_v61 = vld [vmem:[%s4918_s1 + $0x80] sm:$0xff] }
  0x1c   : > { %v3952_v54 = vld [vmem:[%s4918_s1 + $0x50] sm:$0xff]  ;;  %v3967_v57 = vld [vmem:[%s4918_s1 + $0xc8] sm:$0xff]  ;;  %v3966_v62 = vld [vmem:[%s4918_s1 + $0xc0] sm:$0xff] }
  0x1d   : > { %4026 = vmatpush.bf16.msra.mxu1 %v3945_v4  ;;  %4027 = vmatpush.bf16.msra.mxu2 %v3945_v4  ;;  %v3976_v55 = vld [vmem:[%s4918_s1 + $0x110] sm:$0xff]  ;;  %v3951_v58 = vld [vmem:[%s4918_s1 + $0x48] sm:$0xff]  ;;  %v3997_v12 = vld [vmem:[%s4918_s1 + $0x1b8] sm:$0xff] }
  0x1e   : > { %4028 = vmatpush.bf16.msra.mxu3 %v3945_v4  ;;  %1811 = vmatpush.bf16.msra.mxu0 %v3945_v4  ;;  %v3975_v59 = vld [vmem:[%s4918_s1 + $0x108] sm:$0xff]  ;;  %v3150_v60 = vld [vmem:[%s4156_s7 + $0x1b0] sm:$0xf]  ;;  %v3856_v63 = vld [vmem:[%s4156_s7 + $0x1d0] sm:$0xf0] }
  0x1f   : > { %v3294_v0 = vld [vmem:[%s4156_s7 + $0x2d0] sm:$0xf]  ;;  %v3892_v1 = vld [vmem:[%s4156_s7 + $0x2f0] sm:$0xf0]  ;;  %v3151_v8 = vor.u32 %v3856_v63, %v3150_v60  ;;  %v4005_v13 = vld [vmem:[%s4918_s1 + $0x1f8] sm:$0xff] }
  0x20   : > { %v3438_v2 = vld [vmem:[%s4156_s7 + $0x3f0] sm:$0xf]  ;;  %v3928_v3 = vld [vmem:[%s4156_s7 + $0x410] sm:$0xf0]  ;;  %v3295_v9 = vor.u32 %v3892_v1, %v3294_v0  ;;  %v3989_v14 = vld [vmem:[%s4918_s1 + $0x178] sm:$0xff] }
  0x21   : > { %4029 = vmatpush.bf16.msra.mxu1 %v3944_v5  ;;  %4030 = vmatpush.bf16.msra.mxu2 %v3944_v5  ;;  %v3006_v4 = vld [vmem:[%s4156_s7 + $0x90] sm:$0xf]  ;;  %v3439_v10 = vor.u32 %v3928_v3, %v3438_v2  ;;  %v4013_v15 = vld [vmem:[%s4918_s1 + $0x238] sm:$0xff]  ;;  %v3799_v32 = vld [vmem:[%s4156_s7 + $0xc] sm:$0xf] }
  0x22   : > { %4031 = vmatpush.bf16.msra.mxu3 %v3944_v5  ;;  %1812 = vmatpush.bf16.msra.mxu0 %v3944_v5  ;;  %v3820_v5 = vld [vmem:[%s4156_s7 + $0xb0] sm:$0xf0]  ;;  %v3817_v60 = vld [vmem:[%s4156_s7 + $0x9c] sm:$0xf]  ;;  %v3822_v63 = vld [vmem:[%s4156_s7 + $0xc0] sm:$0xf0] }
  0x23   : > { %v3007_v11 = vor.u32 %v3820_v5, %v3006_v4  ;;  %v3804_v35 = vld [vmem:[%s4156_s7 + $0x30] sm:$0xf0]  ;;  %v3995_v4 = vld [vmem:[%s4918_s1 + $0x1a8] sm:$0xff] }
  0x24   : > { %v3996_v40 = vld [vmem:[%s4918_s1 + $0x1b0] sm:$0xff]  ;;  %v4003_v5 = vld [vmem:[%s4918_s1 + $0x1e8] sm:$0xff] }
  0x25   : > { %4032 = vmatpush.bf16.msra.mxu1 %v3943_v6  ;;  %4033 = vmatpush.bf16.msra.mxu2 %v3943_v6  ;;  %v4004_v41 = vld [vmem:[%s4918_s1 + $0x1f0] sm:$0xff] }
  0x26   : > { %4034 = vmatpush.bf16.msra.mxu3 %v3943_v6  ;;  %1813 = vmatpush.bf16.msra.mxu0 %v3943_v6  ;;  %v3950_v6 = vld [vmem:[%s4918_s1 + $0x40] sm:$0xff] }
  0x29   : > { %4035 = vmatpush.bf16.msra.mxu1 %v3942_v7  ;;  %4036 = vmatpush.bf16.msra.mxu2 %v3942_v7 }
  0x2a   : > { %4037 = vmatpush.bf16.msra.mxu3 %v3942_v7  ;;  %1814 = vmatpush.bf16.msra.mxu0 %v3942_v7  ;;  %v3974_v7 = vld [vmem:[%s4918_s1 + $0x100] sm:$0xff] }
  0x2c   : > { %1835 = vmatmul.bf16.vlgmr.msra.gmra.mxu1 %v3079_v18  ;;  %1855 = vmatmul.bf16.vlgmr.msra.gmra.mxu2 %v3223_v19  ;;  %v3330_v18 = vld [vmem:[%s4156_s7 + $0x318] sm:$0xf]  ;;  %v3901_v19 = vld [vmem:[%s4156_s7 + $0x338] sm:$0xf0] }
  0x2d   : > { %1985 = vmatpush.bf16.msrb.mxu2 %v3965_v16  ;;  %1875 = vmatmul.bf16.vlgmr.msra.gmra.mxu3 %v3367_v20  ;;  %v3186_v16 = vld [vmem:[%s4156_s7 + $0x1f8] sm:$0xf] }
  0x2e   : > { %2074 = vmatpush.bf16.msrb.mxu3 %v3973_v17  ;;  %1815 = vmatmul.bf16.vlgmr.msra.gmra.mxu0 %v2935_v21  ;;  %v3865_v17 = vld [vmem:[%s4156_s7 + $0x218] sm:$0xf0]  ;;  %v3474_v20 = vld [vmem:[%s4156_s7 + $0x438] sm:$0xf] }
  0x2f   : > { %1896 = vmatpush.bf16.msrb.mxu1 %v3957_v22  ;;  %2163 = vmatpush.bf16.msrb.mxu0 %v3981_v23  ;;  %v3937_v21 = vld [vmem:[%s4156_s7 + $0x458] sm:$0xf0]  ;;  %v3042_v22 = vld [vmem:[%s4156_s7 + $0xd8] sm:$0xf] }
  0x30   : > { %v3829_v23 = vld [vmem:[%s4156_s7 + $0xf8] sm:$0xf0] }
  0x31   : > { %1986 = vmatpush.bf16.msrb.mxu2 %v3964_v24  ;;  %v3187_v24 = vor.u32 %v3865_v17, %v3186_v16 }
  0x32   : > { %2075 = vmatpush.bf16.msrb.mxu3 %v3972_v25  ;;  %v3331_v25 = vor.u32 %v3901_v19, %v3330_v18 }
  0x33   : > { %1897 = vmatpush.bf16.msrb.mxu1 %v3956_v26  ;;  %2164 = vmatpush.bf16.msrb.mxu0 %v3980_v27  ;;  %v3475_v26 = vor.u32 %v3937_v21, %v3474_v20  ;;  %v3043_v27 = vor.u32 %v3829_v23, %v3042_v22  ;;  %v3834_v20 = vld [vmem:[%s4156_s7 + $0x124] sm:$0xf]  ;;  %v3080_v21 = vld [vmem:[%s4156_s7 + $0x144] sm:$0xf0]  ;;  %v3839_v23 = vld [vmem:[%s4156_s7 + $0x148] sm:$0xf0] }
  0x34   : > { %v3086_v22 = vld [vmem:[%s4156_s7 + $0x128] sm:$0xf] }
  0x35   : > { %1987 = vmatpush.bf16.msrb.mxu2 %v3963_v28  ;;  %v3798_v28 = vld [vmem:[%s4156_s7 + $0x4] sm:$0xf] }
  0x36   : > { %2076 = vmatpush.bf16.msrb.mxu3 %v3971_v29  ;;  %v2936_v29 = vld [vmem:[%s4156_s7 + $0x24] sm:$0xf0] }
  0x37   : > { %1898 = vmatpush.bf16.msrb.mxu1 %v3955_v30  ;;  %2165 = vmatpush.bf16.msrb.mxu0 %v3979_v31  ;;  %v2942_v30 = vld [vmem:[%s4156_s7 + $0x8] sm:$0xf]  ;;  %v3803_v31 = vld [vmem:[%s4156_s7 + $0x28] sm:$0xf0]  ;;  %v2939_v36 = vor.u32 %v3798_v28, %v2936_v29  ;;  %v3083_v28 = vor.u32 %v3834_v20, %v3080_v21  ;;  %v3087_v29 = vor.u32 %v3839_v23, %v3086_v22  ;;  %v3985_v20 = vld [vmem:[%s4918_s1 + $0x158] sm:$0xff] }
  0x38   : > { %v2943_v37 = vor.u32 %v3803_v31, %v2942_v30  ;;  %v4009_v21 = vld [vmem:[%s4918_s1 + $0x218] sm:$0xff]  ;;  %v3188_v23 = vld [vmem:[%s4156_s7 + $0x21c] sm:$0xf0] }
  0x39   : > { %1988 = vmatpush.bf16.msrb.mxu2 %v3962_v33  ;;  %v2944_v33 = vld [vmem:[%s4156_s7 + $0x2c] sm:$0xf0]  ;;  %v3861_v22 = vld [vmem:[%s4156_s7 + $0x1fc] sm:$0xf] }
  0x3a   : > { %2077 = vmatpush.bf16.msrb.mxu3 %v3970_v34  ;;  %v2950_v34 = vld [vmem:[%s4156_s7 + $0x10] sm:$0xf]  ;;  %v2947_v38 = vor.u32 %v3799_v32, %v2944_v33 }
  0x3b   : > { %1899 = vmatpush.bf16.msrb.mxu1 %v3954_v42  ;;  %2166 = vmatpush.bf16.msrb.mxu0 %v3978_v43  ;;  %v2951_v39 = vor.u32 %v3804_v35, %v2950_v34  ;;  %v3988_v42 = vld [vmem:[%s4918_s1 + $0x170] sm:$0xff]  ;;  %v3994_v34 = vld [vmem:[%s4918_s1 + $0x1a0] sm:$0xff] }
  0x3c   : > { %1840 = vmatmul.bf16.gmra.mxu1 %v3115_v46  ;;  %1860 = vmatmul.bf16.gmra.mxu2 %v3259_v47  ;;  %v4012_v43 = vld [vmem:[%s4918_s1 + $0x230] sm:$0xff]  ;;  %v4002_v35 = vld [vmem:[%s4918_s1 + $0x1e0] sm:$0xff] }
  0x3d   : > { %1989 = vmatpush.bf16.msrb.mxu2 %v3961_v44  ;;  %1880 = vmatmul.bf16.gmra.mxu3 %v3403_v48  ;;  %v3807_v44 = vld [vmem:[%s4156_s7 + $0x4c] sm:$0xf]  ;;  %v2978_v46 = vld [vmem:[%s4156_s7 + $0x50] sm:$0xf]  ;;  %v3812_v47 = vld [vmem:[%s4156_s7 + $0x70] sm:$0xf0] }
  0x3e   : > { %2078 = vmatpush.bf16.msrb.mxu3 %v3969_v45  ;;  %1820 = vmatmul.bf16.gmra.mxu0 %v2971_v49  ;;  %v2972_v45 = vld [vmem:[%s4156_s7 + $0x6c] sm:$0xf0]  ;;  %v3808_v48 = vld [vmem:[%s4156_s7 + $0x54] sm:$0xf]  ;;  %v2980_v49 = vld [vmem:[%s4156_s7 + $0x74] sm:$0xf0] }
  0x3f   : > { %1900 = vmatpush.bf16.msrb.mxu1 %v3953_v50  ;;  %2167 = vmatpush.bf16.msrb.mxu0 %v3977_v51  ;;  %v2986_v50 = vld [vmem:[%s4156_s7 + $0x58] sm:$0xf]  ;;  %v3813_v51 = vld [vmem:[%s4156_s7 + $0x78] sm:$0xf0] }
  0x41   : > { %1990 = vmatpush.bf16.msrb.mxu2 %v3960_v52  ;;  %v2975_v52 = vor.u32 %v3807_v44, %v2972_v45  ;;  %v3122_v44 = vld [vmem:[%s4156_s7 + $0x170] sm:$0xf]  ;;  %v3848_v45 = vld [vmem:[%s4156_s7 + $0x190] sm:$0xf0] }
  0x42   : > { %2079 = vmatpush.bf16.msrb.mxu3 %v3968_v53  ;;  %v2979_v53 = vor.u32 %v3812_v47, %v2978_v46  ;;  %v3844_v46 = vld [vmem:[%s4156_s7 + $0x174] sm:$0xf]  ;;  %v3124_v47 = vld [vmem:[%s4156_s7 + $0x194] sm:$0xf0] }
  0x43   : > { %1901 = vmatpush.bf16.msrb.mxu1 %v3952_v54  ;;  %2168 = vmatpush.bf16.msrb.mxu0 %v3976_v55  ;;  %v2983_v54 = vor.u32 %v3808_v48, %v2980_v49  ;;  %v2987_v55 = vor.u32 %v3813_v51, %v2986_v50  ;;  %v3130_v48 = vld [vmem:[%s4156_s7 + $0x178] sm:$0xf]  ;;  %v3849_v49 = vld [vmem:[%s4156_s7 + $0x198] sm:$0xf0] }
  0x45   : > { %1991 = vmatpush.bf16.msrb.mxu2 %v3959_v56  ;;  %v3816_v56 = vld [vmem:[%s4156_s7 + $0x94] sm:$0xf] }
  0x46   : > { %2080 = vmatpush.bf16.msrb.mxu3 %v3967_v57  ;;  %v3008_v57 = vld [vmem:[%s4156_s7 + $0xb4] sm:$0xf0] }
  0x47   : > { %1902 = vmatpush.bf16.msrb.mxu1 %v3951_v58  ;;  %2169 = vmatpush.bf16.msrb.mxu0 %v3975_v59  ;;  %v3014_v58 = vld [vmem:[%s4156_s7 + $0x98] sm:$0xf]  ;;  %v3821_v59 = vld [vmem:[%s4156_s7 + $0xb8] sm:$0xf0]  ;;  %v3011_v0 = vor.u32 %v3816_v56, %v3008_v57  ;;  %v3131_v56 = vor.u32 %v3849_v49, %v3130_v48  ;;  %v3870_v48 = vld [vmem:[%s4156_s7 + $0x244] sm:$0xf] }
  0x48   : > { %v3015_v1 = vor.u32 %v3821_v59, %v3014_v58  ;;  %v3224_v49 = vld [vmem:[%s4156_s7 + $0x264] sm:$0xf0] }
  0x49   : > { %1992 = vmatpush.bf16.msrb.mxu2 %v3958_v61  ;;  %v3016_v61 = vld [vmem:[%s4156_s7 + $0xbc] sm:$0xf0] }
  0x4a   : > { %2081 = vmatpush.bf16.msrb.mxu3 %v3966_v62  ;;  %v3022_v62 = vld [vmem:[%s4156_s7 + $0xa0] sm:$0xf]  ;;  %v3019_v2 = vor.u32 %v3817_v60, %v3016_v61 }
  0x4b   : > { %1903 = vmatpush.bf16.msrb.mxu1 %v3950_v6  ;;  %2170 = vmatpush.bf16.msrb.mxu0 %v3974_v7  ;;  %v3023_v3 = vor.u32 %v3822_v63, %v3022_v62  ;;  %v3987_v6 = vld [vmem:[%s4918_s1 + $0x168] sm:$0xff]  ;;  %v3852_v62 = vld [vmem:[%s4156_s7 + $0x1b4] sm:$0xf]  ;;  %v3152_v63 = vld [vmem:[%s4156_s7 + $0x1d4] sm:$0xf0] }
  0x4c   : > { %1845 = vmatmul.bf16.gmra.mxu1 %v3151_v8  ;;  %1865 = vmatmul.bf16.gmra.mxu2 %v3295_v9  ;;  %v4011_v7 = vld [vmem:[%s4918_s1 + $0x228] sm:$0xff]  ;;  %v3825_v8 = vld [vmem:[%s4156_s7 + $0xdc] sm:$0xf]  ;;  %v3044_v9 = vld [vmem:[%s4156_s7 + $0xfc] sm:$0xf0] }
  0x4d   : > { %1885 = vmatmul.bf16.gmra.mxu3 %v3439_v10  ;;  %2341 = vmatpush.bf16.msra.mxu2 %v3997_v12  ;;  %v3050_v10 = vld [vmem:[%s4156_s7 + $0xe0] sm:$0xf]  ;;  %v3826_v12 = vld [vmem:[%s4156_s7 + $0xe4] sm:$0xf]  ;;  %v3047_v16 = vor.u32 %v3825_v8, %v3044_v9  ;;  %v3155_v8 = vor.u32 %v3852_v62, %v3152_v63  ;;  %v3238_v62 = vld [vmem:[%s4156_s7 + $0x250] sm:$0xf] }
  0x4e   : > { %1825 = vmatmul.bf16.gmra.mxu0 %v3007_v11  ;;  %2430 = vmatpush.bf16.msra.mxu3 %v4005_v13  ;;  %v3830_v11 = vld [vmem:[%s4156_s7 + $0x100] sm:$0xf0]  ;;  %v3052_v13 = vld [vmem:[%s4156_s7 + $0x104] sm:$0xf0]  ;;  %v3876_v63 = vld [vmem:[%s4156_s7 + $0x270] sm:$0xf0] }
  0x4f   : > { %2252 = vmatpush.bf16.msra.mxu1 %v3989_v14  ;;  %2519 = vmatpush.bf16.msra.mxu0 %v4013_v15  ;;  %v3058_v14 = vld [vmem:[%s4156_s7 + $0xe8] sm:$0xf]  ;;  %v3831_v15 = vld [vmem:[%s4156_s7 + $0x108] sm:$0xf0]  ;;  %v3051_v17 = vor.u32 %v3830_v11, %v3050_v10  ;;  %v3055_v18 = vor.u32 %v3826_v12, %v3052_v13 }
  0x50   : > { %v3059_v19 = vor.u32 %v3831_v15, %v3058_v14  ;;  %v3993_v14 = vld [vmem:[%s4918_s1 + $0x198] sm:$0xff] }
  0x51   : > { %2342 = vmatpush.bf16.msra.mxu2 %v3996_v40  ;;  %v4001_v15 = vld [vmem:[%s4918_s1 + $0x1d8] sm:$0xff] }
  0x52   : > { %2431 = vmatpush.bf16.msra.mxu3 %v4004_v41  ;;  %v4010_v41 = vld [vmem:[%s4918_s1 + $0x220] sm:$0xff] }
  0x53   : > { %2253 = vmatpush.bf16.msra.mxu1 %v3988_v42  ;;  %2520 = vmatpush.bf16.msra.mxu0 %v4012_v43  ;;  %v3843_v42 = vld [vmem:[%s4156_s7 + $0x16c] sm:$0xf]  ;;  %v3116_v43 = vld [vmem:[%s4156_s7 + $0x18c] sm:$0xf0] }
  0x55   : > { %2343 = vmatpush.bf16.msra.mxu2 %v3995_v4  ;;  %v3166_v4 = vld [vmem:[%s4156_s7 + $0x1c0] sm:$0xf] }
  0x56   : > { %2432 = vmatpush.bf16.msra.mxu3 %v4003_v5  ;;  %v3858_v5 = vld [vmem:[%s4156_s7 + $0x1e0] sm:$0xf0] }
  0x57   : > { %2254 = vmatpush.bf16.msra.mxu1 %v3987_v6  ;;  %2521 = vmatpush.bf16.msra.mxu0 %v4011_v7  ;;  %v3167_v12 = vor.u32 %v3858_v5, %v3166_v4 }
  0x59   : > { %2344 = vmatpush.bf16.msra.mxu2 %v3994_v34  ;;  %v3191_v34 = vor.u32 %v3861_v22, %v3188_v23 }
  0x5a   : > { %2433 = vmatpush.bf16.msra.mxu3 %v4002_v35 }
  0x5b   : > { %2522 = vmatpush.bf16.msra.mxu0 %v4010_v41 }
  0x5c   : > { %1850 = vmatmul.bf16.gmra.mxu1 %v3187_v24  ;;  %1870 = vmatmul.bf16.gmra.mxu2 %v3331_v25  ;;  %v3835_v24 = vld [vmem:[%s4156_s7 + $0x12c] sm:$0xf]  ;;  %v3088_v25 = vld [vmem:[%s4156_s7 + $0x14c] sm:$0xf0] }
  0x5d   : > { %1890 = vmatmul.bf16.gmra.mxu3 %v3475_v26  ;;  %v3094_v26 = vld [vmem:[%s4156_s7 + $0x130] sm:$0xf]  ;;  %v3091_v31 = vor.u32 %v3835_v24, %v3088_v25  ;;  %2345 = vmatpush.bf16.msra.mxu2 %v3993_v14  ;;  %v3194_v24 = vld [vmem:[%s4156_s7 + $0x200] sm:$0xf]  ;;  %v3866_v25 = vld [vmem:[%s4156_s7 + $0x220] sm:$0xf0] }
  0x5e   : > { %1830 = vmatmul.bf16.gmra.mxu0 %v3043_v27  ;;  %v3840_v27 = vld [vmem:[%s4156_s7 + $0x150] sm:$0xf0]  ;;  %2434 = vmatpush.bf16.msra.mxu3 %v4001_v15  ;;  %v3195_v35 = vor.u32 %v3866_v25, %v3194_v24 }
  0x5f   : > { %v3095_v32 = vor.u32 %v3840_v27, %v3094_v26  ;;  %2523 = vmatpush.bf16.msra.mxu0 %v4009_v21  ;;  %v3862_v26 = vld [vmem:[%s4156_s7 + $0x204] sm:$0xf]  ;;  %v3196_v27 = vld [vmem:[%s4156_s7 + $0x224] sm:$0xf0]  ;;  %v4000_v14 = vld [vmem:[%s4918_s1 + $0x1d0] sm:$0xff] }
  0x60   : > { %v3199_v41 = vor.u32 %v3862_v26, %v3196_v27  ;;  %v3984_v25 = vld [vmem:[%s4918_s1 + $0x150] sm:$0xff]  ;;  %v3879_v27 = vld [vmem:[%s4156_s7 + $0x28c] sm:$0xf] }
  0x61   : > { %v4008_v26 = vld [vmem:[%s4918_s1 + $0x210] sm:$0xff] }
  0x62   : > { %2435 = vmatpush.bf16.msra.mxu3 %v4000_v14 }
  0x63   : > { %2524 = vmatpush.bf16.msra.mxu0 %v4008_v26  ;;  %v3304_v26 = vld [vmem:[%s4156_s7 + $0x2fc] sm:$0xf0] }
  0x6c   : > { %1904 = vmatmul.bf16.vlgmr.msrb.gmra.mxu1 %v2939_v36  ;;  %1993 = vmatmul.bf16.vlgmr.msrb.gmra.mxu2 %v2943_v37 }
  0x6d   : > { %2082 = vmatmul.bf16.vlgmr.msrb.gmra.mxu3 %v2947_v38  ;;  %v3986_v38 = vld [vmem:[%s4918_s1 + $0x160] sm:$0xff] }
  0x6e   : > { %2171 = vmatmul.bf16.vlgmr.msrb.gmra.mxu0 %v2951_v39  ;;  %2255 = vmatpush.bf16.msra.mxu1 %v3986_v38 }
  0x72   : > { %2256 = vmatpush.bf16.msra.mxu1 %v3985_v20 }
  0x76   : > { %2257 = vmatpush.bf16.msra.mxu1 %v3984_v25  ;;  %v3889_v25 = vld [vmem:[%s4156_s7 + $0x2dc] sm:$0xf] }
  0x7c   : > { %1909 = vmatmul.bf16.gmra.mxu1 %v2975_v52  ;;  %1998 = vmatmul.bf16.gmra.mxu2 %v2979_v53  ;;  %v3119_v52 = vor.u32 %v3843_v42, %v3116_v43  ;;  %v3123_v53 = vor.u32 %v3848_v45, %v3122_v44 }
  0x7d   : > { %2087 = vmatmul.bf16.gmra.mxu3 %v2983_v54 }
  0x7e   : > { %2176 = vmatmul.bf16.gmra.mxu0 %v2987_v55  ;;  %v3127_v55 = vor.u32 %v3844_v46, %v3124_v47 }
  0x8c   : > { %1914 = vmatmul.bf16.gmra.mxu1 %v3011_v0  ;;  %2003 = vmatmul.bf16.gmra.mxu2 %v3015_v1  ;;  %v3158_v0 = vld [vmem:[%s4156_s7 + $0x1b8] sm:$0xf]  ;;  %v3857_v1 = vld [vmem:[%s4156_s7 + $0x1d8] sm:$0xf0] }
  0x8d   : > { %2092 = vmatmul.bf16.gmra.mxu3 %v3019_v2  ;;  %v3853_v2 = vld [vmem:[%s4156_s7 + $0x1bc] sm:$0xf]  ;;  %v3159_v9 = vor.u32 %v3857_v1, %v3158_v0 }
  0x8e   : > { %2181 = vmatmul.bf16.gmra.mxu0 %v3023_v3  ;;  %v3160_v3 = vld [vmem:[%s4156_s7 + $0x1dc] sm:$0xf0] }
  0x8f   : > { %v3163_v11 = vor.u32 %v3853_v2, %v3160_v3  ;;  %v3227_v2 = vor.u32 %v3870_v48, %v3224_v49  ;;  %v3885_v48 = vld [vmem:[%s4156_s7 + $0x2b8] sm:$0xf0] }
  0x9c   : > { %1919 = vmatmul.bf16.gmra.mxu1 %v3047_v16  ;;  %2008 = vmatmul.bf16.gmra.mxu2 %v3051_v17 }
  0x9d   : > { %2097 = vmatmul.bf16.gmra.mxu3 %v3055_v18 }
  0x9e   : > { %2186 = vmatmul.bf16.gmra.mxu0 %v3059_v19 }
  0xa9   : > { %v4365_v30 = vpop.f32.mrf.mxu1 }
  0xab   : > { %v4367_v33 = vpop.f32.mrf.mxu0 }
  0xac   : > { %1924 = vmatmul.bf16.gmra.mxu1 %v3083_v28  ;;  %2013 = vmatmul.bf16.gmra.mxu2 %v3087_v29  ;;  %v3202_v28 = vld [vmem:[%s4156_s7 + $0x208] sm:$0xf]  ;;  %v3867_v29 = vld [vmem:[%s4156_s7 + $0x228] sm:$0xf0] }
  0xad   : > { %2102 = vmatmul.bf16.gmra.mxu3 %v3091_v31  ;;  %v3203_v42 = vor.u32 %v3867_v29, %v3202_v28  ;;  %v3260_v28 = vld [vmem:[%s4156_s7 + $0x2ac] sm:$0xf0] }
  0xae   : > { %2191 = vmatmul.bf16.gmra.mxu0 %v3095_v32 }
  0xaf   : > { %v4375_v36 = vpop.f32.mrf.mxu2 }
  0xb0   : > { %v4377_v37 = vpop.f32.mrf.mxu3 }
  0xb1   : > { %v4382_v39 = vpop.f32.mrf.mxu1 }
  0xb3   : > { %v4384_v40 = vpop.f32.mrf.mxu0 }
  0xb7   : > { %v4397_v50 = vpop.f32.mrf.mxu2 }
  0xb8   : > { %v4399_v51 = vpop.f32.mrf.mxu3 }
  0xb9   : > { %v4401_v54 = vpop.f32.mrf.mxu1 }
  0xbb   : > { %v4403_v57 = vpop.f32.mrf.mxu0 }
  0xbc   : > { %1929 = vmatmul.bf16.gmra.mxu1 %v3119_v52  ;;  %2018 = vmatmul.bf16.gmra.mxu2 %v3123_v53  ;;  %v3230_v52 = vld [vmem:[%s4156_s7 + $0x248] sm:$0xf]  ;;  %v3875_v53 = vld [vmem:[%s4156_s7 + $0x268] sm:$0xf0] }
  0xbd   : > { %2107 = vmatmul.bf16.gmra.mxu3 %v3127_v55  ;;  %v3871_v55 = vld [vmem:[%s4156_s7 + $0x24c] sm:$0xf]  ;;  %v3231_v3 = vor.u32 %v3875_v53, %v3230_v52 }
  0xbe   : > { %2196 = vmatmul.bf16.gmra.mxu0 %v3131_v56  ;;  %v3232_v56 = vld [vmem:[%s4156_s7 + $0x26c] sm:$0xf0] }
  0xbf   : > { %v4405_v58 = vpop.f32.mrf.mxu2  ;;  %v3235_v5 = vor.u32 %v3871_v55, %v3232_v56  ;;  %v3263_v55 = vor.u32 %v3879_v27, %v3260_v28  ;;  %v3310_v27 = vld [vmem:[%s4156_s7 + $0x2e0] sm:$0xf]  ;;  %v3894_v28 = vld [vmem:[%s4156_s7 + $0x300] sm:$0xf0] }
  0xc0   : > { %v4407_v59 = vpop.f32.mrf.mxu3 }
  0xc1   : > { %v4409_v60 = vpop.f32.mrf.mxu1 }
  0xc3   : > { %v4411_v61 = vpop.f32.mrf.mxu0 }
  0xc7   : > { %v4421_v6 = vpop.f32.mrf.mxu2 }
  0xc8   : > { %v4423_v7 = vpop.f32.mrf.mxu3 }
  0xc9   : > { %v4425_v10 = vpop.f32.mrf.mxu1 }
  0xcb   : > { %v4427_v13 = vpop.f32.mrf.mxu0 }
  0xcc   : > { %1934 = vmatmul.bf16.gmra.mxu1 %v3155_v8  ;;  %2023 = vmatmul.bf16.gmra.mxu2 %v3159_v9  ;;  %v3239_v8 = vor.u32 %v3876_v63, %v3238_v62 }
  0xcd   : > { %2112 = vmatmul.bf16.gmra.mxu3 %v3163_v11 }
  0xce   : > { %2201 = vmatmul.bf16.gmra.mxu0 %v3167_v12  ;;  %v3992_v12 = vld [vmem:[%s4918_s1 + $0x190] sm:$0xff] }
  0xcf   : > { %v4435_v16 = vpop.f32.mrf.mxu2  ;;  %2346 = vmatpush.bf16.msra.mxu2 %v3992_v12 }
  0xd0   : > { %v4437_v17 = vpop.f32.mrf.mxu3 }
  0xd1   : > { %v4439_v18 = vpop.f32.mrf.mxu1 }
  0xd3   : > { %v4441_v19 = vpop.f32.mrf.mxu0 }
  0xd7   : > { %v4457_v31 = vpop.f32.mrf.mxu2 }
  0xd8   : > { %v4459_v32 = vpop.f32.mrf.mxu3 }
  0xd9   : > { %v4461_v38 = vpop.f32.mrf.mxu1 }
  0xdb   : > { %v4463_v43 = vpop.f32.mrf.mxu0 }
  0xdc   : > { %1939 = vmatmul.bf16.gmra.mxu1 %v3191_v34  ;;  %2028 = vmatmul.bf16.gmra.mxu2 %v3195_v35  ;;  %v3266_v34 = vld [vmem:[%s4156_s7 + $0x290] sm:$0xf]  ;;  %v3884_v35 = vld [vmem:[%s4156_s7 + $0x2b0] sm:$0xf0] }
  0xdd   : > { %2117 = vmatmul.bf16.gmra.mxu3 %v3199_v41  ;;  %v3880_v41 = vld [vmem:[%s4156_s7 + $0x294] sm:$0xf]  ;;  %v3267_v56 = vor.u32 %v3884_v35, %v3266_v34 }
  0xde   : > { %2206 = vmatmul.bf16.gmra.mxu0 %v3203_v42  ;;  %v3268_v42 = vld [vmem:[%s4156_s7 + $0x2b4] sm:$0xf0] }
  0xdf   : > { %v4465_v44 = vpop.f32.mrf.mxu2  ;;  %v3271_v63 = vor.u32 %v3880_v41, %v3268_v42 }
  0xe0   : > { %v4467_v45 = vpop.f32.mrf.mxu3 }
  0xe1   : > { %v4469_v46 = vpop.f32.mrf.mxu1 }
  0xe3   : > { %v4471_v47 = vpop.f32.mrf.mxu0 }
  0xe7   : > { %v4481_v0 = vpop.f32.mrf.mxu2 }
  0xe8   : > { %v4483_v1 = vpop.f32.mrf.mxu3 }
  0xe9   : > { %v1905_v4 = vpop.f32.mrf.mxu1 }
  0xea   : > { %v1906_v9 = vadd.f32 %v1905_v4, %v4367_v33 }
  0xeb   : > { %v2172_v11 = vpop.f32.mrf.mxu0 }
  0xec   : > { %1944 = vmatmul.bf16.gmra.mxu1 %v3227_v2  ;;  %2033 = vmatmul.bf16.gmra.mxu2 %v3231_v3 }
  0xed   : > { %2122 = vmatmul.bf16.gmra.mxu3 %v3235_v5 }
  0xee   : > { %2211 = vmatmul.bf16.gmra.mxu0 %v3239_v8 }
  0xef   : > { %v1994_v15 = vpop.f32.mrf.mxu2 }
  0xf0   : > { %v1995_v33 = vadd.f32 %v1994_v15, %v1906_v9  ;;  %v2083_v20 = vpop.f32.mrf.mxu3 }
  0xf1   : > { %v1907_v21 = vpop.f32.mrf.mxu1 }
  0xf2   : > { %v2084_v22 = vadd.f32 %v2083_v20, %v1995_v33  ;;  %v1908_v23 = vadd.f32 %v1907_v21, %v4384_v40  ;;  %v3274_v40 = vld [vmem:[%s4156_s7 + $0x298] sm:$0xf]  ;;  %v3888_v20 = vld [vmem:[%s4156_s7 + $0x2d4] sm:$0xf] }
  0xf3   : > { %v2174_v24 = vpop.f32.mrf.mxu0  ;;  %v3275_v2 = vor.u32 %v3885_v48, %v3274_v40  ;;  %v3296_v21 = vld [vmem:[%s4156_s7 + $0x2f4] sm:$0xf0] }
  0xf4   : > { %v4501_v29 = vadd.f32 %v2172_v11, %v2084_v22  ;;  %v3299_v42 = vor.u32 %v3888_v20, %v3296_v21  ;;  %v3338_v20 = vld [vmem:[%s4156_s7 + $0x320] sm:$0xf]  ;;  %v3902_v21 = vld [vmem:[%s4156_s7 + $0x340] sm:$0xf0] }
  0xf7   : > { %v1996_v49 = vpop.f32.mrf.mxu2 }
  0xf8   : > { %v1997_v52 = vadd.f32 %v1996_v49, %v1908_v23  ;;  %v2085_v53 = vpop.f32.mrf.mxu3  ;;  %v3302_v23 = vld [vmem:[%s4156_s7 + $0x2d8] sm:$0xf]  ;;  %v3307_v49 = vor.u32 %v3889_v25, %v3304_v26  ;;  %v3903_v25 = vld [vmem:[%s4156_s7 + $0x348] sm:$0xf0] }
  0xf9   : > { %v1910_v62 = vpop.f32.mrf.mxu1 }
  0xfa   : > { %v2086_v3 = vadd.f32 %v2085_v53, %v1997_v52  ;;  %v1911_v4 = vadd.f32 %v1910_v62, %v4403_v57  ;;  %v3311_v52 = vor.u32 %v3894_v28, %v3310_v27  ;;  %v3991_v62 = vld [vmem:[%s4918_s1 + $0x188] sm:$0xff] }
  0xfb   : > { %v2177_v5 = vpop.f32.mrf.mxu0  ;;  %2347 = vmatpush.bf16.msra.mxu2 %v3991_v62 }
  0xfc   : > { %1949 = vmatmul.bf16.gmra.mxu1 %v3263_v55  ;;  %2038 = vmatmul.bf16.gmra.mxu2 %v3267_v56  ;;  %v4510_v8 = vadd.f32 %v2174_v24, %v2086_v3  ;;  %v3893_v24 = vld [vmem:[%s4156_s7 + $0x2f8] sm:$0xf0] }
  0xfd   : > { %2127 = vmatmul.bf16.gmra.mxu3 %v3271_v63  ;;  %v3303_v40 = vor.u32 %v3893_v24, %v3302_v23  ;;  %v3999_v63 = vld [vmem:[%s4918_s1 + $0x1c8] sm:$0xff]  ;;  %v3898_v23 = vld [vmem:[%s4156_s7 + $0x324] sm:$0xf] }
  0xfe   : > { %2216 = vmatmul.bf16.gmra.mxu0 %v3275_v2  ;;  %2436 = vmatpush.bf16.msra.mxu3 %v3999_v63  ;;  %v3340_v24 = vld [vmem:[%s4156_s7 + $0x344] sm:$0xf0] }
  0xff   : > { %v1999_v9 = vpop.f32.mrf.mxu2 }
 0x100   : > { %v2000_v11 = vadd.f32 %v1999_v9, %v1911_v4  ;;  %v2088_v12 = vpop.f32.mrf.mxu3 }
 0x101   : > { %v1912_v14 = vpop.f32.mrf.mxu1 }
 0x102   : > { %v2089_v15 = vadd.f32 %v2088_v12, %v2000_v11  ;;  %v1913_v57 = vadd.f32 %v1912_v14, %v4411_v61  ;;  %v3983_v12 = vld [vmem:[%s4918_s1 + $0x148] sm:$0xff] }
 0x103   : > { %v2179_v33 = vpop.f32.mrf.mxu0  ;;  %v4007_v14 = vld [vmem:[%s4918_s1 + $0x208] sm:$0xff]  ;;  %2258 = vmatpush.bf16.msra.mxu1 %v3983_v12 }
 0x104   : > { %v4515_v22 = vadd.f32 %v2177_v5, %v2089_v15  ;;  %v3897_v15 = vld [vmem:[%s4156_s7 + $0x31c] sm:$0xf]  ;;  %2525 = vmatpush.bf16.msra.mxu0 %v4007_v14  ;;  %v3907_v12 = vld [vmem:[%s4156_s7 + $0x36c] sm:$0xf]  ;;  %v3376_v14 = vld [vmem:[%s4156_s7 + $0x38c] sm:$0xf0] }
 0x107   : > { %v2001_v34 = vpop.f32.mrf.mxu2 }
 0x108   : > { %v2002_v35 = vadd.f32 %v2001_v34, %v1913_v57  ;;  %v2090_v41 = vpop.f32.mrf.mxu3  ;;  %v3332_v57 = vld [vmem:[%s4156_s7 + $0x33c] sm:$0xf0] }
 0x109   : > { %v1915_v48 = vpop.f32.mrf.mxu1  ;;  %v3335_v34 = vor.u32 %v3897_v15, %v3332_v57  ;;  %v3382_v15 = vld [vmem:[%s4156_s7 + $0x370] sm:$0xf]  ;;  %v3912_v57 = vld [vmem:[%s4156_s7 + $0x390] sm:$0xf0] }
 0x10a   : > { %v2091_v61 = vadd.f32 %v2090_v41, %v2002_v35  ;;  %v1916_v53 = vadd.f32 %v1915_v48, %v4427_v13  ;;  %v3339_v35 = vor.u32 %v3902_v21, %v3338_v20 }
 0x10b   : > { %v2182_v55 = vpop.f32.mrf.mxu0 }
 0x10c   : > { %1954 = vmatmul.bf16.gmra.mxu1 %v3299_v42  ;;  %2043 = vmatmul.bf16.gmra.mxu2 %v3303_v40  ;;  %v4524_v56 = vadd.f32 %v2179_v33, %v2091_v61  ;;  %v3343_v42 = vor.u32 %v3898_v23, %v3340_v24 }
 0x10d   : > { %2132 = vmatmul.bf16.gmra.mxu3 %v3307_v49 }
 0x10e   : > { %2221 = vmatmul.bf16.gmra.mxu0 %v3311_v52 }
 0x10f   : > { %v2004_v2 = vpop.f32.mrf.mxu2 }
 0x110   : > { %v2005_v13 = vadd.f32 %v2004_v2, %v1916_v53  ;;  %v2093_v3 = vpop.f32.mrf.mxu3 }
 0x111   : > { %v1917_v4 = vpop.f32.mrf.mxu1 }
 0x112   : > { %v2094_v5 = vadd.f32 %v2093_v3, %v2005_v13  ;;  %v1918_v9 = vadd.f32 %v1917_v4, %v4441_v19  ;;  %v3346_v19 = vld [vmem:[%s4156_s7 + $0x328] sm:$0xf]  ;;  %v3906_v3 = vld [vmem:[%s4156_s7 + $0x364] sm:$0xf] }
 0x113   : > { %v2184_v11 = vpop.f32.mrf.mxu0  ;;  %v3347_v40 = vor.u32 %v3903_v25, %v3346_v19  ;;  %v3368_v4 = vld [vmem:[%s4156_s7 + $0x384] sm:$0xf0] }
 0x114   : > { %v4541_v33 = vadd.f32 %v2182_v55, %v2094_v5  ;;  %v3371_v24 = vor.u32 %v3906_v3, %v3368_v4  ;;  %v3920_v3 = vld [vmem:[%s4156_s7 + $0x3d0] sm:$0xf0] }
 0x115   : > { %v3916_v4 = vld [vmem:[%s4156_s7 + $0x3b4] sm:$0xf] }
 0x117   : > { %v2006_v26 = vpop.f32.mrf.mxu2 }
 0x118   : > { %v2007_v27 = vadd.f32 %v2006_v26, %v1918_v9  ;;  %v2095_v28 = vpop.f32.mrf.mxu3  ;;  %v3374_v9 = vld [vmem:[%s4156_s7 + $0x368] sm:$0xf]  ;;  %v3379_v26 = vor.u32 %v3907_v12, %v3376_v14  ;;  %v3418_v12 = vld [vmem:[%s4156_s7 + $0x3b8] sm:$0xf]  ;;  %v3921_v14 = vld [vmem:[%s4156_s7 + $0x3d8] sm:$0xf0] }
 0x119   : > { %v1920_v41 = vpop.f32.mrf.mxu1 }
 0x11a   : > { %v2096_v48 = vadd.f32 %v2095_v28, %v2007_v27  ;;  %v1921_v49 = vadd.f32 %v1920_v41, %v4463_v43  ;;  %v3383_v27 = vor.u32 %v3912_v57, %v3382_v15  ;;  %v3998_v41 = vld [vmem:[%s4918_s1 + $0x1c0] sm:$0xff] }
 0x11b   : > { %v2187_v52 = vpop.f32.mrf.mxu0  ;;  %2437 = vmatpush.bf16.msra.mxu3 %v3998_v41 }
 0x11c   : > { %1959 = vmatmul.bf16.gmra.mxu1 %v3335_v34  ;;  %2048 = vmatmul.bf16.gmra.mxu2 %v3339_v35  ;;  %v4550_v61 = vadd.f32 %v2184_v11, %v2096_v48  ;;  %v3911_v11 = vld [vmem:[%s4156_s7 + $0x388] sm:$0xf0]  ;;  %v3990_v35 = vld [vmem:[%s4918_s1 + $0x180] sm:$0xff] }
 0x11d   : > { %2137 = vmatmul.bf16.gmra.mxu3 %v3343_v42  ;;  %v3375_v19 = vor.u32 %v3911_v11, %v3374_v9  ;;  %2348 = vmatpush.bf16.msra.mxu2 %v3990_v35  ;;  %v3412_v11 = vld [vmem:[%s4156_s7 + $0x3d4] sm:$0xf0] }
 0x11e   : > { %2226 = vmatmul.bf16.gmra.mxu0 %v3347_v40 }
 0x11f   : > { %v2009_v53 = vpop.f32.mrf.mxu2 }
 0x120   : > { %v2010_v55 = vadd.f32 %v2009_v53, %v1921_v49  ;;  %v2098_v62 = vpop.f32.mrf.mxu3 }
 0x121   : > { %v1922_v63 = vpop.f32.mrf.mxu1 }
 0x122   : > { %v2099_v2 = vadd.f32 %v2098_v62, %v2010_v55  ;;  %v1923_v43 = vadd.f32 %v1922_v63, %v4471_v47  ;;  %v3982_v62 = vld [vmem:[%s4918_s1 + $0x140] sm:$0xff]  ;;  %v3915_v63 = vld [vmem:[%s4156_s7 + $0x3ac] sm:$0xf] }
 0x123   : > { %v2189_v13 = vpop.f32.mrf.mxu0  ;;  %2259 = vmatpush.bf16.msra.mxu1 %v3982_v62  ;;  %v3446_v62 = vld [vmem:[%s4156_s7 + $0x3f8] sm:$0xf] }
 0x124   : > { %v4555_v5 = vadd.f32 %v2187_v52, %v2099_v2  ;;  %v3404_v2 = vld [vmem:[%s4156_s7 + $0x3cc] sm:$0xf0] }
 0x127   : > { %v2011_v20 = vpop.f32.mrf.mxu2 }
 0x128   : > { %v2012_v21 = vadd.f32 %v2011_v20, %v1923_v43  ;;  %v2100_v23 = vpop.f32.mrf.mxu3 }
 0x129   : > { %v1925_v25 = vpop.f32.mrf.mxu1 }
 0x12a   : > { %v2101_v47 = vadd.f32 %v2100_v23, %v2012_v21  ;;  %v1926_v42 = vadd.f32 %v1925_v25, %v4365_v30  ;;  %v4006_v30 = vld [vmem:[%s4918_s1 + $0x200] sm:$0xff]  ;;  %v3407_v21 = vor.u32 %v3915_v63, %v3404_v2  ;;  %v3419_v25 = vor.u32 %v3921_v14, %v3418_v12 }
 0x12b   : > { %v2192_v28 = vpop.f32.mrf.mxu0  ;;  %2526 = vmatpush.bf16.msra.mxu0 %v4006_v30  ;;  %v3925_v30 = vld [vmem:[%s4156_s7 + $0x3fc] sm:$0xf]  ;;  %v3448_v2 = vld [vmem:[%s4156_s7 + $0x41c] sm:$0xf0] }
 0x12c   : > { %1964 = vmatmul.bf16.gmra.mxu1 %v3371_v24  ;;  %2053 = vmatmul.bf16.gmra.mxu2 %v3375_v19  ;;  %v4563_v34 = vadd.f32 %v2189_v13, %v2101_v47  ;;  %v3410_v13 = vld [vmem:[%s4156_s7 + $0x3b0] sm:$0xf]  ;;  %v3415_v19 = vor.u32 %v3916_v4, %v3412_v11 }
 0x12d   : > { %2142 = vmatmul.bf16.gmra.mxu3 %v3379_v26  ;;  %v3411_v23 = vor.u32 %v3920_v3, %v3410_v13  ;;  %v3454_v13 = vld [vmem:[%s4156_s7 + $0x400] sm:$0xf]  ;;  %v3930_v3 = vld [vmem:[%s4156_s7 + $0x420] sm:$0xf0] }
 0x12e   : > { %2231 = vmatmul.bf16.gmra.mxu0 %v3383_v27 }
 0x12f   : > { %v2014_v40 = vpop.f32.mrf.mxu2 }
 0x130   : > { %v2015_v48 = vadd.f32 %v2014_v40, %v1926_v42  ;;  %v2103_v49 = vpop.f32.mrf.mxu3 }
 0x131   : > { %v1927_v52 = vpop.f32.mrf.mxu1 }
 0x132   : > { %v2104_v53 = vadd.f32 %v2103_v49, %v2015_v48  ;;  %v1928_v9 = vadd.f32 %v1927_v52, %v4382_v39  ;;  %v3924_v49 = vld [vmem:[%s4156_s7 + $0x3f4] sm:$0xf]  ;;  %v3440_v52 = vld [vmem:[%s4156_s7 + $0x414] sm:$0xf0] }
 0x133   : > { %v2194_v55 = vpop.f32.mrf.mxu0  ;;  %v3443_v11 = vor.u32 %v3924_v49, %v3440_v52  ;;  %v3484_v52 = vld [vmem:[%s4156_s7 + $0x464] sm:$0xf0] }
 0x134   : > { %v4580_v43 = vadd.f32 %v2192_v28, %v2104_v53 }
 0x137   : > { %v2016_v15 = vpop.f32.mrf.mxu2 }
 0x138   : > { %v2017_v57 = vadd.f32 %v2016_v15, %v1928_v9  ;;  %v2105_v20 = vpop.f32.mrf.mxu3  ;;  %v3451_v15 = vor.u32 %v3925_v30, %v3448_v2 }
 0x139   : > { %v1930_v24 = vpop.f32.mrf.mxu1 }
 0x13a   : > { %v2106_v26 = vadd.f32 %v2105_v20, %v2017_v57  ;;  %v1931_v47 = vadd.f32 %v1930_v24, %v4401_v54  ;;  %v3455_v57 = vor.u32 %v3930_v3, %v3454_v13 }
 0x13b   : > { %v2197_v27 = vpop.f32.mrf.mxu0 }
 0x13c   : > { %1969 = vmatmul.bf16.gmra.mxu1 %v3407_v21  ;;  %2058 = vmatmul.bf16.gmra.mxu2 %v3411_v23  ;;  %v4589_v39 = vadd.f32 %v2194_v55, %v2106_v26  ;;  %v3929_v55 = vld [vmem:[%s4156_s7 + $0x418] sm:$0xf0] }
 0x13d   : > { %2147 = vmatmul.bf16.gmra.mxu3 %v3415_v19  ;;  %v3447_v12 = vor.u32 %v3929_v55, %v3446_v62  ;;  %v3490_v62 = vld [vmem:[%s4156_s7 + $0x448] sm:$0xf]  ;;  %v3939_v55 = vld [vmem:[%s4156_s7 + $0x468] sm:$0xf0] }
 0x13e   : > { %2236 = vmatmul.bf16.gmra.mxu0 %v3419_v25 }
 0x13f   : > { %v2019_v28 = vpop.f32.mrf.mxu2 }
 0x140   : > { %v2020_v35 = vadd.f32 %v2019_v28, %v1931_v47  ;;  %v2108_v41 = vpop.f32.mrf.mxu3  ;;  %v3933_v28 = vld [vmem:[%s4156_s7 + $0x43c] sm:$0xf] }
 0x141   : > { %v1932_v42 = vpop.f32.mrf.mxu1 }
 0x142   : > { %v2109_v40 = vadd.f32 %v2108_v41, %v2020_v35  ;;  %v1933_v63 = vadd.f32 %v1932_v42, %v4409_v60  ;;  %v3476_v35 = vld [vmem:[%s4156_s7 + $0x45c] sm:$0xf0] }
 0x143   : > { %v2199_v48 = vpop.f32.mrf.mxu0  ;;  %v3482_v42 = vld [vmem:[%s4156_s7 + $0x440] sm:$0xf]  ;;  %v3479_v2 = vor.u32 %v3933_v28, %v3476_v35 }
 0x144   : > { %v4594_v53 = vadd.f32 %v2197_v27, %v2109_v40  ;;  %v3938_v40 = vld [vmem:[%s4156_s7 + $0x460] sm:$0xf0]  ;;  %v2960_v35 = vld [vmem:[%s4156_s7 + $0x3c] sm:$0xf0] }
 0x145   : > { %v3483_v13 = vor.u32 %v3938_v40, %v3482_v42  ;;  %v2966_v42 = vld [vmem:[%s4156_s7 + $0x20] sm:$0xf]  ;;  %v3806_v40 = vld [vmem:[%s4156_s7 + $0x40] sm:$0xf0] }
 0x147   : > { %v2021_v54 = vpop.f32.mrf.mxu2 }
 0x148   : > { %v2022_v4 = vadd.f32 %v2021_v54, %v1933_v63  ;;  %v2110_v9 = vpop.f32.mrf.mxu3 }
 0x149   : > { %v1935_v14 = vpop.f32.mrf.mxu1 }
 0x14a   : > { %v2111_v20 = vadd.f32 %v2110_v9, %v2022_v4  ;;  %v1936_v23 = vadd.f32 %v1935_v14, %v4425_v10  ;;  %v3491_v4 = vor.u32 %v3939_v55, %v3490_v62 }
 0x14b   : > { %v2202_v21 = vpop.f32.mrf.mxu0 }
 0x14c   : > { %1974 = vmatmul.bf16.gmra.mxu1 %v3443_v11  ;;  %2063 = vmatmul.bf16.gmra.mxu2 %v3447_v12  ;;  %v4603_v60 = vadd.f32 %v2199_v48, %v2111_v20  ;;  %v3934_v48 = vld [vmem:[%s4156_s7 + $0x444] sm:$0xf] }
 0x14d   : > { %2152 = vmatmul.bf16.gmra.mxu3 %v3451_v15  ;;  %v3487_v54 = vor.u32 %v3934_v48, %v3484_v52 }
 0x14e   : > { %2241 = vmatmul.bf16.gmra.mxu0 %v3455_v57 }
 0x14f   : > { %v2024_v24 = vpop.f32.mrf.mxu2 }
 0x150   : > { %v2025_v19 = vadd.f32 %v2024_v24, %v1936_v23  ;;  %v2113_v25 = vpop.f32.mrf.mxu3  ;;  %v3800_v24 = vld [vmem:[%s4156_s7 + $0x14] sm:$0xf] }
 0x151   : > { %v1937_v26 = vpop.f32.mrf.mxu1 }
 0x152   : > { %v2114_v27 = vadd.f32 %v2113_v25, %v2025_v19  ;;  %v1938_v49 = vadd.f32 %v1937_v26, %v4439_v18  ;;  %v2952_v19 = vld [vmem:[%s4156_s7 + $0x34] sm:$0xf0] }
 0x153   : > { %v2204_v47 = vpop.f32.mrf.mxu0  ;;  %v2958_v26 = vld [vmem:[%s4156_s7 + $0x18] sm:$0xf]  ;;  %v2955_v52 = vor.u32 %v3800_v24, %v2952_v19  ;;  %v2996_v19 = vld [vmem:[%s4156_s7 + $0x84] sm:$0xf0] }
 0x154   : > { %v4608_v41 = vadd.f32 %v2202_v21, %v2114_v27  ;;  %v3805_v27 = vld [vmem:[%s4156_s7 + $0x38] sm:$0xf0] }
 0x155   : > { %v2959_v62 = vor.u32 %v3805_v27, %v2958_v26  ;;  %v3002_v26 = vld [vmem:[%s4156_s7 + $0x68] sm:$0xf]  ;;  %v3815_v27 = vld [vmem:[%s4156_s7 + $0x88] sm:$0xf0] }
 0x157   : > { %v2026_v10 = vpop.f32.mrf.mxu2 }
 0x158   : > { %v2027_v30 = vadd.f32 %v2026_v10, %v1938_v49  ;;  %v2115_v63 = vpop.f32.mrf.mxu3 }
 0x159   : > { %v1940_v3 = vpop.f32.mrf.mxu1 }
 0x15a   : > { %v2116_v9 = vadd.f32 %v2115_v63, %v2027_v30  ;;  %v1941_v12 = vadd.f32 %v1940_v3, %v4461_v38  ;;  %v2967_v30 = vor.u32 %v3806_v40, %v2966_v42 }
 0x15b   : > { %v2207_v11 = vpop.f32.mrf.mxu0 }
 0x15c   : > { %1979 = vmatmul.bf16.gmra.mxu1 %v3479_v2  ;;  %2068 = vmatmul.bf16.gmra.mxu2 %v3483_v13  ;;  %v4617_v18 = vadd.f32 %v2204_v47, %v2116_v9  ;;  %v3801_v47 = vld [vmem:[%s4156_s7 + $0x1c] sm:$0xf] }
 0x15d   : > { %2157 = vmatmul.bf16.gmra.mxu3 %v3487_v54  ;;  %v2963_v10 = vor.u32 %v3801_v47, %v2960_v35 }
 0x15e   : > { %2246 = vmatmul.bf16.gmra.mxu0 %v3491_v4 }
 0x15f   : > { %v2029_v14 = vpop.f32.mrf.mxu2 }
 0x160   : > { %v2030_v15 = vadd.f32 %v2029_v14, %v1941_v12  ;;  %v2118_v57 = vpop.f32.mrf.mxu3  ;;  %v3809_v14 = vld [vmem:[%s4156_s7 + $0x5c] sm:$0xf] }
 0x161   : > { %v1942_v20 = vpop.f32.mrf.mxu1 }
 0x162   : > { %v2119_v21 = vadd.f32 %v2118_v57, %v2030_v15  ;;  %v1943_v28 = vadd.f32 %v1942_v20, %v4469_v46  ;;  %v2988_v15 = vld [vmem:[%s4156_s7 + $0x7c] sm:$0xf0] }
 0x163   : > { %v2209_v23 = vpop.f32.mrf.mxu0  ;;  %v2994_v20 = vld [vmem:[%s4156_s7 + $0x60] sm:$0xf]  ;;  %v2991_v35 = vor.u32 %v3809_v14, %v2988_v15  ;;  %v3032_v15 = vld [vmem:[%s4156_s7 + $0xcc] sm:$0xf0] }
 0x164   : > { %v4622_v25 = vadd.f32 %v2207_v11, %v2119_v21  ;;  %v3814_v21 = vld [vmem:[%s4156_s7 + $0x80] sm:$0xf0] }
 0x165   : > { %v2995_v42 = vor.u32 %v3814_v21, %v2994_v20  ;;  %v3038_v20 = vld [vmem:[%s4156_s7 + $0xb0] sm:$0xf]  ;;  %v3824_v21 = vld [vmem:[%s4156_s7 + $0xd0] sm:$0xf0] }
 0x167   : > { %v2031_v38 = vpop.f32.mrf.mxu2 }
 0x168   : > { %v2032_v48 = vadd.f32 %v2031_v38, %v1943_v28  ;;  %v2120_v49 = vpop.f32.mrf.mxu3 }
 0x169   : > { %v1945_v55 = vpop.f32.mrf.mxu1 }
 0x16a   : > { %v2121_v63 = vadd.f32 %v2120_v49, %v2032_v48  ;;  %v1946_v13 = vadd.f32 %v1945_v55, %v4375_v36  ;;  %v3003_v48 = vor.u32 %v3815_v27, %v3002_v26 }
 0x16b   : > { %v2212_v2 = vpop.f32.mrf.mxu0 }
 0x16c   : > { %2260 = vmatmul.bf16.vlgmr.msra.gmra.mxu1 %v2955_v52  ;;  %2349 = vmatmul.bf16.vlgmr.msra.gmra.mxu2 %v2959_v62  ;;  %v4631_v46 = vadd.f32 %v2209_v23, %v2121_v63  ;;  %v3810_v23 = vld [vmem:[%s4156_s7 + $0x64] sm:$0xf] }
 0x16d   : > { %2438 = vmatmul.bf16.vlgmr.msra.gmra.mxu3 %v2963_v10  ;;  %v2999_v38 = vor.u32 %v3810_v23, %v2996_v19 }
 0x16e   : > { %2527 = vmatmul.bf16.vlgmr.msra.gmra.mxu0 %v2967_v30 }
 0x16f   : > { %v2034_v3 = vpop.f32.mrf.mxu2 }
 0x170   : > { %v2035_v54 = vadd.f32 %v2034_v3, %v1946_v13  ;;  %v2123_v4 = vpop.f32.mrf.mxu3  ;;  %v3818_v3 = vld [vmem:[%s4156_s7 + $0xa4] sm:$0xf] }
 0x171   : > { %v1947_v9 = vpop.f32.mrf.mxu1 }
 0x172   : > { %v2124_v11 = vadd.f32 %v2123_v4, %v2035_v54  ;;  %v1948_v24 = vadd.f32 %v1947_v9, %v4397_v50  ;;  %v3024_v54 = vld [vmem:[%s4156_s7 + $0xc4] sm:$0xf0] }
 0x173   : > { %v2214_v12 = vpop.f32.mrf.mxu0  ;;  %v3030_v9 = vld [vmem:[%s4156_s7 + $0xa8] sm:$0xf]  ;;  %v3027_v19 = vor.u32 %v3818_v3, %v3024_v54  ;;  %v3068_v54 = vld [vmem:[%s4156_s7 + $0x114] sm:$0xf0] }
 0x174   : > { %v4636_v57 = vadd.f32 %v2212_v2, %v2124_v11  ;;  %v3823_v11 = vld [vmem:[%s4156_s7 + $0xc8] sm:$0xf0] }
 0x175   : > { %v3031_v26 = vor.u32 %v3823_v11, %v3030_v9  ;;  %v3074_v9 = vld [vmem:[%s4156_s7 + $0xf8] sm:$0xf]  ;;  %v3833_v11 = vld [vmem:[%s4156_s7 + $0x118] sm:$0xf0] }
 0x177   : > { %v2036_v36 = vpop.f32.mrf.mxu2 }
 0x178   : > { %v2037_v47 = vadd.f32 %v2036_v36, %v1948_v24  ;;  %v2125_v28 = vpop.f32.mrf.mxu3 }
 0x179   : > { %v1950_v40 = vpop.f32.mrf.mxu1 }
 0x17a   : > { %v2126_v49 = vadd.f32 %v2125_v28, %v2037_v47  ;;  %v1951_v62 = vadd.f32 %v1950_v40, %v4405_v58  ;;  %v3039_v47 = vor.u32 %v3824_v21, %v3038_v20 }
 0x17b   : > { %v2217_v52 = vpop.f32.mrf.mxu0 }
 0x17c   : > { %2265 = vmatmul.bf16.gmra.mxu1 %v2991_v35  ;;  %2354 = vmatmul.bf16.gmra.mxu2 %v2995_v42  ;;  %v4645_v50 = vadd.f32 %v2214_v12, %v2126_v49  ;;  %v3819_v12 = vld [vmem:[%s4156_s7 + $0xac] sm:$0xf] }
 0x17d   : > { %2443 = vmatmul.bf16.gmra.mxu3 %v2999_v38  ;;  %v3035_v36 = vor.u32 %v3819_v12, %v3032_v15 }
 0x17e   : > { %2532 = vmatmul.bf16.gmra.mxu0 %v3003_v48 }
 0x17f   : > { %v2039_v55 = vpop.f32.mrf.mxu2 }
 0x180   : > { %v2040_v10 = vadd.f32 %v2039_v55, %v1951_v62  ;;  %v2128_v30 = vpop.f32.mrf.mxu3  ;;  %v3827_v55 = vld [vmem:[%s4156_s7 + $0xec] sm:$0xf] }
 0x181   : > { %v1952_v63 = vpop.f32.mrf.mxu1 }
 0x182   : > { %v2129_v2 = vadd.f32 %v2128_v30, %v2040_v10  ;;  %v1953_v14 = vadd.f32 %v1952_v63, %v4421_v6  ;;  %v3060_v10 = vld [vmem:[%s4156_s7 + $0x10c] sm:$0xf0] }
 0x183   : > { %v2219_v13 = vpop.f32.mrf.mxu0  ;;  %v3066_v63 = vld [vmem:[%s4156_s7 + $0xf0] sm:$0xf]  ;;  %v3063_v15 = vor.u32 %v3827_v55, %v3060_v10  ;;  %v3104_v10 = vld [vmem:[%s4156_s7 + $0x15c] sm:$0xf0] }
 0x184   : > { %v4650_v4 = vadd.f32 %v2217_v52, %v2129_v2  ;;  %v3832_v2 = vld [vmem:[%s4156_s7 + $0x110] sm:$0xf0] }
 0x185   : > { %v3067_v20 = vor.u32 %v3832_v2, %v3066_v63  ;;  %v3110_v63 = vld [vmem:[%s4156_s7 + $0x140] sm:$0xf]  ;;  %v3842_v2 = vld [vmem:[%s4156_s7 + $0x160] sm:$0xf0] }
 0x187   : > { %v2041_v58 = vpop.f32.mrf.mxu2 }
 0x188   : > { %v2042_v23 = vadd.f32 %v2041_v58, %v1953_v14  ;;  %v2130_v24 = vpop.f32.mrf.mxu3 }
 0x189   : > { %v1955_v27 = vpop.f32.mrf.mxu1 }
 0x18a   : > { %v2131_v28 = vadd.f32 %v2130_v24, %v2042_v23  ;;  %v1956_v42 = vadd.f32 %v1955_v27, %v4435_v16  ;;  %v3075_v23 = vor.u32 %v3833_v11, %v3074_v9 }
 0x18b   : > { %v2222_v35 = vpop.f32.mrf.mxu0 }
 0x18c   : > { %2270 = vmatmul.bf16.gmra.mxu1 %v3027_v19  ;;  %2359 = vmatmul.bf16.gmra.mxu2 %v3031_v26  ;;  %v4659_v6 = vadd.f32 %v2219_v13, %v2131_v28  ;;  %v3828_v13 = vld [vmem:[%s4156_s7 + $0xf4] sm:$0xf] }
 0x18d   : > { %2448 = vmatmul.bf16.gmra.mxu3 %v3035_v36  ;;  %v3071_v58 = vor.u32 %v3828_v13, %v3068_v54 }
 0x18e   : > { %2537 = vmatmul.bf16.gmra.mxu0 %v3039_v47 }
 0x18f   : > { %v2044_v40 = vpop.f32.mrf.mxu2 }
 0x190   : > { %v2045_v38 = vadd.f32 %v2044_v40, %v1956_v42  ;;  %v2133_v48 = vpop.f32.mrf.mxu3  ;;  %v3836_v40 = vld [vmem:[%s4156_s7 + $0x134] sm:$0xf] }
 0x191   : > { %v1957_v49 = vpop.f32.mrf.mxu1 }
 0x192   : > { %v2134_v52 = vadd.f32 %v2133_v48, %v2045_v38  ;;  %v1958_v3 = vadd.f32 %v1957_v49, %v4457_v31  ;;  %v3096_v38 = vld [vmem:[%s4156_s7 + $0x154] sm:$0xf0] }
 0x193   : > { %v2224_v62 = vpop.f32.mrf.mxu0  ;;  %v3102_v49 = vld [vmem:[%s4156_s7 + $0x138] sm:$0xf]  ;;  %v3099_v54 = vor.u32 %v3836_v40, %v3096_v38  ;;  %v3140_v38 = vld [vmem:[%s4156_s7 + $0x1a4] sm:$0xf0] }
 0x194   : > { %v4664_v30 = vadd.f32 %v2222_v35, %v2134_v52  ;;  %v3841_v52 = vld [vmem:[%s4156_s7 + $0x158] sm:$0xf0] }
 0x195   : > { %v3103_v9 = vor.u32 %v3841_v52, %v3102_v49  ;;  %v3146_v49 = vld [vmem:[%s4156_s7 + $0x188] sm:$0xf]  ;;  %v3851_v52 = vld [vmem:[%s4156_s7 + $0x1a8] sm:$0xf0] }
 0x197   : > { %v2046_v16 = vpop.f32.mrf.mxu2 }
 0x198   : > { %v2047_v12 = vadd.f32 %v2046_v16, %v1958_v3  ;;  %v2135_v14 = vpop.f32.mrf.mxu3 }
 0x199   : > { %v1960_v21 = vpop.f32.mrf.mxu1 }
 0x19a   : > { %v2136_v24 = vadd.f32 %v2135_v14, %v2047_v12  ;;  %v1961_v26 = vadd.f32 %v1960_v21, %v4465_v44  ;;  %v3111_v12 = vor.u32 %v3842_v2, %v3110_v63 }
 0x19b   : > { %v2227_v19 = vpop.f32.mrf.mxu0 }
 0x19c   : > { %2275 = vmatmul.bf16.gmra.mxu1 %v3063_v15  ;;  %2364 = vmatmul.bf16.gmra.mxu2 %v3067_v20  ;;  %v4673_v31 = vadd.f32 %v2224_v62, %v2136_v24  ;;  %v3837_v62 = vld [vmem:[%s4156_s7 + $0x13c] sm:$0xf] }
 0x19d   : > { %2453 = vmatmul.bf16.gmra.mxu3 %v3071_v58  ;;  %v3107_v16 = vor.u32 %v3837_v62, %v3104_v10 }
 0x19e   : > { %2542 = vmatmul.bf16.gmra.mxu0 %v3075_v23 }
 0x19f   : > { %v2049_v27 = vpop.f32.mrf.mxu2 }
 0x1a0   : > { %v2050_v36 = vadd.f32 %v2049_v27, %v1961_v26  ;;  %v2138_v47 = vpop.f32.mrf.mxu3  ;;  %v3845_v27 = vld [vmem:[%s4156_s7 + $0x17c] sm:$0xf] }
 0x1a1   : > { %v1962_v28 = vpop.f32.mrf.mxu1 }
 0x1a2   : > { %v2139_v35 = vadd.f32 %v2138_v47, %v2050_v36  ;;  %v1963_v55 = vadd.f32 %v1962_v28, %v4481_v0  ;;  %v3132_v36 = vld [vmem:[%s4156_s7 + $0x19c] sm:$0xf0] }
 0x1a3   : > { %v2229_v42 = vpop.f32.mrf.mxu0  ;;  %v3138_v28 = vld [vmem:[%s4156_s7 + $0x180] sm:$0xf]  ;;  %v3135_v10 = vor.u32 %v3845_v27, %v3132_v36  ;;  %v3176_v36 = vld [vmem:[%s4156_s7 + $0x1ec] sm:$0xf0] }
 0x1a4   : > { %v4678_v48 = vadd.f32 %v2227_v19, %v2139_v35  ;;  %v3850_v35 = vld [vmem:[%s4156_s7 + $0x1a0] sm:$0xf0] }
 0x1a5   : > { %v3139_v63 = vor.u32 %v3850_v35, %v3138_v28  ;;  %v3182_v28 = vld [vmem:[%s4156_s7 + $0x1d0] sm:$0xf]  ;;  %v3860_v35 = vld [vmem:[%s4156_s7 + $0x1f0] sm:$0xf0] }
 0x1a7   : > { %v2051_v44 = vpop.f32.mrf.mxu2 }
 0x1a8   : > { %v2052_v13 = vadd.f32 %v2051_v44, %v1963_v55  ;;  %v2140_v3 = vpop.f32.mrf.mxu3 }
 0x1a9   : > { %v1965_v11 = vpop.f32.mrf.mxu1 }
 0x1aa   : > { %v2141_v14 = vadd.f32 %v2140_v3, %v2052_v13  ;;  %v1966_v20 = vadd.f32 %v1965_v11, %v4377_v37  ;;  %v3147_v13 = vor.u32 %v3851_v52, %v3146_v49 }
 0x1ab   : > { %v2232_v15 = vpop.f32.mrf.mxu0 }
 0x1ac   : > { %2280 = vmatmul.bf16.gmra.mxu1 %v3099_v54  ;;  %2369 = vmatmul.bf16.gmra.mxu2 %v3103_v9  ;;  %v4687_v0 = vadd.f32 %v2229_v42, %v2141_v14  ;;  %v3846_v42 = vld [vmem:[%s4156_s7 + $0x184] sm:$0xf] }
 0x1ad   : > { %2458 = vmatmul.bf16.gmra.mxu3 %v3107_v16  ;;  %v3143_v44 = vor.u32 %v3846_v42, %v3140_v38 }
 0x1ae   : > { %2547 = vmatmul.bf16.gmra.mxu0 %v3111_v12 }
 0x1af   : > { %v2054_v21 = vpop.f32.mrf.mxu2 }
 0x1b0   : > { %v2055_v58 = vadd.f32 %v2054_v21, %v1966_v20  ;;  %v2143_v23 = vpop.f32.mrf.mxu3  ;;  %v3854_v21 = vld [vmem:[%s4156_s7 + $0x1c4] sm:$0xf] }
 0x1b1   : > { %v1967_v24 = vpop.f32.mrf.mxu1 }
 0x1b2   : > { %v2144_v19 = vadd.f32 %v2143_v23, %v2055_v58  ;;  %v1968_v40 = vadd.f32 %v1967_v24, %v4399_v51  ;;  %v3168_v58 = vld [vmem:[%s4156_s7 + $0x1e4] sm:$0xf0] }
 0x1b3   : > { %v2234_v26 = vpop.f32.mrf.mxu0  ;;  %v3174_v24 = vld [vmem:[%s4156_s7 + $0x1c8] sm:$0xf]  ;;  %v3171_v38 = vor.u32 %v3854_v21, %v3168_v58  ;;  %v3212_v58 = vld [vmem:[%s4156_s7 + $0x234] sm:$0xf0] }
 0x1b4   : > { %v4692_v47 = vadd.f32 %v2232_v15, %v2144_v19  ;;  %v3859_v19 = vld [vmem:[%s4156_s7 + $0x1e8] sm:$0xf0] }
 0x1b5   : > { %v3175_v49 = vor.u32 %v3859_v19, %v3174_v24  ;;  %v3218_v24 = vld [vmem:[%s4156_s7 + $0x218] sm:$0xf]  ;;  %v3869_v19 = vld [vmem:[%s4156_s7 + $0x238] sm:$0xf0] }
 0x1b7   : > { %v2056_v37 = vpop.f32.mrf.mxu2 }
 0x1b8   : > { %v2057_v62 = vadd.f32 %v2056_v37, %v1968_v40  ;;  %v2145_v55 = vpop.f32.mrf.mxu3 }
 0x1b9   : > { %v1970_v2 = vpop.f32.mrf.mxu1 }
 0x1ba   : > { %v2146_v3 = vadd.f32 %v2145_v55, %v2057_v62  ;;  %v1971_v9 = vadd.f32 %v1970_v2, %v4407_v59  ;;  %v3183_v62 = vor.u32 %v3860_v35, %v3182_v28 }
 0x1bb   : > { %v2237_v54 = vpop.f32.mrf.mxu0 }
 0x1bc   : > { %2285 = vmatmul.bf16.gmra.mxu1 %v3135_v10  ;;  %2374 = vmatmul.bf16.gmra.mxu2 %v3139_v63  ;;  %v4701_v51 = vadd.f32 %v2234_v26, %v2146_v3  ;;  %v3855_v26 = vld [vmem:[%s4156_s7 + $0x1cc] sm:$0xf] }
 0x1bd   : > { %2463 = vmatmul.bf16.gmra.mxu3 %v3143_v44  ;;  %v3179_v37 = vor.u32 %v3855_v26, %v3176_v36 }
 0x1be   : > { %2552 = vmatmul.bf16.gmra.mxu0 %v3147_v13 }
 0x1bf   : > { %v2059_v11 = vpop.f32.mrf.mxu2 }
 0x1c0   : > { %v2060_v16 = vadd.f32 %v2059_v11, %v1971_v9  ;;  %v2148_v12 = vpop.f32.mrf.mxu3  ;;  %v3863_v11 = vld [vmem:[%s4156_s7 + $0x20c] sm:$0xf] }
 0x1c1   : > { %v1972_v14 = vpop.f32.mrf.mxu1 }
 0x1c2   : > { %v2149_v15 = vadd.f32 %v2148_v12, %v2060_v16  ;;  %v1973_v27 = vadd.f32 %v1972_v14, %v4423_v7  ;;  %v3204_v16 = vld [vmem:[%s4156_s7 + $0x22c] sm:$0xf0] }
 0x1c3   : > { %v2239_v20 = vpop.f32.mrf.mxu0  ;;  %v3210_v14 = vld [vmem:[%s4156_s7 + $0x210] sm:$0xf]  ;;  %v3207_v36 = vor.u32 %v3863_v11, %v3204_v16  ;;  %v3248_v16 = vld [vmem:[%s4156_s7 + $0x27c] sm:$0xf0] }
 0x1c4   : > { %v4706_v23 = vadd.f32 %v2237_v54, %v2149_v15  ;;  %v3868_v15 = vld [vmem:[%s4156_s7 + $0x230] sm:$0xf0] }
 0x1c5   : > { %v3211_v28 = vor.u32 %v3868_v15, %v3210_v14  ;;  %v3254_v14 = vld [vmem:[%s4156_s7 + $0x260] sm:$0xf]  ;;  %v3878_v15 = vld [vmem:[%s4156_s7 + $0x280] sm:$0xf0] }
 0x1c7   : > { %v2061_v59 = vpop.f32.mrf.mxu2 }
 0x1c8   : > { %v2062_v42 = vadd.f32 %v2061_v59, %v1973_v27  ;;  %v2150_v40 = vpop.f32.mrf.mxu3 }
 0x1c9   : > { %v1975_v52 = vpop.f32.mrf.mxu1 }
 0x1ca   : > { %v2151_v55 = vadd.f32 %v2150_v40, %v2062_v42  ;;  %v1976_v63 = vadd.f32 %v1975_v52, %v4437_v17  ;;  %v3219_v42 = vor.u32 %v3869_v19, %v3218_v24 }
 0x1cb   : > { %v2242_v10 = vpop.f32.mrf.mxu0 }
 0x1cc   : > { %2290 = vmatmul.bf16.gmra.mxu1 %v3171_v38  ;;  %2379 = vmatmul.bf16.gmra.mxu2 %v3175_v49  ;;  %v4715_v7 = vadd.f32 %v2239_v20, %v2151_v55  ;;  %v3864_v20 = vld [vmem:[%s4156_s7 + $0x214] sm:$0xf] }
 0x1cd   : > { %2468 = vmatmul.bf16.gmra.mxu3 %v3179_v37  ;;  %v3215_v59 = vor.u32 %v3864_v20, %v3212_v58 }
 0x1ce   : > { %2557 = vmatmul.bf16.gmra.mxu0 %v3183_v62 }
 0x1cf   : > { %v2064_v2 = vpop.f32.mrf.mxu2 }
 0x1d0   : > { %v2065_v44 = vadd.f32 %v2064_v2, %v1976_v63  ;;  %v2153_v13 = vpop.f32.mrf.mxu3  ;;  %v3872_v2 = vld [vmem:[%s4156_s7 + $0x254] sm:$0xf] }
 0x1d1   : > { %v1977_v3 = vpop.f32.mrf.mxu1 }
 0x1d2   : > { %v2154_v54 = vadd.f32 %v2153_v13, %v2065_v44  ;;  %v1978_v21 = vadd.f32 %v1977_v3, %v4459_v32  ;;  %v3240_v44 = vld [vmem:[%s4156_s7 + $0x274] sm:$0xf0] }
 0x1d3   : > { %v2244_v9 = vpop.f32.mrf.mxu0  ;;  %v3246_v3 = vld [vmem:[%s4156_s7 + $0x258] sm:$0xf]  ;;  %v3243_v58 = vor.u32 %v3872_v2, %v3240_v44 }
 0x1d4   : > { %v4720_v12 = vadd.f32 %v2242_v10, %v2154_v54  ;;  %v3877_v54 = vld [vmem:[%s4156_s7 + $0x278] sm:$0xf0] }
 0x1d5   : > { %v3247_v24 = vor.u32 %v3877_v54, %v3246_v3  ;;  %v3284_v3 = vld [vmem:[%s4156_s7 + $0x2c4] sm:$0xf0] }
 0x1d6   : > { %v3290_v54 = vld [vmem:[%s4156_s7 + $0x2a8] sm:$0xf] }
 0x1d7   : > { %v2066_v17 = vpop.f32.mrf.mxu2 }
 0x1d8   : > { %v2067_v26 = vadd.f32 %v2066_v17, %v1978_v21  ;;  %v2155_v27 = vpop.f32.mrf.mxu3 }
 0x1d9   : > { %v1980_v35 = vpop.f32.mrf.mxu1 }
 0x1da   : > { %v2156_v40 = vadd.f32 %v2155_v27, %v2067_v26  ;;  %v1981_v49 = vadd.f32 %v1980_v35, %v4467_v45  ;;  %v3255_v26 = vor.u32 %v3878_v15, %v3254_v14 }
 0x1db   : > { %v2247_v38 = vpop.f32.mrf.mxu0 }
 0x1dc   : > { %2295 = vmatmul.bf16.gmra.mxu1 %v3207_v36  ;;  %2384 = vmatmul.bf16.gmra.mxu2 %v3211_v28  ;;  %v4729_v32 = vadd.f32 %v2244_v9, %v2156_v40  ;;  %v3873_v9 = vld [vmem:[%s4156_s7 + $0x25c] sm:$0xf] }
 0x1dd   : > { %2473 = vmatmul.bf16.gmra.mxu3 %v3215_v59  ;;  %v3251_v17 = vor.u32 %v3873_v9, %v3248_v16  ;;  %v3887_v9 = vld [vmem:[%s4156_s7 + $0x2c8] sm:$0xf0] }
 0x1de   : > { %2562 = vmatmul.bf16.gmra.mxu0 %v3219_v42 }
 0x1df   : > { %v2069_v52 = vpop.f32.mrf.mxu2 }
 0x1e0   : > { %v2070_v37 = vadd.f32 %v2069_v52, %v1981_v49  ;;  %v2158_v62 = vpop.f32.mrf.mxu3  ;;  %v4749_v49 = vld [vmem:[%s4919_s2] ss:$0 sm:$0xff] }
 0x1e1   : > { %v1982_v55 = vpop.f32.mrf.mxu1 }
 0x1e2   : > { %v2159_v10 = vadd.f32 %v2158_v62, %v2070_v37  ;;  %v1983_v11 = vadd.f32 %v1982_v55, %v4483_v1  ;;  %v3881_v62 = vld [vmem:[%s4156_s7 + $0x29c] sm:$0xf]  ;;  %v3276_v55 = vld [vmem:[%s4156_s7 + $0x2bc] sm:$0xf0] }
 0x1e3   : > { %v2249_v63 = vpop.f32.mrf.mxu0 }
 0x1e4   : > { %v4734_v13 = vadd.f32 %v2247_v38, %v2159_v10  ;;  %v3282_v10 = vld [vmem:[%s4156_s7 + $0x2a0] sm:$0xf] }
 0x1e7   : > { %v2071_v45 = vpop.f32.mrf.mxu2 }
 0x1e8   : > { %v2072_v20 = vadd.f32 %v2071_v45, %v1983_v11  ;;  %v2160_v21 = vpop.f32.mrf.mxu3  ;;  %v3279_v45 = vor.u32 %v3881_v62, %v3276_v55  ;;  %v3312_v62 = vld [vmem:[%s4156_s7 + $0x304] sm:$0xf0] }
 0x1e9   : > { %v2261_v19 = vpop.f32.mrf.mxu1  ;;  %v3318_v55 = vld [vmem:[%s4156_s7 + $0x2e8] sm:$0xf] }
 0x1ea   : > { %v2161_v27 = vadd.f32 %v2160_v21, %v2072_v20  ;;  %v2262_v28 = vadd.f32 %v2261_v19, %v4501_v29  ;;  %v3886_v29 = vld [vmem:[%s4156_s7 + $0x2c0] sm:$0xf0] }
 0x1eb   : > { %v2528_v36 = vpop.f32.mrf.mxu0  ;;  %v3283_v20 = vor.u32 %v3886_v29, %v3282_v10  ;;  %v3895_v10 = vld [vmem:[%s4156_s7 + $0x308] sm:$0xf0] }
 0x1ec   : > { %2300 = vmatmul.bf16.gmra.mxu1 %v3243_v58  ;;  %2389 = vmatmul.bf16.gmra.mxu2 %v3247_v24  ;;  %v4743_v1 = vadd.f32 %v2249_v63, %v2161_v27  ;;  %v3882_v63 = vld [vmem:[%s4156_s7 + $0x2a4] sm:$0xf]  ;;  %v3291_v24 = vor.u32 %v3887_v9, %v3290_v54  ;;  %v3891_v29 = vld [vmem:[%s4156_s7 + $0x2ec] sm:$0xf] }
 0x1ed   : > { %2478 = vmatmul.bf16.gmra.mxu3 %v3251_v17  ;;  %v3287_v58 = vor.u32 %v3882_v63, %v3284_v3  ;;  %v3896_v3 = vld [vmem:[%s4156_s7 + $0x310] sm:$0xf0] }
 0x1ee   : > { %2567 = vmatmul.bf16.gmra.mxu0 %v3255_v26 }
 0x1ef   : > { %v2350_v35 = vpop.f32.mrf.mxu2 }
 0x1f0   : > { %v2351_v59 = vadd.f32 %v2350_v35, %v2262_v28  ;;  %v2439_v42 = vpop.f32.mrf.mxu3 }
 0x1f1   : > { %v2263_v40 = vpop.f32.mrf.mxu1 }
 0x1f2   : > { %v2440_v38 = vadd.f32 %v2439_v42, %v2351_v59  ;;  %v2264_v44 = vadd.f32 %v2263_v40, %v4510_v8 }
 0x1f3   : > { %v2530_v52 = vpop.f32.mrf.mxu0 }
 0x1f4   : > { %v2529_v37 = vadd.f32 %v2528_v36, %v2440_v38 }
 0x1f6   : > { %v2711_v2 = vadd.f32 %v4749_v49, %v2529_v37  ;;  %v3890_v37 = vld [vmem:[%s4156_s7 + $0x2e4] sm:$0xf] }
 0x1f7   : > { %v2352_v11 = vpop.f32.mrf.mxu2 }
 0x1f8   : > { %v2743_v16 = vmax.f32 %v2711_v2, 0.0  ;;  %v2353_v14 = vadd.f32 %v2352_v11, %v2264_v44  ;;  %v2441_v15 = vpop.f32.mrf.mxu3  ;;  %v3320_v2 = vld [vmem:[%s4156_s7 + $0x30c] sm:$0xf0] }
 0x1f9   : > { %v2266_v21 = vpop.f32.mrf.mxu1  ;;  %v3326_v44 = vld [vmem:[%s4156_s7 + $0x2f0] sm:$0xf] }
 0x1fa   : > { %2775 = vst [vmem:[%s4765_s11] sm:$0xff] %v2743_v16  ;;  %v2442_v8 = vadd.f32 %v2441_v15, %v2353_v14  ;;  %v2267_v27 = vadd.f32 %v2266_v21, %v4515_v22  ;;  %v3315_v14 = vor.u32 %v3890_v37, %v3312_v62  ;;  %v3319_v15 = vor.u32 %v3895_v10, %v3318_v55  ;;  %v3904_v37 = vld [vmem:[%s4156_s7 + $0x350] sm:$0xf0]  ;;  %v3356_v10 = vld [vmem:[%s4156_s7 + $0x354] sm:$0xf0] }
 0x1fb   : > { %v2533_v19 = vpop.f32.mrf.mxu0  ;;  %v3327_v21 = vor.u32 %v3896_v3, %v3326_v44  ;;  %v3900_v62 = vld [vmem:[%s4156_s7 + $0x334] sm:$0xf] }
 0x1fc   : > { %v2531_v17 = vadd.f32 %v2530_v52, %v2442_v8  ;;  %2305 = vmatmul.bf16.gmra.mxu1 %v3279_v45  ;;  %2394 = vmatmul.bf16.gmra.mxu2 %v3283_v20  ;;  %v3323_v20 = vor.u32 %v3891_v29, %v3320_v2  ;;  %v3362_v29 = vld [vmem:[%s4156_s7 + $0x338] sm:$0xf] }
 0x1fd   : > { %2483 = vmatmul.bf16.gmra.mxu3 %v3287_v58 }
 0x1fe   : > { %2572 = vmatmul.bf16.gmra.mxu0 %v3291_v24  ;;  %v2712_v26 = vadd.f32 %v4749_v49, %v2531_v17 }
 0x1ff   : > { %v2355_v36 = vpop.f32.mrf.mxu2 }
 0x200   : > { %v2744_v28 = vmax.f32 %v2712_v26, 0.0  ;;  %v2356_v35 = vadd.f32 %v2355_v36, %v2267_v27  ;;  %v2444_v59 = vpop.f32.mrf.mxu3 }
 0x201   : > { %v2268_v42 = vpop.f32.mrf.mxu1 }
 0x202   : > { %2776 = vst [vmem:[%s4765_s11 + $0x8] sm:$0xff] %v2744_v28  ;;  %v2445_v40 = vadd.f32 %v2444_v59, %v2356_v35  ;;  %v2269_v63 = vadd.f32 %v2268_v42, %v4524_v56 }
 0x203   : > { %v2535_v38 = vpop.f32.mrf.mxu0 }
 0x204   : > { %v2534_v52 = vadd.f32 %v2533_v19, %v2445_v40  ;;  %v3899_v40 = vld [vmem:[%s4156_s7 + $0x32c] sm:$0xf] }
 0x206   : > { %v2713_v22 = vadd.f32 %v4749_v49, %v2534_v52  ;;  %v3354_v52 = vld [vmem:[%s4156_s7 + $0x330] sm:$0xf] }
 0x207   : > { %v2357_v54 = vpop.f32.mrf.mxu2 }
 0x208   : > { %v2745_v9 = vmax.f32 %v2713_v22, 0.0  ;;  %v2358_v11 = vadd.f32 %v2357_v54, %v2269_v63  ;;  %v2446_v16 = vpop.f32.mrf.mxu3  ;;  %v3905_v22 = vld [vmem:[%s4156_s7 + $0x358] sm:$0xf0] }
 0x209   : > { %v2271_v45 = vpop.f32.mrf.mxu1 }
 0x20a   : > { %2777 = vst [vmem:[%s4765_s11 + $0x10] sm:$0xff] %v2745_v9  ;;  %v2447_v58 = vadd.f32 %v2446_v16, %v2358_v11  ;;  %v2272_v19 = vadd.f32 %v2271_v45, %v4541_v33  ;;  %v3355_v9 = vor.u32 %v3904_v37, %v3354_v52  ;;  %v3359_v16 = vor.u32 %v3900_v62, %v3356_v10  ;;  %v3398_v52 = vld [vmem:[%s4156_s7 + $0x380] sm:$0xf]  ;;  %v3914_v37 = vld [vmem:[%s4156_s7 + $0x3a0] sm:$0xf0] }
 0x20b   : > { %v2538_v24 = vpop.f32.mrf.mxu0 }
 0x20c   : > { %v2536_v8 = vadd.f32 %v2535_v38, %v2447_v58  ;;  %2310 = vmatmul.bf16.gmra.mxu1 %v3315_v14  ;;  %2399 = vmatmul.bf16.gmra.mxu2 %v3319_v15  ;;  %v3348_v38 = vld [vmem:[%s4156_s7 + $0x34c] sm:$0xf0]  ;;  %v3363_v14 = vor.u32 %v3905_v22, %v3362_v29 }
 0x20d   : > { %2488 = vmatmul.bf16.gmra.mxu3 %v3323_v20  ;;  %v3351_v54 = vor.u32 %v3899_v40, %v3348_v38  ;;  %v3392_v38 = vld [vmem:[%s4156_s7 + $0x39c] sm:$0xf0] }
 0x20e   : > { %2577 = vmatmul.bf16.gmra.mxu0 %v3327_v21  ;;  %v2714_v56 = vadd.f32 %v4749_v49, %v2536_v8 }
 0x20f   : > { %v2360_v17 = vpop.f32.mrf.mxu2 }
 0x210   : > { %v2746_v26 = vmax.f32 %v2714_v56, 0.0  ;;  %v2361_v27 = vadd.f32 %v2360_v17, %v2272_v19  ;;  %v2449_v36 = vpop.f32.mrf.mxu3 }
 0x211   : > { %v2273_v28 = vpop.f32.mrf.mxu1 }
 0x212   : > { %2778 = vst [vmem:[%s4765_s11 + $0x18] sm:$0xff] %v2746_v26  ;;  %v2450_v35 = vadd.f32 %v2449_v36, %v2361_v27  ;;  %v2274_v55 = vadd.f32 %v2273_v28, %v4550_v61  ;;  %v3908_v36 = vld [vmem:[%s4156_s7 + $0x374] sm:$0xf]  ;;  %v3384_v28 = vld [vmem:[%s4156_s7 + $0x394] sm:$0xf0] }
 0x213   : > { %v2540_v59 = vpop.f32.mrf.mxu0  ;;  %v3387_v29 = vor.u32 %v3908_v36, %v3384_v28  ;;  %v3434_v36 = vld [vmem:[%s4156_s7 + $0x3c8] sm:$0xf]  ;;  %v3923_v28 = vld [vmem:[%s4156_s7 + $0x3e8] sm:$0xf0] }
 0x214   : > { %v2539_v42 = vadd.f32 %v2538_v24, %v2450_v35  ;;  %v3390_v35 = vld [vmem:[%s4156_s7 + $0x378] sm:$0xf] }
 0x216   : > { %v2715_v33 = vadd.f32 %v4749_v49, %v2539_v42  ;;  %v3909_v42 = vld [vmem:[%s4156_s7 + $0x37c] sm:$0xf] }
 0x217   : > { %v2362_v63 = vpop.f32.mrf.mxu2 }
 0x218   : > { %v2747_v2 = vmax.f32 %v2715_v33, 0.0  ;;  %v2363_v44 = vadd.f32 %v2362_v63, %v2274_v55  ;;  %v2451_v3 = vpop.f32.mrf.mxu3 }
 0x219   : > { %v2276_v11 = vpop.f32.mrf.mxu1 }
 0x21a   : > { %2779 = vst [vmem:[%s4765_s11 + $0x20] sm:$0xff] %v2747_v2  ;;  %v2452_v15 = vadd.f32 %v2451_v3, %v2363_v44  ;;  %v2277_v21 = vadd.f32 %v2276_v11, %v4555_v5  ;;  %v3395_v2 = vor.u32 %v3909_v42, %v3392_v38  ;;  %v3399_v44 = vor.u32 %v3914_v37, %v3398_v52 }
 0x21b   : > { %v2543_v45 = vpop.f32.mrf.mxu0 }
 0x21c   : > { %v2541_v20 = vadd.f32 %v2540_v59, %v2452_v15  ;;  %2315 = vmatmul.bf16.gmra.mxu1 %v3351_v54  ;;  %2404 = vmatmul.bf16.gmra.mxu2 %v3355_v9  ;;  %v3913_v59 = vld [vmem:[%s4156_s7 + $0x398] sm:$0xf0] }
 0x21d   : > { %2493 = vmatmul.bf16.gmra.mxu3 %v3359_v16  ;;  %v3391_v22 = vor.u32 %v3913_v59, %v3390_v35 }
 0x21e   : > { %2582 = vmatmul.bf16.gmra.mxu0 %v3363_v14  ;;  %v2716_v61 = vadd.f32 %v4749_v49, %v2541_v20 }
 0x21f   : > { %v2365_v58 = vpop.f32.mrf.mxu2 }
 0x220   : > { %v2748_v24 = vmax.f32 %v2716_v61, 0.0  ;;  %v2366_v8 = vadd.f32 %v2365_v58, %v2277_v21  ;;  %v2454_v56 = vpop.f32.mrf.mxu3 }
 0x221   : > { %v2278_v19 = vpop.f32.mrf.mxu1 }
 0x222   : > { %2780 = vst [vmem:[%s4765_s11 + $0x28] sm:$0xff] %v2748_v24  ;;  %v2455_v17 = vadd.f32 %v2454_v56, %v2366_v8  ;;  %v2279_v40 = vadd.f32 %v2278_v19, %v4563_v34  ;;  %v3917_v24 = vld [vmem:[%s4156_s7 + $0x3bc] sm:$0xf]  ;;  %v3420_v8 = vld [vmem:[%s4156_s7 + $0x3dc] sm:$0xf0] }
 0x223   : > { %v2545_v26 = vpop.f32.mrf.mxu0  ;;  %v3426_v56 = vld [vmem:[%s4156_s7 + $0x3c0] sm:$0xf]  ;;  %v3922_v19 = vld [vmem:[%s4156_s7 + $0x3e0] sm:$0xf0] }
 0x224   : > { %v2544_v27 = vadd.f32 %v2543_v45, %v2455_v17  ;;  %v3918_v17 = vld [vmem:[%s4156_s7 + $0x3c4] sm:$0xf]  ;;  %v3427_v38 = vor.u32 %v3922_v19, %v3426_v56 }
 0x226   : > { %v2717_v5 = vadd.f32 %v4749_v49, %v2544_v27  ;;  %v3428_v27 = vld [vmem:[%s4156_s7 + $0x3e4] sm:$0xf0] }
 0x227   : > { %v2367_v62 = vpop.f32.mrf.mxu2  ;;  %v3431_v37 = vor.u32 %v3918_v17, %v3428_v27 }
 0x228   : > { %v2749_v33 = vmax.f32 %v2717_v5, 0.0  ;;  %v2368_v55 = vadd.f32 %v2367_v62, %v2279_v40  ;;  %v2456_v10 = vpop.f32.mrf.mxu3  ;;  %v3423_v40 = vor.u32 %v3917_v24, %v3420_v8  ;;  %v3435_v62 = vor.u32 %v3923_v28, %v3434_v36 }
 0x229   : > { %v2281_v63 = vpop.f32.mrf.mxu1 }
 0x22a   : > { %2781 = vst [vmem:[%s4765_s11 + $0x30] sm:$0xff] %v2749_v33  ;;  %v2457_v3 = vadd.f32 %v2456_v10, %v2368_v55  ;;  %v2282_v11 = vadd.f32 %v2281_v63, %v4580_v43 }
 0x22b   : > { %v2548_v54 = vpop.f32.mrf.mxu0 }
 0x22c   : > { %v2546_v9 = vadd.f32 %v2545_v26, %v2457_v3  ;;  %2320 = vmatmul.bf16.gmra.mxu1 %v3387_v29  ;;  %2409 = vmatmul.bf16.gmra.mxu2 %v3391_v22 }
 0x22d   : > { %2498 = vmatmul.bf16.gmra.mxu3 %v3395_v2 }
 0x22e   : > { %2587 = vmatmul.bf16.gmra.mxu0 %v3399_v44  ;;  %v2718_v34 = vadd.f32 %v4749_v49, %v2546_v9 }
 0x22f   : > { %v2370_v16 = vpop.f32.mrf.mxu2 }
 0x230   : > { %v2750_v14 = vmax.f32 %v2718_v34, 0.0  ;;  %v2371_v15 = vadd.f32 %v2370_v16, %v2282_v11  ;;  %v2459_v45 = vpop.f32.mrf.mxu3  ;;  %v3926_v11 = vld [vmem:[%s4156_s7 + $0x404] sm:$0xf]  ;;  %v3456_v16 = vld [vmem:[%s4156_s7 + $0x424] sm:$0xf0] }
 0x231   : > { %v2283_v20 = vpop.f32.mrf.mxu1  ;;  %v3459_v17 = vor.u32 %v3926_v11, %v3456_v16 }
 0x232   : > { %2782 = vst [vmem:[%s4765_s11 + $0x38] sm:$0xff] %v2750_v14  ;;  %v2460_v61 = vadd.f32 %v2459_v45, %v2371_v15  ;;  %v2284_v26 = vadd.f32 %v2283_v20, %v4589_v39  ;;  %v3462_v14 = vld [vmem:[%s4156_s7 + $0x408] sm:$0xf]  ;;  %v3931_v15 = vld [vmem:[%s4156_s7 + $0x428] sm:$0xf0] }
 0x233   : > { %v2550_v21 = vpop.f32.mrf.mxu0  ;;  %v3927_v45 = vld [vmem:[%s4156_s7 + $0x40c] sm:$0xf] }
 0x234   : > { %v2549_v58 = vadd.f32 %v2548_v54, %v2460_v61  ;;  %v3464_v61 = vld [vmem:[%s4156_s7 + $0x42c] sm:$0xf0] }
 0x235   : > { %v3467_v27 = vor.u32 %v3927_v45, %v3464_v61 }
 0x236   : > { %v2719_v43 = vadd.f32 %v4749_v49, %v2549_v58  ;;  %v3932_v58 = vld [vmem:[%s4156_s7 + $0x430] sm:$0xf0] }
 0x237   : > { %v2372_v35 = vpop.f32.mrf.mxu2 }
 0x238   : > { %v2751_v59 = vmax.f32 %v2719_v43, 0.0  ;;  %v2373_v42 = vadd.f32 %v2372_v35, %v2284_v26  ;;  %v2461_v5 = vpop.f32.mrf.mxu3  ;;  %v3463_v43 = vor.u32 %v3931_v15, %v3462_v14 }
 0x239   : > { %v2286_v52 = vpop.f32.mrf.mxu1 }
 0x23a   : > { %2783 = vst [vmem:[%s4765_s11 + $0x40] sm:$0xff] %v2751_v59  ;;  %v2462_v33 = vadd.f32 %v2461_v5, %v2373_v42  ;;  %v2287_v29 = vadd.f32 %v2286_v52, %v4594_v53 }
 0x23b   : > { %v2553_v55 = vpop.f32.mrf.mxu0 }
 0x23c   : > { %v2551_v10 = vadd.f32 %v2550_v21, %v2462_v33  ;;  %2325 = vmatmul.bf16.gmra.mxu1 %v3423_v40  ;;  %2414 = vmatmul.bf16.gmra.mxu2 %v3427_v38  ;;  %v3470_v21 = vld [vmem:[%s4156_s7 + $0x410] sm:$0xf] }
 0x23d   : > { %2503 = vmatmul.bf16.gmra.mxu3 %v3431_v37  ;;  %v3471_v36 = vor.u32 %v3932_v58, %v3470_v21 }
 0x23e   : > { %2592 = vmatmul.bf16.gmra.mxu0 %v3435_v62  ;;  %v2720_v39 = vadd.f32 %v4749_v49, %v2551_v10  ;;  %v3935_v10 = vld [vmem:[%s4156_s7 + $0x44c] sm:$0xf] }
 0x23f   : > { %v2375_v22 = vpop.f32.mrf.mxu2 }
 0x240   : > { %v2752_v63 = vmax.f32 %v2720_v39, 0.0  ;;  %v2376_v2 = vadd.f32 %v2375_v22, %v2287_v29  ;;  %v2464_v44 = vpop.f32.mrf.mxu3  ;;  %v3492_v39 = vld [vmem:[%s4156_s7 + $0x46c] sm:$0xf0]  ;;  %v3940_v22 = vld [vmem:[%s4156_s7 + $0x470] sm:$0xf0] }
 0x241   : > { %v2288_v3 = vpop.f32.mrf.mxu1  ;;  %v3498_v29 = vld [vmem:[%s4156_s7 + $0x450] sm:$0xf]  ;;  %v3495_v14 = vor.u32 %v3935_v10, %v3492_v39 }
 0x242   : > { %2784 = vst [vmem:[%s4765_s11 + $0x48] sm:$0xff] %v2752_v63  ;;  %v2465_v54 = vadd.f32 %v2464_v44, %v2376_v2  ;;  %v2289_v20 = vadd.f32 %v2288_v3, %v4603_v60  ;;  %v3936_v63 = vld [vmem:[%s4156_s7 + $0x454] sm:$0xf]  ;;  %v3500_v44 = vld [vmem:[%s4156_s7 + $0x474] sm:$0xf0]  ;;  %v3499_v15 = vor.u32 %v3940_v22, %v3498_v29 }
 0x243   : > { %v2555_v9 = vpop.f32.mrf.mxu0  ;;  %v3506_v3 = vld [vmem:[%s4156_s7 + $0x458] sm:$0xf] }
 0x244   : > { %v2554_v34 = vadd.f32 %v2553_v55, %v2465_v54  ;;  %v3941_v54 = vld [vmem:[%s4156_s7 + $0x478] sm:$0xf0] }
 0x246   : > { %v2721_v53 = vadd.f32 %v4749_v49, %v2554_v34 }
 0x247   : > { %v2377_v24 = vpop.f32.mrf.mxu2 }
 0x248   : > { %v2753_v8 = vmax.f32 %v2721_v53, 0.0  ;;  %v2378_v56 = vadd.f32 %v2377_v24, %v2289_v20  ;;  %v2466_v19 = vpop.f32.mrf.mxu3  ;;  %v3503_v53 = vor.u32 %v3936_v63, %v3500_v44  ;;  %v3507_v20 = vor.u32 %v3941_v54, %v3506_v3 }
 0x249   : > { %v2291_v26 = vpop.f32.mrf.mxu1 }
 0x24a   : > { %2785 = vst [vmem:[%s4765_s11 + $0x50] sm:$0xff] %v2753_v8  ;;  %v2467_v28 = vadd.f32 %v2466_v19, %v2378_v56  ;;  %v2292_v42 = vadd.f32 %v2291_v26, %v4608_v41 }
 0x24b   : > { %v2558_v35 = vpop.f32.mrf.mxu0 }
 0x24c   : > { %v2556_v59 = vadd.f32 %v2555_v9, %v2467_v28  ;;  %2330 = vmatmul.bf16.gmra.mxu1 %v3459_v17  ;;  %2419 = vmatmul.bf16.gmra.mxu2 %v3463_v43 }
 0x24d   : > { %2508 = vmatmul.bf16.gmra.mxu3 %v3467_v27 }
 0x24e   : > { %2597 = vmatmul.bf16.gmra.mxu0 %v3471_v36  ;;  %v2722_v60 = vadd.f32 %v4749_v49, %v2556_v59 }
 0x24f   : > { %v2380_v5 = vpop.f32.mrf.mxu2 }
 0x250   : > { %v2754_v40 = vmax.f32 %v2722_v60, 0.0  ;;  %v2381_v38 = vadd.f32 %v2380_v5, %v2292_v42  ;;  %v2469_v52 = vpop.f32.mrf.mxu3 }
 0x251   : > { %v2293_v37 = vpop.f32.mrf.mxu1 }
 0x252   : > { %2786 = vst [vmem:[%s4765_s11 + $0x58] sm:$0xff] %v2754_v40  ;;  %v2470_v62 = vadd.f32 %v2469_v52, %v2381_v38  ;;  %v2294_v2 = vadd.f32 %v2293_v37, %v4617_v18 }
 0x253   : > { %v2560_v33 = vpop.f32.mrf.mxu0 }
 0x254   : > { %v2559_v55 = vadd.f32 %v2558_v35, %v2470_v62 }
 0x256   : > { %v2723_v41 = vadd.f32 %v4749_v49, %v2559_v55 }
 0x257   : > { %v2382_v9 = vpop.f32.mrf.mxu2 }
 0x258   : > { %v2755_v34 = vmax.f32 %v2723_v41, 0.0  ;;  %v2383_v11 = vadd.f32 %v2382_v9, %v2294_v2  ;;  %v2471_v16 = vpop.f32.mrf.mxu3 }
 0x259   : > { %v2296_v45 = vpop.f32.mrf.mxu1 }
 0x25a   : > { %2787 = vst [vmem:[%s4765_s11 + $0x60] sm:$0xff] %v2755_v34  ;;  %v2472_v61 = vadd.f32 %v2471_v16, %v2383_v11  ;;  %v2297_v24 = vadd.f32 %v2296_v45, %v4622_v25 }
 0x25b   : > { %v2563_v21 = vpop.f32.mrf.mxu0 }
 0x25c   : > { %v2561_v58 = vadd.f32 %v2560_v33, %v2472_v61  ;;  %2335 = vmatmul.bf16.gmra.mxu1 %v3495_v14  ;;  %2424 = vmatmul.bf16.gmra.mxu2 %v3499_v15 }
 0x25d   : > { %2513 = vmatmul.bf16.gmra.mxu3 %v3503_v53 }
 0x25e   : > { %2602 = vmatmul.bf16.gmra.mxu0 %v3507_v20  ;;  %v2724_v18 = vadd.f32 %v4749_v49, %v2561_v58 }
 0x25f   : > { %v2385_v8 = vpop.f32.mrf.mxu2 }
 0x260   : > { %v2756_v56 = vmax.f32 %v2724_v18, 0.0  ;;  %v2386_v19 = vadd.f32 %v2385_v8, %v2297_v24  ;;  %v2474_v17 = vpop.f32.mrf.mxu3 }
 0x261   : > { %v2298_v43 = vpop.f32.mrf.mxu1 }
 0x262   : > { %2788 = vst [vmem:[%s4765_s11 + $0x68] sm:$0xff] %v2756_v56  ;;  %v2475_v26 = vadd.f32 %v2474_v17, %v2386_v19  ;;  %v2299_v35 = vadd.f32 %v2298_v43, %v4631_v46 }
 0x263   : > { %v2565_v27 = vpop.f32.mrf.mxu0 }
 0x264   : > { %v2564_v36 = vadd.f32 %v2563_v21, %v2475_v26 }
 0x266   : > { %v2725_v28 = vadd.f32 %v4749_v49, %v2564_v36 }
 0x267   : > { %v2387_v59 = vpop.f32.mrf.mxu2 }
 0x268   : > { %v2757_v60 = vmax.f32 %v2725_v28, 0.0  ;;  %v2388_v42 = vadd.f32 %v2387_v59, %v2299_v35  ;;  %v2476_v5 = vpop.f32.mrf.mxu3 }
 0x269   : > { %v2301_v25 = vpop.f32.mrf.mxu1 }
 0x26a   : > { %2789 = vst [vmem:[%s4765_s11 + $0x70] sm:$0xff] %v2757_v60  ;;  %v2477_v40 = vadd.f32 %v2476_v5, %v2388_v42  ;;  %v2302_v62 = vadd.f32 %v2301_v25, %v4636_v57 }
 0x26b   : > { %v2568_v38 = vpop.f32.mrf.mxu0 }
 0x26c   : > { %v2566_v52 = vadd.f32 %v2565_v27, %v2477_v40 }
 0x26e   : > { %v2726_v37 = vadd.f32 %v4749_v49, %v2566_v52 }
 0x26f   : > { %v2390_v33 = vpop.f32.mrf.mxu2 }
 0x270   : > { %v2758_v55 = vmax.f32 %v2726_v37, 0.0  ;;  %v2391_v10 = vadd.f32 %v2390_v33, %v2302_v62  ;;  %v2479_v39 = vpop.f32.mrf.mxu3 }
 0x271   : > { %v2303_v46 = vpop.f32.mrf.mxu1 }
 0x272   : > { %2790 = vst [vmem:[%s4765_s11 + $0x78] sm:$0xff] %v2758_v55  ;;  %v2480_v29 = vadd.f32 %v2479_v39, %v2391_v10  ;;  %v2304_v2 = vadd.f32 %v2303_v46, %v4645_v50 }
 0x273   : > { %v2570_v22 = vpop.f32.mrf.mxu0 }
 0x274   : > { %v2569_v63 = vadd.f32 %v2568_v38, %v2480_v29 }
 0x276   : > { %v2727_v41 = vadd.f32 %v4749_v49, %v2569_v63 }
 0x277   : > { %v2392_v44 = vpop.f32.mrf.mxu2 }
 0x278   : > { %v2759_v3 = vmax.f32 %v2727_v41, 0.0  ;;  %v2393_v54 = vadd.f32 %v2392_v44, %v2304_v2  ;;  %v2481_v9 = vpop.f32.mrf.mxu3 }
 0x279   : > { %v2306_v57 = vpop.f32.mrf.mxu1 }
 0x27a   : > { %2791 = vst [vmem:[%s4765_s11 + $0x80] sm:$0xff] %v2759_v3  ;;  %v2482_v34 = vadd.f32 %v2481_v9, %v2393_v54  ;;  %v2307_v15 = vadd.f32 %v2306_v57, %v4650_v4 }
 0x27b   : > { %v2573_v11 = vpop.f32.mrf.mxu0 }
 0x27c   : > { %v2571_v16 = vadd.f32 %v2570_v22, %v2482_v34 }
 0x27e   : > { %v2728_v14 = vadd.f32 %v4749_v49, %v2571_v16 }
 0x27f   : > { %v2395_v45 = vpop.f32.mrf.mxu2 }
 0x280   : > { %v2760_v53 = vmax.f32 %v2728_v14, 0.0  ;;  %v2396_v20 = vadd.f32 %v2395_v45, %v2307_v15  ;;  %v2484_v61 = vpop.f32.mrf.mxu3 }
 0x281   : > { %v2308_v50 = vpop.f32.mrf.mxu1 }
 0x282   : > { %2792 = vst [vmem:[%s4765_s11 + $0x88] sm:$0xff] %v2760_v53  ;;  %v2485_v21 = vadd.f32 %v2484_v61, %v2396_v20  ;;  %v2309_v8 = vadd.f32 %v2308_v50, %v4659_v6 }
 0x283   : > { %v2575_v58 = vpop.f32.mrf.mxu0 }
 0x284   : > { %v2574_v18 = vadd.f32 %v2573_v11, %v2485_v21 }
 0x286   : > { %v2729_v24 = vadd.f32 %v4749_v49, %v2574_v18 }
 0x287   : > { %v2397_v56 = vpop.f32.mrf.mxu2 }
 0x288   : > { %v2761_v19 = vmax.f32 %v2729_v24, 0.0  ;;  %v2398_v17 = vadd.f32 %v2397_v56, %v2309_v8  ;;  %v2486_v43 = vpop.f32.mrf.mxu3 }
 0x289   : > { %v2311_v4 = vpop.f32.mrf.mxu1 }
 0x28a   : > { %2793 = vst [vmem:[%s4765_s11 + $0x90] sm:$0xff] %v2761_v19  ;;  %v2487_v26 = vadd.f32 %v2486_v43, %v2398_v17  ;;  %v2312_v35 = vadd.f32 %v2311_v4, %v4664_v30 }
 0x28b   : > { %v2578_v27 = vpop.f32.mrf.mxu0 }
 0x28c   : > { %v2576_v36 = vadd.f32 %v2575_v58, %v2487_v26 }
 0x28e   : > { %v2730_v28 = vadd.f32 %v4749_v49, %v2576_v36 }
 0x28f   : > { %v2400_v59 = vpop.f32.mrf.mxu2 }
 0x290   : > { %v2762_v60 = vmax.f32 %v2730_v28, 0.0  ;;  %v2401_v42 = vadd.f32 %v2400_v59, %v2312_v35  ;;  %v2489_v5 = vpop.f32.mrf.mxu3 }
 0x291   : > { %v2313_v6 = vpop.f32.mrf.mxu1 }
 0x292   : > { %2794 = vst [vmem:[%s4765_s11 + $0x98] sm:$0xff] %v2762_v60  ;;  %v2490_v25 = vadd.f32 %v2489_v5, %v2401_v42  ;;  %v2314_v37 = vadd.f32 %v2313_v6, %v4673_v31 }
 0x293   : > { %v2580_v40 = vpop.f32.mrf.mxu0 }
 0x294   : > { %v2579_v38 = vadd.f32 %v2578_v27, %v2490_v25 }
 0x296   : > { %v2731_v52 = vadd.f32 %v4749_v49, %v2579_v38 }
 0x297   : > { %v2402_v62 = vpop.f32.mrf.mxu2 }
 0x298   : > { %v2763_v33 = vmax.f32 %v2731_v52, 0.0  ;;  %v2403_v55 = vadd.f32 %v2402_v62, %v2314_v37  ;;  %v2491_v10 = vpop.f32.mrf.mxu3 }
 0x299   : > { %v2316_v30 = vpop.f32.mrf.mxu1 }
 0x29a   : > { %2795 = vst [vmem:[%s4765_s11 + $0xa0] sm:$0xff] %v2763_v33  ;;  %v2492_v39 = vadd.f32 %v2491_v10, %v2403_v55  ;;  %v2317_v63 = vadd.f32 %v2316_v30, %v4678_v48 }
 0x29b   : > { %v2583_v46 = vpop.f32.mrf.mxu0 }
 0x29c   : > { %v2581_v29 = vadd.f32 %v2580_v40, %v2492_v39 }
 0x29e   : > { %v2732_v22 = vadd.f32 %v4749_v49, %v2581_v29 }
 0x29f   : > { %v2405_v41 = vpop.f32.mrf.mxu2 }
 0x2a0   : > { %v2764_v2 = vmax.f32 %v2732_v22, 0.0  ;;  %v2406_v44 = vadd.f32 %v2405_v41, %v2317_v63  ;;  %v2494_v3 = vpop.f32.mrf.mxu3 }
 0x2a1   : > { %v2318_v31 = vpop.f32.mrf.mxu1 }
 0x2a2   : > { %2796 = vst [vmem:[%s4765_s11 + $0xa8] sm:$0xff] %v2764_v2  ;;  %v2495_v54 = vadd.f32 %v2494_v3, %v2406_v44  ;;  %v2319_v11 = vadd.f32 %v2318_v31, %v4687_v0 }
 0x2a3   : > { %v2585_v9 = vpop.f32.mrf.mxu0 }
 0x2a4   : > { %v2584_v57 = vadd.f32 %v2583_v46, %v2495_v54 }
 0x2a6   : > { %v2733_v34 = vadd.f32 %v4749_v49, %v2584_v57 }
 0x2a7   : > { %v2407_v16 = vpop.f32.mrf.mxu2 }
 0x2a8   : > { %v2765_v14 = vmax.f32 %v2733_v34, 0.0  ;;  %v2408_v15 = vadd.f32 %v2407_v16, %v2319_v11  ;;  %v2496_v45 = vpop.f32.mrf.mxu3 }
 0x2a9   : > { %v2321_v48 = vpop.f32.mrf.mxu1 }
 0x2aa   : > { %2797 = vst [vmem:[%s4765_s11 + $0xb0] sm:$0xff] %v2765_v14  ;;  %v2497_v53 = vadd.f32 %v2496_v45, %v2408_v15  ;;  %v2322_v21 = vadd.f32 %v2321_v48, %v4692_v47 }
 0x2ab   : > { %v2588_v20 = vpop.f32.mrf.mxu0 }
 0x2ac   : > { %v2586_v61 = vadd.f32 %v2585_v9, %v2497_v53 }
 0x2ae   : > { %v2734_v50 = vadd.f32 %v4749_v49, %v2586_v61 }
 0x2af   : > { %v2410_v58 = vpop.f32.mrf.mxu2 }
 0x2b0   : > { %v2766_v18 = vmax.f32 %v2734_v50, 0.0  ;;  %v2411_v24 = vadd.f32 %v2410_v58, %v2322_v21  ;;  %v2499_v8 = vpop.f32.mrf.mxu3 }
 0x2b1   : > { %v2323_v0 = vpop.f32.mrf.mxu1 }
 0x2b2   : > { %2798 = vst [vmem:[%s4765_s11 + $0xb8] sm:$0xff] %v2766_v18  ;;  %v2500_v56 = vadd.f32 %v2499_v8, %v2411_v24  ;;  %v2324_v4 = vadd.f32 %v2323_v0, %v4701_v51 }
 0x2b3   : > { %v2590_v19 = vpop.f32.mrf.mxu0 }
 0x2b4   : > { %v2589_v17 = vadd.f32 %v2588_v20, %v2500_v56 }
 0x2b6   : > { %v2735_v43 = vadd.f32 %v4749_v49, %v2589_v17 }
 0x2b7   : > { %v2412_v26 = vpop.f32.mrf.mxu2 }
 0x2b8   : > { %v2767_v27 = vmax.f32 %v2735_v43, 0.0  ;;  %v2413_v36 = vadd.f32 %v2412_v26, %v2324_v4  ;;  %v2501_v28 = vpop.f32.mrf.mxu3 }
 0x2b9   : > { %v2326_v47 = vpop.f32.mrf.mxu1 }
 0x2ba   : > { %2799 = vst [vmem:[%s4765_s11 + $0xc0] sm:$0xff] %v2767_v27  ;;  %v2502_v35 = vadd.f32 %v2501_v28, %v2413_v36  ;;  %v2327_v5 = vadd.f32 %v2326_v47, %v4706_v23 }
 0x2bb   : > { %v2593_v59 = vpop.f32.mrf.mxu0 }
 0x2bc   : > { %v2591_v60 = vadd.f32 %v2590_v19, %v2502_v35 }
 0x2be   : > { %v2736_v42 = vadd.f32 %v4749_v49, %v2591_v60 }
 0x2bf   : > { %v2415_v6 = vpop.f32.mrf.mxu2 }
 0x2c0   : > { %v2768_v25 = vmax.f32 %v2736_v42, 0.0  ;;  %v2416_v40 = vadd.f32 %v2415_v6, %v2327_v5  ;;  %v2504_v38 = vpop.f32.mrf.mxu3 }
 0x2c1   : > { %v2328_v51 = vpop.f32.mrf.mxu1 }
 0x2c2   : > { %2800 = vst [vmem:[%s4765_s11 + $0xc8] sm:$0xff] %v2768_v25  ;;  %v2505_v52 = vadd.f32 %v2504_v38, %v2416_v40  ;;  %v2329_v55 = vadd.f32 %v2328_v51, %v4715_v7 }
 0x2c3   : > { %v2595_v37 = vpop.f32.mrf.mxu0 }
 0x2c4   : > { %v2594_v62 = vadd.f32 %v2593_v59, %v2505_v52 }
 0x2c6   : > { %v2737_v33 = vadd.f32 %v4749_v49, %v2594_v62 }
 0x2c7   : > { %v2417_v10 = vpop.f32.mrf.mxu2 }
 0x2c8   : > { %v2769_v30 = vmax.f32 %v2737_v33, 0.0  ;;  %v2418_v39 = vadd.f32 %v2417_v10, %v2329_v55  ;;  %v2506_v46 = vpop.f32.mrf.mxu3 }
 0x2c9   : > { %v2331_v23 = vpop.f32.mrf.mxu1 }
 0x2ca   : > { %2801 = vst [vmem:[%s4765_s11 + $0xd0] sm:$0xff] %v2769_v30  ;;  %v2507_v29 = vadd.f32 %v2506_v46, %v2418_v39  ;;  %v2332_v2 = vadd.f32 %v2331_v23, %v4720_v12 }
 0x2cb   : > { %v2598_v63 = vpop.f32.mrf.mxu0 }
 0x2cc   : > { %v2596_v22 = vadd.f32 %v2595_v37, %v2507_v29 }
 0x2ce   : > { %v2738_v41 = vadd.f32 %v4749_v49, %v2596_v22 }
 0x2cf   : > { %v2420_v44 = vpop.f32.mrf.mxu2 }
 0x2d0   : > { %v2770_v3 = vmax.f32 %v2738_v41, 0.0  ;;  %v2421_v31 = vadd.f32 %v2420_v44, %v2332_v2  ;;  %v2509_v54 = vpop.f32.mrf.mxu3 }
 0x2d1   : > { %v2333_v7 = vpop.f32.mrf.mxu1 }
 0x2d2   : > { %2802 = vst [vmem:[%s4765_s11 + $0xd8] sm:$0xff] %v2770_v3  ;;  %v2510_v9 = vadd.f32 %v2509_v54, %v2421_v31  ;;  %v2334_v11 = vadd.f32 %v2333_v7, %v4729_v32 }
 0x2d3   : > { %v2600_v16 = vpop.f32.mrf.mxu0 }
 0x2d4   : > { %v2599_v57 = vadd.f32 %v2598_v63, %v2510_v9 }
 0x2d6   : > { %v2739_v34 = vadd.f32 %v4749_v49, %v2599_v57 }
 0x2d7   : > { %v2422_v14 = vpop.f32.mrf.mxu2 }
 0x2d8   : > { %v2771_v15 = vmax.f32 %v2739_v34, 0.0  ;;  %v2423_v45 = vadd.f32 %v2422_v14, %v2334_v11  ;;  %v2511_v48 = vpop.f32.mrf.mxu3 }
 0x2d9   : > { %v2336_v12 = vpop.f32.mrf.mxu1 }
 0x2da   : > { %2803 = vst [vmem:[%s4765_s11 + $0xe0] sm:$0xff] %v2771_v15  ;;  %v2512_v53 = vadd.f32 %v2511_v48, %v2423_v45  ;;  %v2337_v50 = vadd.f32 %v2336_v12, %v4734_v13 }
 0x2db   : > { %v2603_v32 = vpop.f32.mrf.mxu0 }
 0x2dc   : > { %v2601_v20 = vadd.f32 %v2600_v16, %v2512_v53 }
 0x2de   : > { %v2740_v61 = vadd.f32 %v4749_v49, %v2601_v20 }
 0x2df   : > { %v2425_v21 = vpop.f32.mrf.mxu2 }
 0x2e0   : > { %v2772_v58 = vmax.f32 %v2740_v61, 0.0  ;;  %v2426_v18 = vadd.f32 %v2425_v21, %v2337_v50  ;;  %v2514_v24 = vpop.f32.mrf.mxu3 }
 0x2e1   : > { %v2338_v0 = vpop.f32.mrf.mxu1 }
 0x2e2   : > { %2804 = vst [vmem:[%s4765_s11 + $0xe8] sm:$0xff] %v2772_v58  ;;  %v2515_v8 = vadd.f32 %v2514_v24, %v2426_v18  ;;  %v2339_v17 = vadd.f32 %v2338_v0, %v4743_v1 }
 0x2e3   : > { %v2605_v36 = vpop.f32.mrf.mxu0 }
 0x2e4   : > { %v2604_v56 = vadd.f32 %v2603_v32, %v2515_v8 }
 0x2e6   : > { %v2741_v19 = vadd.f32 %v4749_v49, %v2604_v56 }
 0x2e7   : > { %v2427_v43 = vpop.f32.mrf.mxu2 }
 0x2e8   : > { %v2773_v4 = vmax.f32 %v2741_v19, 0.0  ;;  %v2428_v26 = vadd.f32 %v2427_v43, %v2339_v17  ;;  %v2516_v27 = vpop.f32.mrf.mxu3 }
 0x2ea   : > { %2805 = vst [vmem:[%s4765_s11 + $0xf0] sm:$0xff] %v2773_v4  ;;  %v2517_v13 = vadd.f32 %v2516_v27, %v2428_v26 }
 0x2ec   : > { %v2606_v28 = vadd.f32 %v2605_v36, %v2517_v13 }
 0x2ee   : > { %v2742_v47 = vadd.f32 %v4749_v49, %v2606_v28 }
 0x2f0   : > { %v2774_v35 = vmax.f32 %v2742_v47, 0.0 }
 0x2f2   : > { %2806 = vst [vmem:[%s4765_s11 + $0xf8] sm:$0xff] %v2774_v35 }
 0x2f3 PF: > { %s13_s14 = sadd.s32 1, %s4086_s14   ;;  %s4921_s12 = smov %s4082_s13 }
 0x2f4   : > { %p10_p5 = scmp.ge.s32.totalorder %s13_s14, 4   ;;  %s4922_s13 = smov %s4924_s15 }
 0x2f6   :  { %12 = sbr.rel (!%p10_p5) target bundleno = 2 (0x2), region = 76 }

// kernel: device_forward.43
= control target key start
LH: loop header
LB: loop body
LE: loop exit
PB: predicated region body
PF: predicated region fallthrough
CT: control target
= control target key end

     0   :  { %s1860_s12 = smov 0   ;;  %s1862_s13 = smov 0   ;;  %s2184_s0 = inlined_call_operand.vmem [shape: bf16[512,288], index: 0, kind: input, shape index: {}]   ;;  %s2185_s1 = inlined_call_operand.vmem [shape: bf16[288,128], index: 1, kind: input, shape index: {}]   ;;  %s2186_s2 = inlined_call_operand.vmem [shape: f32[1,128], index: 2, kind: input, shape index: {}]   ;;  %s2187_s3 = inlined_call_operand.vmem [shape: f32[512,128], index: 3, kind: output, shape index: {}]  }
   0x1   :  { %s1864_s14 = smov 0  }
   0x2 LB: > { %s32_s15 = sadd.s32 1, %s1834_s13  ;;  %p1419_p0 = scmp.ge.s32.totalorder %s1838_s14, 1  ;;  %s1838_s14 = sphi %s1864_s14, %s13_s14   ;;  %s1834_s13 = sphi %s1862_s13, %s2189_s13   ;;  %s1830_s12 = sphi %s1860_s12, %s2188_s12  }
   0x3   : > { %p34_p1 = scmp.ge.s32.totalorder %s32_s15, 2  ;;  %p191_p2 = scmp.lt.s32.totalorder %s1838_s14, 3 }
   0x5   : > { %s2191_s15 = smov (%p34_p1, %s32_s15), 0  ;;  %p192_p3 = pnand %p1419_p0, %p191_p2 }
   0x6   : > { %s1420_s22 = sshll.u32 (!%p192_p3), %s1830_s12, 5 }
   0x7   : > { %195 = sbr.rel (%p192_p3) target bundleno = 377 (0x179), region = 32  ;;  %p236_p4 = scmp.lt.s32.totalorder (!%p192_p3), %s1420_s22, 63 }
   0xc   : > { %v1761_v0 = vld [vmem:[%s2185_s1 + $0x38] sm:$0xff]  ;;  %v1889_v2 = vld [vmem:[%s2185_s1 + $0x88] sm:$0xff]  ;;  %v1760_v3 = vld [vmem:[%s2185_s1 + $0x30] sm:$0xff]  ;;  %s2193_s22 = smov (!%p236_p4, %s1420_s22), 63  ;;  %vm784_vm0 = vcmask 261120  }
   0xd   : > { %v1884_v1 = vld [vmem:[%s2185_s1 + $0x78] sm:$0xff]  ;;  %833 = vmatpush.bf16.msra.mxu0 %v1761_v0  ;;  %1772 = vmatpush.bf16.msra.mxu3 %v1761_v0  ;;  %v1768_v4 = vld [vmem:[%s2185_s1 + $0x70] sm:$0xff]  ;;  %v1902_v5 = vld [vmem:[%s2185_s1 + $0x80] sm:$0xff]  ;;  %s1790_s29 = smul.u32 12, %s2193_s22  ;;  %s1423_s10 = sshll.u32 %s2193_s22, 3 }
   0xe   : > { %922 = vmatpush.bf16.msra.mxu1 %v1884_v1  ;;  %1017 = vmatpush.bf16.msra.mxu2 %v1889_v2  ;;  %v1759_v6 = vld [vmem:[%s2185_s1 + $0x28] sm:$0xff]  ;;  %v1758_v11 = vld [vmem:[%s2185_s1 + $0x20] sm:$0xff]  ;;  %v1757_v13 = vld [vmem:[%s2185_s1 + $0x18] sm:$0xff]  ;;  %s2051_s16 = scalar_lea.vmem %s2187_s3, %s1423_s10 }
   0xf   : > { %v1767_v7 = vld [vmem:[%s2185_s1 + $0x68] sm:$0xff]  ;;  %s1917_s9 = scalar_lea.vmem %s2184_s0, %s1790_s29  ;;  %v1766_v12 = vld [vmem:[%s2185_s1 + $0x60] sm:$0xff]  ;;  %v1765_v14 = vld [vmem:[%s2185_s1 + $0x58] sm:$0xff] }
  0x10   : > { %v1434_v8 = vld [vmem:[%s1917_s9 + $0x8] sm:$0xf]  ;;  %v1708_v9 = vld [vmem:[%s1917_s9 + $0x10] sm:$0xf0]  ;;  %v1446_v17 = vld [vmem:[%s1917_s9 + $0x20] sm:$0xf] }
  0x11   : > { %834 = vmatpush.bf16.msra.mxu0 %v1760_v3  ;;  %1773 = vmatpush.bf16.msra.mxu3 %v1760_v3  ;;  %v1435_v10 = vor.u32 %v1708_v9, %v1434_v8  ;;  %v1756_v15 = vld [vmem:[%s2185_s1 + $0x10] sm:$0xff]  ;;  %v1711_v18 = vld [vmem:[%s1917_s9 + $0x28] sm:$0xf0]  ;;  %v1754_v22 = vld [vmem:[%s2185_s1] sm:$0xff] }
  0x12   : > { %923 = vmatpush.bf16.msra.mxu1 %v1768_v4  ;;  %1018 = vmatpush.bf16.msra.mxu2 %v1902_v5  ;;  %v1764_v16 = vld [vmem:[%s2185_s1 + $0x50] sm:$0xff]  ;;  %v1755_v19 = vld [vmem:[%s2185_s1 + $0x8] sm:$0xff]  ;;  %v1447_v21 = vor.u32 %v1711_v18, %v1446_v17  ;;  %v1426_v23 = vld [vmem:[%s1917_s9] sm:$0xf] }
  0x13   : > { %v1763_v20 = vld [vmem:[%s2185_s1 + $0x48] sm:$0xff]  ;;  %v1570_v25 = vld [vmem:[%s1917_s9 + $0x120] sm:$0xf]  ;;  %v1706_v28 = vld [vmem:[%s1917_s9 + $0x4] sm:$0xf] }
  0x14   : > { %v1707_v24 = vld [vmem:[%s1917_s9 + $0x8] sm:$0xf0]  ;;  %v1762_v27 = vld [vmem:[%s2185_s1 + $0x40] sm:$0xff]  ;;  %v1428_v29 = vld [vmem:[%s1917_s9 + $0xc] sm:$0xf0] }
  0x15   : > { %835 = vmatpush.bf16.msra.mxu0 %v1759_v6  ;;  %1774 = vmatpush.bf16.msra.mxu3 %v1759_v6  ;;  %v1743_v26 = vld [vmem:[%s1917_s9 + $0x128] sm:$0xf0]  ;;  %v1427_v30 = vor.u32 %v1707_v24, %v1426_v23  ;;  %v1431_v32 = vor.u32 %v1706_v28, %v1428_v29  ;;  %v1458_v33 = vld [vmem:[%s1917_s9 + $0x38] sm:$0xf]  ;;  %v1714_v34 = vld [vmem:[%s1917_s9 + $0x40] sm:$0xf0] }
  0x16   : > { %924 = vmatpush.bf16.msra.mxu1 %v1767_v7  ;;  %1688 = vmatmul.msk.bf16.vlgmr.msra.gmra.mxu2 %vm784_vm0, %v1435_v10  ;;  %v1571_v31 = vor.u32 %v1743_v26, %v1570_v25  ;;  %v1459_v35 = vor.u32 %v1714_v34, %v1458_v33  ;;  %v1438_v36 = vld [vmem:[%s1917_s9 + $0x18] sm:$0xf]  ;;  %v1710_v37 = vld [vmem:[%s1917_s9 + $0x20] sm:$0xf0]  ;;  %v1709_v40 = vld [vmem:[%s1917_s9 + $0x1c] sm:$0xf] }
  0x17   : > { %v1582_v38 = vld [vmem:[%s1917_s9 + $0x138] sm:$0xf]  ;;  %v1746_v39 = vld [vmem:[%s1917_s9 + $0x140] sm:$0xf0]  ;;  %v1440_v41 = vld [vmem:[%s1917_s9 + $0x24] sm:$0xf0]  ;;  %v1439_v42 = vor.u32 %v1710_v37, %v1438_v36 }
  0x18   : > { %v1583_v43 = vor.u32 %v1746_v39, %v1582_v38  ;;  %v1443_v44 = vor.u32 %v1709_v40, %v1440_v41  ;;  %v1470_v45 = vld [vmem:[%s1917_s9 + $0x50] sm:$0xf]  ;;  %v1717_v46 = vld [vmem:[%s1917_s9 + $0x58] sm:$0xf0]  ;;  %v1712_v52 = vld [vmem:[%s1917_s9 + $0x34] sm:$0xf] }
  0x19   : > { %836 = vmatpush.bf16.msra.mxu0 %v1758_v11  ;;  %1775 = vmatpush.bf16.msra.mxu3 %v1758_v11  ;;  %v1471_v47 = vor.u32 %v1717_v46, %v1470_v45  ;;  %v1450_v48 = vld [vmem:[%s1917_s9 + $0x30] sm:$0xf]  ;;  %v1713_v49 = vld [vmem:[%s1917_s9 + $0x38] sm:$0xf0]  ;;  %v1452_v53 = vld [vmem:[%s1917_s9 + $0x3c] sm:$0xf0] }
  0x1a   : > { %925 = vmatpush.bf16.msra.mxu1 %v1766_v12  ;;  %v1594_v50 = vld [vmem:[%s1917_s9 + $0x150] sm:$0xf]  ;;  %v1749_v51 = vld [vmem:[%s1917_s9 + $0x158] sm:$0xf0]  ;;  %v1451_v54 = vor.u32 %v1713_v49, %v1450_v48  ;;  %v1455_v56 = vor.u32 %v1712_v52, %v1452_v53  ;;  %v1482_v57 = vld [vmem:[%s1917_s9 + $0x68] sm:$0xf] }
  0x1b   : > { %v1595_v55 = vor.u32 %v1749_v51, %v1594_v50  ;;  %v1720_v58 = vld [vmem:[%s1917_s9 + $0x70] sm:$0xf0]  ;;  %v1462_v60 = vld [vmem:[%s1917_s9 + $0x48] sm:$0xf]  ;;  %v1715_v0 = vld [vmem:[%s1917_s9 + $0x4c] sm:$0xf] }
  0x1c   : > { %v1483_v59 = vor.u32 %v1720_v58, %v1482_v57  ;;  %v1716_v61 = vld [vmem:[%s1917_s9 + $0x50] sm:$0xf0]  ;;  %v1606_v62 = vld [vmem:[%s1917_s9 + $0x168] sm:$0xf]  ;;  %v1723_v6 = vld [vmem:[%s1917_s9 + $0x88] sm:$0xf0] }
  0x1d   : > { %837 = vmatpush.bf16.msra.mxu0 %v1757_v13  ;;  %1776 = vmatpush.bf16.msra.mxu3 %v1757_v13  ;;  %v1752_v63 = vld [vmem:[%s1917_s9 + $0x170] sm:$0xf0]  ;;  %v1474_v8 = vld [vmem:[%s1917_s9 + $0x60] sm:$0xf]  ;;  %v1719_v9 = vld [vmem:[%s1917_s9 + $0x68] sm:$0xf0] }
  0x1e   : > { %926 = vmatpush.bf16.msra.mxu1 %v1765_v14  ;;  %v1607_v3 = vor.u32 %v1752_v63, %v1606_v62  ;;  %v1742_v10 = vld [vmem:[%s1917_s9 + $0x124] sm:$0xf]  ;;  %v1572_v11 = vld [vmem:[%s1917_s9 + $0x12c] sm:$0xf0]  ;;  %v1506_v17 = vld [vmem:[%s1917_s9 + $0x98] sm:$0xf] }
  0x1f   : > { %v1476_v13 = vld [vmem:[%s1917_s9 + $0x6c] sm:$0xf0]  ;;  %v1726_v18 = vld [vmem:[%s1917_s9 + $0xa0] sm:$0xf0]  ;;  %v1584_v23 = vld [vmem:[%s1917_s9 + $0x144] sm:$0xf0] }
  0x20   : > { %v1721_v24 = vld [vmem:[%s1917_s9 + $0x7c] sm:$0xf]  ;;  %v1488_v25 = vld [vmem:[%s1917_s9 + $0x84] sm:$0xf0]  ;;  %v1518_v29 = vld [vmem:[%s1917_s9 + $0xb0] sm:$0xf] }
  0x21   : > { %838 = vmatpush.bf16.msra.mxu0 %v1756_v15  ;;  %1777 = vmatpush.bf16.msra.mxu3 %v1756_v15  ;;  %v1575_v15 = vor.u32 %v1742_v10, %v1572_v11  ;;  %v1491_v28 = vor.u32 %v1721_v24, %v1488_v25  ;;  %v1725_v33 = vld [vmem:[%s1917_s9 + $0x98] sm:$0xf0]  ;;  %v1748_v34 = vld [vmem:[%s1917_s9 + $0x154] sm:$0xf]  ;;  %v1500_v37 = vld [vmem:[%s1917_s9 + $0x9c] sm:$0xf0] }
  0x22   : > { %927 = vmatpush.bf16.msra.mxu1 %v1764_v16  ;;  %v1724_v36 = vld [vmem:[%s1917_s9 + $0x94] sm:$0xf]  ;;  %v1530_v41 = vld [vmem:[%s1917_s9 + $0xc8] sm:$0xf]  ;;  %v1751_v46 = vld [vmem:[%s1917_s9 + $0x16c] sm:$0xf] }
  0x23   : > { %v1503_v40 = vor.u32 %v1724_v36, %v1500_v37  ;;  %v1728_v45 = vld [vmem:[%s1917_s9 + $0xb0] sm:$0xf0]  ;;  %v1727_v48 = vld [vmem:[%s1917_s9 + $0xac] sm:$0xf]  ;;  %v1512_v49 = vld [vmem:[%s1917_s9 + $0xb4] sm:$0xf0] }
  0x24   : > { %v1515_v53 = vor.u32 %v1727_v48, %v1512_v49  ;;  %v1522_v58 = vld [vmem:[%s1917_s9 + $0xc0] sm:$0xf]  ;;  %v1730_v62 = vld [vmem:[%s1917_s9 + $0xc4] sm:$0xf]  ;;  %v1524_v63 = vld [vmem:[%s1917_s9 + $0xcc] sm:$0xf0] }
  0x25   : > { %839 = vmatpush.bf16.msra.mxu0 %v1755_v19  ;;  %1778 = vmatpush.bf16.msra.mxu3 %v1755_v19  ;;  %v1507_v19 = vor.u32 %v1726_v18, %v1506_v17  ;;  %v1554_v11 = vld [vmem:[%s1917_s9 + $0xf8] sm:$0xf]  ;;  %v1733_v24 = vld [vmem:[%s1917_s9 + $0xdc] sm:$0xf]  ;;  %v1536_v25 = vld [vmem:[%s1917_s9 + $0xe4] sm:$0xf0] }
  0x26   : > { %928 = vmatpush.bf16.msra.mxu1 %v1763_v20  ;;  %1689 = vmatmul.msk.bf16.gmra.mxu2 %vm784_vm0, %v1447_v21  ;;  %v1722_v21 = vld [vmem:[%s1917_s9 + $0x80] sm:$0xf0]  ;;  %v1546_v48 = vld [vmem:[%s1917_s9 + $0xf0] sm:$0xf]  ;;  %v1737_v49 = vld [vmem:[%s1917_s9 + $0xf8] sm:$0xf0] }
  0x29   : > { %840 = vmatpush.bf16.msra.mxu0 %v1754_v22  ;;  %1779 = vmatpush.bf16.msra.mxu3 %v1754_v22  ;;  %v1745_v22 = vld [vmem:[%s1917_s9 + $0x13c] sm:$0xf] }
  0x2a   : > { %929 = vmatpush.bf16.msra.mxu1 %v1762_v27 }
  0x2c   : > { %841 = vmatmul.bf16.vlgmr.msra.gmra.mxu0 %v1427_v30  ;;  %901 = vmatmul.bf16.vlgmr.msra.gmra.mxu3 %v1571_v31  ;;  %v1729_v30 = vld [vmem:[%s1917_s9 + $0xb8] sm:$0xf0] }
  0x2d   : > { %1780 = vmatpush.bf16.msrb.mxu3 %v1884_v1  ;;  %930 = vmatmul.bf16.vlgmr.msra.gmra.mxu1 %v1431_v32  ;;  %v1464_v1 = vld [vmem:[%s1917_s9 + $0x54] sm:$0xf0]  ;;  %v1519_v31 = vor.u32 %v1729_v30, %v1518_v29  ;;  %v1498_v32 = vld [vmem:[%s1917_s9 + $0x90] sm:$0xf] }
  0x2e   : > { %v1499_v38 = vor.u32 %v1725_v33, %v1498_v32  ;;  %v1539_v33 = vor.u32 %v1733_v24, %v1536_v25 }
  0x31   : > { %1781 = vmatpush.bf16.msrb.mxu3 %v1768_v4  ;;  %v1467_v4 = vor.u32 %v1715_v0, %v1464_v1 }
  0x35   : > { %1782 = vmatpush.bf16.msrb.mxu3 %v1767_v7 }
  0x36   : > { %1690 = vmatmul.msk.bf16.gmra.mxu2 %vm784_vm0, %v1459_v35  ;;  %v1596_v35 = vld [vmem:[%s1917_s9 + $0x15c] sm:$0xf0] }
  0x37   : > { %v1599_v39 = vor.u32 %v1748_v34, %v1596_v35 }
  0x39   : > { %1783 = vmatpush.bf16.msrb.mxu3 %v1766_v12  ;;  %v1718_v12 = vld [vmem:[%s1917_s9 + $0x64] sm:$0xf] }
  0x3c   : > { %846 = vmatmul.bf16.gmra.mxu0 %v1439_v42  ;;  %906 = vmatmul.bf16.gmra.mxu3 %v1583_v43  ;;  %v1732_v42 = vld [vmem:[%s1917_s9 + $0xd0] sm:$0xf0] }
  0x3d   : > { %1784 = vmatpush.bf16.msrb.mxu3 %v1765_v14  ;;  %935 = vmatmul.bf16.gmra.mxu1 %v1443_v44  ;;  %v1475_v14 = vor.u32 %v1719_v9, %v1474_v8  ;;  %v1531_v43 = vor.u32 %v1732_v42, %v1530_v41  ;;  %v1510_v44 = vld [vmem:[%s1917_s9 + $0xa8] sm:$0xf] }
  0x3e   : > { %v1511_v50 = vor.u32 %v1728_v45, %v1510_v44 }
  0x41   : > { %1785 = vmatpush.bf16.msrb.mxu3 %v1764_v16  ;;  %v1479_v16 = vor.u32 %v1718_v12, %v1476_v13  ;;  %v1738_v12 = vld [vmem:[%s1917_s9 + $0x100] sm:$0xf0] }
  0x42   : > { %v1555_v17 = vor.u32 %v1738_v12, %v1554_v11  ;;  %v1558_v11 = vld [vmem:[%s1917_s9 + $0x108] sm:$0xf]  ;;  %v1740_v12 = vld [vmem:[%s1917_s9 + $0x110] sm:$0xf0] }
  0x45   : > { %1786 = vmatpush.bf16.msrb.mxu3 %v1763_v20  ;;  %v1486_v20 = vld [vmem:[%s1917_s9 + $0x78] sm:$0xf] }
  0x46   : > { %1691 = vmatmul.msk.bf16.gmra.mxu2 %vm784_vm0, %v1471_v47  ;;  %v1487_v26 = vor.u32 %v1722_v21, %v1486_v20  ;;  %v1608_v47 = vld [vmem:[%s1917_s9 + $0x174] sm:$0xf0]  ;;  %v1734_v21 = vld [vmem:[%s1917_s9 + $0xe0] sm:$0xf0] }
  0x47   : > { %v1611_v51 = vor.u32 %v1751_v46, %v1608_v47 }
  0x49   : > { %1787 = vmatpush.bf16.msrb.mxu3 %v1762_v27  ;;  %v1587_v27 = vor.u32 %v1745_v22, %v1584_v23  ;;  %v1614_v22 = vld [vmem:[%s1917_s9 + $0x170] sm:$0xf]  ;;  %v1753_v23 = vld [vmem:[%s1917_s9 + $0x178] sm:$0xf0] }
  0x4a   : > { %v1615_v29 = vor.u32 %v1753_v23, %v1614_v22 }
  0x4c   : > { %851 = vmatmul.bf16.gmra.mxu0 %v1451_v54  ;;  %911 = vmatmul.bf16.gmra.mxu3 %v1595_v55  ;;  %v1542_v54 = vld [vmem:[%s1917_s9 + $0xe0] sm:$0xf]  ;;  %v1735_v55 = vld [vmem:[%s1917_s9 + $0xe8] sm:$0xf0] }
  0x4d   : > { %1788 = vmatpush.bf16.msra.mxu3 %v1889_v2  ;;  %940 = vmatmul.bf16.gmra.mxu1 %v1455_v56  ;;  %v1463_v2 = vor.u32 %v1716_v61, %v1462_v60  ;;  %v1543_v57 = vor.u32 %v1735_v55, %v1542_v54  ;;  %v1602_v60 = vld [vmem:[%s1917_s9 + $0x158] sm:$0xf]  ;;  %v1750_v61 = vld [vmem:[%s1917_s9 + $0x160] sm:$0xf0]  ;;  %v1547_v54 = vor.u32 %v1737_v49, %v1546_v48 }
  0x4e   : > { %v1603_v1 = vor.u32 %v1750_v61, %v1602_v60 }
  0x51   : > { %1789 = vmatpush.bf16.msra.mxu3 %v1902_v5  ;;  %v1494_v5 = vld [vmem:[%s1917_s9 + $0x80] sm:$0xf] }
  0x52   : > { %v1495_v7 = vor.u32 %v1723_v6, %v1494_v5 }
  0x56   : > { %1692 = vmatmul.msk.bf16.gmra.mxu2 %vm784_vm0, %v1483_v59  ;;  %v1731_v59 = vld [vmem:[%s1917_s9 + $0xc8] sm:$0xf0] }
  0x57   : > { %v1523_v0 = vor.u32 %v1731_v59, %v1522_v58 }
  0x5c   : > { %856 = vmatmul.bf16.gmra.mxu0 %v1463_v2  ;;  %916 = vmatmul.bf16.gmra.mxu3 %v1607_v3 }
  0x5d   : > { %945 = vmatmul.bf16.gmra.mxu1 %v1467_v4  ;;  %v1527_v4 = vor.u32 %v1730_v62, %v1524_v63 }
  0x66   : > { %1693 = vmatmul.msk.bf16.gmra.mxu2 %vm784_vm0, %v1495_v7  ;;  %v2039_v7 = vld [vmem:[%s2186_s2] ss:$0 sm:$0xff] }
  0x6c   : > { %861 = vmatmul.bf16.gmra.mxu0 %v1475_v14  ;;  %990 = vmatmul.bf16.vlgmr.msrb.gmra.mxu3 %v1575_v15 }
  0x6d   : > { %950 = vmatmul.bf16.gmra.mxu1 %v1479_v16 }
  0x76   : > { %1694 = vmatmul.msk.bf16.gmra.mxu2 %vm784_vm0, %v1507_v19  ;;  %v1534_v19 = vld [vmem:[%s1917_s9 + $0xd8] sm:$0xf] }
  0x7c   : > { %866 = vmatmul.bf16.gmra.mxu0 %v1487_v26  ;;  %995 = vmatmul.bf16.gmra.mxu3 %v1587_v27 }
  0x7d   : > { %955 = vmatmul.bf16.gmra.mxu1 %v1491_v28  ;;  %v1535_v28 = vor.u32 %v1734_v21, %v1534_v19 }
  0x86   : > { %1695 = vmatmul.msk.bf16.gmra.mxu2 %vm784_vm0, %v1519_v31 }
  0x8c   : > { %871 = vmatmul.bf16.gmra.mxu0 %v1499_v38  ;;  %1000 = vmatmul.bf16.gmra.mxu3 %v1599_v39  ;;  %v1566_v39 = vld [vmem:[%s1917_s9 + $0x110] sm:$0xf] }
  0x8d   : > { %960 = vmatmul.bf16.gmra.mxu1 %v1503_v40  ;;  %v1741_v40 = vld [vmem:[%s1917_s9 + $0x118] sm:$0xf0] }
  0x8e   : > { %v1567_v45 = vor.u32 %v1741_v40, %v1566_v39 }
  0x96   : > { %1696 = vmatmul.msk.bf16.gmra.mxu2 %vm784_vm0, %v1531_v43 }
  0x99   : > { %v1020_v52 = vpop.f32.mrf.mxu2 }
  0x9c   : > { %876 = vmatmul.bf16.gmra.mxu0 %v1511_v50  ;;  %1005 = vmatmul.bf16.gmra.mxu3 %v1611_v51  ;;  %v1736_v50 = vld [vmem:[%s1917_s9 + $0xf4] sm:$0xf]  ;;  %v1548_v51 = vld [vmem:[%s1917_s9 + $0xfc] sm:$0xf0] }
  0x9d   : > { %965 = vmatmul.bf16.gmra.mxu1 %v1515_v53  ;;  %v1551_v58 = vor.u32 %v1736_v50, %v1548_v51 }
  0xa1   : > { %v1022_v56 = vpop.f32.mrf.mxu2 }
  0xa6   : > { %1697 = vmatmul.msk.bf16.gmra.mxu2 %vm784_vm0, %v1543_v57 }
  0xa9   : > { %v1025_v2 = vpop.f32.mrf.mxu2  ;;  %v842_v3 = vpop.f32.mrf.mxu0 }
  0xaa   : > { %v931_v5 = vpop.f32.mrf.mxu1 }
  0xab   : > { %v932_v6 = vadd.f32 %v931_v5, %v842_v3 }
  0xac   : > { %881 = vmatmul.bf16.gmra.mxu0 %v1523_v0  ;;  %1702 = vmatmul.msk.bf16.vlgmr.msra.gmra.mxu3 %vm784_vm0, %v1603_v1  ;;  %v1578_v0 = vld [vmem:[%s1917_s9 + $0x128] sm:$0xf]  ;;  %v1744_v1 = vld [vmem:[%s1917_s9 + $0x130] sm:$0xf0] }
  0xad   : > { %v1021_v8 = vadd.f32 %v1020_v52, %v932_v6  ;;  %970 = vmatmul.bf16.gmra.mxu1 %v1527_v4  ;;  %v1579_v6 = vor.u32 %v1744_v1, %v1578_v0 }
  0xaf   : > { %v1203_v9 = vadd.f32 %v2039_v7, %v1021_v8  ;;  %v2044_v10 = vpop.f32.mrf.mxu3 }
  0xb1   : > { %v1235_v13 = vmax.f32 %v1203_v9, 0.0  ;;  %v1027_v14 = vpop.f32.mrf.mxu2  ;;  %v844_v15 = vpop.f32.mrf.mxu0 }
  0xb2   : > { %v933_v16 = vpop.f32.mrf.mxu1 }
  0xb3   : > { %1267 = vst [vmem:[%s2051_s16] sm:$0xff] %v1235_v13  ;;  %v934_v18 = vadd.f32 %v933_v16, %v844_v15  ;;  %v1739_v13 = vld [vmem:[%s1917_s9 + $0x10c] sm:$0xf] }
  0xb5   : > { %v1023_v20 = vadd.f32 %v1022_v56, %v934_v18 }
  0xb6   : > { %1698 = vmatmul.msk.bf16.gmra.mxu2 %vm784_vm0, %v1555_v17  ;;  %v1559_v17 = vor.u32 %v1740_v12, %v1558_v11 }
  0xb7   : > { %v1204_v26 = vadd.f32 %v2039_v7, %v1023_v20  ;;  %v2062_v27 = vpop.f32.mrf.mxu3 }
  0xb9   : > { %v1236_v30 = vmax.f32 %v1204_v26, 0.0  ;;  %v1030_v31 = vpop.f32.mrf.mxu2  ;;  %v847_v32 = vpop.f32.mrf.mxu0 }
  0xba   : > { %v936_v34 = vpop.f32.mrf.mxu1 }
  0xbb   : > { %1268 = vst [vmem:[%s2051_s16 + $0x8] sm:$0xff] %v1236_v30  ;;  %v937_v35 = vadd.f32 %v936_v34, %v847_v32 }
  0xbc   : > { %886 = vmatmul.bf16.gmra.mxu0 %v1535_v28  ;;  %1703 = vmatmul.msk.bf16.gmra.mxu3 %vm784_vm0, %v1615_v29  ;;  %v1590_v28 = vld [vmem:[%s1917_s9 + $0x140] sm:$0xf]  ;;  %v1747_v29 = vld [vmem:[%s1917_s9 + $0x148] sm:$0xf0] }
  0xbd   : > { %v1026_v36 = vadd.f32 %v1025_v2, %v937_v35  ;;  %975 = vmatmul.bf16.gmra.mxu1 %v1539_v33  ;;  %v1591_v34 = vor.u32 %v1747_v29, %v1590_v28 }
  0xbf   : > { %v1205_v37 = vadd.f32 %v2039_v7, %v1026_v36  ;;  %v2067_v38 = vpop.f32.mrf.mxu3 }
  0xc1   : > { %v1237_v41 = vmax.f32 %v1205_v37, 0.0  ;;  %v1032_v42 = vpop.f32.mrf.mxu2  ;;  %v849_v43 = vpop.f32.mrf.mxu0 }
  0xc2   : > { %v938_v44 = vpop.f32.mrf.mxu1 }
  0xc3   : > { %1269 = vst [vmem:[%s2051_s16 + $0x10] sm:$0xff] %v1237_v41  ;;  %v939_v46 = vadd.f32 %v938_v44, %v849_v43 }
  0xc5   : > { %v1028_v47 = vadd.f32 %v1027_v14, %v939_v46  ;;  %v1560_v14 = vld [vmem:[%s1917_s9 + $0x114] sm:$0xf0] }
  0xc6   : > { %1699 = vmatmul.msk.bf16.gmra.mxu2 %vm784_vm0, %v1567_v45  ;;  %v1563_v21 = vor.u32 %v1739_v13, %v1560_v14 }
  0xc7   : > { %v1206_v52 = vadd.f32 %v2039_v7, %v1028_v47  ;;  %v2078_v53 = vpop.f32.mrf.mxu3 }
  0xc9   : > { %v1238_v55 = vmax.f32 %v1206_v52, 0.0  ;;  %v1035_v56 = vpop.f32.mrf.mxu2  ;;  %v852_v57 = vpop.f32.mrf.mxu0 }
  0xca   : > { %v941_v59 = vpop.f32.mrf.mxu1 }
  0xcb   : > { %1270 = vst [vmem:[%s2051_s16 + $0x18] sm:$0xff] %v1238_v55  ;;  %v942_v60 = vadd.f32 %v941_v59, %v852_v57 }
  0xcc   : > { %891 = vmatmul.bf16.gmra.mxu0 %v1547_v54 }
  0xcd   : > { %v1031_v61 = vadd.f32 %v1030_v31, %v942_v60  ;;  %980 = vmatmul.bf16.gmra.mxu1 %v1551_v58 }
  0xcf   : > { %v1207_v62 = vadd.f32 %v2039_v7, %v1031_v61  ;;  %v2082_v63 = vpop.f32.mrf.mxu3 }
  0xd1   : > { %v1239_v2 = vmax.f32 %v1207_v62, 0.0  ;;  %v1037_v3 = vpop.f32.mrf.mxu2  ;;  %v854_v4 = vpop.f32.mrf.mxu0 }
  0xd2   : > { %v943_v5 = vpop.f32.mrf.mxu1 }
  0xd3   : > { %1271 = vst [vmem:[%s2051_s16 + $0x20] sm:$0xff] %v1239_v2  ;;  %v944_v8 = vadd.f32 %v943_v5, %v854_v4 }
  0xd5   : > { %v1033_v9 = vadd.f32 %v1032_v42, %v944_v8 }
  0xd6   : > { %1700 = vmatmul.msk.bf16.gmra.mxu2 %vm784_vm0, %v1579_v6 }
  0xd7   : > { %v1208_v15 = vadd.f32 %v2039_v7, %v1033_v9  ;;  %v2093_v16 = vpop.f32.mrf.mxu3 }
  0xd9   : > { %v1240_v18 = vmax.f32 %v1208_v15, 0.0  ;;  %v1040_v19 = vpop.f32.mrf.mxu2  ;;  %v857_v20 = vpop.f32.mrf.mxu0 }
  0xda   : > { %v946_v22 = vpop.f32.mrf.mxu1 }
  0xdb   : > { %1272 = vst [vmem:[%s2051_s16 + $0x28] sm:$0xff] %v1240_v18  ;;  %v947_v23 = vadd.f32 %v946_v22, %v857_v20 }
  0xdc   : > { %896 = vmatmul.bf16.gmra.mxu0 %v1559_v17 }
  0xdd   : > { %v1036_v24 = vadd.f32 %v1035_v56, %v947_v23  ;;  %985 = vmatmul.bf16.gmra.mxu1 %v1563_v21 }
  0xdf   : > { %v1209_v25 = vadd.f32 %v2039_v7, %v1036_v24  ;;  %v2097_v26 = vpop.f32.mrf.mxu3 }
  0xe1   : > { %v1241_v30 = vmax.f32 %v1209_v25, 0.0  ;;  %v1042_v31 = vpop.f32.mrf.mxu2  ;;  %v859_v32 = vpop.f32.mrf.mxu0 }
  0xe2   : > { %v948_v33 = vpop.f32.mrf.mxu1 }
  0xe3   : > { %1273 = vst [vmem:[%s2051_s16 + $0x30] sm:$0xff] %v1241_v30  ;;  %v949_v35 = vadd.f32 %v948_v33, %v859_v32 }
  0xe5   : > { %v1038_v36 = vadd.f32 %v1037_v3, %v949_v35 }
  0xe6   : > { %1701 = vmatmul.msk.bf16.gmra.mxu2 %vm784_vm0, %v1591_v34 }
  0xe7   : > { %v1210_v37 = vadd.f32 %v2039_v7, %v1038_v36  ;;  %v2104_v39 = vpop.f32.mrf.mxu3 }
  0xe9   : > { %v1242_v40 = vmax.f32 %v1210_v37, 0.0  ;;  %v1045_v41 = vpop.f32.mrf.mxu2  ;;  %v862_v42 = vpop.f32.mrf.mxu0 }
  0xea   : > { %v951_v43 = vpop.f32.mrf.mxu1 }
  0xeb   : > { %1274 = vst [vmem:[%s2051_s16 + $0x38] sm:$0xff] %v1242_v40  ;;  %v952_v44 = vadd.f32 %v951_v43, %v862_v42 }
  0xed   : > { %v1041_v45 = vadd.f32 %v1040_v19, %v952_v44 }
  0xef   : > { %v1211_v46 = vadd.f32 %v2039_v7, %v1041_v45  ;;  %v991_v47 = vpop.f32.mrf.mxu3 }
  0xf0   : > { %v2109_v48 = vadd.f32 %v991_v47, %v2044_v10 }
  0xf1   : > { %v1243_v49 = vmax.f32 %v1211_v46, 0.0  ;;  %v1047_v50 = vpop.f32.mrf.mxu2  ;;  %v864_v51 = vpop.f32.mrf.mxu0 }
  0xf2   : > { %v953_v52 = vpop.f32.mrf.mxu1 }
  0xf3   : > { %1275 = vst [vmem:[%s2051_s16 + $0x40] sm:$0xff] %v1243_v49  ;;  %v954_v54 = vadd.f32 %v953_v52, %v864_v51 }
  0xf5   : > { %v1043_v55 = vadd.f32 %v1042_v31, %v954_v54 }
  0xf7   : > { %v1212_v56 = vadd.f32 %v2039_v7, %v1043_v55  ;;  %v993_v57 = vpop.f32.mrf.mxu3 }
  0xf8   : > { %v2114_v58 = vadd.f32 %v993_v57, %v2062_v27 }
  0xf9   : > { %v1244_v59 = vmax.f32 %v1212_v56, 0.0  ;;  %v1050_v60 = vpop.f32.mrf.mxu2  ;;  %v867_v61 = vpop.f32.mrf.mxu0 }
  0xfa   : > { %v956_v62 = vpop.f32.mrf.mxu1 }
  0xfb   : > { %1276 = vst [vmem:[%s2051_s16 + $0x48] sm:$0xff] %v1244_v59  ;;  %v957_v10 = vadd.f32 %v956_v62, %v867_v61 }
  0xfd   : > { %v1046_v0 = vadd.f32 %v1045_v41, %v957_v10 }
  0xff   : > { %v1213_v1 = vadd.f32 %v2039_v7, %v1046_v0  ;;  %v996_v2 = vpop.f32.mrf.mxu3 }
 0x100   : > { %v2119_v3 = vadd.f32 %v996_v2, %v2067_v38 }
 0x101   : > { %v1245_v4 = vmax.f32 %v1213_v1, 0.0  ;;  %v1052_v5 = vpop.f32.mrf.mxu2  ;;  %v869_v6 = vpop.f32.mrf.mxu0 }
 0x102   : > { %v958_v8 = vpop.f32.mrf.mxu1 }
 0x103   : > { %1277 = vst [vmem:[%s2051_s16 + $0x50] sm:$0xff] %v1245_v4  ;;  %v959_v27 = vadd.f32 %v958_v8, %v869_v6 }
 0x105   : > { %v1048_v9 = vadd.f32 %v1047_v50, %v959_v27 }
 0x107   : > { %v1214_v11 = vadd.f32 %v2039_v7, %v1048_v9  ;;  %v998_v12 = vpop.f32.mrf.mxu3 }
 0x108   : > { %v2124_v13 = vadd.f32 %v998_v12, %v2078_v53 }
 0x109   : > { %v1246_v14 = vmax.f32 %v1214_v11, 0.0  ;;  %v1055_v15 = vpop.f32.mrf.mxu2  ;;  %v872_v17 = vpop.f32.mrf.mxu0 }
 0x10a   : > { %v961_v18 = vpop.f32.mrf.mxu1 }
 0x10b   : > { %1278 = vst [vmem:[%s2051_s16 + $0x58] sm:$0xff] %v1246_v14  ;;  %v962_v38 = vadd.f32 %v961_v18, %v872_v17 }
 0x10d   : > { %v1051_v19 = vadd.f32 %v1050_v60, %v962_v38 }
 0x10f   : > { %v1215_v20 = vadd.f32 %v2039_v7, %v1051_v19  ;;  %v1001_v21 = vpop.f32.mrf.mxu3 }
 0x110   : > { %v1002_v57 = vadd.f32 %v1001_v21, %v2082_v63 }
 0x111   : > { %v1247_v22 = vmax.f32 %v1215_v20, 0.0  ;;  %v1057_v23 = vpop.f32.mrf.mxu2  ;;  %v874_v24 = vpop.f32.mrf.mxu0 }
 0x112   : > { %v963_v25 = vpop.f32.mrf.mxu1 }
 0x113   : > { %1279 = vst [vmem:[%s2051_s16 + $0x60] sm:$0xff] %v1247_v22  ;;  %v964_v28 = vadd.f32 %v963_v25, %v874_v24 }
 0x115   : > { %v1053_v29 = vadd.f32 %v1052_v5, %v964_v28 }
 0x117   : > { %v1216_v53 = vadd.f32 %v2039_v7, %v1053_v29  ;;  %v1003_v30 = vpop.f32.mrf.mxu3 }
 0x118   : > { %v1004_v8 = vadd.f32 %v1003_v30, %v2093_v16 }
 0x119   : > { %v1248_v31 = vmax.f32 %v1216_v53, 0.0  ;;  %v1060_v32 = vpop.f32.mrf.mxu2  ;;  %v877_v33 = vpop.f32.mrf.mxu0 }
 0x11a   : > { %v966_v34 = vpop.f32.mrf.mxu1 }
 0x11b   : > { %1280 = vst [vmem:[%s2051_s16 + $0x68] sm:$0xff] %v1248_v31  ;;  %v967_v35 = vadd.f32 %v966_v34, %v877_v33 }
 0x11d   : > { %v1056_v36 = vadd.f32 %v1055_v15, %v967_v35 }
 0x11f   : > { %v1217_v37 = vadd.f32 %v2039_v7, %v1056_v36  ;;  %v1006_v40 = vpop.f32.mrf.mxu3 }
 0x120   : > { %v1007_v20 = vadd.f32 %v1006_v40, %v2097_v26 }
 0x121   : > { %v1249_v41 = vmax.f32 %v1217_v37, 0.0  ;;  %v1062_v42 = vpop.f32.mrf.mxu2  ;;  %v879_v43 = vpop.f32.mrf.mxu0 }
 0x122   : > { %v968_v44 = vpop.f32.mrf.mxu1 }
 0x123   : > { %1281 = vst [vmem:[%s2051_s16 + $0x70] sm:$0xff] %v1249_v41  ;;  %v969_v45 = vadd.f32 %v968_v44, %v879_v43 }
 0x125   : > { %v1058_v46 = vadd.f32 %v1057_v23, %v969_v45 }
 0x127   : > { %v1218_v47 = vadd.f32 %v2039_v7, %v1058_v46  ;;  %v1008_v49 = vpop.f32.mrf.mxu3 }
 0x129   : > { %v1250_v50 = vmax.f32 %v1218_v47, 0.0  ;;  %v1065_v51 = vpop.f32.mrf.mxu2  ;;  %v882_v52 = vpop.f32.mrf.mxu0 }
 0x12a   : > { %v971_v54 = vpop.f32.mrf.mxu1 }
 0x12b   : > { %1282 = vst [vmem:[%s2051_s16 + $0x78] sm:$0xff] %v1250_v50  ;;  %v972_v55 = vadd.f32 %v971_v54, %v882_v52 }
 0x12d   : > { %v1061_v56 = vadd.f32 %v1060_v32, %v972_v55  ;;  %v1009_v32 = vadd.f32 %v1008_v49, %v2104_v39 }
 0x12f   : > { %v1219_v59 = vadd.f32 %v2039_v7, %v1061_v56  ;;  %v1090_v60 = vpop.f32.mrf.mxu3 }
 0x130   : > { %v1091_v61 = vadd.f32 %v1090_v60, %v1002_v57 }
 0x131   : > { %v1251_v62 = vmax.f32 %v1219_v59, 0.0  ;;  %v1067_v10 = vpop.f32.mrf.mxu2  ;;  %v884_v0 = vpop.f32.mrf.mxu0 }
 0x132   : > { %v1231_v1 = vadd.f32 %v2039_v7, %v1091_v61  ;;  %v973_v2 = vpop.f32.mrf.mxu1 }
 0x133   : > { %1283 = vst [vmem:[%s2051_s16 + $0x80] sm:$0xff] %v1251_v62  ;;  %v974_v4 = vadd.f32 %v973_v2, %v884_v0 }
 0x134   : > { %v1263_v5 = vmax.f32 %v1231_v1, 0.0 }
 0x135   : > { %v1063_v6 = vadd.f32 %v1062_v42, %v974_v4 }
 0x136   : > { %1295 = vst [vmem:[%s2051_s16 + $0xe0] sm:$0xff] %v1263_v5 }
 0x137   : > { %v1220_v63 = vadd.f32 %v2039_v7, %v1063_v6  ;;  %v1092_v27 = vpop.f32.mrf.mxu3 }
 0x138   : > { %v1093_v9 = vadd.f32 %v1092_v27, %v1004_v8 }
 0x139   : > { %v1252_v11 = vmax.f32 %v1220_v63, 0.0  ;;  %v1070_v12 = vpop.f32.mrf.mxu2  ;;  %v887_v14 = vpop.f32.mrf.mxu0 }
 0x13a   : > { %v1232_v15 = vadd.f32 %v2039_v7, %v1093_v9  ;;  %v976_v17 = vpop.f32.mrf.mxu1 }
 0x13b   : > { %1284 = vst [vmem:[%s2051_s16 + $0x88] sm:$0xff] %v1252_v11  ;;  %v977_v18 = vadd.f32 %v976_v17, %v887_v14 }
 0x13c   : > { %v1264_v38 = vmax.f32 %v1232_v15, 0.0 }
 0x13d   : > { %v1066_v19 = vadd.f32 %v1065_v51, %v977_v18 }
 0x13e   : > { %1296 = vst [vmem:[%s2051_s16 + $0xe8] sm:$0xff] %v1264_v38 }
 0x13f   : > { %v1221_v16 = vadd.f32 %v2039_v7, %v1066_v19  ;;  %v1095_v21 = vpop.f32.mrf.mxu3 }
 0x140   : > { %v1096_v22 = vadd.f32 %v1095_v21, %v1007_v20 }
 0x141   : > { %v1253_v23 = vmax.f32 %v1221_v16, 0.0  ;;  %v1072_v24 = vpop.f32.mrf.mxu2  ;;  %v889_v25 = vpop.f32.mrf.mxu0 }
 0x142   : > { %v1233_v28 = vadd.f32 %v2039_v7, %v1096_v22  ;;  %v978_v29 = vpop.f32.mrf.mxu1 }
 0x143   : > { %1285 = vst [vmem:[%s2051_s16 + $0x90] sm:$0xff] %v1253_v23  ;;  %v979_v53 = vadd.f32 %v978_v29, %v889_v25 }
 0x144   : > { %v1265_v30 = vmax.f32 %v1233_v28, 0.0 }
 0x145   : > { %v1068_v31 = vadd.f32 %v1067_v10, %v979_v53 }
 0x146   : > { %1297 = vst [vmem:[%s2051_s16 + $0xf0] sm:$0xff] %v1265_v30 }
 0x147   : > { %v1222_v26 = vadd.f32 %v2039_v7, %v1068_v31  ;;  %v1097_v33 = vpop.f32.mrf.mxu3 }
 0x148   : > { %v1098_v34 = vadd.f32 %v1097_v33, %v1009_v32 }
 0x149   : > { %v1254_v35 = vmax.f32 %v1222_v26, 0.0  ;;  %v1075_v36 = vpop.f32.mrf.mxu2  ;;  %v892_v37 = vpop.f32.mrf.mxu0 }
 0x14a   : > { %v1234_v40 = vadd.f32 %v2039_v7, %v1098_v34  ;;  %v981_v41 = vpop.f32.mrf.mxu1 }
 0x14b   : > { %1286 = vst [vmem:[%s2051_s16 + $0x98] sm:$0xff] %v1254_v35  ;;  %v982_v42 = vadd.f32 %v981_v41, %v892_v37 }
 0x14c   : > { %v1266_v43 = vmax.f32 %v1234_v40, 0.0 }
 0x14d   : > { %v1071_v44 = vadd.f32 %v1070_v12, %v982_v42 }
 0x14e   : > { %1298 = vst [vmem:[%s2051_s16 + $0xf8] sm:$0xff] %v1266_v43 }
 0x14f   : > { %v1223_v39 = vadd.f32 %v2039_v7, %v1071_v44 }
 0x151   : > { %v1255_v45 = vmax.f32 %v1223_v39, 0.0  ;;  %v1077_v46 = vpop.f32.mrf.mxu2  ;;  %v894_v47 = vpop.f32.mrf.mxu0 }
 0x152   : > { %v983_v49 = vpop.f32.mrf.mxu1 }
 0x153   : > { %1287 = vst [vmem:[%s2051_s16 + $0xa0] sm:$0xff] %v1255_v45  ;;  %v984_v50 = vadd.f32 %v983_v49, %v894_v47 }
 0x155   : > { %v1073_v51 = vadd.f32 %v1072_v24, %v984_v50 }
 0x157   : > { %v1224_v52 = vadd.f32 %v2039_v7, %v1073_v51 }
 0x159   : > { %v1256_v54 = vmax.f32 %v1224_v52, 0.0  ;;  %v1080_v55 = vpop.f32.mrf.mxu2  ;;  %v897_v56 = vpop.f32.mrf.mxu0 }
 0x15a   : > { %v1081_v57 = vadd.f32 %v1080_v55, %v2109_v48  ;;  %v986_v59 = vpop.f32.mrf.mxu1 }
 0x15b   : > { %1288 = vst [vmem:[%s2051_s16 + $0xa8] sm:$0xff] %v1256_v54  ;;  %v987_v60 = vadd.f32 %v986_v59, %v897_v56 }
 0x15c   : > { %v1227_v61 = vadd.f32 %v2039_v7, %v1081_v57 }
 0x15d   : > { %v1076_v62 = vadd.f32 %v1075_v36, %v987_v60 }
 0x15e   : > { %v1259_v10 = vmax.f32 %v1227_v61, 0.0 }
 0x15f   : > { %v1225_v0 = vadd.f32 %v2039_v7, %v1076_v62 }
 0x160   : > { %1291 = vst [vmem:[%s2051_s16 + $0xc0] sm:$0xff] %v1259_v10 }
 0x161   : > { %v1257_v1 = vmax.f32 %v1225_v0, 0.0  ;;  %v1082_v2 = vpop.f32.mrf.mxu2  ;;  %v899_v4 = vpop.f32.mrf.mxu0 }
 0x162   : > { %v1083_v5 = vadd.f32 %v1082_v2, %v2114_v58  ;;  %v988_v6 = vpop.f32.mrf.mxu1 }
 0x163   : > { %1289 = vst [vmem:[%s2051_s16 + $0xb0] sm:$0xff] %v1257_v1  ;;  %v989_v48 = vadd.f32 %v988_v6, %v899_v4 }
 0x164   : > { %v1228_v8 = vadd.f32 %v2039_v7, %v1083_v5 }
 0x165   : > { %v1078_v63 = vadd.f32 %v1077_v46, %v989_v48 }
 0x166   : > { %v1260_v27 = vmax.f32 %v1228_v8, 0.0 }
 0x167   : > { %v1226_v9 = vadd.f32 %v2039_v7, %v1078_v63 }
 0x168   : > { %1292 = vst [vmem:[%s2051_s16 + $0xc8] sm:$0xff] %v1260_v27 }
 0x169   : > { %v1258_v11 = vmax.f32 %v1226_v9, 0.0  ;;  %v1085_v12 = vpop.f32.mrf.mxu2 }
 0x16a   : > { %v1086_v14 = vadd.f32 %v1085_v12, %v2119_v3 }
 0x16b   : > { %1290 = vst [vmem:[%s2051_s16 + $0xb8] sm:$0xff] %v1258_v11 }
 0x16c   : > { %v1229_v15 = vadd.f32 %v2039_v7, %v1086_v14 }
 0x16e   : > { %v1261_v17 = vmax.f32 %v1229_v15, 0.0 }
 0x170   : > { %1293 = vst [vmem:[%s2051_s16 + $0xd0] sm:$0xff] %v1261_v17 }
 0x171   : > { %v1087_v58 = vpop.f32.mrf.mxu2 }
 0x172   : > { %v1088_v18 = vadd.f32 %v1087_v58, %v2124_v13 }
 0x174   : > { %v1230_v38 = vadd.f32 %v2039_v7, %v1088_v18 }
 0x176   : > { %v1262_v19 = vmax.f32 %v1230_v38, 0.0 }
 0x178   : > { %1294 = vst [vmem:[%s2051_s16 + $0xd8] sm:$0xff] %v1262_v19 }
 0x179 PF: > { %s13_s14 = sadd.s32 1, %s1838_s14   ;;  %s2188_s12 = smov %s1834_s13 }
 0x17a   : > { %p10_p5 = scmp.ge.s32.totalorder %s13_s14, 4   ;;  %s2189_s13 = smov %s2191_s15 }
 0x17c   :  { %12 = sbr.rel (!%p10_p5) target bundleno = 2 (0x2), region = 76 }

</bundles_post_ra>
